<compile_context>
chip_gen: v5e
topology: v5e:2x2
jax: 0.10.0
libtpu: 0.0.40
codegen_flags: <defaults>
</compile_context>

<pallas_src>
import numpy as np
import jax
import jax.numpy as jnp
from jax import lax
from jax.experimental import pallas as pl
from jax.experimental.pallas import tpu as pltpu

# ----------------------------- configuration --------------------------------
B, EMB_CH, H, W = 2, 4, 16, 16
C = EMB_CH                     # NRN dim == n_fea_out == emb_ch
N_FEA_IN = 2 * C               # conv1 input = cat([fea, fea_in])
M = 16                         # n_fea_middle (divisible by groups)
GROUPS = N_FEA_IN              # 8
CPG = M // GROUPS              # 2 channels per group of depth_conv
L = 8
HIDDEN = [256, 256, 256]       # module-default hidden_list
NPIX = H * W                   # pixels per image
N = B * NPIX
MLP_IN_DIM = C * 9 + 2 + 4 * L + 2     # 72 (full torch MLP input width)
UNF = C * 9                            # 36 live (non-constant) input columns
CPAD = 8                               # fea channels padded to one sublane tile


# ------------------------------- fused kernel --------------------------------
def nrda_fused_kernel(fea_ref, mask_ref, bias_ref, w1_ref, w2_ref, w3_ref,
                      wo_ref, wc_ref, wdw_ref, w2c_ref, out_ref):
    f32 = jnp.float32
    bf16 = jnp.bfloat16

    fea8 = fea_ref[...]                 # (8, L): rows 0..C-1 real, rest zero
    maskf = mask_ref[...]               # (25, L) combined row & col validity
    bias = bias_ref[...]                # (256, 8) packed bias slab
    lanes = fea8.shape[-1]              # NPIX or B*NPIX (batch fused in lanes)

    def tap(x, di, dj):
        # x sampled at spatial offset (di, dj), zero outside its own image.
        # pltpu.roll (XLU) + one VPU multiply by the precomputed validity mask;
        # the mask also cancels every wrap / cross-image leak of the roll.
        delta = di * W + dj
        if delta == 0:
            return x
        t = (di + 2) * 5 + (dj + 2)
        rolled = pltpu.roll(x, shift=(-delta) % lanes, axis=1)
        return rolled * maskf[t:t + 1, :]

    # ---- feat_unfold (3x3, pad=1): 8-sublane-aligned taps -> (72, L) -------
    unf = jnp.concatenate([tap(fea8, di, dj)
                           for di in (-1, 0, 1) for dj in (-1, 0, 1)], axis=0)

    # ---- unpack the bias slab ----------------------------------------------
    b1 = bias[:, 0:1]
    b2 = bias[:, 1:2]
    b3 = bias[:, 2:3]
    bo = bias[0:C, 3:4]
    bc = bias[0:M, 4:5]
    b2c = bias[0:C, 5:6]

    # ---- imnet MLP (rel_coord dropped, rel_cell folded into b1) ------------
    # layer 1 / output layer in f32; the two 256x256 hidden layers in bf16
    # operands with f32 MXU accumulation.
    h = jnp.maximum(jnp.dot(w1_ref[...], unf,
                            preferred_element_type=f32) + b1, 0.0)
    h = jnp.maximum(jnp.dot(w2_ref[...], h.astype(bf16),
                            preferred_element_type=f32) + b2, 0.0)
    h = jnp.maximum(jnp.dot(w3_ref[...], h.astype(bf16),
                            preferred_element_type=f32) + b3, 0.0)
    pred = jnp.dot(wo_ref[...], h,
                   preferred_element_type=f32) + bo                # fea_in (C, L)

    # ---- conv1 (1x1) on cat([fea, fea_in]) ---------------------------------
    wc = wc_ref[...]
    x1 = (jnp.dot(wc[:, :C], fea8[:C], preferred_element_type=f32)
          + jnp.dot(wc[:, C:], pred, preferred_element_type=f32)
          + bc)                                                     # (M, L)

    # ---- 5x5 grouped depth_conv: 25 accumulating per-tap (16,16) matmuls ---
    dw = jnp.zeros((M, lanes), f32)
    for di in (-2, -1, 0, 1, 2):
        for dj in (-2, -1, 0, 1, 2):
            t = (di + 2) * 5 + (dj + 2)
            dw = dw + jnp.dot(wdw_ref[t], tap(x1, di, dj),
                              preferred_element_type=f32)

    # ---- conv2 (1x1, depth_conv bias folded in) + residual -----------------
    illu = jnp.dot(w2c_ref[...], dw,
                   preferred_element_type=f32) + b2c                # (C, L)
    out_ref[...] = pred * (illu + 1.0)          # illu_map * fea_in + fea_in


# --------------------------- pallas_call wrapper ------------------------------
def _images_per_grid_step():
    # 2-TensorCore chips (v7x, also v4/v5p): keep a 2-way "parallel" grid so
    # each core gets one image.  Single-TC v5e/v6e: fuse the whole batch into
    # the lane axis (one 512-lane grid step).
    try:
        kind = jax.devices()[0].device_kind.lower()
    except Exception:
        kind = ""
    two_tc = any(s in kind for s in ("v7", "7x", "v4", "v5p"))
    imgs = 1 if two_tc else B
    return imgs if B % imgs == 0 else 1


def nrda_forward(fea_nchw, kp):
    imgs = _images_per_grid_step()
    lanes = imgs * NPIX

    # layout plumbing outside the kernel: channels x (batch-fused pixels),
    # channels zero-padded to one 8-row sublane tile.
    fea_cl = fea_nchw.reshape(B, C, NPIX).transpose(1, 0, 2).reshape(C, B * NPIX)
    fea_cl = jnp.concatenate(
        [fea_cl, jnp.zeros((CPAD - C, B * NPIX), jnp.float32)], axis=0)

    lane_blk = lambda b: (0, b)
    whole2 = lambda b: (0, 0)
    whole3 = lambda b: (0, 0, 0)

    out_cl = pl.pallas_call(
        nrda_fused_kernel,
        out_shape=jax.ShapeDtypeStruct((C, B * NPIX), jnp.float32),
        grid=(B // imgs,),
        in_specs=[
            pl.BlockSpec((CPAD, lanes), lane_blk),           # fea (padded rows)
            pl.BlockSpec((25, lanes), lane_blk),             # per-tap validity masks
            pl.BlockSpec((HIDDEN[0], 8), whole2),            # packed bias slab
            pl.BlockSpec((HIDDEN[0], 9 * 8), whole2),        # MLP layer 1 (f32)
            pl.BlockSpec((HIDDEN[1], HIDDEN[0]), whole2),    # MLP layer 2 (bf16)
            pl.BlockSpec((HIDDEN[2], HIDDEN[1]), whole2),    # MLP layer 3 (bf16)
            pl.BlockSpec((C, HIDDEN[2]), whole2),            # MLP output layer
            pl.BlockSpec((M, 2 * C), whole2),                # conv1 (1x1)
            pl.BlockSpec((25, M, M), whole3),                # 5x5 grouped depth_conv
            pl.BlockSpec((C, M), whole2),                    # conv2 (1x1)
        ],
        out_specs=pl.BlockSpec((C, lanes), lane_blk),
        compiler_params=pltpu.CompilerParams(
            dimension_semantics=("parallel",),
            vmem_limit_bytes=8 * 1024 * 1024),
        cost_estimate=pl.CostEstimate(flops=161_000_000,
                                      transcendentals=0,
                                      bytes_accessed=450_000),
    )(fea_cl, kp["mask"], kp["bias"], kp["w1t"], kp["w2t"], kp["w3t"],
      kp["wot"], kp["wc"], kp["wdw"], kp["w2c"])

    return out_cl.reshape(C, B, NPIX).transpose(1, 0, 2).reshape(B, C, H, W)


# --------------------------- pure-JAX reference -------------------------------
def reference_forward(fea_nchw, p, bf16_hidden=False):
    hp = lax.Precision.HIGHEST
    pad = jnp.pad(fea_nchw, ((0, 0), (0, 0), (1, 1), (1, 1)))
    unf = jnp.stack([pad[:, :, ki:ki + H, kj:kj + W]
                     for ki in range(3) for kj in range(3)], axis=2)  # (B,C,9,H,W)
    q_feat = unf.reshape(B, C * 9, H * W).transpose(0, 2, 1)
    rel_coord = jnp.zeros((B, H * W, 2 + 4 * L), jnp.float32)
    rel_cell = jnp.concatenate(
        [jnp.full((B, H * W, 1), (2.0 / H) * H, jnp.float32),
         jnp.full((B, H * W, 1), (2.0 / W) * W, jnp.float32)], axis=-1)
    x = jnp.concatenate([q_feat, rel_coord, rel_cell], axis=-1).reshape(N, -1)

    hdn = x
    layers = [(p["w1m"], p["b1m"]), (p["w2m"], p["b2m"]), (p["w3m"], p["b3m"])]
    for li, (wm, bm) in enumerate(layers):
        if bf16_hidden and li >= 1:
            hdn = jnp.dot(hdn.astype(jnp.bfloat16), wm.astype(jnp.bfloat16),
                          preferred_element_type=jnp.float32) + bm
        else:
            hdn = jnp.dot(hdn, wm, precision=hp) + bm
        hdn = jnp.maximum(hdn, 0.0)
    pred = jnp.dot(hdn, p["wom"], precision=hp) + p["bom"]

    fea_in = pred.reshape(B, H, W, C).transpose(0, 3, 1, 2)
    inp = jnp.concatenate([fea_nchw, fea_in], axis=1)
    dn = ("NCHW", "OIHW", "NCHW")
    x1 = lax.conv_general_dilated(inp, p["w_conv1"], (1, 1), "VALID",
                                  dimension_numbers=dn, precision=hp) \
        + p["b_conv1"][None, :, None, None]
    dw = lax.conv_general_dilated(x1, p["w_dw"], (1, 1), ((2, 2), (2, 2)),
                                  dimension_numbers=dn,
                                  feature_group_count=GROUPS, precision=hp) \
        + p["b_dw"][None, :, None, None]
    illu = lax.conv_general_dilated(dw, p["w_conv2"], (1, 1), "VALID",
                                    dimension_numbers=dn, precision=hp) \
        + p["b_conv2"][None, :, None, None]
    return illu * fea_in + fea_in


# --------------------------------- params -------------------------------------
def make_params():
    keys = jax.random.split(jax.random.PRNGKey(1), 14)

    def rnd(k, shape, s=0.1):
        return jax.random.normal(k, shape, jnp.float32) * s

    p = {
        "w1m": rnd(keys[0], (MLP_IN_DIM, HIDDEN[0])),
        "b1m": rnd(keys[1], (HIDDEN[0],), 0.02),
        "w2m": rnd(keys[2], (HIDDEN[0], HIDDEN[1])),
        "b2m": rnd(keys[3], (HIDDEN[1],), 0.02),
        "w3m": rnd(keys[4], (HIDDEN[1], HIDDEN[2])),
        "b3m": rnd(keys[5], (HIDDEN[2],), 0.02),
        "wom": rnd(keys[6], (HIDDEN[2], C)),
        "bom": rnd(keys[7], (C,), 0.02),
        "w_conv1": rnd(keys[8], (M, 2 * C, 1, 1)),
        "b_conv1": rnd(keys[9], (M,), 0.02),
        "w_dw": rnd(keys[10], (M, CPG, 5, 5)),
        "b_dw": rnd(keys[11], (M,), 0.02),
        "w_conv2": rnd(keys[12], (C, M, 1, 1)),
        "b_conv2": rnd(keys[13], (C,), 0.02),
    }

    assert HIDDEN[0] == HIDDEN[1] == HIDDEN[2]
    H0 = HIDDEN[0]
    w1m = np.asarray(p["w1m"], np.float32)                       # (72, 256)

    # GUARD (correctness concern from review): this fold assumes grid_sample
    # stays commented out upstream, so rel_coord == 0 exactly and all four
    # local-ensemble branches are identical with weights 1/4.  The 34
    # rel_coord weight rows are dropped; the 2 constant rel_cell rows (value
    # 2.0 each) are folded into the first-layer bias.
    w1_pad = np.zeros((9 * 8, H0), np.float32)   # taps padded to 8 sublanes
    for k in range(9):
        for c in range(C):
            w1_pad[k * 8 + c] = w1m[c * 9 + k]
    rc = 2.0
    b1_eff = (np.asarray(p["b1m"], np.float32)
              + w1m[UNF + 2 + 4 * L] * rc
              + w1m[UNF + 2 + 4 * L + 1] * rc)

    # Combined row-AND-col validity mask for every (di, dj) of the 5x5 window,
    # laid out over the batch-fused lane axis (correct for both grid layouts:
    # it only depends on the pixel position within its own image).
    pidx = np.arange(B * NPIX)
    ii = (pidx % NPIX) // W
    jj = pidx % W
    mask = np.zeros((25, B * NPIX), np.float32)
    for di in range(-2, 3):
        for dj in range(-2, 3):
            t = (di + 2) * 5 + (dj + 2)
            mask[t] = ((ii + di >= 0) & (ii + di < H) &
                       (jj + dj >= 0) & (jj + dj < W)).astype(np.float32)

    # Grouped 5x5 depth_conv as 25 per-tap dense (out, in) blocks; its bias is
    # folded into conv2's bias.
    w_dw = np.asarray(p["w_dw"], np.float32)                     # (M, CPG, 5, 5)
    wdw = np.zeros((25, M, M), np.float32)
    for o in range(M):
        g = o // CPG
        for l_ in range(CPG):
            for ki in range(5):
                for kj in range(5):
                    wdw[ki * 5 + kj, o, g * CPG + l_] = w_dw[o, l_, ki, kj]

    w2c = np.asarray(p["w_conv2"], np.float32)[:, :, 0, 0]       # (C, M)
    b2c_eff = (w2c @ np.asarray(p["b_dw"], np.float32)
               + np.asarray(p["b_conv2"], np.float32))

    # Packed lane-dense bias slab: one (256, 8) block instead of six narrow
    # (n, 1) inputs.
    bias = np.zeros((H0, 8), np.float32)
    bias[:, 0] = b1_eff
    bias[:, 1] = np.asarray(p["b2m"], np.float32)
    bias[:, 2] = np.asarray(p["b3m"], np.float32)
    bias[0:C, 3] = np.asarray(p["bom"], np.float32)
    bias[0:M, 4] = np.asarray(p["b_conv1"], np.float32)
    bias[0:C, 5] = b2c_eff

    kp = {
        "mask": jnp.asarray(mask),
        "bias": jnp.asarray(bias),
        "w1t": jnp.asarray(np.ascontiguousarray(w1_pad.T)),              # (256, 72) f32
        "w2t": jnp.asarray(np.asarray(p["w2m"], np.float32).T,
                           dtype=jnp.bfloat16),                          # (256, 256) bf16
        "w3t": jnp.asarray(np.asarray(p["w3m"], np.float32).T,
                           dtype=jnp.bfloat16),                          # (256, 256) bf16
        "wot": jnp.asarray(np.asarray(p["wom"], np.float32).T),          # (4, 256) f32
        "wc": jnp.asarray(np.asarray(p["w_conv1"], np.float32)[:, :, 0, 0]),  # (16, 8)
        "wdw": jnp.asarray(wdw),                                         # (25, 16, 16)
        "w2c": jnp.asarray(w2c),                                         # (4, 16)
    }
    return p, kp


# ----------------------------------- main --------------------------------------
if __name__ == "__main__":
    fea = jax.random.normal(jax.random.PRNGKey(0), (B, EMB_CH, H, W),
                            jnp.float32)
    p, kp = make_params()

    fwd = jax.jit(nrda_forward)
    out = jax.block_until_ready(fwd(fea, kp))
    assert out.shape == (B, C, H, W)

    # Tight check: reference with the same bf16 rounding on the two hidden
    # layers (validates the kernel math itself).
    ref_bf = reference_forward(fea, p, bf16_hidden=True)
    err_tight = float(jnp.max(jnp.abs(out - ref_bf)))
    assert err_tight < 5e-3, f"kernel vs bf16-matched reference: {err_tight}"

    # Loose check: pure-f32 reference (validates that the bf16 hidden layers,
    # with f32 accumulation, stay within ~1e-2 absolute of full precision).
    ref_f32 = reference_forward(fea, p, bf16_hidden=False)
    err_f32 = float(jnp.max(jnp.abs(out - ref_f32)))
    assert err_f32 < 3e-2, f"kernel vs f32 reference: {err_f32}"

    print("KERNEL_OK")
</pallas_src>

<mosaic_0001>
module attributes {stable_mosaic.version = 11 : i64} {
  func.func @nrda_fused_kernel(%arg0: i32, %arg1: memref<8x512xf32, #tpu.memory_space<vmem>>, %arg2: memref<25x512xf32, #tpu.memory_space<vmem>>, %arg3: memref<256x8xf32, #tpu.memory_space<vmem>>, %arg4: memref<256x72xf32, #tpu.memory_space<vmem>>, %arg5: memref<256x256xbf16, #tpu.memory_space<vmem>>, %arg6: memref<256x256xbf16, #tpu.memory_space<vmem>>, %arg7: memref<4x256xf32, #tpu.memory_space<vmem>>, %arg8: memref<16x8xf32, #tpu.memory_space<vmem>>, %arg9: memref<25x16x16xf32, #tpu.memory_space<vmem>>, %arg10: memref<4x16xf32, #tpu.memory_space<vmem>>, %arg11: memref<4x512xf32, #tpu.memory_space<vmem>>) attributes {dimension_semantics = [#tpu.dimension_semantics<parallel>], iteration_bounds = array<i64: 1>, scalar_prefetch = 0 : i64, scratch_operands = 0 : i64, tpu.core_type = #tpu.core_type<tc>, window_params = [{transform_indices = @transform_0, window_bounds = array<i64: 8, 512>}, {transform_indices = @transform_1, window_bounds = array<i64: 25, 512>}, {pipeline_mode = #tpu.pipeline_mode<synchronous>, transform_indices = @transform_2, window_bounds = array<i64: 256, 8>}, {pipeline_mode = #tpu.pipeline_mode<synchronous>, transform_indices = @transform_3, window_bounds = array<i64: 256, 72>}, {pipeline_mode = #tpu.pipeline_mode<synchronous>, transform_indices = @transform_4, window_bounds = array<i64: 256, 256>}, {pipeline_mode = #tpu.pipeline_mode<synchronous>, transform_indices = @transform_5, window_bounds = array<i64: 256, 256>}, {pipeline_mode = #tpu.pipeline_mode<synchronous>, transform_indices = @transform_6, window_bounds = array<i64: 4, 256>}, {pipeline_mode = #tpu.pipeline_mode<synchronous>, transform_indices = @transform_7, window_bounds = array<i64: 16, 8>}, {pipeline_mode = #tpu.pipeline_mode<synchronous>, transform_indices = @transform_8, window_bounds = array<i64: 25, 16, 16>}, {pipeline_mode = #tpu.pipeline_mode<synchronous>, transform_indices = @transform_9, window_bounds = array<i64: 4, 16>}, {transform_indices = @transform_10, window_bounds = array<i64: 4, 512>}]} {
    %c0 = arith.constant 0 : index
    %c0_0 = arith.constant 0 : index
    %0 = vector.load %arg1[%c0, %c0_0] : memref<8x512xf32, #tpu.memory_space<vmem>>, vector<8x512xf32>
    %c0_1 = arith.constant 0 : index
    %c0_2 = arith.constant 0 : index
    %1 = vector.load %arg2[%c0_1, %c0_2] : memref<25x512xf32, #tpu.memory_space<vmem>>, vector<25x512xf32>
    %c0_3 = arith.constant 0 : index
    %c0_4 = arith.constant 0 : index
    %2 = vector.load %arg3[%c0_3, %c0_4] : memref<256x8xf32, #tpu.memory_space<vmem>>, vector<256x8xf32>
    %c17_i32 = arith.constant 17 : i32
    %3 = tpu.dynamic_rotate %0 by %c17_i32 dim 1 : vector<8x512xf32>, i32 -> vector<8x512xf32>
    %4 = vector.extract_strided_slice %1 {offsets = [6, 0], sizes = [1, 512], strides = [1, 1]} : vector<25x512xf32> to vector<1x512xf32>
    %5 = vector.broadcast %4 : vector<1x512xf32> to vector<8x512xf32>
    %6 = arith.mulf %3, %5 : vector<8x512xf32>
    %c16_i32 = arith.constant 16 : i32
    %7 = tpu.dynamic_rotate %0 by %c16_i32 dim 1 : vector<8x512xf32>, i32 -> vector<8x512xf32>
    %8 = vector.extract_strided_slice %1 {offsets = [7, 0], sizes = [1, 512], strides = [1, 1]} : vector<25x512xf32> to vector<1x512xf32>
    %9 = vector.broadcast %8 : vector<1x512xf32> to vector<8x512xf32>
    %10 = arith.mulf %7, %9 : vector<8x512xf32>
    %c15_i32 = arith.constant 15 : i32
    %11 = tpu.dynamic_rotate %0 by %c15_i32 dim 1 : vector<8x512xf32>, i32 -> vector<8x512xf32>
    %12 = vector.extract_strided_slice %1 {offsets = [8, 0], sizes = [1, 512], strides = [1, 1]} : vector<25x512xf32> to vector<1x512xf32>
    %13 = vector.broadcast %12 : vector<1x512xf32> to vector<8x512xf32>
    %14 = arith.mulf %11, %13 : vector<8x512xf32>
    %c1_i32 = arith.constant 1 : i32
    %15 = tpu.dynamic_rotate %0 by %c1_i32 dim 1 : vector<8x512xf32>, i32 -> vector<8x512xf32>
    %16 = vector.extract_strided_slice %1 {offsets = [11, 0], sizes = [1, 512], strides = [1, 1]} : vector<25x512xf32> to vector<1x512xf32>
    %17 = vector.broadcast %16 : vector<1x512xf32> to vector<8x512xf32>
    %18 = arith.mulf %15, %17 : vector<8x512xf32>
    %c511_i32 = arith.constant 511 : i32
    %19 = tpu.dynamic_rotate %0 by %c511_i32 dim 1 : vector<8x512xf32>, i32 -> vector<8x512xf32>
    %20 = vector.extract_strided_slice %1 {offsets = [13, 0], sizes = [1, 512], strides = [1, 1]} : vector<25x512xf32> to vector<1x512xf32>
    %21 = vector.broadcast %20 : vector<1x512xf32> to vector<8x512xf32>
    %22 = arith.mulf %19, %21 : vector<8x512xf32>
    %c497_i32 = arith.constant 497 : i32
    %23 = tpu.dynamic_rotate %0 by %c497_i32 dim 1 : vector<8x512xf32>, i32 -> vector<8x512xf32>
    %24 = vector.extract_strided_slice %1 {offsets = [16, 0], sizes = [1, 512], strides = [1, 1]} : vector<25x512xf32> to vector<1x512xf32>
    %25 = vector.broadcast %24 : vector<1x512xf32> to vector<8x512xf32>
    %26 = arith.mulf %23, %25 : vector<8x512xf32>
    %c496_i32 = arith.constant 496 : i32
    %27 = tpu.dynamic_rotate %0 by %c496_i32 dim 1 : vector<8x512xf32>, i32 -> vector<8x512xf32>
    %28 = vector.extract_strided_slice %1 {offsets = [17, 0], sizes = [1, 512], strides = [1, 1]} : vector<25x512xf32> to vector<1x512xf32>
    %29 = vector.broadcast %28 : vector<1x512xf32> to vector<8x512xf32>
    %30 = arith.mulf %27, %29 : vector<8x512xf32>
    %c495_i32 = arith.constant 495 : i32
    %31 = tpu.dynamic_rotate %0 by %c495_i32 dim 1 : vector<8x512xf32>, i32 -> vector<8x512xf32>
    %32 = vector.extract_strided_slice %1 {offsets = [18, 0], sizes = [1, 512], strides = [1, 1]} : vector<25x512xf32> to vector<1x512xf32>
    %33 = vector.broadcast %32 : vector<1x512xf32> to vector<8x512xf32>
    %34 = arith.mulf %31, %33 : vector<8x512xf32>
    %35 = tpu.concatenate %6, %10, %14, %18, %0, %22, %26, %30, %34 in 0 : vector<8x512xf32>, vector<8x512xf32>, vector<8x512xf32>, vector<8x512xf32>, vector<8x512xf32>, vector<8x512xf32>, vector<8x512xf32>, vector<8x512xf32>, vector<8x512xf32> -> vector<72x512xf32>
    %36 = vector.extract_strided_slice %2 {offsets = [0, 0], sizes = [256, 1], strides = [1, 1]} : vector<256x8xf32> to vector<256x1xf32>
    %37 = vector.extract_strided_slice %2 {offsets = [0, 1], sizes = [256, 1], strides = [1, 1]} : vector<256x8xf32> to vector<256x1xf32>
    %38 = vector.extract_strided_slice %2 {offsets = [0, 2], sizes = [256, 1], strides = [1, 1]} : vector<256x8xf32> to vector<256x1xf32>
    %39 = vector.extract_strided_slice %2 {offsets = [0, 3], sizes = [4, 1], strides = [1, 1]} : vector<256x8xf32> to vector<4x1xf32>
    %40 = vector.extract_strided_slice %2 {offsets = [0, 4], sizes = [16, 1], strides = [1, 1]} : vector<256x8xf32> to vector<16x1xf32>
    %41 = vector.extract_strided_slice %2 {offsets = [0, 5], sizes = [4, 1], strides = [1, 1]} : vector<256x8xf32> to vector<4x1xf32>
    %c0_5 = arith.constant 0 : index
    %c0_6 = arith.constant 0 : index
    %42 = vector.load %arg4[%c0_5, %c0_6] : memref<256x72xf32, #tpu.memory_space<vmem>>, vector<256x72xf32>
    %cst = arith.constant dense<0.000000e+00> : vector<256x512xf32>
    %43 = tpu.matmul %42, %35, %cst {dimension_numbers = #tpu.dot_dimension_numbers<[1], [0], [0], [1], [0, 0, 1, 1], [], []>} : vector<256x72xf32>, vector<72x512xf32>, vector<256x512xf32> -> vector<256x512xf32>
    %44 = vector.broadcast %36 : vector<256x1xf32> to vector<256x512xf32>
    %45 = arith.addf %43, %44 : vector<256x512xf32>
    %cst_7 = arith.constant 0.000000e+00 : f32
    %46 = vector.broadcast %cst_7 : f32 to vector<256x512xf32>
    %47 = arith.maximumf %45, %46 : vector<256x512xf32>
    %c0_8 = arith.constant 0 : index
    %c0_9 = arith.constant 0 : index
    %48 = vector.load %arg5[%c0_8, %c0_9] : memref<256x256xbf16, #tpu.memory_space<vmem>>, vector<256x256xbf16>
    %49 = arith.truncf %47 : vector<256x512xf32> to vector<256x512xbf16>
    %cst_10 = arith.constant dense<0.000000e+00> : vector<256x512xf32>
    %50 = tpu.matmul %48, %49, %cst_10 {dimension_numbers = #tpu.dot_dimension_numbers<[1], [0], [0], [1], [0, 0, 1, 1], [], []>} : vector<256x256xbf16>, vector<256x512xbf16>, vector<256x512xf32> -> vector<256x512xf32>
    %51 = vector.broadcast %37 : vector<256x1xf32> to vector<256x512xf32>
    %52 = arith.addf %50, %51 : vector<256x512xf32>
    %cst_11 = arith.constant 0.000000e+00 : f32
    %53 = vector.broadcast %cst_11 : f32 to vector<256x512xf32>
    %54 = arith.maximumf %52, %53 : vector<256x512xf32>
    %c0_12 = arith.constant 0 : index
    %c0_13 = arith.constant 0 : index
    %55 = vector.load %arg6[%c0_12, %c0_13] : memref<256x256xbf16, #tpu.memory_space<vmem>>, vector<256x256xbf16>
    %56 = arith.truncf %54 : vector<256x512xf32> to vector<256x512xbf16>
    %cst_14 = arith.constant dense<0.000000e+00> : vector<256x512xf32>
    %57 = tpu.matmul %55, %56, %cst_14 {dimension_numbers = #tpu.dot_dimension_numbers<[1], [0], [0], [1], [0, 0, 1, 1], [], []>} : vector<256x256xbf16>, vector<256x512xbf16>, vector<256x512xf32> -> vector<256x512xf32>
    %58 = vector.broadcast %38 : vector<256x1xf32> to vector<256x512xf32>
    %59 = arith.addf %57, %58 : vector<256x512xf32>
    %cst_15 = arith.constant 0.000000e+00 : f32
    %60 = vector.broadcast %cst_15 : f32 to vector<256x512xf32>
    %61 = arith.maximumf %59, %60 : vector<256x512xf32>
    %c0_16 = arith.constant 0 : index
    %c0_17 = arith.constant 0 : index
    %62 = vector.load %arg7[%c0_16, %c0_17] : memref<4x256xf32, #tpu.memory_space<vmem>>, vector<4x256xf32>
    %cst_18 = arith.constant dense<0.000000e+00> : vector<4x512xf32>
    %63 = tpu.matmul %62, %61, %cst_18 {dimension_numbers = #tpu.dot_dimension_numbers<[1], [0], [0], [1], [0, 0, 1, 1], [], []>} : vector<4x256xf32>, vector<256x512xf32>, vector<4x512xf32> -> vector<4x512xf32>
    %64 = vector.broadcast %39 : vector<4x1xf32> to vector<4x512xf32>
    %65 = arith.addf %63, %64 : vector<4x512xf32>
    %c0_19 = arith.constant 0 : index
    %c0_20 = arith.constant 0 : index
    %66 = vector.load %arg8[%c0_19, %c0_20] : memref<16x8xf32, #tpu.memory_space<vmem>>, vector<16x8xf32>
    %67 = vector.extract_strided_slice %66 {offsets = [0, 0], sizes = [16, 4], strides = [1, 1]} : vector<16x8xf32> to vector<16x4xf32>
    %68 = vector.extract_strided_slice %0 {offsets = [0, 0], sizes = [4, 512], strides = [1, 1]} : vector<8x512xf32> to vector<4x512xf32>
    %cst_21 = arith.constant dense<0.000000e+00> : vector<16x512xf32>
    %69 = tpu.matmul %67, %68, %cst_21 {dimension_numbers = #tpu.dot_dimension_numbers<[1], [0], [0], [1], [0, 0, 1, 1], [], []>} : vector<16x4xf32>, vector<4x512xf32>, vector<16x512xf32> -> vector<16x512xf32>
    %70 = vector.extract_strided_slice %66 {offsets = [0, 4], sizes = [16, 4], strides = [1, 1]} : vector<16x8xf32> to vector<16x4xf32>
    %cst_22 = arith.constant dense<0.000000e+00> : vector<16x512xf32>
    %71 = tpu.matmul %70, %65, %cst_22 {dimension_numbers = #tpu.dot_dimension_numbers<[1], [0], [0], [1], [0, 0, 1, 1], [], []>} : vector<16x4xf32>, vector<4x512xf32>, vector<16x512xf32> -> vector<16x512xf32>
    %72 = arith.addf %69, %71 : vector<16x512xf32>
    %73 = vector.broadcast %40 : vector<16x1xf32> to vector<16x512xf32>
    %74 = arith.addf %72, %73 : vector<16x512xf32>
    %cst_23 = arith.constant 0.000000e+00 : f32
    %75 = vector.broadcast %cst_23 : f32 to vector<16x512xf32>
    %c0_24 = arith.constant 0 : index
    %c0_25 = arith.constant 0 : index
    %c0_26 = arith.constant 0 : index
    %76 = vector.load %arg9[%c0_24, %c0_25, %c0_26] : memref<25x16x16xf32, #tpu.memory_space<vmem>>, vector<1x16x16xf32>
    %77 = vector.shape_cast %76 : vector<1x16x16xf32> to vector<16x16xf32>
    %c34_i32 = arith.constant 34 : i32
    %78 = tpu.dynamic_rotate %74 by %c34_i32 dim 1 : vector<16x512xf32>, i32 -> vector<16x512xf32>
    %79 = vector.extract_strided_slice %1 {offsets = [0, 0], sizes = [1, 512], strides = [1, 1]} : vector<25x512xf32> to vector<1x512xf32>
    %80 = vector.broadcast %79 : vector<1x512xf32> to vector<16x512xf32>
    %81 = arith.mulf %78, %80 : vector<16x512xf32>
    %cst_27 = arith.constant dense<0.000000e+00> : vector<16x512xf32>
    %82 = tpu.matmul %77, %81, %cst_27 {dimension_numbers = #tpu.dot_dimension_numbers<[1], [0], [0], [1], [0, 0, 1, 1], [], []>} : vector<16x16xf32>, vector<16x512xf32>, vector<16x512xf32> -> vector<16x512xf32>
    %83 = arith.addf %75, %82 : vector<16x512xf32>
    %c1 = arith.constant 1 : index
    %c0_28 = arith.constant 0 : index
    %c0_29 = arith.constant 0 : index
    %84 = vector.load %arg9[%c1, %c0_28, %c0_29] : memref<25x16x16xf32, #tpu.memory_space<vmem>>, vector<1x16x16xf32>
    %85 = vector.shape_cast %84 : vector<1x16x16xf32> to vector<16x16xf32>
    %c33_i32 = arith.constant 33 : i32
    %86 = tpu.dynamic_rotate %74 by %c33_i32 dim 1 : vector<16x512xf32>, i32 -> vector<16x512xf32>
    %87 = vector.extract_strided_slice %1 {offsets = [1, 0], sizes = [1, 512], strides = [1, 1]} : vector<25x512xf32> to vector<1x512xf32>
    %88 = vector.broadcast %87 : vector<1x512xf32> to vector<16x512xf32>
    %89 = arith.mulf %86, %88 : vector<16x512xf32>
    %cst_30 = arith.constant dense<0.000000e+00> : vector<16x512xf32>
    %90 = tpu.matmul %85, %89, %cst_30 {dimension_numbers = #tpu.dot_dimension_numbers<[1], [0], [0], [1], [0, 0, 1, 1], [], []>} : vector<16x16xf32>, vector<16x512xf32>, vector<16x512xf32> -> vector<16x512xf32>
    %91 = arith.addf %83, %90 : vector<16x512xf32>
    %c2 = arith.constant 2 : index
    %c0_31 = arith.constant 0 : index
    %c0_32 = arith.constant 0 : index
    %92 = vector.load %arg9[%c2, %c0_31, %c0_32] : memref<25x16x16xf32, #tpu.memory_space<vmem>>, vector<1x16x16xf32>
    %93 = vector.shape_cast %92 : vector<1x16x16xf32> to vector<16x16xf32>
    %c32_i32 = arith.constant 32 : i32
    %94 = tpu.dynamic_rotate %74 by %c32_i32 dim 1 : vector<16x512xf32>, i32 -> vector<16x512xf32>
    %95 = vector.extract_strided_slice %1 {offsets = [2, 0], sizes = [1, 512], strides = [1, 1]} : vector<25x512xf32> to vector<1x512xf32>
    %96 = vector.broadcast %95 : vector<1x512xf32> to vector<16x512xf32>
    %97 = arith.mulf %94, %96 : vector<16x512xf32>
    %cst_33 = arith.constant dense<0.000000e+00> : vector<16x512xf32>
    %98 = tpu.matmul %93, %97, %cst_33 {dimension_numbers = #tpu.dot_dimension_numbers<[1], [0], [0], [1], [0, 0, 1, 1], [], []>} : vector<16x16xf32>, vector<16x512xf32>, vector<16x512xf32> -> vector<16x512xf32>
    %99 = arith.addf %91, %98 : vector<16x512xf32>
    %c3 = arith.constant 3 : index
    %c0_34 = arith.constant 0 : index
    %c0_35 = arith.constant 0 : index
    %100 = vector.load %arg9[%c3, %c0_34, %c0_35] : memref<25x16x16xf32, #tpu.memory_space<vmem>>, vector<1x16x16xf32>
    %101 = vector.shape_cast %100 : vector<1x16x16xf32> to vector<16x16xf32>
    %c31_i32 = arith.constant 31 : i32
    %102 = tpu.dynamic_rotate %74 by %c31_i32 dim 1 : vector<16x512xf32>, i32 -> vector<16x512xf32>
    %103 = vector.extract_strided_slice %1 {offsets = [3, 0], sizes = [1, 512], strides = [1, 1]} : vector<25x512xf32> to vector<1x512xf32>
    %104 = vector.broadcast %103 : vector<1x512xf32> to vector<16x512xf32>
    %105 = arith.mulf %102, %104 : vector<16x512xf32>
    %cst_36 = arith.constant dense<0.000000e+00> : vector<16x512xf32>
    %106 = tpu.matmul %101, %105, %cst_36 {dimension_numbers = #tpu.dot_dimension_numbers<[1], [0], [0], [1], [0, 0, 1, 1], [], []>} : vector<16x16xf32>, vector<16x512xf32>, vector<16x512xf32> -> vector<16x512xf32>
    %107 = arith.addf %99, %106 : vector<16x512xf32>
    %c4 = arith.constant 4 : index
    %c0_37 = arith.constant 0 : index
    %c0_38 = arith.constant 0 : index
    %108 = vector.load %arg9[%c4, %c0_37, %c0_38] : memref<25x16x16xf32, #tpu.memory_space<vmem>>, vector<1x16x16xf32>
    %109 = vector.shape_cast %108 : vector<1x16x16xf32> to vector<16x16xf32>
    %c30_i32 = arith.constant 30 : i32
    %110 = tpu.dynamic_rotate %74 by %c30_i32 dim 1 : vector<16x512xf32>, i32 -> vector<16x512xf32>
    %111 = vector.extract_strided_slice %1 {offsets = [4, 0], sizes = [1, 512], strides = [1, 1]} : vector<25x512xf32> to vector<1x512xf32>
    %112 = vector.broadcast %111 : vector<1x512xf32> to vector<16x512xf32>
    %113 = arith.mulf %110, %112 : vector<16x512xf32>
    %cst_39 = arith.constant dense<0.000000e+00> : vector<16x512xf32>
    %114 = tpu.matmul %109, %113, %cst_39 {dimension_numbers = #tpu.dot_dimension_numbers<[1], [0], [0], [1], [0, 0, 1, 1], [], []>} : vector<16x16xf32>, vector<16x512xf32>, vector<16x512xf32> -> vector<16x512xf32>
    %115 = arith.addf %107, %114 : vector<16x512xf32>
    %c5 = arith.constant 5 : index
    %c0_40 = arith.constant 0 : index
    %c0_41 = arith.constant 0 : index
    %116 = vector.load %arg9[%c5, %c0_40, %c0_41] : memref<25x16x16xf32, #tpu.memory_space<vmem>>, vector<1x16x16xf32>
    %117 = vector.shape_cast %116 : vector<1x16x16xf32> to vector<16x16xf32>
    %c18_i32 = arith.constant 18 : i32
    %118 = tpu.dynamic_rotate %74 by %c18_i32 dim 1 : vector<16x512xf32>, i32 -> vector<16x512xf32>
    %119 = vector.extract_strided_slice %1 {offsets = [5, 0], sizes = [1, 512], strides = [1, 1]} : vector<25x512xf32> to vector<1x512xf32>
    %120 = vector.broadcast %119 : vector<1x512xf32> to vector<16x512xf32>
    %121 = arith.mulf %118, %120 : vector<16x512xf32>
    %cst_42 = arith.constant dense<0.000000e+00> : vector<16x512xf32>
    %122 = tpu.matmul %117, %121, %cst_42 {dimension_numbers = #tpu.dot_dimension_numbers<[1], [0], [0], [1], [0, 0, 1, 1], [], []>} : vector<16x16xf32>, vector<16x512xf32>, vector<16x512xf32> -> vector<16x512xf32>
    %123 = arith.addf %115, %122 : vector<16x512xf32>
    %c6 = arith.constant 6 : index
    %c0_43 = arith.constant 0 : index
    %c0_44 = arith.constant 0 : index
    %124 = vector.load %arg9[%c6, %c0_43, %c0_44] : memref<25x16x16xf32, #tpu.memory_space<vmem>>, vector<1x16x16xf32>
    %125 = vector.shape_cast %124 : vector<1x16x16xf32> to vector<16x16xf32>
    %c17_i32_45 = arith.constant 17 : i32
    %126 = tpu.dynamic_rotate %74 by %c17_i32_45 dim 1 : vector<16x512xf32>, i32 -> vector<16x512xf32>
    %127 = vector.extract_strided_slice %1 {offsets = [6, 0], sizes = [1, 512], strides = [1, 1]} : vector<25x512xf32> to vector<1x512xf32>
    %128 = vector.broadcast %127 : vector<1x512xf32> to vector<16x512xf32>
    %129 = arith.mulf %126, %128 : vector<16x512xf32>
    %cst_46 = arith.constant dense<0.000000e+00> : vector<16x512xf32>
    %130 = tpu.matmul %125, %129, %cst_46 {dimension_numbers = #tpu.dot_dimension_numbers<[1], [0], [0], [1], [0, 0, 1, 1], [], []>} : vector<16x16xf32>, vector<16x512xf32>, vector<16x512xf32> -> vector<16x512xf32>
    %131 = arith.addf %123, %130 : vector<16x512xf32>
    %c7 = arith.constant 7 : index
    %c0_47 = arith.constant 0 : index
    %c0_48 = arith.constant 0 : index
    %132 = vector.load %arg9[%c7, %c0_47, %c0_48] : memref<25x16x16xf32, #tpu.memory_space<vmem>>, vector<1x16x16xf32>
    %133 = vector.shape_cast %132 : vector<1x16x16xf32> to vector<16x16xf32>
    %c16_i32_49 = arith.constant 16 : i32
    %134 = tpu.dynamic_rotate %74 by %c16_i32_49 dim 1 : vector<16x512xf32>, i32 -> vector<16x512xf32>
    %135 = vector.extract_strided_slice %1 {offsets = [7, 0], sizes = [1, 512], strides = [1, 1]} : vector<25x512xf32> to vector<1x512xf32>
    %136 = vector.broadcast %135 : vector<1x512xf32> to vector<16x512xf32>
    %137 = arith.mulf %134, %136 : vector<16x512xf32>
    %cst_50 = arith.constant dense<0.000000e+00> : vector<16x512xf32>
    %138 = tpu.matmul %133, %137, %cst_50 {dimension_numbers = #tpu.dot_dimension_numbers<[1], [0], [0], [1], [0, 0, 1, 1], [], []>} : vector<16x16xf32>, vector<16x512xf32>, vector<16x512xf32> -> vector<16x512xf32>
    %139 = arith.addf %131, %138 : vector<16x512xf32>
    %c8 = arith.constant 8 : index
    %c0_51 = arith.constant 0 : index
    %c0_52 = arith.constant 0 : index
    %140 = vector.load %arg9[%c8, %c0_51, %c0_52] : memref<25x16x16xf32, #tpu.memory_space<vmem>>, vector<1x16x16xf32>
    %141 = vector.shape_cast %140 : vector<1x16x16xf32> to vector<16x16xf32>
    %c15_i32_53 = arith.constant 15 : i32
    %142 = tpu.dynamic_rotate %74 by %c15_i32_53 dim 1 : vector<16x512xf32>, i32 -> vector<16x512xf32>
    %143 = vector.extract_strided_slice %1 {offsets = [8, 0], sizes = [1, 512], strides = [1, 1]} : vector<25x512xf32> to vector<1x512xf32>
    %144 = vector.broadcast %143 : vector<1x512xf32> to vector<16x512xf32>
    %145 = arith.mulf %142, %144 : vector<16x512xf32>
    %cst_54 = arith.constant dense<0.000000e+00> : vector<16x512xf32>
    %146 = tpu.matmul %141, %145, %cst_54 {dimension_numbers = #tpu.dot_dimension_numbers<[1], [0], [0], [1], [0, 0, 1, 1], [], []>} : vector<16x16xf32>, vector<16x512xf32>, vector<16x512xf32> -> vector<16x512xf32>
    %147 = arith.addf %139, %146 : vector<16x512xf32>
    %c9 = arith.constant 9 : index
    %c0_55 = arith.constant 0 : index
    %c0_56 = arith.constant 0 : index
    %148 = vector.load %arg9[%c9, %c0_55, %c0_56] : memref<25x16x16xf32, #tpu.memory_space<vmem>>, vector<1x16x16xf32>
    %149 = vector.shape_cast %148 : vector<1x16x16xf32> to vector<16x16xf32>
    %c14_i32 = arith.constant 14 : i32
    %150 = tpu.dynamic_rotate %74 by %c14_i32 dim 1 : vector<16x512xf32>, i32 -> vector<16x512xf32>
    %151 = vector.extract_strided_slice %1 {offsets = [9, 0], sizes = [1, 512], strides = [1, 1]} : vector<25x512xf32> to vector<1x512xf32>
    %152 = vector.broadcast %151 : vector<1x512xf32> to vector<16x512xf32>
    %153 = arith.mulf %150, %152 : vector<16x512xf32>
    %cst_57 = arith.constant dense<0.000000e+00> : vector<16x512xf32>
    %154 = tpu.matmul %149, %153, %cst_57 {dimension_numbers = #tpu.dot_dimension_numbers<[1], [0], [0], [1], [0, 0, 1, 1], [], []>} : vector<16x16xf32>, vector<16x512xf32>, vector<16x512xf32> -> vector<16x512xf32>
    %155 = arith.addf %147, %154 : vector<16x512xf32>
    %c10 = arith.constant 10 : index
    %c0_58 = arith.constant 0 : index
    %c0_59 = arith.constant 0 : index
    %156 = vector.load %arg9[%c10, %c0_58, %c0_59] : memref<25x16x16xf32, #tpu.memory_space<vmem>>, vector<1x16x16xf32>
    %157 = vector.shape_cast %156 : vector<1x16x16xf32> to vector<16x16xf32>
    %c2_i32 = arith.constant 2 : i32
    %158 = tpu.dynamic_rotate %74 by %c2_i32 dim 1 : vector<16x512xf32>, i32 -> vector<16x512xf32>
    %159 = vector.extract_strided_slice %1 {offsets = [10, 0], sizes = [1, 512], strides = [1, 1]} : vector<25x512xf32> to vector<1x512xf32>
    %160 = vector.broadcast %159 : vector<1x512xf32> to vector<16x512xf32>
    %161 = arith.mulf %158, %160 : vector<16x512xf32>
    %cst_60 = arith.constant dense<0.000000e+00> : vector<16x512xf32>
    %162 = tpu.matmul %157, %161, %cst_60 {dimension_numbers = #tpu.dot_dimension_numbers<[1], [0], [0], [1], [0, 0, 1, 1], [], []>} : vector<16x16xf32>, vector<16x512xf32>, vector<16x512xf32> -> vector<16x512xf32>
    %163 = arith.addf %155, %162 : vector<16x512xf32>
    %c11 = arith.constant 11 : index
    %c0_61 = arith.constant 0 : index
    %c0_62 = arith.constant 0 : index
    %164 = vector.load %arg9[%c11, %c0_61, %c0_62] : memref<25x16x16xf32, #tpu.memory_space<vmem>>, vector<1x16x16xf32>
    %165 = vector.shape_cast %164 : vector<1x16x16xf32> to vector<16x16xf32>
    %c1_i32_63 = arith.constant 1 : i32
    %166 = tpu.dynamic_rotate %74 by %c1_i32_63 dim 1 : vector<16x512xf32>, i32 -> vector<16x512xf32>
    %167 = vector.extract_strided_slice %1 {offsets = [11, 0], sizes = [1, 512], strides = [1, 1]} : vector<25x512xf32> to vector<1x512xf32>
    %168 = vector.broadcast %167 : vector<1x512xf32> to vector<16x512xf32>
    %169 = arith.mulf %166, %168 : vector<16x512xf32>
    %cst_64 = arith.constant dense<0.000000e+00> : vector<16x512xf32>
    %170 = tpu.matmul %165, %169, %cst_64 {dimension_numbers = #tpu.dot_dimension_numbers<[1], [0], [0], [1], [0, 0, 1, 1], [], []>} : vector<16x16xf32>, vector<16x512xf32>, vector<16x512xf32> -> vector<16x512xf32>
    %171 = arith.addf %163, %170 : vector<16x512xf32>
    %c12 = arith.constant 12 : index
    %c0_65 = arith.constant 0 : index
    %c0_66 = arith.constant 0 : index
    %172 = vector.load %arg9[%c12, %c0_65, %c0_66] : memref<25x16x16xf32, #tpu.memory_space<vmem>>, vector<1x16x16xf32>
    %173 = vector.shape_cast %172 : vector<1x16x16xf32> to vector<16x16xf32>
    %cst_67 = arith.constant dense<0.000000e+00> : vector<16x512xf32>
    %174 = tpu.matmul %173, %74, %cst_67 {dimension_numbers = #tpu.dot_dimension_numbers<[1], [0], [0], [1], [0, 0, 1, 1], [], []>} : vector<16x16xf32>, vector<16x512xf32>, vector<16x512xf32> -> vector<16x512xf32>
    %175 = arith.addf %171, %174 : vector<16x512xf32>
    %c13 = arith.constant 13 : index
    %c0_68 = arith.constant 0 : index
    %c0_69 = arith.constant 0 : index
    %176 = vector.load %arg9[%c13, %c0_68, %c0_69] : memref<25x16x16xf32, #tpu.memory_space<vmem>>, vector<1x16x16xf32>
    %177 = vector.shape_cast %176 : vector<1x16x16xf32> to vector<16x16xf32>
    %c511_i32_70 = arith.constant 511 : i32
    %178 = tpu.dynamic_rotate %74 by %c511_i32_70 dim 1 : vector<16x512xf32>, i32 -> vector<16x512xf32>
    %179 = vector.extract_strided_slice %1 {offsets = [13, 0], sizes = [1, 512], strides = [1, 1]} : vector<25x512xf32> to vector<1x512xf32>
    %180 = vector.broadcast %179 : vector<1x512xf32> to vector<16x512xf32>
    %181 = arith.mulf %178, %180 : vector<16x512xf32>
    %cst_71 = arith.constant dense<0.000000e+00> : vector<16x512xf32>
    %182 = tpu.matmul %177, %181, %cst_71 {dimension_numbers = #tpu.dot_dimension_numbers<[1], [0], [0], [1], [0, 0, 1, 1], [], []>} : vector<16x16xf32>, vector<16x512xf32>, vector<16x512xf32> -> vector<16x512xf32>
    %183 = arith.addf %175, %182 : vector<16x512xf32>
    %c14 = arith.constant 14 : index
    %c0_72 = arith.constant 0 : index
    %c0_73 = arith.constant 0 : index
    %184 = vector.load %arg9[%c14, %c0_72, %c0_73] : memref<25x16x16xf32, #tpu.memory_space<vmem>>, vector<1x16x16xf32>
    %185 = vector.shape_cast %184 : vector<1x16x16xf32> to vector<16x16xf32>
    %c510_i32 = arith.constant 510 : i32
    %186 = tpu.dynamic_rotate %74 by %c510_i32 dim 1 : vector<16x512xf32>, i32 -> vector<16x512xf32>
    %187 = vector.extract_strided_slice %1 {offsets = [14, 0], sizes = [1, 512], strides = [1, 1]} : vector<25x512xf32> to vector<1x512xf32>
    %188 = vector.broadcast %187 : vector<1x512xf32> to vector<16x512xf32>
    %189 = arith.mulf %186, %188 : vector<16x512xf32>
    %cst_74 = arith.constant dense<0.000000e+00> : vector<16x512xf32>
    %190 = tpu.matmul %185, %189, %cst_74 {dimension_numbers = #tpu.dot_dimension_numbers<[1], [0], [0], [1], [0, 0, 1, 1], [], []>} : vector<16x16xf32>, vector<16x512xf32>, vector<16x512xf32> -> vector<16x512xf32>
    %191 = arith.addf %183, %190 : vector<16x512xf32>
    %c15 = arith.constant 15 : index
    %c0_75 = arith.constant 0 : index
    %c0_76 = arith.constant 0 : index
    %192 = vector.load %arg9[%c15, %c0_75, %c0_76] : memref<25x16x16xf32, #tpu.memory_space<vmem>>, vector<1x16x16xf32>
    %193 = vector.shape_cast %192 : vector<1x16x16xf32> to vector<16x16xf32>
    %c498_i32 = arith.constant 498 : i32
    %194 = tpu.dynamic_rotate %74 by %c498_i32 dim 1 : vector<16x512xf32>, i32 -> vector<16x512xf32>
    %195 = vector.extract_strided_slice %1 {offsets = [15, 0], sizes = [1, 512], strides = [1, 1]} : vector<25x512xf32> to vector<1x512xf32>
    %196 = vector.broadcast %195 : vector<1x512xf32> to vector<16x512xf32>
    %197 = arith.mulf %194, %196 : vector<16x512xf32>
    %cst_77 = arith.constant dense<0.000000e+00> : vector<16x512xf32>
    %198 = tpu.matmul %193, %197, %cst_77 {dimension_numbers = #tpu.dot_dimension_numbers<[1], [0], [0], [1], [0, 0, 1, 1], [], []>} : vector<16x16xf32>, vector<16x512xf32>, vector<16x512xf32> -> vector<16x512xf32>
    %199 = arith.addf %191, %198 : vector<16x512xf32>
    %c16 = arith.constant 16 : index
    %c0_78 = arith.constant 0 : index
    %c0_79 = arith.constant 0 : index
    %200 = vector.load %arg9[%c16, %c0_78, %c0_79] : memref<25x16x16xf32, #tpu.memory_space<vmem>>, vector<1x16x16xf32>
    %201 = vector.shape_cast %200 : vector<1x16x16xf32> to vector<16x16xf32>
    %c497_i32_80 = arith.constant 497 : i32
    %202 = tpu.dynamic_rotate %74 by %c497_i32_80 dim 1 : vector<16x512xf32>, i32 -> vector<16x512xf32>
    %203 = vector.extract_strided_slice %1 {offsets = [16, 0], sizes = [1, 512], strides = [1, 1]} : vector<25x512xf32> to vector<1x512xf32>
    %204 = vector.broadcast %203 : vector<1x512xf32> to vector<16x512xf32>
    %205 = arith.mulf %202, %204 : vector<16x512xf32>
    %cst_81 = arith.constant dense<0.000000e+00> : vector<16x512xf32>
    %206 = tpu.matmul %201, %205, %cst_81 {dimension_numbers = #tpu.dot_dimension_numbers<[1], [0], [0], [1], [0, 0, 1, 1], [], []>} : vector<16x16xf32>, vector<16x512xf32>, vector<16x512xf32> -> vector<16x512xf32>
    %207 = arith.addf %199, %206 : vector<16x512xf32>
    %c17 = arith.constant 17 : index
    %c0_82 = arith.constant 0 : index
    %c0_83 = arith.constant 0 : index
    %208 = vector.load %arg9[%c17, %c0_82, %c0_83] : memref<25x16x16xf32, #tpu.memory_space<vmem>>, vector<1x16x16xf32>
    %209 = vector.shape_cast %208 : vector<1x16x16xf32> to vector<16x16xf32>
    %c496_i32_84 = arith.constant 496 : i32
    %210 = tpu.dynamic_rotate %74 by %c496_i32_84 dim 1 : vector<16x512xf32>, i32 -> vector<16x512xf32>
    %211 = vector.extract_strided_slice %1 {offsets = [17, 0], sizes = [1, 512], strides = [1, 1]} : vector<25x512xf32> to vector<1x512xf32>
    %212 = vector.broadcast %211 : vector<1x512xf32> to vector<16x512xf32>
    %213 = arith.mulf %210, %212 : vector<16x512xf32>
    %cst_85 = arith.constant dense<0.000000e+00> : vector<16x512xf32>
    %214 = tpu.matmul %209, %213, %cst_85 {dimension_numbers = #tpu.dot_dimension_numbers<[1], [0], [0], [1], [0, 0, 1, 1], [], []>} : vector<16x16xf32>, vector<16x512xf32>, vector<16x512xf32> -> vector<16x512xf32>
    %215 = arith.addf %207, %214 : vector<16x512xf32>
    %c18 = arith.constant 18 : index
    %c0_86 = arith.constant 0 : index
    %c0_87 = arith.constant 0 : index
    %216 = vector.load %arg9[%c18, %c0_86, %c0_87] : memref<25x16x16xf32, #tpu.memory_space<vmem>>, vector<1x16x16xf32>
    %217 = vector.shape_cast %216 : vector<1x16x16xf32> to vector<16x16xf32>
    %c495_i32_88 = arith.constant 495 : i32
    %218 = tpu.dynamic_rotate %74 by %c495_i32_88 dim 1 : vector<16x512xf32>, i32 -> vector<16x512xf32>
    %219 = vector.extract_strided_slice %1 {offsets = [18, 0], sizes = [1, 512], strides = [1, 1]} : vector<25x512xf32> to vector<1x512xf32>
    %220 = vector.broadcast %219 : vector<1x512xf32> to vector<16x512xf32>
    %221 = arith.mulf %218, %220 : vector<16x512xf32>
    %cst_89 = arith.constant dense<0.000000e+00> : vector<16x512xf32>
    %222 = tpu.matmul %217, %221, %cst_89 {dimension_numbers = #tpu.dot_dimension_numbers<[1], [0], [0], [1], [0, 0, 1, 1], [], []>} : vector<16x16xf32>, vector<16x512xf32>, vector<16x512xf32> -> vector<16x512xf32>
    %223 = arith.addf %215, %222 : vector<16x512xf32>
    %c19 = arith.constant 19 : index
    %c0_90 = arith.constant 0 : index
    %c0_91 = arith.constant 0 : index
    %224 = vector.load %arg9[%c19, %c0_90, %c0_91] : memref<25x16x16xf32, #tpu.memory_space<vmem>>, vector<1x16x16xf32>
    %225 = vector.shape_cast %224 : vector<1x16x16xf32> to vector<16x16xf32>
    %c494_i32 = arith.constant 494 : i32
    %226 = tpu.dynamic_rotate %74 by %c494_i32 dim 1 : vector<16x512xf32>, i32 -> vector<16x512xf32>
    %227 = vector.extract_strided_slice %1 {offsets = [19, 0], sizes = [1, 512], strides = [1, 1]} : vector<25x512xf32> to vector<1x512xf32>
    %228 = vector.broadcast %227 : vector<1x512xf32> to vector<16x512xf32>
    %229 = arith.mulf %226, %228 : vector<16x512xf32>
    %cst_92 = arith.constant dense<0.000000e+00> : vector<16x512xf32>
    %230 = tpu.matmul %225, %229, %cst_92 {dimension_numbers = #tpu.dot_dimension_numbers<[1], [0], [0], [1], [0, 0, 1, 1], [], []>} : vector<16x16xf32>, vector<16x512xf32>, vector<16x512xf32> -> vector<16x512xf32>
    %231 = arith.addf %223, %230 : vector<16x512xf32>
    %c20 = arith.constant 20 : index
    %c0_93 = arith.constant 0 : index
    %c0_94 = arith.constant 0 : index
    %232 = vector.load %arg9[%c20, %c0_93, %c0_94] : memref<25x16x16xf32, #tpu.memory_space<vmem>>, vector<1x16x16xf32>
    %233 = vector.shape_cast %232 : vector<1x16x16xf32> to vector<16x16xf32>
    %c482_i32 = arith.constant 482 : i32
    %234 = tpu.dynamic_rotate %74 by %c482_i32 dim 1 : vector<16x512xf32>, i32 -> vector<16x512xf32>
    %235 = vector.extract_strided_slice %1 {offsets = [20, 0], sizes = [1, 512], strides = [1, 1]} : vector<25x512xf32> to vector<1x512xf32>
    %236 = vector.broadcast %235 : vector<1x512xf32> to vector<16x512xf32>
    %237 = arith.mulf %234, %236 : vector<16x512xf32>
    %cst_95 = arith.constant dense<0.000000e+00> : vector<16x512xf32>
    %238 = tpu.matmul %233, %237, %cst_95 {dimension_numbers = #tpu.dot_dimension_numbers<[1], [0], [0], [1], [0, 0, 1, 1], [], []>} : vector<16x16xf32>, vector<16x512xf32>, vector<16x512xf32> -> vector<16x512xf32>
    %239 = arith.addf %231, %238 : vector<16x512xf32>
    %c21 = arith.constant 21 : index
    %c0_96 = arith.constant 0 : index
    %c0_97 = arith.constant 0 : index
    %240 = vector.load %arg9[%c21, %c0_96, %c0_97] : memref<25x16x16xf32, #tpu.memory_space<vmem>>, vector<1x16x16xf32>
    %241 = vector.shape_cast %240 : vector<1x16x16xf32> to vector<16x16xf32>
    %c481_i32 = arith.constant 481 : i32
    %242 = tpu.dynamic_rotate %74 by %c481_i32 dim 1 : vector<16x512xf32>, i32 -> vector<16x512xf32>
    %243 = vector.extract_strided_slice %1 {offsets = [21, 0], sizes = [1, 512], strides = [1, 1]} : vector<25x512xf32> to vector<1x512xf32>
    %244 = vector.broadcast %243 : vector<1x512xf32> to vector<16x512xf32>
    %245 = arith.mulf %242, %244 : vector<16x512xf32>
    %cst_98 = arith.constant dense<0.000000e+00> : vector<16x512xf32>
    %246 = tpu.matmul %241, %245, %cst_98 {dimension_numbers = #tpu.dot_dimension_numbers<[1], [0], [0], [1], [0, 0, 1, 1], [], []>} : vector<16x16xf32>, vector<16x512xf32>, vector<16x512xf32> -> vector<16x512xf32>
    %247 = arith.addf %239, %246 : vector<16x512xf32>
    %c22 = arith.constant 22 : index
    %c0_99 = arith.constant 0 : index
    %c0_100 = arith.constant 0 : index
    %248 = vector.load %arg9[%c22, %c0_99, %c0_100] : memref<25x16x16xf32, #tpu.memory_space<vmem>>, vector<1x16x16xf32>
    %249 = vector.shape_cast %248 : vector<1x16x16xf32> to vector<16x16xf32>
    %c480_i32 = arith.constant 480 : i32
    %250 = tpu.dynamic_rotate %74 by %c480_i32 dim 1 : vector<16x512xf32>, i32 -> vector<16x512xf32>
    %251 = vector.extract_strided_slice %1 {offsets = [22, 0], sizes = [1, 512], strides = [1, 1]} : vector<25x512xf32> to vector<1x512xf32>
    %252 = vector.broadcast %251 : vector<1x512xf32> to vector<16x512xf32>
    %253 = arith.mulf %250, %252 : vector<16x512xf32>
    %cst_101 = arith.constant dense<0.000000e+00> : vector<16x512xf32>
    %254 = tpu.matmul %249, %253, %cst_101 {dimension_numbers = #tpu.dot_dimension_numbers<[1], [0], [0], [1], [0, 0, 1, 1], [], []>} : vector<16x16xf32>, vector<16x512xf32>, vector<16x512xf32> -> vector<16x512xf32>
    %255 = arith.addf %247, %254 : vector<16x512xf32>
    %c23 = arith.constant 23 : index
    %c0_102 = arith.constant 0 : index
    %c0_103 = arith.constant 0 : index
    %256 = vector.load %arg9[%c23, %c0_102, %c0_103] : memref<25x16x16xf32, #tpu.memory_space<vmem>>, vector<1x16x16xf32>
    %257 = vector.shape_cast %256 : vector<1x16x16xf32> to vector<16x16xf32>
    %c479_i32 = arith.constant 479 : i32
    %258 = tpu.dynamic_rotate %74 by %c479_i32 dim 1 : vector<16x512xf32>, i32 -> vector<16x512xf32>
    %259 = vector.extract_strided_slice %1 {offsets = [23, 0], sizes = [1, 512], strides = [1, 1]} : vector<25x512xf32> to vector<1x512xf32>
    %260 = vector.broadcast %259 : vector<1x512xf32> to vector<16x512xf32>
    %261 = arith.mulf %258, %260 : vector<16x512xf32>
    %cst_104 = arith.constant dense<0.000000e+00> : vector<16x512xf32>
    %262 = tpu.matmul %257, %261, %cst_104 {dimension_numbers = #tpu.dot_dimension_numbers<[1], [0], [0], [1], [0, 0, 1, 1], [], []>} : vector<16x16xf32>, vector<16x512xf32>, vector<16x512xf32> -> vector<16x512xf32>
    %263 = arith.addf %255, %262 : vector<16x512xf32>
    %c24 = arith.constant 24 : index
    %c0_105 = arith.constant 0 : index
    %c0_106 = arith.constant 0 : index
    %264 = vector.load %arg9[%c24, %c0_105, %c0_106] : memref<25x16x16xf32, #tpu.memory_space<vmem>>, vector<1x16x16xf32>
    %265 = vector.shape_cast %264 : vector<1x16x16xf32> to vector<16x16xf32>
    %c478_i32 = arith.constant 478 : i32
    %266 = tpu.dynamic_rotate %74 by %c478_i32 dim 1 : vector<16x512xf32>, i32 -> vector<16x512xf32>
    %267 = vector.extract_strided_slice %1 {offsets = [24, 0], sizes = [1, 512], strides = [1, 1]} : vector<25x512xf32> to vector<1x512xf32>
    %268 = vector.broadcast %267 : vector<1x512xf32> to vector<16x512xf32>
    %269 = arith.mulf %266, %268 : vector<16x512xf32>
    %cst_107 = arith.constant dense<0.000000e+00> : vector<16x512xf32>
    %270 = tpu.matmul %265, %269, %cst_107 {dimension_numbers = #tpu.dot_dimension_numbers<[1], [0], [0], [1], [0, 0, 1, 1], [], []>} : vector<16x16xf32>, vector<16x512xf32>, vector<16x512xf32> -> vector<16x512xf32>
    %271 = arith.addf %263, %270 : vector<16x512xf32>
    %c0_108 = arith.constant 0 : index
    %c0_109 = arith.constant 0 : index
    %272 = vector.load %arg10[%c0_108, %c0_109] : memref<4x16xf32, #tpu.memory_space<vmem>>, vector<4x16xf32>
    %cst_110 = arith.constant dense<0.000000e+00> : vector<4x512xf32>
    %273 = tpu.matmul %272, %271, %cst_110 {dimension_numbers = #tpu.dot_dimension_numbers<[1], [0], [0], [1], [0, 0, 1, 1], [], []>} : vector<4x16xf32>, vector<16x512xf32>, vector<4x512xf32> -> vector<4x512xf32>
    %274 = vector.broadcast %41 : vector<4x1xf32> to vector<4x512xf32>
    %275 = arith.addf %273, %274 : vector<4x512xf32>
    %cst_111 = arith.constant 1.000000e+00 : f32
    %276 = vector.broadcast %cst_111 : f32 to vector<4x512xf32>
    %277 = arith.addf %275, %276 : vector<4x512xf32>
    %278 = arith.mulf %65, %277 : vector<4x512xf32>
    %c0_112 = arith.constant 0 : index
    %c0_113 = arith.constant 0 : index
    %279 = vector.load %arg11[%c0_112, %c0_113] : memref<4x512xf32, #tpu.memory_space<vmem>>, vector<4x512xf32>
    tpu.vector_store %arg11[%c0_112, %c0_113], %278 {strides = array<i32>} : memref<4x512xf32, #tpu.memory_space<vmem>>, vector<4x512xf32>,
    return
  }
  func.func @transform_0(%arg0: i32) -> (i32, i32) {
    %c0_i32 = arith.constant 0 : i32
    %c0_i32_0 = arith.constant 0 : i32
    return %c0_i32, %arg0 : i32, i32
  }
  func.func @transform_1(%arg0: i32) -> (i32, i32) {
    %c0_i32 = arith.constant 0 : i32
    %c0_i32_0 = arith.constant 0 : i32
    return %c0_i32, %arg0 : i32, i32
  }
  func.func @transform_2(%arg0: i32) -> (i32, i32) {
    %c0_i32 = arith.constant 0 : i32
    %c0_i32_0 = arith.constant 0 : i32
    %c0_i32_1 = arith.constant 0 : i32
    return %c0_i32, %c0_i32_0 : i32, i32
  }
  func.func @transform_3(%arg0: i32) -> (i32, i32) {
    %c0_i32 = arith.constant 0 : i32
    %c0_i32_0 = arith.constant 0 : i32
    %c0_i32_1 = arith.constant 0 : i32
    return %c0_i32, %c0_i32_0 : i32, i32
  }
  func.func @transform_4(%arg0: i32) -> (i32, i32) {
    %c0_i32 = arith.constant 0 : i32
    %c0_i32_0 = arith.constant 0 : i32
    %c0_i32_1 = arith.constant 0 : i32
    return %c0_i32, %c0_i32_0 : i32, i32
  }
  func.func @transform_5(%arg0: i32) -> (i32, i32) {
    %c0_i32 = arith.constant 0 : i32
    %c0_i32_0 = arith.constant 0 : i32
    %c0_i32_1 = arith.constant 0 : i32
    return %c0_i32, %c0_i32_0 : i32, i32
  }
  func.func @transform_6(%arg0: i32) -> (i32, i32) {
    %c0_i32 = arith.constant 0 : i32
    %c0_i32_0 = arith.constant 0 : i32
    %c0_i32_1 = arith.constant 0 : i32
    return %c0_i32, %c0_i32_0 : i32, i32
  }
  func.func @transform_7(%arg0: i32) -> (i32, i32) {
    %c0_i32 = arith.constant 0 : i32
    %c0_i32_0 = arith.constant 0 : i32
    %c0_i32_1 = arith.constant 0 : i32
    return %c0_i32, %c0_i32_0 : i32, i32
  }
  func.func @transform_8(%arg0: i32) -> (i32, i32, i32) {
    %c0_i32 = arith.constant 0 : i32
    %c0_i32_0 = arith.constant 0 : i32
    %c0_i32_1 = arith.constant 0 : i32
    %c0_i32_2 = arith.constant 0 : i32
    return %c0_i32, %c0_i32_0, %c0_i32_1 : i32, i32, i32
  }
  func.func @transform_9(%arg0: i32) -> (i32, i32) {
    %c0_i32 = arith.constant 0 : i32
    %c0_i32_0 = arith.constant 0 : i32
    %c0_i32_1 = arith.constant 0 : i32
    return %c0_i32, %c0_i32_0 : i32, i32
  }
  func.func @transform_10(%arg0: i32) -> (i32, i32) {
    %c0_i32 = arith.constant 0 : i32
    %c0_i32_0 = arith.constant 0 : i32
    return %c0_i32, %arg0 : i32, i32
  }
}

</mosaic_0001>

<bundles_post_ra>
// kernel: nrda_forward.1
= control target key start
LH: loop header
LB: loop body
LE: loop exit
PB: predicated region body
PF: predicated region fallthrough
CT: control target
= control target key end

     0   :  { %s8512_s15 = smov 113   ;;  %s8513_s16 = smov 112   ;;  %v8520_v4 = vmov 0   ;;  %v95_v14 = vlaneseq  ;;  %vm449_vm8 = vcmask 588800   ;;  %vm3758_vm9 = vcmask 1043456   ;;  %s14974_s0 = inlined_call_operand.vmem [shape: f32[8,512], index: 0, kind: input, shape index: {}]   ;;  %s14975_s1 = inlined_call_operand.vmem [shape: f32[25,512], index: 1, kind: input, shape index: {}]   ;;  %s14976_s2 = inlined_call_operand.vmem [shape: f32[256,8], index: 2, kind: input, shape index: {}]   ;;  %s14977_s3 = inlined_call_operand.vmem [shape: f32[256,72], index: 3, kind: input, shape index: {}]   ;;  %s14978_s4 = inlined_call_operand.vmem [shape: bf16[256,256], index: 4, kind: input, shape index: {}]   ;;  %s14979_s5 = inlined_call_operand.vmem [shape: bf16[256,256], index: 5, kind: input, shape index: {}]   ;;  %s14980_s6 = inlined_call_operand.vmem [shape: f32[4,256], index: 6, kind: input, shape index: {}]   ;;  %s14981_s7 = inlined_call_operand.vmem [shape: f32[16,8], index: 7, kind: input, shape index: {}]   ;;  %s14982_s8 = inlined_call_operand.vmem [shape: f32[25,16,16], index: 8, kind: input, shape index: {}]   ;;  %s14983_s9 = inlined_call_operand.vmem [shape: f32[4,16], index: 9, kind: input, shape index: {}]   ;;  %s14984_s10 = inlined_call_operand.vmem [shape: f32[4,512], index: 10, kind: output, shape index: {}]  }
   0x1   :  { %v8601_v0 = vld [vmem:[%s14974_s0 + $0x8] sm:$0xff]  ;;  %s8514_s17 = smov 111   ;;  %v8612_v1 = vld [vmem:[%s14974_s0 + $0x10] sm:$0xff]  ;;  %v8623_v2 = vld [vmem:[%s14974_s0] sm:$0xff]  ;;  %s8515_s22 = smov 127   ;;  %8413 = vset.pattern.permute.xlu1 %v8520_v4  ;;  %8411 = vset.pattern.permute.xlu2 %v8520_v4  ;;  %vm3753_vm10 = vcmask 31744  }
   0x2   :  { %196 = vrot.lane.b32.xlu2 %v8601_v0, %s8512_s15  ;;  %217 = vrot.lane.b32.xlu1 %v8601_v0, %s8513_s16  ;;  %s8516_s23 = smov 1   ;;  %s8517_s24 = smov 15   ;;  %v8652_v3 = vld [vmem:[%s14974_s0 + $0x18] sm:$0xff]  ;;  %v85_v5 = vld [vmem:[%s14976_s2 + $0xf0] sm:$0xff]  ;;  %v8716_v19 = vand.u32 127, %v95_v14  ;;  %vm4066_vm14 = vcmask 130048  }
   0x3   :  { %238 = vrot.lane.b32.xlu0 %v8601_v0, %s8514_s17  ;;  %s8518_s25 = smov 16   ;;  %s8519_s26 = smov 17   ;;  %v67_v6 = vld [vmem:[%s14976_s2 + $0x60] sm:$0xff]  ;;  %v84_v8 = vld [vmem:[%s14976_s2 + $0xe8] sm:$0xff]  ;;  %v69_v9 = vld [vmem:[%s14976_s2 + $0x70] sm:$0xff] }
   0x4   :  { %8412 = vset.pattern.permute.xlu0 %v8520_v4  ;;  %v81_v11 = vld [vmem:[%s14976_s2 + $0xd0] sm:$0xff]  ;;  %v70_v15 = vld [vmem:[%s14976_s2 + $0x78] sm:$0xff]  ;;  %v64_v16 = vld [vmem:[%s14976_s2 + $0x48] sm:$0xff]  ;;  %15315 = vst [vmem:[#allocation2_spill] sm:$0xff] %v8716_v19  ;;  %vm244_vm0 = vcmp.lt.s32.totalorder %v8716_v19, 111  ;;  %vm223_vm1 = vcmp.lt.s32.totalorder %v8716_v19, 112 }
   0x5   :  { %v86_v17 = vld [vmem:[%s14976_s2 + $0xf8] sm:$0xff]  ;;  %v48_v20 = vld [vmem:[%s14975_s1 + $0x48] sm:$0xff]  ;;  %vm202_vm2 = vcmp.lt.s32.totalorder %v8716_v19, 113  ;;  %v83_v25 = vld [vmem:[%s14976_s2 + $0xe0] sm:$0xff]  ;;  %vm181_vm3 = vcmp.lt.s32.totalorder %v8716_v19, 127  ;;  %vm139_vm4 = vcmp.lt.s32.totalorder %v8716_v19, 15 }
   0x6   :  { %v8722_v21 = vperm.slane %v48_v20, 2  ;;  %v8729_v24 = vperm.slane %v48_v20, 1  ;;  %v8744_v29 = vperm.slane %v48_v20, 0  ;;  %v44_v31 = vld [vmem:[%s14975_s1 + $0x28] sm:$0xff]  ;;  %v61_v32 = vld [vmem:[%s14976_s2 + $0x30] sm:$0xff]  ;;  %v66_v40 = vld [vmem:[%s14976_s2 + $0x58] sm:$0xff] }
   0x7   :  { %v68_v33 = vld [vmem:[%s14976_s2 + $0x68] sm:$0xff]  ;;  %v8764_v37 = vperm.slane %v44_v31, 5  ;;  %v78_v43 = vld [vmem:[%s14976_s2 + $0xb8] sm:$0xff]  ;;  %v65_v44 = vld [vmem:[%s14976_s2 + $0x50] sm:$0xff]  ;;  %vm160_vm5 = vcmp.lt.s32.totalorder %v8716_v19, 1  ;;  %v8787_v45 = vperm.slane %v44_v31, 3 }
   0x8   :  { %15316 = vst [vmem:[#allocation3_spill] sm:$0xff] %v8722_v21  ;;  %v8789_v46 = vperm.slane %v44_v31, 0  ;;  %v40_v52 = vld [vmem:[%s14975_s1 + $0x8] sm:$0xff]  ;;  %v63_v55 = vld [vmem:[%s14976_s2 + $0x40] sm:$0xff]  ;;  %v82_v57 = vld [vmem:[%s14976_s2 + $0xd8] sm:$0xff]  ;;  %vm118_vm6 = vcmp.lt.s32.totalorder %v8716_v19, 16 }
   0x9   :  { %15317 = vst [vmem:[#allocation4_spill] sm:$0xff] %v8729_v24  ;;  %v75_v56 = vld [vmem:[%s14976_s2 + $0xa0] sm:$0xff]  ;;  %v8823_v59 = vperm.slane %v40_v52, 7  ;;  %vm97_vm7 = vcmp.lt.s32.totalorder %v8716_v19, 17  ;;  %s8523_s12 = smov 124   ;;  %s8527_s30 = smov 34  }
   0xa   :  { %198 = vrot.lane.b32.xlu2 %v8612_v1, %s8512_s15  ;;  %219 = vrot.lane.b32.xlu1 %v8612_v1, %s8513_s16  ;;  %15318 = vst [vmem:[#allocation5_spill] sm:$0xff] %v8744_v29  ;;  %v47_v58 = vld [vmem:[%s14975_s1 + $0x40] sm:$0xff]  ;;  %s8529_s13 = smov 18   ;;  %s8540_s19 = smov 95  }
   0xb   :  { %240 = vrot.lane.b32.xlu0 %v8612_v1, %s8514_s17  ;;  %15319 = vst [vmem:[#allocation6_spill] sm:$0xff] %v8764_v37  ;;  %v8825_v60 = vperm.slane %v47_v58, 2  ;;  %v8855_v14 = vperm.slane %v47_v58, 1 }
   0xc   :  { %15320 = vst [vmem:[#allocation7_spill] sm:$0xff] %v8787_v45 }
   0xd   :  { %15321 = vst [vmem:[#allocation8_spill] sm:$0xff] %v8789_v46 }
   0xe   :  { %15322 = vst [vmem:[#allocation9_spill] sm:$0xff] %v8823_v59 }
   0xf   :  { %15323 = vst [vmem:[#allocation10_spill] sm:$0xff] %v8825_v60 }
  0x10   :  { %15325 = vst [vmem:[#allocation12_spill] sm:$0xff] %v8855_v14 }
  0x12   :  { %177 = vrot.lane.b32.xlu1 %v8612_v1, %s8515_s22  ;;  %152 = vrot.lane.b32.xlu2 %v8623_v2, %s8516_s23 }
  0x13   :  { %175 = vrot.lane.b32.xlu0 %v8601_v0, %s8515_s22 }
  0x1a   :  { %131 = vrot.lane.b32.xlu1 %v8623_v2, %s8517_s24  ;;  %133 = vrot.lane.b32.xlu2 %v8601_v0, %s8517_s24 }
  0x1b   :  { %154 = vrot.lane.b32.xlu0 %v8601_v0, %s8516_s23 }
  0x22   :  { %110 = vrot.lane.b32.xlu1 %v8623_v2, %s8518_s25  ;;  %112 = vrot.lane.b32.xlu2 %v8601_v0, %s8518_s25 }
  0x23   :  { %236 = vrot.lane.b32.xlu0 %v8623_v2, %s8514_s17 }
  0x2a   :  { %87 = vrot.lane.b32.xlu1 %v8623_v2, %s8519_s26  ;;  %89 = vrot.lane.b32.xlu2 %v8601_v0, %s8519_s26 }
  0x2b   :  { %215 = vrot.lane.b32.xlu0 %v8623_v2, %s8513_s16 }
  0x32   :  { %173 = vrot.lane.b32.xlu1 %v8623_v2, %s8515_s22  ;;  %158 = vrot.lane.b32.xlu2 %v8652_v3, %s8516_s23 }
  0x33   :  { %194 = vrot.lane.b32.xlu0 %v8623_v2, %s8512_s15 }
  0x3a   :  { %116 = vrot.lane.b32.xlu1 %v8652_v3, %s8518_s25  ;;  %93 = vrot.lane.b32.xlu2 %v8652_v3, %s8519_s26 }
  0x3b   :  { %137 = vrot.lane.b32.xlu0 %v8652_v3, %s8517_s24 }
  0x42   :  { %221 = vrot.lane.b32.xlu1 %v8652_v3, %s8513_s16  ;;  %200 = vrot.lane.b32.xlu2 %v8652_v3, %s8512_s15 }
  0x43   :  { %242 = vrot.lane.b32.xlu0 %v8652_v3, %s8514_s17 }
  0x4a   :  { %156 = vrot.lane.b32.xlu1 %v8612_v1, %s8516_s23  ;;  %135 = vrot.lane.b32.xlu2 %v8612_v1, %s8517_s24 }
  0x4b   :  { %179 = vrot.lane.b32.xlu0 %v8652_v3, %s8515_s22 }
  0x52   :  { %91 = vrot.lane.b32.xlu1 %v8612_v1, %s8519_s26  ;;  %361 = vperm.xlu2 %8411, %v69_v9   ;;  %v58_v9 = vld [vmem:[%s14976_s2 + $0x18] sm:$0xff] }
  0x53   :  { %114 = vrot.lane.b32.xlu0 %v8612_v1, %s8518_s25 }
  0x5a   :  { %441 = vperm.xlu1 %8413, %v85_v5   ;;  %446 = vperm.xlu2 %8411, %v86_v17   ;;  %v80_v5 = vld [vmem:[%s14976_s2 + $0xc8] sm:$0xff] }
  0x5b   :  { %366 = vperm.xlu0 %8412, %v70_v15  }
  0x5c   :  { %v8688_v7 = vpop.permute.xlu2 %196 }
  0x62   :  { %351 = vperm.xlu1 %8413, %v67_v6   ;;  %356 = vperm.xlu2 %8411, %v68_v33  }
  0x63   :  { %431 = vperm.xlu0 %8412, %v83_v25  }
  0x64   :  { %v8696_v10 = vpop.permute.xlu2 %198 }
  0x65   :  { %v204_v30 = vsel %vm202_vm2, %v8688_v7, %v8696_v10 }
  0x66   :  { %v212_v36 = vmul.f32 %v8744_v29, %v204_v30  ;;  %v55_v30 = vld [vmem:[%s14976_s2] sm:$0xff]  ;;  %v280_v29 = vld [vmem:[%s14977_s3 + $0xb8] sm:$0xff] }
  0x6a   :  { %436 = vperm.xlu1 %8413, %v84_v8   ;;  %341 = vperm.xlu2 %8411, %v65_v44  }
  0x6b   :  { %346 = vperm.xlu0 %8412, %v66_v40  }
  0x6c   :  { %v8714_v18 = vpop.permute.xlu2 %152 }
  0x72   :  { %421 = vperm.xlu1 %8413, %v81_v11   ;;  %426 = vperm.xlu2 %8411, %v82_v57   ;;  %v79_v11 = vld [vmem:[%s14976_s2 + $0xc0] sm:$0xff] }
  0x73   :  { %331 = vperm.xlu0 %8412, %v63_v55  }
  0x74   :  { %v8701_v12 = vpop.permute.xlu1 %217  ;;  %v8760_v35 = vpop.permute.xlu2 %133 }
  0x75   :  { %v8703_v13 = vpop.permute.xlu0 %238 }
  0x7a   :  { %336 = vperm.xlu1 %8413, %v64_v16   ;;  %411 = vperm.xlu2 %8411, %v79_v11   ;;  %v49_v11 = vld [vmem:[%s14975_s1 + $0x50] sm:$0xff] }
  0x7b   :  { %416 = vperm.xlu0 %8412, %v80_v5  }
  0x7c   :  { %v8725_v22 = vpop.permute.xlu1 %219  ;;  %v8793_v48 = vpop.permute.xlu2 %112 }
  0x7d   :  { %v8727_v23 = vpop.permute.xlu0 %240  ;;  %v225_v27 = vsel %vm223_vm1, %v8701_v12, %v8725_v22 }
  0x7e   :  { %v246_v26 = vsel %vm244_vm0, %v8703_v13, %v8727_v23  ;;  %v233_v34 = vmul.f32 %v8729_v24, %v225_v27  ;;  %v77_v27 = vld [vmem:[%s14976_s2 + $0xb0] sm:$0xff] }
  0x7f   :  { %v254_v28 = vmul.f32 %v8722_v21, %v246_v26  ;;  %v8870_v26 = vld [vmem:[%s14977_s3] sm:$0xff]  ;;  %v279_v24 = vld [vmem:[%s14977_s3 + $0xb0] sm:$0xff] }
  0x81   :  { %666 = vmatpush.msra.mxu1 %v254_v28 }
  0x82   :  { %321 = vperm.xlu1 %8413, %v61_v32   ;;  %v8886_v32 = vperm.slane %v47_v58, 0 }
  0x83   :  { %667 = vmatpush.msra.mxu1 %v233_v34  ;;  %401 = vperm.xlu0 %8412, %v77_v27   ;;  %v43_v34 = vld [vmem:[%s14975_s1 + $0x20] sm:$0xff] }
  0x84   :  { %v8766_v38 = vpop.permute.xlu1 %177  ;;  %v8843_v6 = vpop.permute.xlu2 %89  ;;  %15326 = vst [vmem:[#allocation13_spill] sm:$0xff] %v8886_v32  ;;  %v8895_v40 = vperm.slane %v43_v34, 5 }
  0x85   :  { %668 = vmatpush.msra.mxu1 %v212_v36  ;;  %v8768_v39 = vpop.permute.xlu0 %175 }
  0x86   :  { %v183_v41 = vsel %vm181_vm3, %v8768_v39, %v8766_v38  ;;  %15327 = vst [vmem:[#allocation14_spill] sm:$0xff] %v8895_v40 }
  0x87   :  { %v191_v42 = vmul.f32 %v8764_v37, %v183_v41 }
  0x89   :  { %669 = vmatpush.msra.mxu1 %v191_v42  ;;  %v8904_v42 = vld [vmem:[%s14977_s3 + $0x8] sm:$0xff] }
  0x8a   :  { %406 = vperm.xlu1 %8413, %v78_v43  }
  0x8b   :  { %670 = vmatpush.msra.mxu1 %v8601_v0 }
  0x8c   :  { %v8791_v47 = vpop.permute.xlu1 %131  ;;  %v8882_v31 = vpop.permute.xlu2 %158 }
  0x8d   :  { %v8795_v49 = vpop.permute.xlu0 %154  ;;  %v142_v50 = vsel %vm139_vm4, %v8791_v47, %v8760_v35 }
  0x8e   :  { %v163_v51 = vsel %vm160_vm5, %v8714_v18, %v8795_v49  ;;  %v149_v54 = vmul.f32 %v8789_v46, %v142_v50  ;;  %v60_v50 = vld [vmem:[%s14976_s2 + $0x28] sm:$0xff] }
  0x8f   :  { %v170_v53 = vmul.f32 %v8787_v45, %v163_v51  ;;  %316 = vperm.xlu0 %8412, %v60_v50   ;;  %v282_v45 = vld [vmem:[%s14977_s3 + $0xc8] sm:$0xff] }
  0x91   :  { %671 = vmatpush.msra.mxu1 %v170_v53 }
  0x92   :  { %391 = vperm.xlu1 %8413, %v75_v56   ;;  %v39_v56 = vld [vmem:[%s14975_s1] sm:$0xff] }
  0x93   :  { %672 = vmatpush.msra.mxu1 %v149_v54  ;;  %v8928_v54 = vperm.slane %v43_v34, 0 }
  0x94   :  { %v8827_v61 = vpop.permute.xlu1 %110  ;;  %v8926_v53 = vpop.permute.xlu2 %93 }
  0x95   :  { %v8829_v62 = vpop.permute.xlu0 %236  ;;  %v121_v63 = vsel %vm118_vm6, %v8827_v61, %v8793_v48  ;;  %15329 = vst [vmem:[#allocation16_spill] sm:$0xff] %v8928_v54 }
  0x96   :  { %v247_v0 = vsel %vm244_vm0, %v8829_v62, %v8703_v13  ;;  %v128_v4 = vmul.f32 %v8823_v59, %v121_v63  ;;  %v8853_v13 = vperm.slane %v40_v52, 6  ;;  %v8920_v52 = vperm.slane %v43_v34, 3  ;;  %v9399_v59 = vld [vmem:[%s14977_s3 + $0xd8] sm:$0xff] }
  0x97   :  { %v253_v8 = vmul.f32 %v8825_v60, %v247_v0  ;;  %v8939_v63 = vperm.slane %v39_v56, 7  ;;  %v8948_v0 = vld [vmem:[%s14977_s3 + $0x10] sm:$0xff] }
  0x98   :  { %673 = vmatpush.msra.mxu1 %v128_v4  ;;  %15324 = vst [vmem:[#allocation11_spill] sm:$0xff] %v8853_v13 }
  0x99   :  { %553 = vmatpush.msra.mxu0 %v253_v8  ;;  %15328 = vst [vmem:[#allocation15_spill] sm:$0xff] %v8920_v52  ;;  %v8958_v8 = vperm.slane %v39_v56, 6 }
  0x9a   :  { %306 = vperm.xlu1 %8413, %v58_v9   ;;  %15330 = vst [vmem:[#allocation17_spill] sm:$0xff] %v8939_v63 }
  0x9b   :  { %15331 = vst [vmem:[#allocation18_spill] sm:$0xff] %v8958_v8 }
  0x9c   :  { %v88_v15 = vpop.permute.xlu1 %87 }
  0x9d   :  { %v8857_v16 = vpop.permute.xlu0 %215  ;;  %v100_v17 = vsel %vm97_vm7, %v88_v15, %v8843_v6  ;;  %v101_v9 = vsel %vm97_vm7, %v8926_v53, %v88_v15  ;;  %v8976_v15 = vperm.slane %v49_v11, 2 }
  0x9e   :  { %v226_v20 = vsel %vm223_vm1, %v8857_v16, %v8701_v12  ;;  %v107_v25 = vmul.f32 %v8853_v13, %v100_v17  ;;  %v62_v12 = vld [vmem:[%s14976_s2 + $0x38] sm:$0xff] }
  0x9f   :  { %v232_v28 = vmul.f32 %v8855_v14, %v226_v20  ;;  %326 = vperm.xlu2 %8411, %v62_v12   ;;  %v50_v17 = vld [vmem:[%s14975_s1 + $0x58] sm:$0xff]  ;;  %v106_v20 = vmul.f32 %v8958_v8, %v101_v9  ;;  %15332 = vst [vmem:[#allocation19_spill] sm:$0xff] %v8976_v15  ;;  %v8980_v12 = vperm.slane %v49_v11, 1  ;;  %v9383_v8 = vld [vmem:[%s14977_s3 + $0xd0] sm:$0xff] }
  0xa0   :  { %674 = vmatpush.msra.mxu1 %v107_v25  ;;  %v8978_v25 = vperm.slane %v50_v17, 2  ;;  %v8982_v34 = vperm.slane %v50_v17, 1 }
  0xa1   :  { %554 = vmatpush.msra.mxu0 %v232_v28  ;;  %7688 = vmatmul.msk.f32.vlgmr.msra.gmra.mxu1 %vm449_vm8, %v8870_v26  ;;  %v201_v28 = vpop.permute.xlu2 %200  ;;  %15334 = vst [vmem:[#allocation21_spill] sm:$0xff] %v8980_v12 }
  0xa2   :  { %291 = vperm.xlu1 %8413, %v55_v30   ;;  %15333 = vst [vmem:[#allocation20_spill] sm:$0xff] %v8978_v25 }
  0xa3   :  { %15335 = vst [vmem:[#allocation22_spill] sm:$0xff] %v8982_v34 }
  0xa4   :  { %v8888_v33 = vpop.permute.xlu1 %173 }
  0xa5   :  { %v8893_v36 = vpop.permute.xlu0 %194  ;;  %v184_v43 = vsel %vm181_vm3, %v8888_v33, %v8768_v39  ;;  %v164_v39 = vsel %vm160_vm5, %v8882_v31, %v8714_v18 }
  0xa6   :  { %v205_v41 = vsel %vm202_vm2, %v8893_v36, %v8688_v7  ;;  %v59_v7 = vld [vmem:[%s14976_s2 + $0x20] sm:$0xff]  ;;  %v190_v51 = vmul.f32 %v8895_v40, %v184_v43  ;;  %v169_v58 = vmul.f32 %v8920_v52, %v164_v39  ;;  %v9005_v39 = vperm.slane %v49_v11, 0 }
  0xa7   :  { %v211_v44 = vmul.f32 %v8886_v32, %v205_v41  ;;  %311 = vperm.xlu2 %8411, %v59_v7   ;;  %v206_v56 = vsel %vm202_vm2, %v201_v28, %v8893_v36 }
  0xa8   :  { %15336 = vst [vmem:[#allocation23_spill] sm:$0xff] %v9005_v39 }
  0xa9   :  { %555 = vmatpush.msra.mxu0 %v211_v44  ;;  %7689 = vmatmul.msk.f32.gmra.mxu1 %vm449_vm8, %v8904_v42 }
  0xab   :  { %556 = vmatpush.msra.mxu0 %v190_v51 }
  0xac   :  { %v8930_v55 = vpop.permute.xlu1 %116 }
  0xad   :  { %v8935_v57 = vpop.permute.xlu0 %137  ;;  %557 = vmatpush.msra.mxu0 %v8623_v2  ;;  %v122_v4 = vsel %vm118_vm6, %v8930_v55, %v8827_v61  ;;  %v57_v2 = vld [vmem:[%s14976_s2 + $0x10] sm:$0xff] }
  0xae   :  { %v143_v18 = vsel %vm139_vm4, %v8935_v57, %v8791_v47  ;;  %v76_v47 = vld [vmem:[%s14976_s2 + $0xa8] sm:$0xff]  ;;  %301 = vperm.xlu0 %8412, %v57_v2   ;;  %v127_v61 = vmul.f32 %v8939_v63, %v122_v4  ;;  %v45_v4 = vld [vmem:[%s14975_s1 + $0x30] sm:$0xff] }
  0xaf   :  { %558 = vmatpush.msra.mxu0 %v169_v58  ;;  %v148_v5 = vmul.f32 %v8928_v54, %v143_v18  ;;  %396 = vperm.xlu2 %8411, %v76_v47  }
  0xb1   :  { %559 = vmatpush.msra.mxu0 %v148_v5  ;;  %7690 = vmatmul.msk.f32.gmra.mxu1 %vm449_vm8, %v8948_v0  ;;  %v9030_v5 = vperm.slane %v45_v4, 5 }
  0xb3   :  { %560 = vmatpush.msra.mxu0 %v127_v61  ;;  %15338 = vst [vmem:[#allocation25_spill] sm:$0xff] %v9030_v5 }
  0xb4   :  { %v222_v27 = vpop.permute.xlu1 %221 }
  0xb5   :  { %v243_v30 = vpop.permute.xlu0 %242  ;;  %561 = vmatpush.msra.mxu0 %v106_v20  ;;  %v224_v44 = vsel %vm223_vm1, %v8725_v22, %v222_v27  ;;  %v227_v50 = vsel %vm223_vm1, %v222_v27, %v8857_v16  ;;  %v73_v22 = vld [vmem:[%s14976_s2 + $0x90] sm:$0xff]  ;;  %v203_v16 = vsel %vm202_vm2, %v8696_v10, %v201_v28  ;;  %v46_v10 = vld [vmem:[%s14975_s1 + $0x38] sm:$0xff]  ;;  %v136_v20 = vpop.permute.xlu2 %135 }
  0xb6   :  { %7656 = vmatmul.msk.f32.vlgmr.msra.gmra.mxu0 %vm449_vm8, %v8870_v26  ;;  %v245_v41 = vsel %vm244_vm0, %v8727_v23, %v243_v30  ;;  %v248_v43 = vsel %vm244_vm0, %v243_v30, %v8829_v62  ;;  %v9003_v23 = vld [vmem:[%s14977_s3 + $0x18] sm:$0xff]  ;;  %v9007_v62 = vperm.slane %v50_v17, 0  ;;  %v234_v58 = vmul.f32 %v8980_v12, %v224_v44  ;;  %v9047_v30 = vld [vmem:[%s14977_s3 + $0x20] sm:$0xff] }
  0xb7   :  { %v255_v7 = vmul.f32 %v8976_v15, %v245_v41  ;;  %v256_v51 = vmul.f32 %v8978_v25, %v248_v43  ;;  %v235_v18 = vmul.f32 %v8982_v34, %v227_v50  ;;  %381 = vperm.xlu2 %8411, %v73_v22   ;;  %v213_v36 = vmul.f32 %v9005_v39, %v203_v16  ;;  %v41_v50 = vld [vmem:[%s14975_s1 + $0x10] sm:$0xff] }
  0xb8   :  { %15337 = vst [vmem:[#allocation24_spill] sm:$0xff] %v9007_v62  ;;  %v214_v2 = vmul.f32 %v9007_v62, %v206_v56  ;;  %v9032_v47 = vperm.slane %v46_v10, 5  ;;  %v9049_v41 = vperm.slane %v45_v4, 3  ;;  %v9051_v43 = vperm.slane %v46_v10, 3 }
  0xb9   :  { %779 = vmatpush.msra.mxu2 %v255_v7  ;;  %892 = vmatpush.msra.mxu3 %v256_v51  ;;  %v42_v7 = vld [vmem:[%s14975_s1 + $0x18] sm:$0xff]  ;;  %v9068_v51 = vperm.slane %v45_v4, 0  ;;  %v9070_v22 = vperm.slane %v46_v10, 0 }
  0xba   :  { %7691 = vmatmul.msk.f32.gmra.mxu1 %vm449_vm8, %v9003_v23  ;;  %15339 = vst [vmem:[#allocation26_spill] sm:$0xff] %v9032_v47 }
  0xbb   :  { %780 = vmatpush.msra.mxu2 %v234_v58  ;;  %893 = vmatpush.msra.mxu3 %v235_v18  ;;  %15340 = vst [vmem:[#allocation27_spill] sm:$0xff] %v9049_v41  ;;  %v9084_v58 = vperm.slane %v41_v50, 7  ;;  %v9086_v18 = vperm.slane %v42_v7, 7 }
  0xbc   :  { %v157_v9 = vpop.permute.xlu1 %156  ;;  %15341 = vst [vmem:[#allocation28_spill] sm:$0xff] %v9051_v43 }
  0xbd   :  { %v180_v61 = vpop.permute.xlu0 %179  ;;  %781 = vmatpush.msra.mxu2 %v213_v36  ;;  %894 = vmatpush.msra.mxu3 %v214_v2  ;;  %v161_v44 = vsel %vm160_vm5, %v157_v9, %v8882_v31  ;;  %15342 = vst [vmem:[#allocation29_spill] sm:$0xff] %v9068_v51  ;;  %v140_v31 = vsel %vm139_vm4, %v136_v20, %v8935_v57  ;;  %v9090_v36 = vperm.slane %v41_v50, 6 }
  0xbe   :  { %7657 = vmatmul.msk.f32.gmra.mxu0 %vm449_vm8, %v8904_v42  ;;  %v182_v11 = vsel %vm181_vm3, %v8766_v38, %v180_v61  ;;  %v185_v17 = vsel %vm181_vm3, %v180_v61, %v8888_v33  ;;  %v56_v38 = vld [vmem:[%s14976_s2 + $0x8] sm:$0xff]  ;;  %v162_v33 = vsel %vm160_vm5, %v8795_v49, %v157_v9  ;;  %15343 = vst [vmem:[#allocation30_spill] sm:$0xff] %v9070_v22 }
  0xbf   :  { %v192_v27 = vmul.f32 %v9030_v5, %v182_v11  ;;  %v193_v28 = vmul.f32 %v9032_v47, %v185_v17  ;;  %v141_v49 = vsel %vm139_vm4, %v8760_v35, %v136_v20  ;;  %296 = vperm.xlu2 %8411, %v56_v38   ;;  %v171_v16 = vmul.f32 %v9049_v41, %v162_v33  ;;  %v263_v20 = vld [vmem:[%s14977_s3 + $0x30] sm:$0xff] }
  0xc0   :  { %v172_v56 = vmul.f32 %v9051_v43, %v161_v44  ;;  %15344 = vst [vmem:[#allocation31_spill] sm:$0xff] %v9084_v58  ;;  %v150_v35 = vmul.f32 %v9068_v51, %v141_v49  ;;  %v151_v57 = vmul.f32 %v9070_v22, %v140_v31  ;;  %v281_v43 = vld [vmem:[%s14977_s3 + $0xc0] sm:$0xff] }
  0xc1   :  { %782 = vmatpush.msra.mxu2 %v192_v27  ;;  %895 = vmatpush.msra.mxu3 %v193_v28  ;;  %15345 = vst [vmem:[#allocation32_spill] sm:$0xff] %v9086_v18  ;;  %v264_v28 = vld [vmem:[%s14977_s3 + $0x38] sm:$0xff] }
  0xc2   :  { %7692 = vmatmul.msk.f32.gmra.mxu1 %vm449_vm8, %v9047_v30  ;;  %15346 = vst [vmem:[#allocation33_spill] sm:$0xff] %v9090_v36 }
  0xc3   :  { %783 = vmatpush.msra.mxu2 %v8612_v1  ;;  %896 = vmatpush.msra.mxu3 %v8652_v3  ;;  %v9092_v1 = vperm.slane %v42_v7, 6 }
  0xc4   :  { %v92_v4 = vpop.permute.xlu1 %91 }
  0xc5   :  { %v115_v10 = vpop.permute.xlu0 %114  ;;  %784 = vmatpush.msra.mxu2 %v171_v16  ;;  %897 = vmatpush.msra.mxu3 %v172_v56  ;;  %15347 = vst [vmem:[#allocation34_spill] sm:$0xff] %v9092_v1  ;;  %v99_v9 = vsel %vm97_vm7, %v8843_v6, %v92_v4  ;;  %v98_v61 = vsel %vm97_vm7, %v92_v4, %v8926_v53  ;;  %v9120_v53 = vpop.permute.xlu2 %361  ;;  %v269_v56 = vld [vmem:[%s14977_s3 + $0x60] sm:$0xff]  ;;  %v270_v4 = vld [vmem:[%s14977_s3 + $0x68] sm:$0xff] }
  0xc6   :  { %7658 = vmatmul.msk.f32.gmra.mxu0 %vm449_vm8, %v8948_v0  ;;  %v120_v3 = vsel %vm118_vm6, %v8793_v48, %v115_v10  ;;  %v119_v2 = vsel %vm118_vm6, %v115_v10, %v8930_v55  ;;  %v262_v48 = vld [vmem:[%s14977_s3 + $0x28] sm:$0xff]  ;;  %v108_v55 = vmul.f32 %v9090_v36, %v99_v9  ;;  %v109_v6 = vmul.f32 %v9092_v1, %v98_v61  ;;  %v272_v9 = vld [vmem:[%s14977_s3 + $0x78] sm:$0xff] }
  0xc7   :  { %785 = vmatpush.msra.mxu2 %v150_v35  ;;  %898 = vmatpush.msra.mxu3 %v151_v57  ;;  %v129_v11 = vmul.f32 %v9084_v58, %v120_v3  ;;  %v130_v17 = vmul.f32 %v9086_v18, %v119_v2  ;;  %v271_v57 = vld [vmem:[%s14977_s3 + $0x70] sm:$0xff]  ;;  %v74_v61 = vld [vmem:[%s14976_s2 + $0x98] sm:$0xff] }
  0xc8   :  { %386 = vperm.xlu0 %8412, %v74_v61   ;;  %v275_v61 = vld [vmem:[%s14977_s3 + $0x90] sm:$0xff] }
  0xc9   :  { %786 = vmatpush.msra.mxu2 %v129_v11  ;;  %899 = vmatpush.msra.mxu3 %v130_v17 }
  0xca   :  { %7693 = vmatmul.msk.f32.gmra.mxu1 %vm449_vm8, %v262_v48 }
  0xcb   :  { %787 = vmatpush.msra.mxu2 %v108_v55  ;;  %900 = vmatpush.msra.mxu3 %v109_v6  ;;  %v273_v55 = vld [vmem:[%s14977_s3 + $0x80] sm:$0xff] }
  0xcc   :  { %7720 = vmatmul.msk.f32.vlgmr.msra.gmra.mxu2 %vm449_vm8, %v8870_v26  ;;  %7752 = vmatmul.msk.f32.vlgmr.msra.gmra.mxu3 %vm449_vm8, %v8870_v26  ;;  %v9132_v27 = vpop.permute.xlu1 %441  ;;  %v71_v6 = vld [vmem:[%s14976_s2 + $0x80] sm:$0xff] }
  0xcd   :  { %15348 = vst [vmem:[#allocation35_spill] sm:$0xff] %v9132_v27  ;;  %v9136_v26 = vpop.permute.xlu2 %446  ;;  %v9356_v22 = vpop.permute.xlu0 %366  ;;  %v9436_v27 = vld [vmem:[%s14977_s3 + $0xe8] sm:$0xff] }
  0xce   :  { %7659 = vmatmul.msk.f32.gmra.mxu0 %vm449_vm8, %v9003_v23  ;;  %15349 = vst [vmem:[#allocation36_spill] sm:$0xff] %v9136_v26 }
  0xd0   :  { %371 = vperm.xlu0 %8412, %v71_v6  }
  0xd2   :  { %7694 = vmatmul.msk.f32.gmra.mxu1 %vm449_vm8, %v263_v20 }
  0xd4   :  { %7721 = vmatmul.msk.f32.gmra.mxu2 %vm449_vm8, %v8904_v42  ;;  %7753 = vmatmul.msk.f32.gmra.mxu3 %vm449_vm8, %v8904_v42  ;;  %v265_v42 = vld [vmem:[%s14977_s3 + $0x40] sm:$0xff]  ;;  %v9150_v38 = vpop.permute.xlu1 %351 }
  0xd5   :  { %v9152_v33 = vpop.permute.xlu2 %356 }
  0xd6   :  { %7660 = vmatmul.msk.f32.gmra.mxu0 %vm449_vm8, %v9047_v30 }
  0xda   :  { %7695 = vmatmul.msk.f32.gmra.mxu1 %vm449_vm8, %v264_v28 }
  0xdc   :  { %7722 = vmatmul.msk.f32.gmra.mxu2 %vm449_vm8, %v8948_v0  ;;  %7754 = vmatmul.msk.f32.gmra.mxu3 %vm449_vm8, %v8948_v0  ;;  %v266_v0 = vld [vmem:[%s14977_s3 + $0x48] sm:$0xff]  ;;  %v9163_v44 = vpop.permute.xlu1 %436 }
  0xdd   :  { %15350 = vst [vmem:[#allocation37_spill] sm:$0xff] %v9163_v44  ;;  %v9166_v50 = vpop.permute.xlu2 %341 }
  0xde   :  { %7661 = vmatmul.msk.f32.gmra.mxu0 %vm449_vm8, %v262_v48 }
  0xe2   :  { %7696 = vmatmul.msk.f32.gmra.mxu1 %vm449_vm8, %v265_v42 }
  0xe4   :  { %7723 = vmatmul.msk.f32.gmra.mxu2 %vm449_vm8, %v9003_v23  ;;  %7755 = vmatmul.msk.f32.gmra.mxu3 %vm449_vm8, %v9003_v23  ;;  %v267_v23 = vld [vmem:[%s14977_s3 + $0x50] sm:$0xff]  ;;  %v9177_v7 = vpop.permute.xlu1 %421 }
  0xe5   :  { %15351 = vst [vmem:[#allocation38_spill] sm:$0xff] %v9177_v7  ;;  %v9181_v49 = vpop.permute.xlu2 %426 }
  0xe6   :  { %7662 = vmatmul.msk.f32.gmra.mxu0 %vm449_vm8, %v263_v20  ;;  %15352 = vst [vmem:[#allocation39_spill] sm:$0xff] %v9181_v49  ;;  %v9417_v49 = vld [vmem:[%s14977_s3 + $0xe0] sm:$0xff] }
  0xea   :  { %7697 = vmatmul.msk.f32.gmra.mxu1 %vm449_vm8, %v266_v0 }
  0xec   :  { %7724 = vmatmul.msk.f32.gmra.mxu2 %vm449_vm8, %v9047_v30  ;;  %7756 = vmatmul.msk.f32.gmra.mxu3 %vm449_vm8, %v9047_v30  ;;  %v268_v30 = vld [vmem:[%s14977_s3 + $0x58] sm:$0xff]  ;;  %v9190_v31 = vpop.permute.xlu1 %336 }
  0xed   :  { %v9193_v16 = vpop.permute.xlu2 %411 }
  0xee   :  { %7663 = vmatmul.msk.f32.gmra.mxu0 %vm449_vm8, %v264_v28  ;;  %15353 = vst [vmem:[#allocation40_spill] sm:$0xff] %v9193_v16 }
  0xf2   :  { %7698 = vmatmul.msk.f32.gmra.mxu1 %vm449_vm8, %v267_v23 }
  0xf4   :  { %7725 = vmatmul.msk.f32.gmra.mxu2 %vm449_vm8, %v262_v48  ;;  %7757 = vmatmul.msk.f32.gmra.mxu3 %vm449_vm8, %v262_v48  ;;  %v9205_v10 = vpop.permute.xlu1 %321 }
  0xf6   :  { %7664 = vmatmul.msk.f32.gmra.mxu0 %vm449_vm8, %v265_v42 }
  0xf9   :  { %v9207_v35 = vpop.permute.xlu2 %326 }
  0xfa   :  { %7699 = vmatmul.msk.f32.gmra.mxu1 %vm449_vm8, %v268_v30 }
  0xfc   :  { %7726 = vmatmul.msk.f32.gmra.mxu2 %vm449_vm8, %v263_v20  ;;  %7758 = vmatmul.msk.f32.gmra.mxu3 %vm449_vm8, %v263_v20  ;;  %v9216_v3 = vpop.permute.xlu1 %406 }
  0xfd   :  { %15354 = vst [vmem:[#allocation41_spill] sm:$0xff] %v9216_v3 }
  0xfe   :  { %7665 = vmatmul.msk.f32.gmra.mxu0 %vm449_vm8, %v266_v0 }
 0x101   :  { %v9219_v2 = vpop.permute.xlu2 %311 }
 0x102   :  { %7700 = vmatmul.msk.f32.gmra.mxu1 %vm449_vm8, %v269_v56 }
 0x104   :  { %7727 = vmatmul.msk.f32.gmra.mxu2 %vm449_vm8, %v264_v28  ;;  %7759 = vmatmul.msk.f32.gmra.mxu3 %vm449_vm8, %v264_v28  ;;  %v9231_v11 = vpop.permute.xlu1 %391 }
 0x105   :  { %15355 = vst [vmem:[#allocation42_spill] sm:$0xff] %v9231_v11 }
 0x106   :  { %7666 = vmatmul.msk.f32.gmra.mxu0 %vm449_vm8, %v267_v23 }
 0x109   :  { %v9235_v17 = vpop.permute.xlu2 %396 }
 0x10a   :  { %7701 = vmatmul.msk.f32.gmra.mxu1 %vm449_vm8, %v270_v4  ;;  %15356 = vst [vmem:[#allocation43_spill] sm:$0xff] %v9235_v17 }
 0x10c   :  { %7728 = vmatmul.msk.f32.gmra.mxu2 %vm449_vm8, %v265_v42  ;;  %7760 = vmatmul.msk.f32.gmra.mxu3 %vm449_vm8, %v265_v42  ;;  %v9247_v20 = vpop.permute.xlu1 %306 }
 0x10e   :  { %7667 = vmatmul.msk.f32.gmra.mxu0 %vm449_vm8, %v268_v30 }
 0x111   :  { %v9250_v42 = vpop.permute.xlu2 %381 }
 0x112   :  { %7702 = vmatmul.msk.f32.gmra.mxu1 %vm449_vm8, %v271_v57  ;;  %15357 = vst [vmem:[#allocation44_spill] sm:$0xff] %v9250_v42 }
 0x114   :  { %7729 = vmatmul.msk.f32.gmra.mxu2 %vm449_vm8, %v266_v0  ;;  %7761 = vmatmul.msk.f32.gmra.mxu3 %vm449_vm8, %v266_v0  ;;  %v274_v0 = vld [vmem:[%s14977_s3 + $0x88] sm:$0xff]  ;;  %v9267_v6 = vpop.permute.xlu1 %291 }
 0x116   :  { %7668 = vmatmul.msk.f32.gmra.mxu0 %vm449_vm8, %v269_v56 }
 0x119   :  { %v9269_v25 = vpop.permute.xlu2 %296 }
 0x11a   :  { %7703 = vmatmul.msk.f32.gmra.mxu1 %vm449_vm8, %v272_v9 }
 0x11c   :  { %7730 = vmatmul.msk.f32.gmra.mxu2 %vm449_vm8, %v267_v23  ;;  %7762 = vmatmul.msk.f32.gmra.mxu3 %vm449_vm8, %v267_v23  ;;  %v72_v23 = vld [vmem:[%s14976_s2 + $0x88] sm:$0xff] }
 0x11d   :  { %376 = vperm.xlu1 %8413, %v72_v23  }
 0x11e   :  { %7669 = vmatmul.msk.f32.gmra.mxu0 %vm449_vm8, %v270_v4  ;;  %v676_v48 = vpop.f32.mrf.mxu1 }
 0x11f   :  { %v677_v23 = vadd.f32 %v676_v48, %v9267_v6  ;;  %v276_v48 = vld [vmem:[%s14977_s3 + $0x98] sm:$0xff] }
 0x122   :  { %7704 = vmatmul.msk.f32.gmra.mxu1 %vm449_vm8, %v273_v55 }
 0x124   :  { %7731 = vmatmul.msk.f32.gmra.mxu2 %vm449_vm8, %v268_v30  ;;  %7763 = vmatmul.msk.f32.gmra.mxu3 %vm449_vm8, %v268_v30 }
 0x126   :  { %7670 = vmatmul.msk.f32.gmra.mxu0 %vm449_vm8, %v271_v57  ;;  %v679_v28 = vpop.f32.mrf.mxu1 }
 0x127   :  { %v680_v15 = vadd.f32 %v679_v28, %v9269_v25 }
 0x129   :  { %v1003_v60 = vmax.f32 %v680_v15, 0.0  ;;  %v277_v15 = vld [vmem:[%s14977_s3 + $0xa0] sm:$0xff] }
 0x12a   :  { %7705 = vmatmul.msk.f32.gmra.mxu1 %vm449_vm8, %v274_v0 }
 0x12c   :  { %7732 = vmatmul.msk.f32.gmra.mxu2 %vm449_vm8, %v269_v56  ;;  %7764 = vmatmul.msk.f32.gmra.mxu3 %vm449_vm8, %v269_v56  ;;  %v999_v56 = vmax.f32 %v677_v23, 0.0 }
 0x12e   :  { %7671 = vmatmul.msk.f32.gmra.mxu0 %vm449_vm8, %v272_v9  ;;  %v9262_v30 = vpop.f32.mrf.mxu1  ;;  %v9278_v34 = vpack.c.bf16 %v1003_v60, %v999_v56 }
 0x132   :  { %7706 = vmatmul.msk.f32.gmra.mxu1 %vm449_vm8, %v275_v61 }
 0x133   :  { %v9274_v21 = vpop.f32.mrf.mxu0 }
 0x134   :  { %7733 = vmatmul.msk.f32.gmra.mxu2 %vm449_vm8, %v270_v4  ;;  %7765 = vmatmul.msk.f32.gmra.mxu3 %vm449_vm8, %v270_v4 }
 0x136   :  { %7672 = vmatmul.msk.f32.gmra.mxu0 %vm449_vm8, %v273_v55 }
 0x137   :  { %v9281_v12 = vpop.f32.mrf.mxu1 }
 0x13a   :  { %7707 = vmatmul.msk.f32.gmra.mxu1 %vm449_vm8, %v276_v48 }
 0x13b   :  { %v9287_v28 = vpop.f32.mrf.mxu0 }
 0x13c   :  { %7734 = vmatmul.msk.f32.gmra.mxu2 %vm449_vm8, %v271_v57  ;;  %7766 = vmatmul.msk.f32.gmra.mxu3 %vm449_vm8, %v271_v57  ;;  %v278_v57 = vld [vmem:[%s14977_s3 + $0xa8] sm:$0xff] }
 0x13e   :  { %7673 = vmatmul.msk.f32.gmra.mxu0 %vm449_vm8, %v274_v0 }
 0x13f   :  { %v9292_v60 = vpop.f32.mrf.mxu1 }
 0x142   :  { %7708 = vmatmul.msk.f32.gmra.mxu1 %vm449_vm8, %v277_v15 }
 0x143   :  { %v9298_v4 = vpop.f32.mrf.mxu0 }
 0x144   :  { %7735 = vmatmul.msk.f32.gmra.mxu2 %vm449_vm8, %v272_v9  ;;  %7767 = vmatmul.msk.f32.gmra.mxu3 %vm449_vm8, %v272_v9 }
 0x146   :  { %7674 = vmatmul.msk.f32.gmra.mxu0 %vm449_vm8, %v275_v61 }
 0x147   :  { %v9303_v23 = vpop.f32.mrf.mxu1 }
 0x14a   :  { %7709 = vmatmul.msk.f32.gmra.mxu1 %vm449_vm8, %v278_v57 }
 0x14b   :  { %v9309_v56 = vpop.f32.mrf.mxu0 }
 0x14c   :  { %7736 = vmatmul.msk.f32.gmra.mxu2 %vm449_vm8, %v273_v55  ;;  %7768 = vmatmul.msk.f32.gmra.mxu3 %vm449_vm8, %v273_v55 }
 0x14e   :  { %7675 = vmatmul.msk.f32.gmra.mxu0 %vm449_vm8, %v276_v48 }
 0x14f   :  { %v9314_v14 = vpop.f32.mrf.mxu1  ;;  %v9316_v9 = vpop.f32.mrf.mxu2 }
 0x150   :  { %v9321_v62 = vpop.f32.mrf.mxu3 }
 0x152   :  { %7710 = vmatmul.msk.f32.gmra.mxu1 %vm449_vm8, %v279_v24 }
 0x153   :  { %v9324_v39 = vpop.f32.mrf.mxu0 }
 0x154   :  { %7737 = vmatmul.msk.f32.gmra.mxu2 %vm449_vm8, %v274_v0  ;;  %7769 = vmatmul.msk.f32.gmra.mxu3 %vm449_vm8, %v274_v0 }
 0x156   :  { %7676 = vmatmul.msk.f32.gmra.mxu0 %vm449_vm8, %v277_v15 }
 0x157   :  { %v9329_v55 = vpop.f32.mrf.mxu1  ;;  %v9331_v32 = vpop.f32.mrf.mxu2 }
 0x158   :  { %15358 = vst [vmem:[#allocation45_spill] sm:$0xff] %v9331_v32  ;;  %v9336_v47 = vpop.f32.mrf.mxu3 }
 0x159   :  { %15359 = vst [vmem:[#allocation46_spill] sm:$0xff] %v9336_v47 }
 0x15a   :  { %7711 = vmatmul.msk.f32.gmra.mxu1 %vm449_vm8, %v280_v29 }
 0x15b   :  { %v9339_v5 = vpop.f32.mrf.mxu0 }
 0x15c   :  { %7738 = vmatmul.msk.f32.gmra.mxu2 %vm449_vm8, %v275_v61  ;;  %7770 = vmatmul.msk.f32.gmra.mxu3 %vm449_vm8, %v275_v61 }
 0x15e   :  { %7677 = vmatmul.msk.f32.gmra.mxu0 %vm449_vm8, %v278_v57 }
 0x15f   :  { %v9344_v0 = vpop.f32.mrf.mxu1  ;;  %v9346_v40 = vpop.f32.mrf.mxu2 }
 0x160   :  { %v9351_v52 = vpop.f32.mrf.mxu3 }
 0x162   :  { %7712 = vmatmul.msk.f32.gmra.mxu1 %vm449_vm8, %v281_v43 }
 0x163   :  { %v9354_v37 = vpop.f32.mrf.mxu0 }
 0x164   :  { %7739 = vmatmul.msk.f32.gmra.mxu2 %vm449_vm8, %v276_v48  ;;  %7771 = vmatmul.msk.f32.gmra.mxu3 %vm449_vm8, %v276_v48  ;;  %v9375_v48 = vpop.permute.xlu0 %431 }
 0x165   :  { %15362 = vst [vmem:[#allocation49_spill] sm:$0xff] %v9375_v48 }
 0x166   :  { %7678 = vmatmul.msk.f32.gmra.mxu0 %vm449_vm8, %v279_v24 }
 0x167   :  { %v9361_v61 = vpop.f32.mrf.mxu1  ;;  %v9363_v54 = vpop.f32.mrf.mxu2 }
 0x168   :  { %15360 = vst [vmem:[#allocation47_spill] sm:$0xff] %v9363_v54  ;;  %v9368_v41 = vpop.f32.mrf.mxu3 }
 0x169   :  { %15361 = vst [vmem:[#allocation48_spill] sm:$0xff] %v9368_v41  ;;  %v9455_v41 = vld [vmem:[%s14977_s3 + $0xf0] sm:$0xff] }
 0x16a   :  { %7713 = vmatmul.msk.f32.gmra.mxu1 %vm449_vm8, %v282_v45 }
 0x16b   :  { %v9371_v18 = vpop.f32.mrf.mxu0 }
 0x16c   :  { %7740 = vmatmul.msk.f32.gmra.mxu2 %vm449_vm8, %v277_v15  ;;  %7772 = vmatmul.msk.f32.gmra.mxu3 %vm449_vm8, %v277_v15  ;;  %v9401_v36 = vpop.permute.xlu0 %346 }
 0x16e   :  { %7679 = vmatmul.msk.f32.gmra.mxu0 %vm449_vm8, %v280_v29 }
 0x16f   :  { %v706_v63 = vpop.f32.mrf.mxu1  ;;  %v9378_v1 = vpop.f32.mrf.mxu2 }
 0x170   :  { %v9385_v51 = vpop.f32.mrf.mxu3 }
 0x171   :  { %15363 = vst [vmem:[#allocation50_spill] sm:$0xff] %v9385_v51 }
 0x172   :  { %7714 = vmatmul.msk.f32.gmra.mxu1 %vm449_vm8, %v9383_v8 }
 0x173   :  { %v9389_v46 = vpop.f32.mrf.mxu0 }
 0x174   :  { %7741 = vmatmul.msk.f32.gmra.mxu2 %vm449_vm8, %v278_v57  ;;  %7773 = vmatmul.msk.f32.gmra.mxu3 %vm449_vm8, %v278_v57  ;;  %v9421_v48 = vpop.permute.xlu0 %331 }
 0x176   :  { %7680 = vmatmul.msk.f32.gmra.mxu0 %vm449_vm8, %v281_v43 }
 0x177   :  { %v709_v15 = vpop.f32.mrf.mxu1  ;;  %v9394_v58 = vpop.f32.mrf.mxu2 }
 0x178   :  { %15364 = vst [vmem:[#allocation51_spill] sm:$0xff] %v9394_v58  ;;  %v9403_v13 = vpop.f32.mrf.mxu3 }
 0x179   :  { %15365 = vst [vmem:[#allocation52_spill] sm:$0xff] %v9403_v13 }
 0x17a   :  { %7715 = vmatmul.msk.f32.gmra.mxu1 %vm449_vm8, %v9399_v59 }
 0x17b   :  { %v9407_v19 = vpop.f32.mrf.mxu0 }
 0x17c   :  { %7742 = vmatmul.msk.f32.gmra.mxu2 %vm449_vm8, %v279_v24  ;;  %7774 = vmatmul.msk.f32.gmra.mxu3 %vm449_vm8, %v279_v24  ;;  %v9444_v11 = vpop.permute.xlu0 %416 }
 0x17d   :  { %15368 = vst [vmem:[#allocation55_spill] sm:$0xff] %v9444_v11 }
 0x17e   :  { %7681 = vmatmul.msk.f32.gmra.mxu0 %vm449_vm8, %v282_v45 }
 0x17f   :  { %v712_v57 = vpop.f32.mrf.mxu1  ;;  %v9412_v16 = vpop.f32.mrf.mxu2 }
 0x180   :  { %v9419_v7 = vpop.f32.mrf.mxu3 }
 0x181   :  { %15366 = vst [vmem:[#allocation53_spill] sm:$0xff] %v9419_v7 }
 0x182   :  { %7716 = vmatmul.msk.f32.gmra.mxu1 %vm449_vm8, %v9417_v49 }
 0x183   :  { %v9425_v26 = vpop.f32.mrf.mxu0 }
 0x184   :  { %7743 = vmatmul.msk.f32.gmra.mxu2 %vm449_vm8, %v280_v29  ;;  %7775 = vmatmul.msk.f32.gmra.mxu3 %vm449_vm8, %v280_v29 }
 0x186   :  { %7682 = vmatmul.msk.f32.gmra.mxu0 %vm449_vm8, %v9383_v8 }
 0x187   :  { %v715_v24 = vpop.f32.mrf.mxu1  ;;  %v9431_v44 = vpop.f32.mrf.mxu2 }
 0x188   :  { %v9438_v3 = vpop.f32.mrf.mxu3  ;;  %v716_v7 = vadd.f32 %v715_v24, %v9152_v33  ;;  %v710_v24 = vadd.f32 %v709_v15, %v9401_v36 }
 0x189   :  { %15367 = vst [vmem:[#allocation54_spill] sm:$0xff] %v9438_v3  ;;  %v9466_v3 = vpop.permute.xlu0 %401 }
 0x18a   :  { %7717 = vmatmul.msk.f32.gmra.mxu1 %vm449_vm8, %v9436_v27  ;;  %15371 = vst [vmem:[#allocation58_spill] sm:$0xff] %v9466_v3  ;;  %v1051_v51 = vmax.f32 %v716_v7, 0.0 }
 0x18b   :  { %v9442_v17 = vpop.f32.mrf.mxu0 }
 0x18c   :  { %7744 = vmatmul.msk.f32.gmra.mxu2 %vm449_vm8, %v281_v43  ;;  %7776 = vmatmul.msk.f32.gmra.mxu3 %vm449_vm8, %v281_v43 }
 0x18e   :  { %7683 = vmatmul.msk.f32.gmra.mxu0 %vm449_vm8, %v9399_v59 }
 0x18f   :  { %v718_v29 = vpop.f32.mrf.mxu1  ;;  %v9450_v42 = vpop.f32.mrf.mxu2 }
 0x190   :  { %15369 = vst [vmem:[#allocation56_spill] sm:$0xff] %v9450_v42  ;;  %v9457_v54 = vpop.f32.mrf.mxu3  ;;  %v719_v43 = vadd.f32 %v718_v29, %v9120_v53  ;;  %v713_v42 = vadd.f32 %v712_v57, %v9150_v38  ;;  %v9477_v29 = vld [vmem:[%s14977_s3 + $0xf8] sm:$0xff]  ;;  %v707_v57 = vadd.f32 %v706_v63, %v9166_v50 }
 0x191   :  { %15370 = vst [vmem:[#allocation57_spill] sm:$0xff] %v9457_v54  ;;  %v9496_v15 = vpop.permute.xlu0 %316 }
 0x192   :  { %7718 = vmatmul.msk.f32.gmra.mxu1 %vm449_vm8, %v9455_v41  ;;  %v1055_v47 = vmax.f32 %v719_v43, 0.0  ;;  %v1047_v3 = vmax.f32 %v713_v42, 0.0  ;;  %v1039_v43 = vmax.f32 %v707_v57, 0.0 }
 0x193   :  { %v9461_v11 = vpop.f32.mrf.mxu0 }
 0x194   :  { %7745 = vmatmul.msk.f32.gmra.mxu2 %vm449_vm8, %v282_v45  ;;  %7777 = vmatmul.msk.f32.gmra.mxu3 %vm449_vm8, %v282_v45  ;;  %v1183_v63 = vpack.c.bf16 %v1051_v51, %v1047_v3  ;;  %v695_v51 = vadd.f32 %v9314_v14, %v9205_v10  ;;  %v698_v3 = vadd.f32 %v9329_v55, %v9207_v35 }
 0x195   :  { %v692_v55 = vadd.f32 %v9303_v23, %v9496_v15 }
 0x196   :  { %7684 = vmatmul.msk.f32.gmra.mxu0 %vm449_vm8, %v9417_v49 }
 0x197   :  { %v721_v54 = vpop.f32.mrf.mxu1  ;;  %v9472_v13 = vpop.f32.mrf.mxu2 }
 0x198   :  { %15372 = vst [vmem:[#allocation59_spill] sm:$0xff] %v9472_v13  ;;  %v722_v45 = vadd.f32 %v721_v54, %v9356_v22  ;;  %v9480_v58 = vpop.f32.mrf.mxu3 }
 0x199   :  { %15373 = vst [vmem:[#allocation60_spill] sm:$0xff] %v9480_v58  ;;  %v1043_v58 = vmax.f32 %v710_v24, 0.0 }
 0x19a   :  { %v1059_v32 = vmax.f32 %v722_v45, 0.0  ;;  %7719 = vmatmul.msk.f32.gmra.mxu1 %vm449_vm8, %v9477_v29  ;;  %v701_v45 = vadd.f32 %v9344_v0, %v9421_v48 }
 0x19b   :  { %v602_v13 = vpop.f32.mrf.mxu0 }
 0x19c   :  { %7746 = vmatmul.msk.f32.gmra.mxu2 %vm449_vm8, %v9383_v8  ;;  %7778 = vmatmul.msk.f32.gmra.mxu3 %vm449_vm8, %v9383_v8  ;;  %v1187_v54 = vpack.c.bf16 %v1059_v32, %v1055_v47  ;;  %v704_v8 = vadd.f32 %v9361_v61, %v9190_v31  ;;  %v1179_v47 = vpack.c.bf16 %v1043_v58, %v1039_v43  ;;  %v1031_v24 = vmax.f32 %v701_v45, 0.0 }
 0x19d   :  { %v689_v58 = vadd.f32 %v9292_v60, %v9219_v2  ;;  %v1023_v61 = vmax.f32 %v695_v51, 0.0  ;;  %v1027_v43 = vmax.f32 %v698_v3, 0.0  ;;  %v686_v60 = vadd.f32 %v9281_v12, %v9247_v20 }
 0x19e   :  { %7685 = vmatmul.msk.f32.gmra.mxu0 %vm449_vm8, %v9436_v27  ;;  %1688 = vmatpush.bf16.msrb.mxu2 %v1187_v54  ;;  %v1035_v54 = vmax.f32 %v704_v8, 0.0  ;;  %v603_v23 = vadd.f32 %v602_v13, %v9152_v33  ;;  %v600_v12 = vadd.f32 %v9461_v11, %v9150_v38 }
 0x19f   :  { %v9492_v7 = vpop.f32.mrf.mxu1  ;;  %v9494_v42 = vpop.f32.mrf.mxu2 }
 0x1a0   :  { %15374 = vst [vmem:[#allocation61_spill] sm:$0xff] %v9492_v7  ;;  %v9502_v32 = vpop.f32.mrf.mxu3  ;;  %v1175_v45 = vpack.c.bf16 %v1035_v54, %v1031_v24 }
 0x1a2   :  { %1689 = vmatpush.bf16.msrb.mxu2 %v1183_v63 }
 0x1a3   :  { %v605_v57 = vpop.f32.mrf.mxu0 }
 0x1a4   :  { %7747 = vmatmul.msk.f32.gmra.mxu2 %vm449_vm8, %v9399_v59  ;;  %7779 = vmatmul.msk.f32.gmra.mxu3 %vm449_vm8, %v9399_v59  ;;  %v9524_v59 = vpop.permute.xlu0 %301  ;;  %v606_v8 = vadd.f32 %v605_v57, %v9120_v53  ;;  %v1171_v57 = vpack.c.bf16 %v1027_v43, %v1023_v61  ;;  %v594_v43 = vadd.f32 %v9425_v26, %v9166_v50 }
 0x1a5   :  { %v683_v7 = vadd.f32 %v9262_v30, %v9524_v59  ;;  %v1011_v30 = vmax.f32 %v686_v60, 0.0  ;;  %v591_v60 = vadd.f32 %v9407_v19, %v9190_v31  ;;  %v573_v26 = vadd.f32 %v9309_v56, %v9247_v20 }
 0x1a6   :  { %7686 = vmatmul.msk.f32.gmra.mxu0 %vm449_vm8, %v9455_v41  ;;  %1690 = vmatpush.bf16.msrb.mxu2 %v1179_v47  ;;  %v1015_v47 = vmax.f32 %v689_v58, 0.0  ;;  %v1054_v3 = vmax.f32 %v606_v8, 0.0  ;;  %v567_v19 = vadd.f32 %v9287_v28, %v9269_v25  ;;  %v585_v56 = vadd.f32 %v9371_v18, %v9207_v35 }
 0x1a7   :  { %v9516_v0 = vpop.f32.mrf.mxu1  ;;  %v9518_v14 = vpop.f32.mrf.mxu2  ;;  %v1007_v58 = vmax.f32 %v683_v7, 0.0  ;;  %v582_v28 = vadd.f32 %v9354_v37, %v9205_v10 }
 0x1a8   :  { %15375 = vst [vmem:[#allocation62_spill] sm:$0xff] %v9516_v0  ;;  %v9522_v63 = vpop.f32.mrf.mxu3 }
 0x1a9   :  { %15376 = vst [vmem:[#allocation63_spill] sm:$0xff] %v9518_v14  ;;  %v1019_v14 = vmax.f32 %v692_v55, 0.0 }
 0x1aa   :  { %1691 = vmatpush.bf16.msrb.mxu2 %v1175_v45  ;;  %v1046_v45 = vmax.f32 %v600_v12, 0.0  ;;  %v570_v12 = vadd.f32 %v9298_v4, %v9524_v59 }
 0x1ab   :  { %v608_v0 = vpop.f32.mrf.mxu0  ;;  %v1167_v11 = vpack.c.bf16 %v1019_v14, %v1015_v47  ;;  %v1163_v14 = vpack.c.bf16 %v1011_v30, %v1007_v58  ;;  %v588_v47 = vadd.f32 %v9389_v46, %v9421_v48  ;;  %v1034_v46 = vmax.f32 %v591_v60, 0.0 }
 0x1ac   :  { %v609_v51 = vadd.f32 %v608_v0, %v9356_v22  ;;  %7748 = vmatmul.msk.f32.gmra.mxu2 %vm449_vm8, %v9417_v49  ;;  %7780 = vmatmul.msk.f32.gmra.mxu3 %vm449_vm8, %v9417_v49  ;;  %v597_v0 = vadd.f32 %v9442_v17, %v9401_v36  ;;  %v1050_v49 = vmax.f32 %v603_v23, 0.0  ;;  %v1038_v23 = vmax.f32 %v594_v43, 0.0 }
 0x1ad   :  { %v1010_v30 = vmax.f32 %v573_v26, 0.0  ;;  %v1030_v58 = vmax.f32 %v588_v47, 0.0  ;;  %v1006_v18 = vmax.f32 %v570_v12, 0.0  ;;  %v9600_v60 = vadd.f32 %v9321_v62, %v9267_v6  ;;  %v15380_v12 = vld [vmem:[#allocation46_spill] sm:$0xff] }
 0x1ae   :  { %v1058_v24 = vmax.f32 %v609_v51, 0.0  ;;  %7687 = vmatmul.msk.f32.gmra.mxu0 %vm449_vm8, %v9477_v29  ;;  %1692 = vmatpush.bf16.msrb.mxu2 %v1171_v57  ;;  %v1042_v7 = vmax.f32 %v597_v0, 0.0  ;;  %v1182_v17 = vpack.c.bf16 %v1050_v49, %v1046_v45  ;;  %v564_v51 = vadd.f32 %v9274_v21, %v9267_v6 }
 0x1af   :  { %v9541_v13 = vpop.f32.mrf.mxu1  ;;  %v9543_v54 = vpop.f32.mrf.mxu2  ;;  %v1002_v21 = vmax.f32 %v567_v19, 0.0  ;;  %v579_v0 = vadd.f32 %v9339_v5, %v9496_v15  ;;  %v1174_v37 = vpack.c.bf16 %v1034_v46, %v1030_v58  ;;  %v1022_v5 = vmax.f32 %v582_v28, 0.0  ;;  %v15382_v46 = vld [vmem:[#allocation53_spill] sm:$0xff] }
 0x1b0   :  { %v9547_v55 = vpop.f32.mrf.mxu3  ;;  %v1186_v61 = vpack.c.bf16 %v1058_v24, %v1054_v3  ;;  %v1178_v24 = vpack.c.bf16 %v1042_v7, %v1038_v23  ;;  %v998_v49 = vmax.f32 %v564_v51, 0.0  ;;  %v9594_v43 = vpack.c.bf16 %v1010_v30, %v1006_v18  ;;  %v15377_v23 = vld [vmem:[#allocation45_spill] sm:$0xff]  ;;  %v15383_v30 = vld [vmem:[#allocation54_spill] sm:$0xff] }
 0x1b1   :  { %v1018_v7 = vmax.f32 %v579_v0, 0.0  ;;  %v808_v62 = vadd.f32 %v9412_v16, %v9205_v10  ;;  %v9632_v16 = vadd.f32 %v15380_v12, %v9269_v25  ;;  %v924_v28 = vadd.f32 %v15383_v30, %v9207_v35 }
 0x1b2   :  { %1510 = vmatpush.bf16.msrb.mxu0 %v1186_v61  ;;  %1693 = vmatpush.bf16.msrb.mxu2 %v1167_v11  ;;  %v1026_v61 = vmax.f32 %v585_v56, 0.0  ;;  %v576_v11 = vadd.f32 %v9324_v39, %v9219_v2  ;;  %v9596_v45 = vpack.c.bf16 %v1002_v21, %v998_v49  ;;  %v9608_v39 = vadd.f32 %v9351_v52, %v9524_v59  ;;  %v15384_v21 = vld [vmem:[#allocation47_spill] sm:$0xff] }
 0x1b3   :  { %v9551_v8 = vpop.f32.mrf.mxu0  ;;  %v9622_v52 = vadd.f32 %v15377_v23, %v9269_v25  ;;  %v9646_v0 = vadd.f32 %v15384_v21, %v9247_v20  ;;  %v1024_v18 = vmax.f32 %v808_v62, 0.0 }
 0x1b4   :  { %7749 = vmatmul.msk.f32.gmra.mxu2 %vm449_vm8, %v9436_v27  ;;  %7781 = vmatmul.msk.f32.gmra.mxu3 %vm449_vm8, %v9436_v27  ;;  %v1014_v47 = vmax.f32 %v576_v11, 0.0  ;;  %v1009_v58 = vmax.f32 %v9608_v39, 0.0  ;;  %v8319_v39 = vld [vmem:[%s14978_s4 + $0x14] sm:$0xf0] }
 0x1b6   :  { %1511 = vmatpush.bf16.msrb.mxu0 %v1182_v17  ;;  %1694 = vmatpush.bf16.msrb.mxu2 %v1163_v14  ;;  %v9614_v14 = vadd.f32 %v9378_v1, %v9219_v2  ;;  %v15379_v1 = vld [vmem:[#allocation51_spill] sm:$0xff]  ;;  %v1166_v49 = vpack.c.bf16 %v1018_v7, %v1014_v47 }
 0x1b7   :  { %v9567_v57 = vpop.f32.mrf.mxu1  ;;  %v9569_v27 = vpop.f32.mrf.mxu2  ;;  %v805_v51 = vadd.f32 %v15379_v1, %v9496_v15 }
 0x1b8   :  { %v9575_v3 = vpop.f32.mrf.mxu3 }
 0x1b9   :  { %v942_v47 = vadd.f32 %v9575_v3, %v9152_v33  ;;  %v936_v3 = vadd.f32 %v9522_v63, %v9401_v36  ;;  %v15388_v63 = vld [vmem:[#allocation56_spill] sm:$0xff] }
 0x1ba   :  { %1512 = vmatpush.bf16.msrb.mxu0 %v1178_v24  ;;  %1695 = vmatpush.bf16.msrb.mxu2 %v9278_v34  ;;  %v9592_v34 = vadd.f32 %v9316_v9, %v9267_v6  ;;  %v811_v6 = vadd.f32 %v9431_v44, %v9207_v35  ;;  %v15381_v44 = vld [vmem:[#allocation52_spill] sm:$0xff]  ;;  %v921_v24 = vadd.f32 %v15382_v46, %v9205_v10 }
 0x1bb   :  { %v9582_v4 = vpop.f32.mrf.mxu0  ;;  %v9636_v56 = vadd.f32 %v15381_v44, %v9496_v15  ;;  %v1016_v15 = vmax.f32 %v9614_v14, 0.0  ;;  %v15385_v35 = vld [vmem:[#allocation48_spill] sm:$0xff]  ;;  %v7786_v14 = vld [vmem:[%s14978_s4] sm:$0xf]  ;;  %v9695_v44 = vpop.permute.xlu0 %386 }
 0x1bc   :  { %7750 = vmatmul.msk.f32.gmra.mxu2 %vm449_vm8, %v9455_v41  ;;  %7782 = vmatmul.msk.f32.gmra.mxu3 %vm449_vm8, %v9455_v41  ;;  %v9604_v41 = vadd.f32 %v9346_v40, %v9524_v59  ;;  %v1170_v40 = vpack.c.bf16 %v1026_v61, %v1022_v5  ;;  %v15378_v59 = vld [vmem:[#allocation50_spill] sm:$0xff]  ;;  %v1028_v61 = vmax.f32 %v811_v6, 0.0  ;;  %v1020_v5 = vmax.f32 %v805_v51, 0.0 }
 0x1bd   :  { %v9626_v19 = vadd.f32 %v15378_v59, %v9219_v2  ;;  %v1021_v62 = vmax.f32 %v9636_v56, 0.0  ;;  %v1029_v6 = vmax.f32 %v924_v28, 0.0 }
 0x1be   :  { %1513 = vmatpush.bf16.msrb.mxu0 %v1174_v37  ;;  %v1008_v2 = vmax.f32 %v9604_v41, 0.0  ;;  %v9658_v37 = vadd.f32 %v15385_v35, %v9247_v20  ;;  %v826_v20 = vadd.f32 %v9543_v54, %v9150_v38  ;;  %v15390_v35 = vld [vmem:[#allocation59_spill] sm:$0xff] }
 0x1bf   :  { %v9610_v9 = vpop.f32.mrf.mxu1  ;;  %v831_v17 = vpop.f32.mrf.mxu2  ;;  %v1017_v11 = vmax.f32 %v9626_v19, 0.0 }
 0x1c0   :  { %v944_v26 = vpop.f32.mrf.mxu3  ;;  %v832_v10 = vadd.f32 %v831_v17, %v9120_v53  ;;  %v8317_v17 = vld [vmem:[%s14978_s4 + $0x4] sm:$0xf0]  ;;  %v1048_v56 = vmax.f32 %v826_v20, 0.0 }
 0x1c1   :  { %v945_v7 = vadd.f32 %v944_v26, %v9120_v53  ;;  %v939_v53 = vadd.f32 %v9547_v55, %v9150_v38  ;;  %v829_v26 = vadd.f32 %v9569_v27, %v9152_v33  ;;  %v9684_v51 = vor.u32 %v8317_v17, %v7786_v14  ;;  %v15387_v55 = vld [vmem:[#allocation63_spill] sm:$0xff]  ;;  %v15391_v17 = vld [vmem:[#allocation60_spill] sm:$0xff] }
 0x1c2   :  { %1514 = vmatpush.bf16.msrb.mxu0 %v1170_v40  ;;  %v9673_v40 = vadd.f32 %v9494_v42, %v9166_v50  ;;  %v1056_v19 = vmax.f32 %v832_v10, 0.0  ;;  %v9686_v42 = vpack.c.bf16 %v1028_v61, %v1024_v18  ;;  %v933_v38 = vadd.f32 %v9502_v32, %v9166_v50  ;;  %v15389_v61 = vld [vmem:[#allocation57_spill] sm:$0xff] }
 0x1c3   :  { %v9648_v25 = vpop.f32.mrf.mxu0  ;;  %15386 = vst [vmem:[#allocation45_spill] sm:$0xff] %v9684_v51  ;;  %v823_v27 = vadd.f32 %v15387_v55, %v9401_v36  ;;  %v1057_v12 = vmax.f32 %v945_v7, 0.0  ;;  %v1049_v30 = vmax.f32 %v939_v53, 0.0  ;;  %v1052_v28 = vmax.f32 %v829_v26, 0.0 }
 0x1c4   :  { %7751 = vmatmul.msk.f32.gmra.mxu2 %vm449_vm8, %v9477_v29  ;;  %7783 = vmatmul.msk.f32.gmra.mxu3 %vm449_vm8, %v9477_v29  ;;  %v1025_v29 = vmax.f32 %v921_v24, 0.0  ;;  %v1053_v50 = vmax.f32 %v942_v47, 0.0  ;;  %v9705_v36 = vpack.c.bf16 %v1020_v5, %v1016_v15  ;;  %v927_v10 = vadd.f32 %v15389_v61, %v9421_v48 }
 0x1c5   :  { %v817_v7 = vadd.f32 %v15390_v35, %v9190_v31  ;;  %v1169_v15 = vpack.c.bf16 %v1021_v62, %v1017_v11  ;;  %v1044_v5 = vmax.f32 %v823_v27, 0.0  ;;  %v1000_v47 = vmax.f32 %v9592_v34, 0.0 }
 0x1c6   :  { %1515 = vmatpush.bf16.msrb.mxu0 %v1166_v49  ;;  %v9698_v24 = vpack.c.bf16 %v1029_v6, %v1025_v29  ;;  %v1012_v49 = vmax.f32 %v9646_v0, 0.0  ;;  %v930_v0 = vadd.f32 %v15391_v17, %v9190_v31  ;;  %v1041_v29 = vmax.f32 %v933_v38, 0.0 }
 0x1c7   :  { %v9681_v23 = vpop.f32.mrf.mxu1  ;;  %v834_v59 = vpop.f32.mrf.mxu2  ;;  %v1045_v6 = vmax.f32 %v936_v3, 0.0  ;;  %v1185_v26 = vpack.c.bf16 %v1053_v50, %v1049_v30  ;;  %v1005_v11 = vmax.f32 %v9632_v16, 0.0  ;;  %v7794_v16 = vld [vmem:[%s14978_s4 + $0x10] sm:$0xf] }
 0x1c8   :  { %v835_v54 = vadd.f32 %v834_v59, %v9356_v22  ;;  %v947_v1 = vpop.f32.mrf.mxu3  ;;  %v1004_v59 = vmax.f32 %v9622_v52, 0.0  ;;  %v1037_v34 = vmax.f32 %v930_v0, 0.0 }
 0x1c9   :  { %v948_v33 = vadd.f32 %v947_v1, %v9356_v22  ;;  %v1013_v22 = vmax.f32 %v9658_v37, 0.0  ;;  %v1040_v37 = vmax.f32 %v9673_v40, 0.0  ;;  %v1164_v40 = vpack.c.bf16 %v1012_v49, %v1008_v2  ;;  %v9732_v2 = vpop.permute.xlu0 %371 }
 0x1ca   :  { %v1060_v46 = vmax.f32 %v835_v54, 0.0  ;;  %1516 = vmatpush.bf16.msrb.mxu0 %v9594_v43  ;;  %v814_v43 = vadd.f32 %v15388_v63, %v9421_v48  ;;  %v1184_v48 = vpack.c.bf16 %v1052_v28, %v1048_v56  ;;  %v1036_v1 = vmax.f32 %v817_v7, 0.0  ;;  %v7802_v7 = vld [vmem:[%s14978_s4 + $0x20] sm:$0xf] }
 0x1cb   :  { %v1061_v32 = vmax.f32 %v948_v33, 0.0  ;;  %v9700_v21 = vpop.f32.mrf.mxu0  ;;  %v1165_v54 = vpack.c.bf16 %v1013_v22, %v1009_v58  ;;  %v1180_v52 = vpack.c.bf16 %v1044_v5, %v1040_v37  ;;  %v1181_v41 = vpack.c.bf16 %v1045_v6, %v1041_v29  ;;  %v9741_v58 = vpop.permute.xlu1 %376 }
 0x1cc   :  { %v1188_v18 = vpack.c.bf16 %v1060_v46, %v1056_v19  ;;  %1696 = vmatmul.bf16.vlgmr.msrb.gmra.mxu2 %v9684_v51  ;;  %v1032_v62 = vmax.f32 %v814_v43, 0.0  ;;  %v1033_v19 = vmax.f32 %v927_v10, 0.0  ;;  %v9748_v28 = vor.u32 %v8319_v39, %v7794_v16  ;;  %v15396_v10 = vld [vmem:[#allocation44_spill] sm:$0xff] }
 0x1cd   :  { %v1189_v14 = vpack.c.bf16 %v1061_v32, %v1057_v12 }
 0x1ce   :  { %1517 = vmatpush.bf16.msrb.mxu0 %v9596_v45  ;;  %v1001_v45 = vmax.f32 %v9600_v60, 0.0  ;;  %v1160_v60 = vpack.c.bf16 %v1004_v59, %v1000_v47  ;;  %v1176_v3 = vpack.c.bf16 %v1036_v1, %v1032_v62  ;;  %v1177_v56 = vpack.c.bf16 %v1037_v34, %v1033_v19  ;;  %15394 = vst [vmem:[#allocation46_spill] sm:$0xff] %v9748_v28  ;;  %v8429_v59 = vld [vmem:[%s14976_s2 + $0xf0] sm:$0xff]  ;;  %v8323_v19 = vld [vmem:[%s14978_s4 + $0x34] sm:$0xf0] }
 0x1cf   :  { %v9717_v20 = vpop.f32.mrf.mxu1  ;;  %v837_v53 = vpop.f32.mrf.mxu2  ;;  %2044 = vmatpush.bf16.msra.mxu2 %v1189_v14  ;;  %v7810_v62 = vld [vmem:[%s14978_s4 + $0x30] sm:$0xf] }
 0x1d0   :  { %v9721_v31 = vpop.f32.mrf.mxu3  ;;  %v838_v55 = vadd.f32 %v837_v53, %v9732_v2  ;;  %v1161_v27 = vpack.c.bf16 %v1005_v11, %v1001_v45  ;;  %v15400_v45 = vld [vmem:[#allocation42_spill] sm:$0xff]  ;;  %v9812_v16 = vor.u32 %v8323_v19, %v7810_v62 }
 0x1d1   :  { %15392 = vst [vmem:[#allocation50_spill] sm:$0xff] %v9721_v31  ;;  %1518 = vmatmul.bf16.vlgmr.msrb.gmra.mxu0 %v9684_v51 }
 0x1d2   :  { %1866 = vmatpush.bf16.msra.mxu0 %v1188_v18  ;;  %v1064_v50 = vmax.f32 %v838_v55, 0.0  ;;  %15402 = vst [vmem:[#allocation48_spill] sm:$0xff] %v9812_v16 }
 0x1d3   :  { %v9730_v38 = vpop.f32.mrf.mxu0  ;;  %2045 = vmatpush.bf16.msra.mxu2 %v1185_v26  ;;  %v8521_v26 = vmov 1  }
 0x1d4   :  { %8416 = vset.pattern.permute.xlu1 %v8521_v26  ;;  %8414 = vset.pattern.permute.xlu2 %v8521_v26 }
 0x1d5   :  { %1343 = vperm.xlu1 %8416, %v8429_v59   ;;  %8415 = vset.pattern.permute.xlu0 %v8521_v26 }
 0x1d6   :  { %1867 = vmatpush.bf16.msra.mxu0 %v1184_v48 }
 0x1d7   :  { %v9743_v12 = vpop.f32.mrf.mxu1  ;;  %v840_v33 = vpop.f32.mrf.mxu2  ;;  %2046 = vmatpush.bf16.msra.mxu2 %v1181_v41  ;;  %v15401_v41 = vld [vmem:[#allocation43_spill] sm:$0xff] }
 0x1d8   :  { %v841_v46 = vadd.f32 %v840_v33, %v9741_v58  ;;  %v9746_v30 = vpop.f32.mrf.mxu3  ;;  %v8432_v33 = vld [vmem:[%s14976_s2 + $0x60] sm:$0xff] }
 0x1d9   :  { %15393 = vst [vmem:[#allocation51_spill] sm:$0xff] %v9746_v30 }
 0x1da   :  { %1868 = vmatpush.bf16.msra.mxu0 %v1180_v52  ;;  %v1068_v32 = vmax.f32 %v841_v46, 0.0  ;;  %v8434_v46 = vld [vmem:[%s14976_s2 + $0xe0] sm:$0xff] }
 0x1db   :  { %v9750_v49 = vpop.f32.mrf.mxu0  ;;  %2047 = vmatpush.bf16.msra.mxu2 %v1177_v56 }
 0x1dc   :  { %1701 = vmatmul.bf16.gmra.mxu2 %v9748_v28  ;;  %v9753_v22 = vpack.c.bf16 %v1068_v32, %v1064_v50 }
 0x1dd   :  { %1271 = vperm.xlu1 %8416, %v8432_v33  }
 0x1de   :  { %1869 = vmatpush.bf16.msra.mxu0 %v1176_v3  ;;  %15395 = vst [vmem:[#allocation52_spill] sm:$0xff] %v9753_v22  ;;  %v8433_v3 = vld [vmem:[%s14976_s2 + $0xf8] sm:$0xff] }
 0x1df   :  { %v9755_v18 = vpop.f32.mrf.mxu1  ;;  %v843_v63 = vpop.f32.mrf.mxu2  ;;  %2048 = vmatpush.bf16.msra.mxu2 %v9698_v24 }
 0x1e0   :  { %v9759_v43 = vpop.f32.mrf.mxu3  ;;  %v844_v35 = vadd.f32 %v843_v63, %v15396_v10 }
 0x1e1   :  { %1523 = vmatmul.bf16.gmra.mxu0 %v9748_v28 }
 0x1e2   :  { %1870 = vmatpush.bf16.msra.mxu0 %v9686_v42  ;;  %v8321_v42 = vld [vmem:[%s14978_s4 + $0x24] sm:$0xf0]  ;;  %v1072_v17 = vmax.f32 %v844_v35, 0.0 }
 0x1e3   :  { %v9762_v61 = vpop.f32.mrf.mxu0  ;;  %2049 = vmatpush.bf16.msra.mxu2 %v1169_v15  ;;  %v9777_v37 = vor.u32 %v8321_v42, %v7802_v7  ;;  %v8435_v7 = vld [vmem:[%s14976_s2 + $0xe8] sm:$0xff] }
 0x1e4   :  { %v8436_v42 = vld [vmem:[%s14976_s2 + $0x68] sm:$0xff] }
 0x1e5   :  { %15398 = vst [vmem:[#allocation54_spill] sm:$0xff] %v9777_v37  ;;  %1339 = vperm.xlu1 %8416, %v8435_v7  }
 0x1e6   :  { %1871 = vmatpush.bf16.msra.mxu0 %v9705_v36 }
 0x1e7   :  { %v9772_v24 = vpop.f32.mrf.mxu1  ;;  %v846_v14 = vpop.f32.mrf.mxu2  ;;  %2050 = vmatpush.bf16.msra.mxu2 %v1165_v54  ;;  %v8431_v54 = vld [vmem:[%s14976_s2 + $0x78] sm:$0xff] }
 0x1e8   :  { %v847_v0 = vadd.f32 %v846_v14, %v9695_v44  ;;  %v9775_v36 = vpop.f32.mrf.mxu3  ;;  %1283 = vperm.xlu0 %8415, %v8431_v54   ;;  %v7818_v14 = vld [vmem:[%s14978_s4 + $0x40] sm:$0xf] }
 0x1e9   :  { %15397 = vst [vmem:[#allocation53_spill] sm:$0xff] %v9775_v36 }
 0x1ea   :  { %1872 = vmatpush.bf16.msra.mxu0 %v1164_v40  ;;  %v1076_v29 = vmax.f32 %v847_v0, 0.0  ;;  %v8430_v40 = vld [vmem:[%s14976_s2 + $0x70] sm:$0xff]  ;;  %v8437_v0 = vld [vmem:[%s14976_s2 + $0x58] sm:$0xff] }
 0x1eb   :  { %v9779_v15 = vpop.f32.mrf.mxu0  ;;  %2051 = vmatpush.bf16.msra.mxu2 %v1161_v27  ;;  %1279 = vperm.xlu2 %8414, %v8430_v40   ;;  %v15405_v40 = vld [vmem:[#allocation41_spill] sm:$0xff] }
 0x1ec   :  { %1706 = vmatmul.bf16.gmra.mxu2 %v9777_v37  ;;  %v9782_v5 = vpack.c.bf16 %v1076_v29, %v1072_v17  ;;  %v8325_v17 = vld [vmem:[%s14978_s4 + $0x44] sm:$0xf0] }
 0x1ed   :  { %v15404_v29 = vld [vmem:[#allocation58_spill] sm:$0xff]  ;;  %v9852_v19 = vor.u32 %v8325_v17, %v7818_v14  ;;  %v8442_v17 = vld [vmem:[%s14976_s2 + $0xd8] sm:$0xff] }
 0x1ee   :  { %1873 = vmatpush.bf16.msra.mxu0 %v1160_v60  ;;  %15399 = vst [vmem:[#allocation47_spill] sm:$0xff] %v9782_v5  ;;  %v8441_v14 = vld [vmem:[%s14976_s2 + $0x48] sm:$0xff] }
 0x1ef   :  { %v9784_v6 = vpop.f32.mrf.mxu1  ;;  %v849_v53 = vpop.f32.mrf.mxu2  ;;  %15406 = vst [vmem:[#allocation56_spill] sm:$0xff] %v9852_v19 }
 0x1f0   :  { %v9786_v48 = vpop.f32.mrf.mxu3  ;;  %v850_v11 = vadd.f32 %v849_v53, %v15400_v45  ;;  %1335 = vperm.xlu0 %8415, %v8434_v46  }
 0x1f1   :  { %1528 = vmatmul.bf16.gmra.mxu0 %v9777_v37  ;;  %v15412_v37 = vld [vmem:[#allocation49_spill] sm:$0xff] }
 0x1f2   :  { %v1080_v52 = vmax.f32 %v850_v11, 0.0 }
 0x1f3   :  { %v9789_v47 = vpop.f32.mrf.mxu0  ;;  %1347 = vperm.xlu2 %8414, %v8433_v3   ;;  %v8440_v3 = vld [vmem:[%s14976_s2 + $0x40] sm:$0xff] }
 0x1f7   :  { %v9807_v1 = vpop.f32.mrf.mxu1  ;;  %v852_v34 = vpop.f32.mrf.mxu2 }
 0x1f8   :  { %v853_v60 = vadd.f32 %v852_v34, %v15401_v41  ;;  %v9810_v55 = vpop.f32.mrf.mxu3  ;;  %1267 = vperm.xlu0 %8415, %v8437_v0   ;;  %v7826_v0 = vld [vmem:[%s14978_s4 + $0x50] sm:$0xf] }
 0x1fa   :  { %v1084_v39 = vmax.f32 %v853_v60, 0.0  ;;  %v8438_v60 = vld [vmem:[%s14976_s2 + $0xd0] sm:$0xff] }
 0x1fb   :  { %v9814_v27 = vpop.f32.mrf.mxu0  ;;  %1275 = vperm.xlu2 %8414, %v8436_v42   ;;  %1327 = vperm.xlu1 %8416, %v8438_v60  }
 0x1fc   :  { %1711 = vmatmul.bf16.gmra.mxu2 %v9812_v16  ;;  %v9823_v56 = vpack.c.bf16 %v1084_v39, %v1080_v52  ;;  %v8439_v39 = vld [vmem:[%s14976_s2 + $0x50] sm:$0xff] }
 0x1fe   :  { %15403 = vst [vmem:[#allocation63_spill] sm:$0xff] %v9823_v56  ;;  %v15415_v56 = vld [vmem:[#allocation40_spill] sm:$0xff] }
 0x1ff   :  { %v760_v50 = vpop.f32.mrf.mxu1  ;;  %v855_v32 = vpop.f32.mrf.mxu2 }
 0x200   :  { %v9828_v63 = vpop.f32.mrf.mxu3  ;;  %v856_v53 = vadd.f32 %v855_v32, %v15404_v29  ;;  %1255 = vperm.xlu0 %8415, %v8440_v3   ;;  %v761_v28 = vadd.f32 %v760_v50, %v15412_v37 }
 0x201   :  { %1533 = vmatmul.bf16.gmra.mxu0 %v9812_v16 }
 0x202   :  { %v1088_v54 = vmax.f32 %v856_v53, 0.0  ;;  %v8327_v53 = vld [vmem:[%s14978_s4 + $0x54] sm:$0xf0] }
 0x203   :  { %v9831_v35 = vpop.f32.mrf.mxu0  ;;  %1263 = vperm.xlu2 %8414, %v8439_v39   ;;  %1259 = vperm.xlu1 %8416, %v8441_v14   ;;  %v15409_v39 = vld [vmem:[#allocation37_spill] sm:$0xff]  ;;  %v15410_v14 = vld [vmem:[#allocation36_spill] sm:$0xff]  ;;  %v9897_v16 = vor.u32 %v8327_v53, %v7826_v0  ;;  %v15414_v0 = vld [vmem:[#allocation39_spill] sm:$0xff] }
 0x204   :  { %v758_v53 = vadd.f32 %v9807_v1, %v15414_v0 }
 0x205   :  { %15411 = vst [vmem:[#allocation59_spill] sm:$0xff] %v9897_v16 }
 0x207   :  { %v763_v26 = vpop.f32.mrf.mxu1  ;;  %v858_v59 = vpop.f32.mrf.mxu2 }
 0x208   :  { %v859_v11 = vadd.f32 %v858_v59, %v15405_v40  ;;  %v9850_v62 = vpop.f32.mrf.mxu3  ;;  %v8443_v59 = vld [vmem:[%s14976_s2 + $0xc8] sm:$0xff]  ;;  %v764_v3 = vadd.f32 %v763_v26, %v15409_v39  ;;  %v8445_v26 = vld [vmem:[%s14976_s2 + $0xc0] sm:$0xff] }
 0x209   :  { %1323 = vperm.xlu0 %8415, %v8443_v59   ;;  %v15413_v59 = vld [vmem:[#allocation38_spill] sm:$0xff] }
 0x20a   :  { %v1092_v34 = vmax.f32 %v859_v11, 0.0  ;;  %v15408_v11 = vld [vmem:[#allocation35_spill] sm:$0xff]  ;;  %v1115_v50 = vmax.f32 %v764_v3, 0.0  ;;  %v1107_v3 = vmax.f32 %v758_v53, 0.0 }
 0x20b   :  { %v9854_v52 = vpop.f32.mrf.mxu0  ;;  %1331 = vperm.xlu2 %8414, %v8442_v17  }
 0x20c   :  { %1716 = vmatmul.bf16.gmra.mxu2 %v9852_v19  ;;  %v9863_v33 = vpack.c.bf16 %v1092_v34, %v1088_v54 }
 0x20e   :  { %15407 = vst [vmem:[#allocation57_spill] sm:$0xff] %v9863_v33 }
 0x20f   :  { %v766_v46 = vpop.f32.mrf.mxu1  ;;  %v9868_v32 = vpop.f32.mrf.mxu2 }
 0x210   :  { %v9870_v7 = vpop.f32.mrf.mxu3  ;;  %v767_v54 = vadd.f32 %v766_v46, %v15408_v11  ;;  %v8444_v46 = vld [vmem:[%s14976_s2 + $0x30] sm:$0xff] }
 0x211   :  { %1538 = vmatmul.bf16.gmra.mxu0 %v9852_v19  ;;  %1247 = vperm.xlu1 %8416, %v8444_v46   ;;  %v1111_v46 = vmax.f32 %v761_v28, 0.0  ;;  %v743_v28 = vadd.f32 %v9717_v20, %v15404_v29  ;;  %v7834_v20 = vld [vmem:[%s14978_s4 + $0x60] sm:$0xf] }
 0x212   :  { %v1119_v51 = vmax.f32 %v767_v54, 0.0 }
 0x213   :  { %v9873_v42 = vpop.f32.mrf.mxu0  ;;  %1319 = vperm.xlu2 %8414, %v8445_v26   ;;  %v749_v26 = vadd.f32 %v9755_v18, %v15415_v56  ;;  %v8447_v18 = vld [vmem:[%s14976_s2 + $0xb8] sm:$0xff] }
 0x215   :  { %v1095_v53 = vmax.f32 %v749_v26, 0.0 }
 0x217   :  { %v769_v34 = vpop.f32.mrf.mxu1  ;;  %v9891_v60 = vpop.f32.mrf.mxu2 }
 0x218   :  { %v770_v17 = vadd.f32 %v769_v34, %v15410_v14  ;;  %v9895_v19 = vpop.f32.mrf.mxu3  ;;  %v755_v34 = vadd.f32 %v9784_v6, %v15413_v59  ;;  %v15416_v6 = vld [vmem:[#allocation55_spill] sm:$0xff] }
 0x219   :  { %v752_v31 = vadd.f32 %v9772_v24, %v15416_v6  ;;  %1315 = vperm.xlu1 %8416, %v8447_v18   ;;  %v8448_v24 = vld [vmem:[%s14976_s2 + $0x38] sm:$0xff] }
 0x21a   :  { %v1123_v22 = vmax.f32 %v770_v17, 0.0  ;;  %v8446_v17 = vld [vmem:[%s14976_s2 + $0xb0] sm:$0xff]  ;;  %v1103_v1 = vmax.f32 %v755_v34, 0.0  ;;  %v746_v34 = vadd.f32 %v9743_v12, %v15405_v40  ;;  %v737_v12 = vadd.f32 %v9610_v9, %v15400_v45 }
 0x21b   :  { %v650_v5 = vpop.f32.mrf.mxu0  ;;  %1311 = vperm.xlu0 %8415, %v8446_v17   ;;  %1251 = vperm.xlu2 %8414, %v8448_v24   ;;  %v8329_v17 = vld [vmem:[%s14978_s4 + $0x64] sm:$0xf0]  ;;  %v734_v9 = vadd.f32 %v9567_v57, %v9695_v44 }
 0x21c   :  { %1721 = vmatmul.bf16.gmra.mxu2 %v9897_v16  ;;  %v1219_v54 = vpack.c.bf16 %v1123_v22, %v1119_v51  ;;  %v1215_v51 = vpack.c.bf16 %v1115_v50, %v1111_v46  ;;  %v1099_v50 = vmax.f32 %v752_v31, 0.0  ;;  %v8449_v46 = vld [vmem:[%s14976_s2 + $0x28] sm:$0xff]  ;;  %v740_v31 = vadd.f32 %v9681_v23, %v15401_v41 }
 0x21d   :  { %v9950_v24 = vor.u32 %v8329_v17, %v7834_v20  ;;  %v648_v20 = vadd.f32 %v9873_v42, %v15412_v37 }
 0x21e   :  { %1777 = vmatpush.bf16.msrb.mxu3 %v1219_v54  ;;  %v1211_v54 = vpack.c.bf16 %v1107_v3, %v1103_v1  ;;  %v1087_v1 = vmax.f32 %v743_v28, 0.0  ;;  %v1091_v3 = vmax.f32 %v746_v34, 0.0  ;;  %v1207_v18 = vpack.c.bf16 %v1099_v50, %v1095_v53  ;;  %v8450_v28 = vld [vmem:[%s14976_s2 + $0xa0] sm:$0xff]  ;;  %v8452_v50 = vld [vmem:[%s14976_s2 + $0x10] sm:$0xff] }
 0x21f   :  { %v9916_v30 = vpop.f32.mrf.mxu2  ;;  %v8451_v34 = vld [vmem:[%s14976_s2 + $0x20] sm:$0xff]  ;;  %v651_v53 = vadd.f32 %v650_v5, %v15409_v39 }
 0x220   :  { %v9920_v33 = vpop.f32.mrf.mxu3  ;;  %v1203_v57 = vpack.c.bf16 %v1091_v3, %v1087_v1  ;;  %v15417_v5 = vld [vmem:[#allocation61_spill] sm:$0xff]  ;;  %v15418_v1 = vld [vmem:[#allocation62_spill] sm:$0xff] }
 0x221   :  { %1543 = vmatmul.bf16.gmra.mxu0 %v9897_v16  ;;  %1303 = vperm.xlu1 %8416, %v8450_v28   ;;  %v728_v3 = vadd.f32 %v15418_v1, %v9741_v58 }
 0x222   :  { %1778 = vmatpush.bf16.msrb.mxu3 %v1215_v51 }
 0x223   :  { %v653_v22 = vpop.f32.mrf.mxu0  ;;  %1243 = vperm.xlu0 %8415, %v8449_v46   ;;  %v1079_v46 = vmax.f32 %v737_v12, 0.0  ;;  %1239 = vperm.xlu2 %8414, %v8451_v34   ;;  %v645_v34 = vadd.f32 %v9854_v52, %v15414_v0  ;;  %v8454_v52 = vld [vmem:[%s14976_s2 + $0xa8] sm:$0xff] }
 0x224   :  { %v654_v16 = vadd.f32 %v653_v22, %v15408_v11  ;;  %v1083_v22 = vmax.f32 %v740_v31, 0.0  ;;  %v1075_v31 = vmax.f32 %v734_v9, 0.0  ;;  %v1110_v9 = vmax.f32 %v648_v20, 0.0  ;;  %v7842_v20 = vld [vmem:[%s14978_s4 + $0x70] sm:$0xf] }
 0x226   :  { %1779 = vmatpush.bf16.msrb.mxu3 %v1211_v54  ;;  %v731_v54 = vadd.f32 %v9541_v13, %v15396_v10  ;;  %v1118_v17 = vmax.f32 %v654_v16, 0.0  ;;  %v1199_v16 = vpack.c.bf16 %v1083_v22, %v1079_v46  ;;  %v639_v46 = vadd.f32 %v9814_v27, %v15416_v6 }
 0x227   :  { %v9946_v26 = vpop.f32.mrf.mxu2  ;;  %v1106_v22 = vmax.f32 %v645_v34, 0.0  ;;  %v633_v34 = vadd.f32 %v9779_v15, %v15405_v40  ;;  %v8457_v15 = vld [vmem:[%s14976_s2 + $0x90] sm:$0xff] }
 0x228   :  { %v9948_v51 = vpop.f32.mrf.mxu3 }
 0x22a   :  { %1780 = vmatpush.bf16.msrb.mxu3 %v1207_v18  ;;  %v1071_v18 = vmax.f32 %v731_v54, 0.0  ;;  %v642_v54 = vadd.f32 %v9831_v35, %v15413_v59 }
 0x22b   :  { %v656_v23 = vpop.f32.mrf.mxu0  ;;  %1231 = vperm.xlu0 %8415, %v8452_v50   ;;  %v1114_v50 = vmax.f32 %v651_v53, 0.0  ;;  %1307 = vperm.xlu2 %8414, %v8454_v52   ;;  %v1090_v52 = vmax.f32 %v633_v34, 0.0  ;;  %v8333_v34 = vld [vmem:[%s14978_s4 + $0x84] sm:$0xf0] }
 0x22c   :  { %v657_v13 = vadd.f32 %v656_v23, %v15410_v14  ;;  %1726 = vmatmul.bf16.gmra.mxu2 %v9950_v24  ;;  %v725_v23 = vadd.f32 %v15417_v5, %v9732_v2  ;;  %v8453_v5 = vld [vmem:[%s14976_s2 + $0x18] sm:$0xff]  ;;  %v1195_v53 = vpack.c.bf16 %v1075_v31, %v1071_v18  ;;  %v1102_v27 = vmax.f32 %v642_v54, 0.0  ;;  %v8316_v18 = vld [vmem:[%s14978_s4 + $0x4] sm:$0xf]  ;;  %v7788_v31 = vld [vmem:[%s14978_s4 + $0x8] sm:$0xf0] }
 0x22d   :  { %1235 = vperm.xlu1 %8416, %v8453_v5   ;;  %v1214_v35 = vpack.c.bf16 %v1114_v50, %v1110_v9  ;;  %v1098_v50 = vmax.f32 %v639_v46, 0.0  ;;  %v10013_v54 = vor.u32 %v8316_v18, %v7788_v31  ;;  %v630_v9 = vadd.f32 %v9762_v61, %v15404_v29  ;;  %v8458_v46 = vld [vmem:[%s14976_s2 + $0x80] sm:$0xff]  ;;  %v8460_v18 = vld [vmem:[%s14976_s2 + $0x88] sm:$0xff] }
 0x22e   :  { %v1122_v12 = vmax.f32 %v657_v13, 0.0  ;;  %1781 = vmatpush.bf16.msrb.mxu3 %v1203_v57  ;;  %v1063_v13 = vmax.f32 %v725_v23, 0.0  ;;  %v1067_v57 = vmax.f32 %v728_v3, 0.0  ;;  %v636_v23 = vadd.f32 %v9789_v47, %v15415_v56 }
 0x22f   :  { %v9971_v28 = vpop.f32.mrf.mxu2 }
 0x230   :  { %v9979_v36 = vpop.f32.mrf.mxu3  ;;  %v1218_v42 = vpack.c.bf16 %v1122_v12, %v1118_v17  ;;  %v8331_v17 = vld [vmem:[%s14978_s4 + $0x74] sm:$0xf0]  ;;  %v1191_v3 = vpack.c.bf16 %v1067_v57, %v1063_v13  ;;  %v1094_v5 = vmax.f32 %v636_v23, 0.0  ;;  %v8456_v13 = vld [vmem:[%s14976_s2] sm:$0xff]  ;;  %v627_v57 = vadd.f32 %v9750_v49, %v15401_v41 }
 0x231   :  { %1548 = vmatmul.bf16.gmra.mxu0 %v9950_v24  ;;  %v8455_v12 = vld [vmem:[%s14976_s2 + $0x98] sm:$0xff]  ;;  %v10011_v47 = vor.u32 %v8331_v17, %v7842_v20  ;;  %v621_v49 = vadd.f32 %v9700_v21, %v9695_v44  ;;  %v618_v23 = vadd.f32 %v9648_v25, %v15396_v10  ;;  %v615_v21 = vadd.f32 %v9582_v4, %v9741_v58  ;;  %v7850_v25 = vld [vmem:[%s14978_s4 + $0x80] sm:$0xf]  ;;  %v8318_v4 = vld [vmem:[%s14978_s4 + $0x14] sm:$0xf] }
 0x232   :  { %1599 = vmatpush.bf16.msrb.mxu1 %v1218_v42  ;;  %1782 = vmatpush.bf16.msrb.mxu3 %v1199_v16  ;;  %v1210_v16 = vpack.c.bf16 %v1106_v22, %v1102_v27  ;;  %v1206_v61 = vpack.c.bf16 %v1098_v50, %v1094_v5  ;;  %v624_v22 = vadd.f32 %v9730_v38, %v15400_v45  ;;  %v1082_v20 = vmax.f32 %v627_v57, 0.0  ;;  %v8459_v38 = vld [vmem:[%s14976_s2 + $0x8] sm:$0xff]  ;;  %v7796_v5 = vld [vmem:[%s14978_s4 + $0x18] sm:$0xf0] }
 0x233   :  { %1299 = vperm.xlu0 %8415, %v8455_v12   ;;  %1295 = vperm.xlu2 %8414, %v8457_v15   ;;  %v1074_v31 = vmax.f32 %v621_v49, 0.0  ;;  %v612_v50 = vadd.f32 %v9551_v8, %v9732_v2  ;;  %v1066_v57 = vmax.f32 %v615_v21, 0.0  ;;  %v10067_v49 = vor.u32 %v8318_v4, %v7796_v5 }
 0x234   :  { %v1078_v27 = vmax.f32 %v624_v22, 0.0 }
 0x235   :  { %1223 = vperm.xlu1 %8416, %v8456_v13   ;;  %15420 = vst [vmem:[#allocation44_spill] sm:$0xff] %v10067_v49 }
 0x236   :  { %1600 = vmatpush.bf16.msrb.mxu1 %v1214_v35  ;;  %1783 = vmatpush.bf16.msrb.mxu3 %v1195_v53  ;;  %v1086_v35 = vmax.f32 %v630_v9, 0.0 }
 0x237   :  { %v876_v1 = vpop.f32.mrf.mxu2 }
 0x238   :  { %v989_v42 = vpop.f32.mrf.mxu3  ;;  %v1202_v12 = vpack.c.bf16 %v1090_v52, %v1086_v35  ;;  %v877_v22 = vadd.f32 %v876_v1, %v15409_v39  ;;  %v871_v1 = vadd.f32 %v9946_v26, %v15414_v0 }
 0x239   :  { %v990_v35 = vadd.f32 %v989_v42, %v15409_v39  ;;  %v984_v42 = vadd.f32 %v9948_v51, %v15414_v0  ;;  %v865_v0 = vadd.f32 %v9891_v60, %v15416_v6  ;;  %v978_v51 = vadd.f32 %v9895_v19, %v15416_v6 }
 0x23a   :  { %1601 = vmatpush.bf16.msrb.mxu1 %v1210_v16  ;;  %1784 = vmatpush.bf16.msrb.mxu3 %v1191_v3  ;;  %v1198_v3 = vpack.c.bf16 %v1082_v20, %v1078_v27  ;;  %v1070_v16 = vmax.f32 %v618_v23, 0.0  ;;  %v1062_v20 = vmax.f32 %v612_v50, 0.0  ;;  %v972_v19 = vadd.f32 %v9850_v62, %v15405_v40  ;;  %v7804_v40 = vld [vmem:[%s14978_s4 + $0x28] sm:$0xf0] }
 0x23b   :  { %1287 = vperm.xlu0 %8415, %v8458_v46   ;;  %1227 = vperm.xlu2 %8414, %v8459_v38   ;;  %v10062_v46 = vor.u32 %v8333_v34, %v7850_v25  ;;  %v1117_v21 = vmax.f32 %v990_v35, 0.0  ;;  %v1108_v34 = vmax.f32 %v871_v1, 0.0  ;;  %v1109_v50 = vmax.f32 %v984_v42, 0.0  ;;  %v15425_v1 = vld [vmem:[#allocation50_spill] sm:$0xff] }
 0x23c   :  { %1731 = vmatmul.bf16.gmra.mxu2 %v10011_v47  ;;  %v1194_v8 = vpack.c.bf16 %v1074_v31, %v1070_v16  ;;  %v975_v16 = vadd.f32 %v9870_v7, %v15415_v56  ;;  %v1100_v60 = vmax.f32 %v865_v0, 0.0  ;;  %v1101_v6 = vmax.f32 %v978_v51, 0.0  ;;  %v8320_v7 = vld [vmem:[%s14978_s4 + $0x24] sm:$0xf]  ;;  %v15428_v51 = vld [vmem:[#allocation47_spill] sm:$0xff] }
 0x23d   :  { %1785 = vmatmul.bf16.vlgmr.msrb.gmra.mxu3 %v10013_v54  ;;  %1291 = vperm.xlu1 %8416, %v8460_v18   ;;  %15419 = vst [vmem:[#allocation60_spill] sm:$0xff] %v10062_v46  ;;  %v1116_v18 = vmax.f32 %v877_v22, 0.0  ;;  %v969_v62 = vadd.f32 %v9828_v63, %v15404_v29  ;;  %v966_v22 = vadd.f32 %v9810_v55, %v15401_v41 }
 0x23e   :  { %1602 = vmatpush.bf16.msrb.mxu1 %v1206_v61  ;;  %v957_v29 = vadd.f32 %v9759_v43, %v15396_v10  ;;  %v951_v43 = vadd.f32 %v15425_v1, %v9732_v2  ;;  %v15426_v10 = vld [vmem:[#allocation51_spill] sm:$0xff]  ;;  %v7866_v2 = vld [vmem:[%s14978_s4 + $0xa0] sm:$0xf] }
 0x23f   :  { %v879_v53 = vpop.f32.mrf.mxu2  ;;  %v1089_v63 = vmax.f32 %v969_v62, 0.0  ;;  %v1085_v41 = vmax.f32 %v966_v22, 0.0  ;;  %v7882_v22 = vld [vmem:[%s14978_s4 + $0xc0] sm:$0xf] }
 0x240   :  { %v992_v17 = vpop.f32.mrf.mxu3  ;;  %v880_v9 = vadd.f32 %v879_v53, %v15408_v11 }
 0x241   :  { %1553 = vmatmul.bf16.gmra.mxu0 %v10011_v47  ;;  %v993_v13 = vadd.f32 %v992_v17, %v15408_v11  ;;  %v874_v11 = vadd.f32 %v9971_v28, %v15412_v37  ;;  %v987_v17 = vadd.f32 %v9979_v36, %v15412_v37  ;;  %v868_v36 = vadd.f32 %v9916_v30, %v15413_v59 }
 0x242   :  { %1603 = vmatpush.bf16.msrb.mxu1 %v1202_v12  ;;  %v1120_v12 = vmax.f32 %v880_v9, 0.0  ;;  %v981_v37 = vadd.f32 %v9920_v33, %v15413_v59  ;;  %v862_v59 = vadd.f32 %v9868_v32, %v15415_v56  ;;  %v8335_v32 = vld [vmem:[%s14978_s4 + $0x94] sm:$0xf0] }
 0x243   :  { %v1121_v27 = vmax.f32 %v993_v13, 0.0  ;;  %v1112_v26 = vmax.f32 %v874_v11, 0.0  ;;  %v1104_v9 = vmax.f32 %v868_v36, 0.0 }
 0x244   :  { %v1105_v4 = vmax.f32 %v981_v37, 0.0 }
 0x245   :  { %v1216_v33 = vpack.c.bf16 %v1116_v18, %v1112_v26  ;;  %v1212_v13 = vpack.c.bf16 %v1108_v34, %v1104_v9  ;;  %v15427_v18 = vld [vmem:[#allocation63_spill] sm:$0xff] }
 0x246   :  { %1604 = vmatpush.bf16.msrb.mxu1 %v1198_v3  ;;  %v1113_v3 = vmax.f32 %v987_v17, 0.0  ;;  %v1213_v5 = vpack.c.bf16 %v1109_v50, %v1105_v4  ;;  %v8322_v26 = vld [vmem:[%s14978_s4 + $0x34] sm:$0xf] }
 0x247   :  { %v882_v15 = vpop.f32.mrf.mxu2  ;;  %v10175_v4 = vpop.permute.xlu1 %1343 }
 0x248   :  { %v883_v52 = vadd.f32 %v882_v15, %v15410_v14  ;;  %v995_v61 = vpop.f32.mrf.mxu3  ;;  %v1217_v30 = vpack.c.bf16 %v1117_v21, %v1113_v3  ;;  %v7858_v15 = vld [vmem:[%s14978_s4 + $0x90] sm:$0xf]  ;;  %v1065_v21 = vmax.f32 %v951_v43, 0.0  ;;  %v7812_v3 = vld [vmem:[%s14978_s4 + $0x38] sm:$0xf0]  ;;  %15433 = vst [vmem:[#allocation37_spill] sm:$0xff] %v10175_v4 }
 0x249   :  { %v996_v53 = vadd.f32 %v995_v61, %v15410_v14  ;;  %v1190_v14 = vpack.c.bf16 %v1066_v57, %v1062_v20  ;;  %v1096_v57 = vmax.f32 %v862_v59, 0.0  ;;  %v10121_v35 = vor.u32 %v8335_v32, %v7858_v15  ;;  %v10165_v59 = vpop.permute.xlu2 %1279  ;;  %v7820_v15 = vld [vmem:[%s14978_s4 + $0x48] sm:$0xf0]  ;;  %v8332_v4 = vld [vmem:[%s14978_s4 + $0x84] sm:$0xf] }
 0x24a   :  { %v1124_v23 = vmax.f32 %v883_v52, 0.0  ;;  %1605 = vmatpush.bf16.msrb.mxu1 %v1194_v8  ;;  %v1097_v52 = vmax.f32 %v975_v16, 0.0  ;;  %v963_v8 = vadd.f32 %v9786_v48, %v15400_v45  ;;  %v15423_v48 = vld [vmem:[#allocation53_spill] sm:$0xff]  ;;  %15432 = vst [vmem:[#allocation35_spill] sm:$0xff] %v10165_v59 }
 0x24b   :  { %v1125_v38 = vmax.f32 %v996_v53, 0.0  ;;  %15421 = vst [vmem:[#allocation42_spill] sm:$0xff] %v10121_v35  ;;  %v1093_v53 = vmax.f32 %v972_v19, 0.0  ;;  %v960_v45 = vadd.f32 %v15423_v48, %v9695_v44  ;;  %v7874_v19 = vld [vmem:[%s14978_s4 + $0xb0] sm:$0xf] }
 0x24c   :  { %v1220_v39 = vpack.c.bf16 %v1124_v23, %v1120_v12  ;;  %1736 = vmatmul.bf16.gmra.mxu2 %v10062_v46  ;;  %v1209_v20 = vpack.c.bf16 %v1101_v6, %v1097_v52  ;;  %v1208_v12 = vpack.c.bf16 %v1100_v60, %v1096_v57  ;;  %v10123_v23 = vor.u32 %v8320_v7, %v7804_v40  ;;  %v8339_v60 = vld [vmem:[%s14978_s4 + $0xb4] sm:$0xf0] }
 0x24d   :  { %v1221_v31 = vpack.c.bf16 %v1125_v38, %v1121_v27  ;;  %1790 = vmatmul.bf16.gmra.mxu3 %v10067_v49  ;;  %v1081_v11 = vmax.f32 %v963_v8, 0.0  ;;  %v1205_v55 = vpack.c.bf16 %v1093_v53, %v1089_v63  ;;  %v15424_v38 = vld [vmem:[#allocation57_spill] sm:$0xff]  ;;  %v1077_v44 = vmax.f32 %v960_v45, 0.0  ;;  %v8341_v53 = vld [vmem:[%s14978_s4 + $0xc4] sm:$0xf0] }
 0x24e   :  { %v10079_v28 = vpop.f32.mrf.mxu0  ;;  %1606 = vmatpush.bf16.msrb.mxu1 %v1190_v14  ;;  %15422 = vst [vmem:[#allocation43_spill] sm:$0xff] %v10123_v23  ;;  %v1073_v14 = vmax.f32 %v957_v29, 0.0  ;;  %v10195_v7 = vor.u32 %v8339_v60, %v7874_v19  ;;  %v7828_v63 = vld [vmem:[%s14978_s4 + $0x58] sm:$0xf0]  ;;  %v10229_v45 = vor.u32 %v8341_v53, %v7882_v22 }
 0x24f   :  { %2133 = vmatpush.bf16.msra.mxu3 %v1221_v31  ;;  %v10085_v25 = vpop.f32.mrf.mxu2  ;;  %v1201_v42 = vpack.c.bf16 %v1085_v41, %v1081_v11  ;;  %v10201_v62 = vpop.permute.xlu1 %1271 }
 0x250   :  { %v1197_v36 = vpack.c.bf16 %v1077_v44, %v1073_v14  ;;  %15435 = vst [vmem:[#allocation49_spill] sm:$0xff] %v10195_v7  ;;  %v8328_v44 = vld [vmem:[%s14978_s4 + $0x64] sm:$0xf] }
 0x251   :  { %1558 = vmatmul.bf16.gmra.mxu0 %v10062_v46  ;;  %1607 = vmatmul.bf16.vlgmr.msrb.gmra.mxu1 %v10013_v54  ;;  %v10183_v6 = vpop.permute.xlu2 %1347  ;;  %15437 = vst [vmem:[#allocation39_spill] sm:$0xff] %v10201_v62 }
 0x252   :  { %1955 = vmatpush.bf16.msra.mxu1 %v1220_v39  ;;  %v954_v39 = vadd.f32 %v15426_v10, %v9741_v58  ;;  %v8337_v58 = vld [vmem:[%s14978_s4 + $0xa4] sm:$0xf0]  ;;  %15434 = vst [vmem:[#allocation36_spill] sm:$0xff] %v10183_v6  ;;  %v7890_v10 = vld [vmem:[%s14978_s4 + $0xd0] sm:$0xf] }
 0x253   :  { %2134 = vmatpush.bf16.msra.mxu3 %v1217_v30  ;;  %v10160_v34 = vor.u32 %v8337_v58, %v7866_v2  ;;  %v10162_v30 = vor.u32 %v8322_v26, %v7812_v3  ;;  %15440 = vst [vmem:[#allocation61_spill] sm:$0xff] %v10229_v45 }
 0x254   :  { %v1069_v31 = vmax.f32 %v954_v39, 0.0  ;;  %v8343_v39 = vld [vmem:[%s14978_s4 + $0xd4] sm:$0xf0] }
 0x255   :  { %15429 = vst [vmem:[#allocation58_spill] sm:$0xff] %v10160_v34 }
 0x256   :  { %1956 = vmatpush.bf16.msra.mxu1 %v1216_v33  ;;  %v10105_v56 = vpop.f32.mrf.mxu0  ;;  %v1193_v50 = vpack.c.bf16 %v1069_v31, %v1065_v21  ;;  %15430 = vst [vmem:[#allocation41_spill] sm:$0xff] %v10162_v30  ;;  %v15431_v33 = vld [vmem:[#allocation52_spill] sm:$0xff]  ;;  %v10265_v31 = vor.u32 %v8343_v39, %v7890_v10 }
 0x257   :  { %2135 = vmatpush.bf16.msra.mxu3 %v1213_v5  ;;  %v10115_v61 = vpop.f32.mrf.mxu2  ;;  %v10227_v48 = vpop.permute.xlu1 %1339 }
 0x258   :  { %15439 = vst [vmem:[#allocation55_spill] sm:$0xff] %v10227_v48 }
 0x259   :  { %v10207_v8 = vpop.permute.xlu2 %1275  ;;  %15448 = vst [vmem:[#allocation52_spill] sm:$0xff] %v10265_v31 }
 0x25a   :  { %1957 = vmatpush.bf16.msra.mxu1 %v1212_v13  ;;  %v8324_v13 = vld [vmem:[%s14978_s4 + $0x44] sm:$0xf]  ;;  %15438 = vst [vmem:[#allocation40_spill] sm:$0xff] %v10207_v8  ;;  %v10263_v21 = vpop.permute.xlu0 %1283 }
 0x25b   :  { %2136 = vmatpush.bf16.msra.mxu3 %v1209_v20  ;;  %v10197_v40 = vor.u32 %v8324_v13, %v7820_v15  ;;  %15447 = vst [vmem:[#allocation47_spill] sm:$0xff] %v10263_v21  ;;  %v8330_v13 = vld [vmem:[%s14978_s4 + $0x74] sm:$0xf]  ;;  %v7844_v15 = vld [vmem:[%s14978_s4 + $0x78] sm:$0xf0] }
 0x25c   :  { %1741 = vmatmul.bf16.gmra.mxu2 %v10121_v35 }
 0x25d   :  { %1795 = vmatmul.bf16.gmra.mxu3 %v10123_v23  ;;  %15436 = vst [vmem:[#allocation38_spill] sm:$0xff] %v10197_v40 }
 0x25e   :  { %1958 = vmatpush.bf16.msra.mxu1 %v1208_v12  ;;  %v10131_v17 = vpop.f32.mrf.mxu0  ;;  %v8326_v12 = vld [vmem:[%s14978_s4 + $0x54] sm:$0xf] }
 0x25f   :  { %2137 = vmatpush.bf16.msra.mxu3 %v1205_v55  ;;  %v10133_v27 = vpop.f32.mrf.mxu2  ;;  %v10231_v11 = vor.u32 %v8326_v12, %v7828_v63  ;;  %v10305_v63 = vor.u32 %v8330_v13, %v7844_v15  ;;  %v8347_v13 = vld [vmem:[%s14978_s4 + $0xf4] sm:$0xf0] }
 0x261   :  { %1563 = vmatmul.bf16.gmra.mxu0 %v10121_v35  ;;  %1612 = vmatmul.bf16.gmra.mxu1 %v10067_v49  ;;  %15441 = vst [vmem:[#allocation62_spill] sm:$0xff] %v10231_v11  ;;  %v10233_v41 = vpop.permute.xlu2 %1263 }
 0x262   :  { %1959 = vmatpush.bf16.msra.mxu1 %v15424_v38  ;;  %15442 = vst [vmem:[#allocation53_spill] sm:$0xff] %v10233_v41 }
 0x263   :  { %2138 = vmatpush.bf16.msra.mxu3 %v1201_v42  ;;  %v7836_v42 = vld [vmem:[%s14978_s4 + $0x68] sm:$0xf0]  ;;  %15455 = vst [vmem:[#allocation70_spill] sm:$0xff] %v10305_v63 }
 0x266   :  { %1960 = vmatpush.bf16.msra.mxu1 %v15427_v18  ;;  %v10149_v37 = vpop.f32.mrf.mxu0 }
 0x267   :  { %2139 = vmatpush.bf16.msra.mxu3 %v1197_v36  ;;  %v10157_v0 = vpop.f32.mrf.mxu2  ;;  %v10267_v36 = vor.u32 %v8328_v44, %v7836_v42 }
 0x269   :  { %v10245_v43 = vpop.permute.xlu2 %1331  ;;  %15449 = vst [vmem:[#allocation64_spill] sm:$0xff] %v10267_v36 }
 0x26a   :  { %1961 = vmatpush.bf16.msra.mxu1 %v15428_v51  ;;  %15445 = vst [vmem:[#allocation51_spill] sm:$0xff] %v10245_v43  ;;  %v10281_v51 = vpop.permute.xlu0 %1335 }
 0x26b   :  { %2140 = vmatpush.bf16.msra.mxu3 %v1193_v50  ;;  %15451 = vst [vmem:[#allocation66_spill] sm:$0xff] %v10281_v51  ;;  %v7898_v50 = vld [vmem:[%s14978_s4 + $0xe0] sm:$0xf] }
 0x26c   :  { %1746 = vmatmul.bf16.gmra.mxu2 %v10160_v34 }
 0x26d   :  { %1800 = vmatmul.bf16.gmra.mxu3 %v10162_v30  ;;  %v10243_v1 = vpop.permute.xlu1 %1327 }
 0x26e   :  { %1962 = vmatpush.bf16.msra.mxu1 %v15431_v33  ;;  %v10169_v16 = vpop.f32.mrf.mxu0  ;;  %15444 = vst [vmem:[#allocation50_spill] sm:$0xff] %v10243_v1  ;;  %v8345_v33 = vld [vmem:[%s14978_s4 + $0xe4] sm:$0xf0] }
 0x26f   :  { %v10171_v9 = vpop.f32.mrf.mxu2  ;;  %v10303_v12 = vor.u32 %v8345_v33, %v7898_v50  ;;  %v7906_v33 = vld [vmem:[%s14978_s4 + $0xf0] sm:$0xf] }
 0x270   :  { %v10339_v51 = vor.u32 %v8347_v13, %v7906_v33  ;;  %v8334_v13 = vld [vmem:[%s14978_s4 + $0x94] sm:$0xf] }
 0x271   :  { %1568 = vmatmul.bf16.gmra.mxu0 %v10160_v34  ;;  %1617 = vmatmul.bf16.gmra.mxu1 %v10123_v23  ;;  %v10273_v58 = vpop.permute.xlu2 %1319  ;;  %15454 = vst [vmem:[#allocation69_spill] sm:$0xff] %v10303_v12 }
 0x272   :  { %15450 = vst [vmem:[#allocation65_spill] sm:$0xff] %v10273_v58  ;;  %v10307_v10 = vpop.permute.xlu0 %1267  ;;  %v7860_v58 = vld [vmem:[%s14978_s4 + $0x98] sm:$0xf0] }
 0x273   :  { %15456 = vst [vmem:[#allocation71_spill] sm:$0xff] %v10307_v10 }
 0x274   :  { %15459 = vst [vmem:[#allocation74_spill] sm:$0xff] %v10339_v51 }
 0x275   :  { %v10269_v2 = vpop.permute.xlu1 %1259 }
 0x276   :  { %v10185_v5 = vpop.f32.mrf.mxu0 }
 0x277   :  { %v10193_v32 = vpop.f32.mrf.mxu2 }
 0x279   :  { %v10301_v53 = vpop.permute.xlu2 %1251 }
 0x27a   :  { %15453 = vst [vmem:[#allocation68_spill] sm:$0xff] %v10301_v53  ;;  %v10327_v15 = vpop.permute.xlu0 %1255 }
 0x27c   :  { %1751 = vmatmul.bf16.gmra.mxu2 %v10195_v7 }
 0x27d   :  { %1805 = vmatmul.bf16.gmra.mxu3 %v10197_v40 }
 0x27e   :  { %v10203_v57 = vpop.f32.mrf.mxu0 }
 0x27f   :  { %v10205_v52 = vpop.f32.mrf.mxu2 }
 0x281   :  { %1573 = vmatmul.bf16.gmra.mxu0 %v10195_v7  ;;  %1622 = vmatmul.bf16.gmra.mxu1 %v10162_v30  ;;  %v10319_v50 = vpop.permute.xlu2 %1239 }
 0x282   :  { %15458 = vst [vmem:[#allocation73_spill] sm:$0xff] %v10319_v50 }
 0x283   :  { %v10289_v19 = vpop.permute.xlu1 %1247 }
 0x284   :  { %15452 = vst [vmem:[#allocation67_spill] sm:$0xff] %v10289_v19 }
 0x286   :  { %v10217_v20 = vpop.f32.mrf.mxu0 }
 0x287   :  { %v10225_v29 = vpop.f32.mrf.mxu2 }
 0x289   :  { %v10345_v43 = vpop.permute.xlu2 %1307 }
 0x28a   :  { %15462 = vst [vmem:[#allocation77_spill] sm:$0xff] %v10345_v43 }
 0x28b   :  { %v10315_v42 = vpop.permute.xlu1 %1315 }
 0x28c   :  { %1756 = vmatmul.bf16.gmra.mxu2 %v10229_v45  ;;  %15457 = vst [vmem:[#allocation72_spill] sm:$0xff] %v10315_v42  ;;  %v15468_v42 = vld [vmem:[#allocation45_spill] sm:$0xff] }
 0x28d   :  { %1810 = vmatmul.bf16.gmra.mxu3 %v10231_v11 }
 0x28e   :  { %v10237_v55 = vpop.f32.mrf.mxu0 }
 0x28f   :  { %15443 = vst [vmem:[#allocation57_spill] sm:$0xff] %v10237_v55  ;;  %v10239_v38 = vpop.f32.mrf.mxu2 }
 0x291   :  { %1578 = vmatmul.bf16.gmra.mxu0 %v10229_v45  ;;  %1627 = vmatmul.bf16.gmra.mxu1 %v10197_v40  ;;  %v10353_v45 = vpop.permute.xlu0 %1323 }
 0x292   :  { %15463 = vst [vmem:[#allocation78_spill] sm:$0xff] %v10353_v45 }
 0x296   :  { %v10253_v14 = vpop.f32.mrf.mxu0 }
 0x297   :  { %15446 = vst [vmem:[#allocation63_spill] sm:$0xff] %v10253_v14  ;;  %v10261_v18 = vpop.f32.mrf.mxu2 }
 0x29c   :  { %1761 = vmatmul.bf16.gmra.mxu2 %v10265_v31 }
 0x29d   :  { %1815 = vmatmul.bf16.gmra.mxu3 %v10267_v36 }
 0x29e   :  { %v10275_v26 = vpop.f32.mrf.mxu0 }
 0x29f   :  { %v10277_v3 = vpop.f32.mrf.mxu2 }
 0x2a1   :  { %1583 = vmatmul.bf16.gmra.mxu0 %v10265_v31  ;;  %1632 = vmatmul.bf16.gmra.mxu1 %v10231_v11  ;;  %v10343_v31 = vpop.permute.xlu1 %1303 }
 0x2a2   :  { %15461 = vst [vmem:[#allocation76_spill] sm:$0xff] %v10343_v31 }
 0x2a6   :  { %v10291_v60 = vpop.f32.mrf.mxu0 }
 0x2a7   :  { %v10299_v22 = vpop.f32.mrf.mxu2 }
 0x2ac   :  { %1766 = vmatmul.bf16.gmra.mxu2 %v10303_v12 }
 0x2ad   :  { %1820 = vmatmul.bf16.gmra.mxu3 %v10305_v63 }
 0x2ae   :  { %v10311_v39 = vpop.f32.mrf.mxu0 }
 0x2af   :  { %v10313_v44 = vpop.f32.mrf.mxu2 }
 0x2b1   :  { %1588 = vmatmul.bf16.gmra.mxu0 %v10303_v12  ;;  %1637 = vmatmul.bf16.gmra.mxu1 %v10267_v36  ;;  %v7852_v12 = vld [vmem:[%s14978_s4 + $0x88] sm:$0xf0] }
 0x2b2   :  { %v10341_v36 = vor.u32 %v8332_v4, %v7852_v12  ;;  %v10357_v4 = vpop.permute.xlu1 %1235  ;;  %v10359_v12 = vpop.permute.xlu2 %1295 }
 0x2b3   :  { %15464 = vst [vmem:[#allocation79_spill] sm:$0xff] %v10357_v4 }
 0x2b4   :  { %15460 = vst [vmem:[#allocation75_spill] sm:$0xff] %v10341_v36 }
 0x2b5   :  { %15465 = vst [vmem:[#allocation80_spill] sm:$0xff] %v10359_v12 }
 0x2b6   :  { %v10329_v6 = vpop.f32.mrf.mxu0 }
 0x2b7   :  { %v10337_v48 = vpop.f32.mrf.mxu2 }
 0x2ba   :  { %v10377_v30 = vpop.permute.xlu1 %1223  ;;  %v10383_v23 = vpop.permute.xlu2 %1227 }
 0x2bb   :  { %15469 = vst [vmem:[#allocation45_spill] sm:$0xff] %v10377_v30  ;;  %v1522_v14 = vadd.f32 %v10105_v56, %v10383_v23 }
 0x2bc   :  { %1771 = vmatmul.bf16.gmra.mxu2 %v10339_v51  ;;  %15472 = vst [vmem:[#allocation85_spill] sm:$0xff] %v10383_v23 }
 0x2bd   :  { %1825 = vmatmul.bf16.gmra.mxu3 %v10341_v36 }
 0x2be   :  { %v10349_v1 = vpop.f32.mrf.mxu0 }
 0x2bf   :  { %v10351_v11 = vpop.f32.mrf.mxu2 }
 0x2c0   :  { %v1786_v40 = vpop.f32.mrf.mxu3 }
 0x2c1   :  { %1593 = vmatmul.bf16.gmra.mxu0 %v10339_v51  ;;  %1642 = vmatmul.bf16.gmra.mxu1 %v10305_v63  ;;  %v10371_v51 = vor.u32 %v8334_v13, %v7860_v58  ;;  %v10373_v63 = vpop.permute.xlu0 %1311  ;;  %v1698_v58 = vadd.f32 %v10085_v25, %v10377_v30  ;;  %v1700_v13 = vadd.f32 %v10115_v61, %v10383_v23 }
 0x2c2   :  { %15467 = vst [vmem:[#allocation82_spill] sm:$0xff] %v10373_v63  ;;  %v1520_v63 = vadd.f32 %v10079_v28, %v10377_v30  ;;  %v7868_v28 = vld [vmem:[%s14978_s4 + $0xa8] sm:$0xf0] }
 0x2c3   :  { %15466 = vst [vmem:[#allocation81_spill] sm:$0xff] %v10371_v51  ;;  %v1787_v12 = vadd.f32 %v1786_v40, %v1698_v58 }
 0x2c6   :  { %v10361_v33 = vpop.f32.mrf.mxu0 }
 0x2c7   :  { %v10369_v45 = vpop.f32.mrf.mxu2 }
 0x2c8   :  { %v1788_v7 = vpop.f32.mrf.mxu3 }
 0x2c9   :  { %v10393_v55 = vpop.permute.xlu0 %1243 }
 0x2ca   :  { %15473 = vst [vmem:[#allocation86_spill] sm:$0xff] %v10393_v55 }
 0x2cc   :  { %2052 = vmatmul.bf16.vlgmr.msra.gmra.mxu2 %v15468_v42 }
 0x2cd   :  { %1830 = vmatmul.bf16.gmra.mxu3 %v10371_v51 }
 0x2ce   :  { %v10379_v34 = vpop.f32.mrf.mxu0  ;;  %v1608_v43 = vpop.f32.mrf.mxu1 }
 0x2cf   :  { %15470 = vst [vmem:[#allocation83_spill] sm:$0xff] %v10379_v34  ;;  %v10381_v31 = vpop.f32.mrf.mxu2  ;;  %v1789_v34 = vadd.f32 %v1788_v7, %v1700_v13  ;;  %v1609_v25 = vadd.f32 %v1608_v43, %v1520_v63  ;;  %v15476_v13 = vld [vmem:[#allocation46_spill] sm:$0xff] }
 0x2d0   :  { %15471 = vst [vmem:[#allocation84_spill] sm:$0xff] %v10381_v31  ;;  %v1791_v35 = vpop.f32.mrf.mxu3  ;;  %v2223_v31 = vmax.f32 %v1787_v12, 0.0 }
 0x2d1   :  { %1647 = vmatmul.bf16.gmra.mxu1 %v10341_v36  ;;  %1874 = vmatmul.bf16.vlgmr.msra.gmra.mxu0 %v15468_v42  ;;  %v2227_v49 = vmax.f32 %v1789_v34, 0.0  ;;  %v8336_v42 = vld [vmem:[%s14978_s4 + $0xa4] sm:$0xf]  ;;  %v2222_v56 = vmax.f32 %v1609_v25, 0.0  ;;  %v10415_v23 = vpop.permute.xlu0 %1231  ;;  %v1705_v25 = vadd.f32 %v10157_v0, %v10357_v4  ;;  %v8338_v0 = vld [vmem:[%s14978_s4 + $0xb4] sm:$0xf] }
 0x2d2   :  { %v10409_v58 = vor.u32 %v8336_v42, %v7868_v28  ;;  %15477 = vst [vmem:[#allocation46_spill] sm:$0xff] %v10415_v23 }
 0x2d3   :  { %v10405_v7 = vpack.c.bf16 %v2227_v49, %v2223_v31 }
 0x2d4   :  { %15474 = vst [vmem:[#allocation87_spill] sm:$0xff] %v10409_v58 }
 0x2d6   :  { %v10397_v46 = vpop.f32.mrf.mxu0  ;;  %v1610_v61 = vpop.f32.mrf.mxu1 }
 0x2d7   :  { %v10407_v40 = vpop.f32.mrf.mxu2  ;;  %v1611_v34 = vadd.f32 %v1610_v61, %v1522_v14  ;;  %v1703_v14 = vadd.f32 %v10133_v27, %v10415_v23  ;;  %v1525_v61 = vadd.f32 %v10131_v17, %v10415_v23 }
 0x2d8   :  { %v1793_v12 = vpop.f32.mrf.mxu3 }
 0x2d9   :  { %v2226_v43 = vmax.f32 %v1611_v34, 0.0  ;;  %v1792_v42 = vadd.f32 %v1791_v35, %v1703_v14  ;;  %v1794_v28 = vadd.f32 %v1793_v12, %v1705_v25 }
 0x2db   :  { %v10411_v63 = vpack.c.bf16 %v2226_v43, %v2222_v56  ;;  %v2231_v34 = vmax.f32 %v1792_v42, 0.0  ;;  %v2235_v56 = vmax.f32 %v1794_v28, 0.0  ;;  %v1527_v43 = vadd.f32 %v10149_v37, %v10357_v4  ;;  %v15480_v42 = vld [vmem:[#allocation54_spill] sm:$0xff] }
 0x2dc   :  { %2057 = vmatmul.bf16.gmra.mxu2 %v15476_v13 }
 0x2dd   :  { %15475 = vst [vmem:[#allocation88_spill] sm:$0xff] %v10411_v63  ;;  %1835 = vmatmul.bf16.gmra.mxu3 %v10409_v58  ;;  %v10439_v17 = vpack.c.bf16 %v2235_v56, %v2231_v34  ;;  %v1708_v56 = vadd.f32 %v10171_v9, %v10319_v50 }
 0x2de   :  { %v10417_v36 = vpop.f32.mrf.mxu0  ;;  %v1613_v49 = vpop.f32.mrf.mxu1 }
 0x2df   :  { %15478 = vst [vmem:[#allocation89_spill] sm:$0xff] %v10417_v36  ;;  %v10419_v31 = vpop.f32.mrf.mxu2  ;;  %v1614_v63 = vadd.f32 %v1613_v49, %v1525_v61 }
 0x2e0   :  { %v1796_v30 = vpop.f32.mrf.mxu3 }
 0x2e1   :  { %1652 = vmatmul.bf16.gmra.mxu1 %v10371_v51  ;;  %1879 = vmatmul.bf16.gmra.mxu0 %v15476_v13  ;;  %v7876_v13 = vld [vmem:[%s14978_s4 + $0xb8] sm:$0xf0]  ;;  %v2230_v37 = vmax.f32 %v1614_v63, 0.0  ;;  %v1530_v63 = vadd.f32 %v10169_v16, %v10319_v50 }
 0x2e2   :  { %v10443_v25 = vor.u32 %v8338_v0, %v7876_v13 }
 0x2e4   :  { %15479 = vst [vmem:[#allocation90_spill] sm:$0xff] %v10443_v25 }
 0x2e6   :  { %v10431_v36 = vpop.f32.mrf.mxu0  ;;  %v1615_v27 = vpop.f32.mrf.mxu1 }
 0x2e7   :  { %v10441_v35 = vpop.f32.mrf.mxu2  ;;  %v1616_v12 = vadd.f32 %v1615_v27, %v1527_v43  ;;  %v1710_v43 = vadd.f32 %v10193_v32, %v10393_v55  ;;  %v1797_v27 = vadd.f32 %v1796_v30, %v1708_v56  ;;  %v8340_v32 = vld [vmem:[%s14978_s4 + $0xc4] sm:$0xf] }
 0x2e8   :  { %v1798_v14 = vpop.f32.mrf.mxu3 }
 0x2e9   :  { %v2234_v49 = vmax.f32 %v1616_v12, 0.0  ;;  %v1799_v0 = vadd.f32 %v1798_v14, %v1710_v43  ;;  %v2239_v13 = vmax.f32 %v1797_v27, 0.0  ;;  %v15485_v27 = vld [vmem:[#allocation48_spill] sm:$0xff] }
 0x2eb   :  { %v10445_v61 = vpack.c.bf16 %v2234_v49, %v2230_v37  ;;  %v2243_v12 = vmax.f32 %v1799_v0, 0.0  ;;  %v1532_v37 = vadd.f32 %v10185_v5, %v10393_v55 }
 0x2ec   :  { %2062 = vmatmul.bf16.gmra.mxu2 %v15480_v42 }
 0x2ed   :  { %1840 = vmatmul.bf16.gmra.mxu3 %v10443_v25  ;;  %v10471_v16 = vpack.c.bf16 %v2243_v12, %v2239_v13  ;;  %v1713_v12 = vadd.f32 %v10205_v52, %v10289_v19 }
 0x2ee   :  { %v10449_v28 = vpop.f32.mrf.mxu0  ;;  %v1618_v4 = vpop.f32.mrf.mxu1 }
 0x2ef   :  { %15481 = vst [vmem:[#allocation54_spill] sm:$0xff] %v10449_v28  ;;  %v10451_v51 = vpop.f32.mrf.mxu2  ;;  %v1619_v49 = vadd.f32 %v1618_v4, %v1530_v63 }
 0x2f0   :  { %v1801_v34 = vpop.f32.mrf.mxu3 }
 0x2f1   :  { %1657 = vmatmul.bf16.gmra.mxu1 %v10409_v58  ;;  %1884 = vmatmul.bf16.gmra.mxu0 %v15480_v42  ;;  %v7884_v42 = vld [vmem:[%s14978_s4 + $0xc8] sm:$0xf0]  ;;  %v2238_v5 = vmax.f32 %v1619_v49, 0.0  ;;  %v1535_v49 = vadd.f32 %v10203_v57, %v10289_v19 }
 0x2f2   :  { %v10475_v43 = vor.u32 %v8340_v32, %v7884_v42 }
 0x2f4   :  { %15484 = vst [vmem:[#allocation93_spill] sm:$0xff] %v10475_v43 }
 0x2f6   :  { %v10463_v23 = vpop.f32.mrf.mxu0  ;;  %v1620_v9 = vpop.f32.mrf.mxu1 }
 0x2f7   :  { %15482 = vst [vmem:[#allocation91_spill] sm:$0xff] %v10463_v23  ;;  %v10473_v30 = vpop.f32.mrf.mxu2  ;;  %v1621_v14 = vadd.f32 %v1620_v9, %v1532_v37  ;;  %v1715_v37 = vadd.f32 %v10225_v29, %v10301_v53  ;;  %v1802_v9 = vadd.f32 %v1801_v34, %v1713_v12  ;;  %v8342_v29 = vld [vmem:[%s14978_s4 + $0xd4] sm:$0xf] }
 0x2f8   :  { %15483 = vst [vmem:[#allocation92_spill] sm:$0xff] %v10473_v30  ;;  %v1803_v56 = vpop.f32.mrf.mxu3 }
 0x2f9   :  { %v2242_v4 = vmax.f32 %v1621_v14, 0.0  ;;  %v1804_v32 = vadd.f32 %v1803_v56, %v1715_v37  ;;  %v2247_v42 = vmax.f32 %v1802_v9, 0.0  ;;  %v15491_v9 = vld [vmem:[#allocation56_spill] sm:$0xff] }
 0x2fb   :  { %v10477_v63 = vpack.c.bf16 %v2242_v4, %v2238_v5  ;;  %v2251_v14 = vmax.f32 %v1804_v32, 0.0  ;;  %v1537_v5 = vadd.f32 %v10217_v20, %v10301_v53 }
 0x2fc   :  { %2067 = vmatmul.bf16.gmra.mxu2 %v15485_v27 }
 0x2fd   :  { %1845 = vmatmul.bf16.gmra.mxu3 %v10475_v43  ;;  %v10505_v57 = vpack.c.bf16 %v2251_v14, %v2247_v42 }
 0x2fe   :  { %v10481_v0 = vpop.f32.mrf.mxu0  ;;  %v1623_v55 = vpop.f32.mrf.mxu1 }
 0x2ff   :  { %15486 = vst [vmem:[#allocation48_spill] sm:$0xff] %v10481_v0  ;;  %v10483_v58 = vpop.f32.mrf.mxu2  ;;  %v1624_v4 = vadd.f32 %v1623_v55, %v1535_v49  ;;  %v1733_v0 = vadd.f32 %v10351_v11, %v10165_v59 }
 0x300   :  { %15487 = vst [vmem:[#allocation94_spill] sm:$0xff] %v10483_v58  ;;  %v10485_v13 = vpop.f32.mrf.mxu3 }
 0x301   :  { %1662 = vmatmul.bf16.gmra.mxu1 %v10443_v25  ;;  %1889 = vmatmul.bf16.gmra.mxu0 %v15485_v27  ;;  %v7892_v27 = vld [vmem:[%s14978_s4 + $0xd8] sm:$0xf0]  ;;  %v2246_v55 = vmax.f32 %v1624_v4, 0.0 }
 0x302   :  { %v10511_v20 = vor.u32 %v8342_v29, %v7892_v27  ;;  %v7900_v29 = vld [vmem:[%s14978_s4 + $0xe8] sm:$0xf0] }
 0x304   :  { %15490 = vst [vmem:[#allocation97_spill] sm:$0xff] %v10511_v20 }
 0x306   :  { %v10497_v50 = vpop.f32.mrf.mxu0  ;;  %v1625_v52 = vpop.f32.mrf.mxu1 }
 0x307   :  { %15488 = vst [vmem:[#allocation95_spill] sm:$0xff] %v10497_v50  ;;  %v10507_v34 = vpop.f32.mrf.mxu2  ;;  %v1626_v56 = vadd.f32 %v1625_v52, %v1537_v5  ;;  %v8344_v52 = vld [vmem:[%s14978_s4 + $0xe4] sm:$0xf] }
 0x308   :  { %15489 = vst [vmem:[#allocation96_spill] sm:$0xff] %v10507_v34  ;;  %v10509_v12 = vpop.f32.mrf.mxu3 }
 0x309   :  { %v2250_v37 = vmax.f32 %v1626_v56, 0.0 }
 0x30b   :  { %v10513_v49 = vpack.c.bf16 %v2250_v37, %v2246_v55  ;;  %v10537_v55 = vor.u32 %v8344_v52, %v7900_v29  ;;  %v15497_v37 = vld [vmem:[#allocation59_spill] sm:$0xff]  ;;  %v7908_v29 = vld [vmem:[%s14978_s4 + $0xf8] sm:$0xf0] }
 0x30c   :  { %2072 = vmatmul.bf16.gmra.mxu2 %v15491_v9  ;;  %v8346_v52 = vld [vmem:[%s14978_s4 + $0xf4] sm:$0xf]  ;;  %s8530_s4 = smov 30  }
 0x30d   :  { %1850 = vmatmul.bf16.gmra.mxu3 %v10511_v20  ;;  %15496 = vst [vmem:[#allocation101_spill] sm:$0xff] %v10537_v55 }
 0x30e   :  { %v10517_v32 = vpop.f32.mrf.mxu0  ;;  %v10519_v53 = vpop.f32.mrf.mxu1 }
 0x30f   :  { %15492 = vst [vmem:[#allocation56_spill] sm:$0xff] %v10517_v32  ;;  %v10521_v42 = vpop.f32.mrf.mxu2  ;;  %v10561_v32 = vor.u32 %v8346_v52, %v7908_v29  ;;  %v1728_v52 = vadd.f32 %v10313_v44, %v10201_v62  ;;  %v1730_v29 = vadd.f32 %v10337_v48, %v10207_v8 }
 0x310   :  { %15493 = vst [vmem:[#allocation98_spill] sm:$0xff] %v10521_v42  ;;  %v1811_v14 = vpop.f32.mrf.mxu3 }
 0x311   :  { %1667 = vmatmul.bf16.gmra.mxu1 %v10475_v43  ;;  %1894 = vmatmul.bf16.gmra.mxu0 %v15491_v9  ;;  %15502 = vst [vmem:[#allocation105_spill] sm:$0xff] %v10561_v32 }
 0x316   :  { %v10525_v5 = vpop.f32.mrf.mxu0  ;;  %v10527_v4 = vpop.f32.mrf.mxu1 }
 0x317   :  { %15494 = vst [vmem:[#allocation99_spill] sm:$0xff] %v10525_v5  ;;  %v10535_v27 = vpop.f32.mrf.mxu2 }
 0x318   :  { %15495 = vst [vmem:[#allocation100_spill] sm:$0xff] %v10535_v27  ;;  %v1813_v56 = vpop.f32.mrf.mxu3 }
 0x31c   :  { %2077 = vmatmul.bf16.gmra.mxu2 %v15497_v37 }
 0x31d   :  { %1855 = vmatmul.bf16.gmra.mxu3 %v10537_v55 }
 0x31e   :  { %v10541_v9 = vpop.f32.mrf.mxu0  ;;  %v10543_v43 = vpop.f32.mrf.mxu1 }
 0x31f   :  { %15498 = vst [vmem:[#allocation59_spill] sm:$0xff] %v10541_v9  ;;  %v10545_v25 = vpop.f32.mrf.mxu2 }
 0x320   :  { %15499 = vst [vmem:[#allocation102_spill] sm:$0xff] %v10545_v25  ;;  %v1816_v19 = vpop.f32.mrf.mxu3 }
 0x321   :  { %1672 = vmatmul.bf16.gmra.mxu1 %v10511_v20  ;;  %1899 = vmatmul.bf16.gmra.mxu0 %v15497_v37  ;;  %v1817_v34 = vadd.f32 %v1816_v19, %v1728_v52  ;;  %v1718_v19 = vadd.f32 %v10239_v38, %v10327_v15  ;;  %v10605_v52 = vpop.permute.xlu0 %1299 }
 0x322   :  { %15505 = vst [vmem:[#allocation108_spill] sm:$0xff] %v10605_v52 }
 0x323   :  { %v1807_v38 = vadd.f32 %v10485_v13, %v1718_v19  ;;  %v1545_v19 = vadd.f32 %v10275_v26, %v10233_v41 }
 0x325   :  { %v1634_v26 = vadd.f32 %v10543_v43, %v1545_v19  ;;  %v15512_v43 = vld [vmem:[#allocation84_spill] sm:$0xff] }
 0x326   :  { %v10549_v5 = vpop.f32.mrf.mxu0  ;;  %v10551_v27 = vpop.f32.mrf.mxu1 }
 0x327   :  { %15500 = vst [vmem:[#allocation103_spill] sm:$0xff] %v10549_v5  ;;  %v10559_v9 = vpop.f32.mrf.mxu2 }
 0x328   :  { %15501 = vst [vmem:[#allocation104_spill] sm:$0xff] %v10559_v9  ;;  %v1818_v25 = vpop.f32.mrf.mxu3 }
 0x32c   :  { %2082 = vmatmul.bf16.gmra.mxu2 %v9950_v24 }
 0x32d   :  { %1860 = vmatmul.bf16.gmra.mxu3 %v10561_v32 }
 0x32e   :  { %v10565_v37 = vpop.f32.mrf.mxu0  ;;  %v10567_v20 = vpop.f32.mrf.mxu1 }
 0x32f   :  { %15503 = vst [vmem:[#allocation106_spill] sm:$0xff] %v10565_v37  ;;  %v10569_v5 = vpop.f32.mrf.mxu2  ;;  %v1735_v37 = vadd.f32 %v10369_v45, %v10263_v21 }
 0x330   :  { %15504 = vst [vmem:[#allocation107_spill] sm:$0xff] %v10569_v5  ;;  %v1821_v50 = vpop.f32.mrf.mxu3  ;;  %v1723_v5 = vadd.f32 %v10277_v3, %v10233_v41 }
 0x331   :  { %1677 = vmatmul.bf16.gmra.mxu1 %v10537_v55  ;;  %1904 = vmatmul.bf16.gmra.mxu0 %v9950_v24  ;;  %v1822_v9 = vadd.f32 %v1821_v50, %v1733_v0  ;;  %v1819_v55 = vadd.f32 %v1818_v25, %v1730_v29  ;;  %v1725_v24 = vadd.f32 %v10299_v22, %v10307_v10  ;;  %v2271_v0 = vmax.f32 %v1817_v34, 0.0 }
 0x332   :  { %v1812_v50 = vadd.f32 %v1811_v14, %v1723_v5  ;;  %v1720_v25 = vadd.f32 %v10261_v18, %v10269_v2 }
 0x333   :  { %v2279_v23 = vmax.f32 %v1822_v9, 0.0  ;;  %v2275_v28 = vmax.f32 %v1819_v55, 0.0  ;;  %v1814_v30 = vadd.f32 %v1813_v56, %v1725_v24 }
 0x334   :  { %v1809_v18 = vadd.f32 %v10509_v12, %v1720_v25 }
 0x335   :  { %v2407_v34 = vpack.c.bf16 %v2275_v28, %v2271_v0  ;;  %v2267_v5 = vmax.f32 %v1814_v30, 0.0  ;;  %v1557_v28 = vadd.f32 %v10361_v33, %v10263_v21  ;;  %v2255_v30 = vmax.f32 %v1807_v38, 0.0  ;;  %v10627_v38 = vpop.permute.xlu0 %1287  ;;  %v15549_v21 = vld [vmem:[#allocation59_spill] sm:$0xff] }
 0x336   :  { %v10583_v42 = vpop.f32.mrf.mxu0  ;;  %v1640_v11 = vpop.f32.mrf.mxu1  ;;  %v2259_v24 = vmax.f32 %v1809_v18, 0.0 }
 0x337   :  { %v10585_v58 = vpop.f32.mrf.mxu2 }
 0x338   :  { %v1823_v44 = vpop.f32.mrf.mxu3  ;;  %v2399_v33 = vpack.c.bf16 %v2259_v24, %v2255_v30  ;;  %v10638_v30 = vpop.permute.xlu1 %1291 }
 0x339   :  { %v1824_v48 = vadd.f32 %v1823_v44, %v1735_v37  ;;  %v2263_v37 = vmax.f32 %v1812_v50, 0.0 }
 0x33b   :  { %v2283_v45 = vmax.f32 %v1824_v48, 0.0  ;;  %v2403_v55 = vpack.c.bf16 %v2267_v5, %v2263_v37 }
 0x33c   :  { %2087 = vmatmul.bf16.gmra.mxu2 %v10011_v47 }
 0x33d   :  { %v2411_v3 = vpack.c.bf16 %v2283_v45, %v2279_v23  ;;  %2141 = vmatmul.bf16.vlgmr.msra.gmra.mxu3 %v10013_v54  ;;  %v1555_v23 = vadd.f32 %v10349_v1, %v10165_v59  ;;  %v1550_v1 = vadd.f32 %v10311_v39, %v10201_v62  ;;  %v1547_v39 = vadd.f32 %v10291_v60, %v10307_v10 }
 0x33e   :  { %v10595_v22 = vpop.f32.mrf.mxu0  ;;  %v1643_v9 = vpop.f32.mrf.mxu1 }
 0x33f   :  { %v10597_v14 = vpop.f32.mrf.mxu2  ;;  %2912 = vmatpush.bf16.msrb.mxu2 %v2411_v3  ;;  %v1644_v29 = vadd.f32 %v1643_v9, %v1555_v23  ;;  %v1636_v9 = vadd.f32 %v10551_v27, %v1547_v39  ;;  %v15508_v23 = vld [vmem:[#allocation44_spill] sm:$0xff] }
 0x340   :  { %v1826_v56 = vpop.f32.mrf.mxu3 }
 0x341   :  { %1682 = vmatmul.bf16.gmra.mxu1 %v10561_v32  ;;  %1909 = vmatmul.bf16.gmra.mxu0 %v10011_v47  ;;  %v1552_v47 = vadd.f32 %v10329_v6, %v10207_v8  ;;  %v2278_v45 = vmax.f32 %v1644_v29, 0.0  ;;  %v1639_v6 = vadd.f32 %v10567_v20, %v1550_v1  ;;  %v2266_v24 = vmax.f32 %v1636_v9, 0.0  ;;  %v15550_v32 = vld [vmem:[#allocation66_spill] sm:$0xff] }
 0x343   :  { %2913 = vmatpush.bf16.msrb.mxu2 %v2407_v34  ;;  %v1641_v50 = vadd.f32 %v1640_v11, %v1552_v47  ;;  %v15506_v34 = vld [vmem:[#allocation60_spill] sm:$0xff]  ;;  %v15507_v11 = vld [vmem:[#allocation63_spill] sm:$0xff]  ;;  %v2270_v60 = vmax.f32 %v1639_v6, 0.0 }
 0x344   :  { %v1542_v5 = vadd.f32 %v15507_v11, %v10269_v2  ;;  %15509 = vst [vmem:[#allocation60_spill] sm:$0xff] %v10627_v38 }
 0x345   :  { %v2274_v37 = vmax.f32 %v1641_v50, 0.0  ;;  %15511 = vst [vmem:[#allocation63_spill] sm:$0xff] %v10638_v30 }
 0x346   :  { %v10613_v44 = vpop.f32.mrf.mxu0  ;;  %v1645_v13 = vpop.f32.mrf.mxu1  ;;  %v1631_v29 = vadd.f32 %v10527_v4, %v1542_v5  ;;  %v15513_v4 = vld [vmem:[#allocation83_spill] sm:$0xff] }
 0x347   :  { %v1646_v12 = vadd.f32 %v1645_v13, %v1557_v28  ;;  %v10615_v48 = vpop.f32.mrf.mxu2  ;;  %2914 = vmatpush.bf16.msrb.mxu2 %v2403_v55  ;;  %v15510_v55 = vld [vmem:[#allocation57_spill] sm:$0xff]  ;;  %v2406_v47 = vpack.c.bf16 %v2274_v37, %v2270_v60  ;;  %v1738_v13 = vadd.f32 %v15512_v43, %v10627_v38  ;;  %v1560_v50 = vadd.f32 %v15513_v4, %v10627_v38  ;;  %v15514_v60 = vld [vmem:[#allocation80_spill] sm:$0xff] }
 0x348   :  { %v1828_v0 = vpop.f32.mrf.mxu3  ;;  %v1540_v27 = vadd.f32 %v15510_v55, %v10327_v15  ;;  %v2258_v19 = vmax.f32 %v1631_v29, 0.0  ;;  %v15515_v55 = vld [vmem:[#allocation42_spill] sm:$0xff] }
 0x349   :  { %v2282_v3 = vmax.f32 %v1646_v12, 0.0  ;;  %v1740_v12 = vadd.f32 %v10407_v40, %v10638_v30  ;;  %v1562_v40 = vadd.f32 %v10397_v46, %v10638_v30  ;;  %v1743_v46 = vadd.f32 %v10419_v31, %v15514_v60 }
 0x34a   :  { %v1745_v31 = vadd.f32 %v10441_v35, %v10605_v52 }
 0x34b   :  { %v2410_v25 = vpack.c.bf16 %v2282_v3, %v2278_v45  ;;  %2915 = vmatpush.bf16.msrb.mxu2 %v2399_v33  ;;  %v2262_v45 = vmax.f32 %v1634_v26, 0.0  ;;  %v1827_v3 = vadd.f32 %v1826_v56, %v1738_v13  ;;  %v1829_v33 = vadd.f32 %v1828_v0, %v1740_v12 }
 0x34c   :  { %2092 = vmatmul.bf16.gmra.mxu2 %v15506_v34 }
 0x34d   :  { %2146 = vmatmul.bf16.gmra.mxu3 %v15508_v23  ;;  %2734 = vmatpush.bf16.msrb.mxu0 %v2410_v25  ;;  %v2402_v39 = vpack.c.bf16 %v2266_v24, %v2262_v45  ;;  %v2287_v6 = vmax.f32 %v1827_v3, 0.0  ;;  %v2291_v25 = vmax.f32 %v1829_v33, 0.0 }
 0x34e   :  { %v1648_v18 = vpop.f32.mrf.mxu1  ;;  %v10630_v20 = vpop.f32.mrf.mxu0 }
 0x34f   :  { %v10635_v28 = vpop.f32.mrf.mxu2  ;;  %2916 = vmatpush.bf16.msrb.mxu2 %v10505_v57  ;;  %v1629_v57 = vadd.f32 %v10519_v53, %v1540_v27  ;;  %v1649_v9 = vadd.f32 %v1648_v18, %v1560_v50  ;;  %v10654_v11 = vpack.c.bf16 %v2291_v25, %v2287_v6  ;;  %v15516_v27 = vld [vmem:[#allocation43_spill] sm:$0xff]  ;;  %v1567_v50 = vadd.f32 %v10431_v36, %v10605_v52  ;;  %v15519_v25 = vld [vmem:[#allocation77_spill] sm:$0xff]  ;;  %v15521_v36 = vld [vmem:[#allocation88_spill] sm:$0xff] }
 0x350   :  { %v1831_v1 = vpop.f32.mrf.mxu3 }
 0x351   :  { %1914 = vmatmul.bf16.gmra.mxu0 %v15506_v34  ;;  %1963 = vmatmul.bf16.vlgmr.msra.gmra.mxu1 %v10013_v54  ;;  %v2254_v34 = vmax.f32 %v1629_v57, 0.0  ;;  %v2286_v5 = vmax.f32 %v1649_v9, 0.0  ;;  %v1832_v29 = vadd.f32 %v1831_v1, %v1743_v46 }
 0x352   :  { %2735 = vmatpush.bf16.msrb.mxu0 %v2406_v47 }
 0x353   :  { %2917 = vmatpush.bf16.msrb.mxu2 %v10471_v16  ;;  %v2398_v0 = vpack.c.bf16 %v2258_v19, %v2254_v34  ;;  %v2295_v12 = vmax.f32 %v1832_v29, 0.0  ;;  %v15523_v34 = vld [vmem:[#allocation41_spill] sm:$0xff] }
 0x356   :  { %2736 = vmatpush.bf16.msrb.mxu0 %v2402_v39  ;;  %v1650_v54 = vpop.f32.mrf.mxu1  ;;  %v10652_v37 = vpop.f32.mrf.mxu0 }
 0x357   :  { %v10656_v53 = vpop.f32.mrf.mxu2  ;;  %2918 = vmatpush.bf16.msrb.mxu2 %v10439_v17  ;;  %v1651_v16 = vadd.f32 %v1650_v54, %v1562_v40  ;;  %v15520_v40 = vld [vmem:[#allocation92_spill] sm:$0xff]  ;;  %v15522_v54 = vld [vmem:[#allocation58_spill] sm:$0xff] }
 0x358   :  { %v1833_v56 = vpop.f32.mrf.mxu3  ;;  %v1750_v9 = vadd.f32 %v15520_v40, %v15519_v25 }
 0x359   :  { %v2290_v26 = vmax.f32 %v1651_v16, 0.0 }
 0x35a   :  { %2737 = vmatpush.bf16.msrb.mxu0 %v2398_v0 }
 0x35b   :  { %2919 = vmatpush.bf16.msrb.mxu2 %v10405_v7  ;;  %v10662_v18 = vpack.c.bf16 %v2290_v26, %v2286_v5  ;;  %v15517_v7 = vld [vmem:[#allocation89_spill] sm:$0xff] }
 0x35c   :  { %2097 = vmatmul.bf16.gmra.mxu2 %v15515_v55  ;;  %v1565_v13 = vadd.f32 %v15517_v7, %v15514_v60  ;;  %v15525_v7 = vld [vmem:[#allocation91_spill] sm:$0xff] }
 0x35d   :  { %2151 = vmatmul.bf16.gmra.mxu3 %v15516_v27 }
 0x35e   :  { %2738 = vmatpush.bf16.msrb.mxu0 %v10513_v49  ;;  %v1653_v17 = vpop.f32.mrf.mxu1  ;;  %v10667_v24 = vpop.f32.mrf.mxu0  ;;  %v1834_v49 = vadd.f32 %v1833_v56, %v1745_v31 }
 0x35f   :  { %v10669_v47 = vpop.f32.mrf.mxu2  ;;  %v1654_v4 = vadd.f32 %v1653_v17, %v1565_v13 }
 0x360   :  { %v1836_v43 = vpop.f32.mrf.mxu3  ;;  %v2299_v1 = vmax.f32 %v1834_v49, 0.0 }
 0x361   :  { %1919 = vmatmul.bf16.gmra.mxu0 %v15515_v55  ;;  %1968 = vmatmul.bf16.gmra.mxu1 %v15508_v23  ;;  %v2294_v19 = vmax.f32 %v1654_v4, 0.0 }
 0x362   :  { %2739 = vmatpush.bf16.msrb.mxu0 %v10477_v63  ;;  %v10683_v57 = vpack.c.bf16 %v2299_v1, %v2295_v12  ;;  %v15518_v63 = vld [vmem:[#allocation76_spill] sm:$0xff] }
 0x363   :  { %v1748_v6 = vadd.f32 %v10451_v51, %v15518_v63  ;;  %v15524_v51 = vld [vmem:[#allocation54_spill] sm:$0xff] }
 0x364   :  { %v1570_v55 = vadd.f32 %v15524_v51, %v15518_v63  ;;  %v15546_v63 = vld [vmem:[#allocation64_spill] sm:$0xff] }
 0x365   :  { %v1837_v16 = vadd.f32 %v1836_v43, %v1748_v6  ;;  %v1572_v43 = vadd.f32 %v15525_v7, %v15519_v25  ;;  %v15529_v6 = vld [vmem:[#allocation96_spill] sm:$0xff] }
 0x366   :  { %2740 = vmatpush.bf16.msrb.mxu0 %v10445_v61  ;;  %v1655_v45 = vpop.f32.mrf.mxu1  ;;  %v10681_v35 = vpop.f32.mrf.mxu0 }
 0x367   :  { %v10685_v3 = vpop.f32.mrf.mxu2  ;;  %v1656_v33 = vadd.f32 %v1655_v45, %v1567_v50  ;;  %v2303_v29 = vmax.f32 %v1837_v16, 0.0  ;;  %v15532_v16 = vld [vmem:[#allocation98_spill] sm:$0xff] }
 0x368   :  { %v1838_v23 = vpop.f32.mrf.mxu3 }
 0x369   :  { %v2298_v39 = vmax.f32 %v1656_v33, 0.0  ;;  %v1839_v56 = vadd.f32 %v1838_v23, %v1750_v9  ;;  %v15526_v23 = vld [vmem:[#allocation82_spill] sm:$0xff] }
 0x36a   :  { %2741 = vmatpush.bf16.msrb.mxu0 %v15521_v36  ;;  %v15530_v36 = vld [vmem:[#allocation49_spill] sm:$0xff] }
 0x36b   :  { %v10692_v61 = vpack.c.bf16 %v2298_v39, %v2294_v19  ;;  %v2307_v17 = vmax.f32 %v1839_v56, 0.0  ;;  %v15527_v19 = vld [vmem:[#allocation94_spill] sm:$0xff]  ;;  %v15528_v39 = vld [vmem:[#allocation72_spill] sm:$0xff] }
 0x36c   :  { %2102 = vmatmul.bf16.gmra.mxu2 %v15522_v54  ;;  %v1755_v40 = vadd.f32 %v15529_v6, %v15528_v39 }
 0x36d   :  { %2156 = vmatmul.bf16.gmra.mxu3 %v15523_v34  ;;  %v10708_v49 = vpack.c.bf16 %v2307_v17, %v2303_v29 }
 0x36e   :  { %v1658_v0 = vpop.f32.mrf.mxu1  ;;  %v10696_v5 = vpop.f32.mrf.mxu0 }
 0x36f   :  { %v10698_v26 = vpop.f32.mrf.mxu2  ;;  %v1659_v31 = vadd.f32 %v1658_v0, %v1570_v55  ;;  %v15533_v0 = vld [vmem:[#allocation38_spill] sm:$0xff] }
 0x370   :  { %v1841_v46 = vpop.f32.mrf.mxu3 }
 0x371   :  { %1924 = vmatmul.bf16.gmra.mxu0 %v15522_v54  ;;  %1973 = vmatmul.bf16.gmra.mxu1 %v15516_v27  ;;  %v2302_v45 = vmax.f32 %v1659_v31, 0.0  ;;  %v1753_v27 = vadd.f32 %v15527_v19, %v15526_v23  ;;  %v15531_v54 = vld [vmem:[#allocation65_spill] sm:$0xff] }
 0x372   :  { %v1758_v56 = vadd.f32 %v15532_v16, %v15531_v54 }
 0x373   :  { %v1842_v51 = vadd.f32 %v1841_v46, %v1753_v27  ;;  %v15535_v46 = vld [vmem:[#allocation95_spill] sm:$0xff] }
 0x376   :  { %v1660_v13 = vpop.f32.mrf.mxu1  ;;  %v10706_v12 = vpop.f32.mrf.mxu0 }
 0x377   :  { %v1661_v1 = vadd.f32 %v1660_v13, %v1572_v43  ;;  %v10710_v4 = vpop.f32.mrf.mxu2  ;;  %v15534_v43 = vld [vmem:[#allocation48_spill] sm:$0xff] }
 0x378   :  { %v1843_v50 = vpop.f32.mrf.mxu3  ;;  %v1575_v13 = vadd.f32 %v15534_v43, %v15526_v23  ;;  %v15538_v43 = vld [vmem:[#allocation62_spill] sm:$0xff]  ;;  %v15545_v23 = vld [vmem:[#allocation52_spill] sm:$0xff] }
 0x379   :  { %v2306_v33 = vmax.f32 %v1661_v1, 0.0  ;;  %v1844_v55 = vadd.f32 %v1843_v50, %v1755_v40  ;;  %v1577_v50 = vadd.f32 %v15535_v46, %v15528_v39  ;;  %v15543_v39 = vld [vmem:[#allocation51_spill] sm:$0xff] }
 0x37b   :  { %v10716_v9 = vpack.c.bf16 %v2306_v33, %v2302_v45  ;;  %v2311_v45 = vmax.f32 %v1842_v51, 0.0  ;;  %v2315_v33 = vmax.f32 %v1844_v55, 0.0 }
 0x37c   :  { %2107 = vmatmul.bf16.gmra.mxu2 %v15530_v36 }
 0x37d   :  { %2161 = vmatmul.bf16.gmra.mxu3 %v15533_v0  ;;  %v10736_v40 = vpack.c.bf16 %v2315_v33, %v2311_v45 }
 0x37e   :  { %v1663_v29 = vpop.f32.mrf.mxu1  ;;  %v10722_v17 = vpop.f32.mrf.mxu0 }
 0x37f   :  { %v10724_v31 = vpop.f32.mrf.mxu2  ;;  %v1664_v19 = vadd.f32 %v1663_v29, %v1575_v13  ;;  %v15537_v29 = vld [vmem:[#allocation61_spill] sm:$0xff] }
 0x380   :  { %v1846_v7 = vpop.f32.mrf.mxu3 }
 0x381   :  { %v10728_v1 = vadd.f32 %v1846_v7, %v1758_v56  ;;  %1929 = vmatmul.bf16.gmra.mxu0 %v15530_v36  ;;  %1978 = vmatmul.bf16.gmra.mxu1 %v15523_v34  ;;  %v2310_v7 = vmax.f32 %v1664_v19, 0.0  ;;  %v15536_v34 = vld [vmem:[#allocation56_spill] sm:$0xff] }
 0x382   :  { %v1580_v51 = vadd.f32 %v15536_v34, %v15531_v54  ;;  %v15542_v34 = vld [vmem:[#allocation102_spill] sm:$0xff] }
 0x386   :  { %v1665_v27 = vpop.f32.mrf.mxu1  ;;  %v10734_v6 = vpop.f32.mrf.mxu0 }
 0x387   :  { %v1666_v16 = vadd.f32 %v1665_v27, %v1577_v50  ;;  %v10738_v25 = vpop.f32.mrf.mxu2 }
 0x388   :  { %v10740_v56 = vpop.f32.mrf.mxu3 }
 0x389   :  { %v2314_v36 = vmax.f32 %v1666_v16, 0.0 }
 0x38b   :  { %v10744_v55 = vpack.c.bf16 %v2314_v36, %v2310_v7  ;;  %v15541_v36 = vld [vmem:[#allocation50_spill] sm:$0xff] }
 0x38c   :  { %2112 = vmatmul.bf16.gmra.mxu2 %v15537_v29  ;;  %v1763_v54 = vadd.f32 %v15542_v34, %v15541_v36  ;;  %v1585_v59 = vadd.f32 %v15549_v21, %v15541_v36  ;;  %v15551_v34 = vld [vmem:[#allocation107_spill] sm:$0xff] }
 0x38d   :  { %2166 = vmatmul.bf16.gmra.mxu3 %v15538_v43  ;;  %v1768_v8 = vadd.f32 %v15551_v34, %v15550_v32 }
 0x38e   :  { %v1668_v13 = vpop.f32.mrf.mxu1  ;;  %v10748_v46 = vpop.f32.mrf.mxu0 }
 0x38f   :  { %15539 = vst [vmem:[#allocation44_spill] sm:$0xff] %v10748_v46  ;;  %v10750_v45 = vadd.f32 %v1668_v13, %v1580_v51  ;;  %v10752_v33 = vpop.f32.mrf.mxu2  ;;  %v15544_v51 = vld [vmem:[#allocation104_spill] sm:$0xff] }
 0x390   :  { %v1851_v50 = vpop.f32.mrf.mxu3  ;;  %v1765_v13 = vadd.f32 %v15544_v51, %v15543_v39 }
 0x391   :  { %1934 = vmatmul.bf16.gmra.mxu0 %v15537_v29  ;;  %1983 = vmatmul.bf16.gmra.mxu1 %v15533_v0  ;;  %v1852_v29 = vadd.f32 %v1851_v50, %v1763_v54  ;;  %v15552_v54 = vld [vmem:[#allocation103_spill] sm:$0xff] }
 0x392   :  { %v1587_v50 = vadd.f32 %v15552_v54, %v15543_v39  ;;  %v15555_v39 = vld [vmem:[#allocation69_spill] sm:$0xff] }
 0x393   :  { %v2327_v51 = vmax.f32 %v1852_v29, 0.0 }
 0x396   :  { %v10756_v19 = vpop.f32.mrf.mxu1  ;;  %v10758_v27 = vpop.f32.mrf.mxu0 }
 0x397   :  { %15540 = vst [vmem:[#allocation57_spill] sm:$0xff] %v10758_v27  ;;  %v10760_v16 = vpop.f32.mrf.mxu2 }
 0x398   :  { %v1853_v7 = vpop.f32.mrf.mxu3 }
 0x399   :  { %v1854_v52 = vadd.f32 %v1853_v7, %v1765_v13  ;;  %v15553_v7 = vld [vmem:[#allocation55_spill] sm:$0xff] }
 0x39a   :  { %v1770_v13 = vadd.f32 %v10585_v58, %v15553_v7 }
 0x39b   :  { %v2331_v62 = vmax.f32 %v1854_v52, 0.0 }
 0x39c   :  { %2117 = vmatmul.bf16.gmra.mxu2 %v15545_v23 }
 0x39d   :  { %2171 = vmatmul.bf16.gmra.mxu3 %v15546_v63  ;;  %v10784_v21 = vpack.c.bf16 %v2331_v62, %v2327_v51 }
 0x39e   :  { %v1673_v0 = vpop.f32.mrf.mxu1  ;;  %v10768_v60 = vpop.f32.mrf.mxu0 }
 0x39f   :  { %15547 = vst [vmem:[#allocation84_spill] sm:$0xff] %v10768_v60  ;;  %v10770_v30 = vpop.f32.mrf.mxu2  ;;  %v1674_v60 = vadd.f32 %v1673_v0, %v1585_v59  ;;  %v15556_v59 = vld [vmem:[#allocation70_spill] sm:$0xff] }
 0x3a0   :  { %15548 = vst [vmem:[#allocation83_spill] sm:$0xff] %v10770_v30  ;;  %v1856_v38 = vpop.f32.mrf.mxu3  ;;  %v15559_v0 = vld [vmem:[#allocation106_spill] sm:$0xff] }
 0x3a1   :  { %1939 = vmatmul.bf16.gmra.mxu0 %v15545_v23  ;;  %1988 = vmatmul.bf16.gmra.mxu1 %v15538_v43  ;;  %v1857_v10 = vadd.f32 %v1856_v38, %v1768_v8  ;;  %v2326_v43 = vmax.f32 %v1674_v60, 0.0  ;;  %v1590_v60 = vadd.f32 %v15559_v0, %v15550_v32 }
 0x3a3   :  { %v2335_v29 = vmax.f32 %v1857_v10, 0.0  ;;  %v15560_v10 = vld [vmem:[#allocation37_spill] sm:$0xff] }
 0x3a4   :  { %v1773_v51 = vadd.f32 %v10597_v14, %v15560_v10 }
 0x3a6   :  { %v1675_v30 = vpop.f32.mrf.mxu1  ;;  %v10782_v41 = vpop.f32.mrf.mxu0 }
 0x3a7   :  { %15554 = vst [vmem:[#allocation42_spill] sm:$0xff] %v10782_v41  ;;  %v1676_v34 = vadd.f32 %v1675_v30, %v1587_v50  ;;  %v10786_v36 = vpop.f32.mrf.mxu2  ;;  %v15562_v41 = vld [vmem:[#allocation74_spill] sm:$0xff] }
 0x3a8   :  { %v1858_v23 = vpop.f32.mrf.mxu3 }
 0x3a9   :  { %v2330_v52 = vmax.f32 %v1676_v34, 0.0  ;;  %v1859_v27 = vadd.f32 %v1858_v23, %v1770_v13 }
 0x3ab   :  { %v2339_v46 = vmax.f32 %v1859_v27, 0.0  ;;  %v10788_v54 = vpack.c.bf16 %v2330_v52, %v2326_v43  ;;  %v1592_v27 = vadd.f32 %v10583_v42, %v15553_v7  ;;  %v15563_v42 = vld [vmem:[#allocation45_spill] sm:$0xff]  ;;  %v15566_v7 = vld [vmem:[#allocation75_spill] sm:$0xff] }
 0x3ac   :  { %2122 = vmatmul.bf16.gmra.mxu2 %v15555_v39 }
 0x3ad   :  { %2176 = vmatmul.bf16.gmra.mxu3 %v15556_v59  ;;  %v2439_v8 = vpack.c.bf16 %v2339_v46, %v2335_v29  ;;  %v15561_v46 = vld [vmem:[#allocation36_spill] sm:$0xff] }
 0x3ae   :  { %v1678_v58 = vpop.f32.mrf.mxu1  ;;  %v10792_v38 = vpop.f32.mrf.mxu0  ;;  %v1775_v50 = vadd.f32 %v10615_v48, %v15561_v46  ;;  %v2054_v48 = vadd.f32 %v10635_v28, %v15563_v42  ;;  %v15567_v28 = vld [vmem:[#allocation85_spill] sm:$0xff] }
 0x3af   :  { %15557 = vst [vmem:[#allocation43_spill] sm:$0xff] %v10792_v38  ;;  %v10794_v62 = vpop.f32.mrf.mxu2  ;;  %v1679_v13 = vadd.f32 %v1678_v58, %v1590_v60  ;;  %v15564_v58 = vld [vmem:[#allocation78_spill] sm:$0xff] }
 0x3b0   :  { %15558 = vst [vmem:[#allocation89_spill] sm:$0xff] %v10794_v62  ;;  %v1861_v30 = vpop.f32.mrf.mxu3 }
 0x3b1   :  { %1944 = vmatmul.bf16.gmra.mxu0 %v15555_v39  ;;  %1993 = vmatmul.bf16.gmra.mxu1 %v15546_v63  ;;  %v1862_v34 = vadd.f32 %v1861_v30, %v1773_v51  ;;  %v2334_v14 = vmax.f32 %v1679_v13, 0.0  ;;  %v15565_v30 = vld [vmem:[#allocation100_spill] sm:$0xff] }
 0x3b2   :  { %v1760_v60 = vadd.f32 %v15565_v30, %v15564_v58 }
 0x3b3   :  { %v2343_v32 = vmax.f32 %v1862_v34, 0.0 }
 0x3b4   :  { %v1849_v34 = vadd.f32 %v10740_v56, %v1760_v60 }
 0x3b6   :  { %v1680_v23 = vpop.f32.mrf.mxu1  ;;  %v10806_v43 = vpop.f32.mrf.mxu0 }
 0x3b7   :  { %v1681_v29 = vadd.f32 %v1680_v23, %v1592_v27  ;;  %v10808_v52 = vpop.f32.mrf.mxu2 }
 0x3b8   :  { %v1863_v0 = vpop.f32.mrf.mxu3 }
 0x3b9   :  { %v2338_v39 = vmax.f32 %v1681_v29, 0.0  ;;  %v1864_v38 = vadd.f32 %v1863_v0, %v1775_v50  ;;  %v2056_v0 = vadd.f32 %v10656_v53, %v15567_v28 }
 0x3bb   :  { %v2347_v63 = vmax.f32 %v1864_v38, 0.0  ;;  %v2438_v62 = vpack.c.bf16 %v2338_v39, %v2334_v14  ;;  %v1595_v38 = vadd.f32 %v10595_v22, %v15560_v10  ;;  %v2319_v14 = vmax.f32 %v10728_v1, 0.0  ;;  %v7914_v22 = vld [vmem:[%s14979_s5] sm:$0xf] }
 0x3bc   :  { %2127 = vmatmul.bf16.gmra.mxu2 %v15562_v41  ;;  %v2323_v39 = vmax.f32 %v1849_v34, 0.0 }
 0x3bd   :  { %v2443_v51 = vpack.c.bf16 %v2347_v63, %v2343_v32  ;;  %2181 = vmatmul.bf16.gmra.mxu3 %v15566_v7  ;;  %v1597_v32 = vadd.f32 %v10613_v44, %v15561_v46 }
 0x3be   :  { %v1683_v27 = vpop.f32.mrf.mxu1  ;;  %v10816_v23 = vpop.f32.mrf.mxu0 }
 0x3bf   :  { %v10818_v13 = vpop.f32.mrf.mxu2  ;;  %3001 = vmatpush.bf16.msrb.mxu3 %v2443_v51  ;;  %v1684_v63 = vadd.f32 %v1683_v27, %v1595_v38  ;;  %v2431_v51 = vpack.c.bf16 %v2323_v39, %v2319_v14  ;;  %v1876_v27 = vadd.f32 %v10630_v20, %v15563_v42  ;;  %v15569_v38 = vld [vmem:[#allocation46_spill] sm:$0xff] }
 0x3c0   :  { %v2142_v50 = vpop.f32.mrf.mxu3  ;;  %v2059_v34 = vadd.f32 %v10669_v47, %v15569_v38 }
 0x3c1   :  { %v2143_v29 = vadd.f32 %v2142_v50, %v2054_v48  ;;  %1949 = vmatmul.bf16.gmra.mxu0 %v15562_v41  ;;  %1998 = vmatmul.bf16.gmra.mxu1 %v15556_v59  ;;  %v8349_v41 = vld [vmem:[%s14979_s5 + $0x4] sm:$0xf0]  ;;  %v2342_v48 = vmax.f32 %v1684_v63, 0.0 }
 0x3c2   :  { %v10841_v1 = vor.u32 %v8349_v41, %v7914_v22 }
 0x3c3   :  { %3002 = vmatpush.bf16.msrb.mxu3 %v2439_v8  ;;  %v2225_v47 = vmax.f32 %v2143_v29, 0.0  ;;  %v2318_v29 = vmax.f32 %v10750_v45, 0.0 }
 0x3c4   :  { %15568 = vst [vmem:[#allocation92_spill] sm:$0xff] %v10841_v1 }
 0x3c6   :  { %v1685_v56 = vpop.f32.mrf.mxu1  ;;  %v10836_v59 = vpop.f32.mrf.mxu0 }
 0x3c7   :  { %v1686_v8 = vadd.f32 %v1685_v56, %v1597_v32  ;;  %v10838_v44 = vpop.f32.mrf.mxu2  ;;  %3003 = vmatpush.bf16.msrb.mxu3 %v10784_v21  ;;  %v15570_v32 = vld [vmem:[#allocation81_spill] sm:$0xff]  ;;  %v15571_v21 = vld [vmem:[#allocation99_spill] sm:$0xff] }
 0x3c8   :  { %v2144_v53 = vpop.f32.mrf.mxu3  ;;  %v1582_v22 = vadd.f32 %v15571_v21, %v15564_v58 }
 0x3c9   :  { %v2346_v30 = vmax.f32 %v1686_v8, 0.0  ;;  %v2145_v60 = vadd.f32 %v2144_v53, %v2056_v0  ;;  %v1878_v53 = vadd.f32 %v10652_v37, %v15567_v28 }
 0x3ca   :  { %v1671_v20 = vadd.f32 %v10756_v19, %v1582_v22  ;;  %v7922_v19 = vld [vmem:[%s14979_s5 + $0x10] sm:$0xf] }
 0x3cb   :  { %v2442_v50 = vpack.c.bf16 %v2346_v30, %v2342_v48  ;;  %3004 = vmatpush.bf16.msrb.mxu3 %v2431_v51  ;;  %v2229_v56 = vmax.f32 %v2145_v60, 0.0  ;;  %v15572_v48 = vld [vmem:[#allocation79_spill] sm:$0xff] }
 0x3cc   :  { %2920 = vmatmul.bf16.vlgmr.msrb.gmra.mxu2 %v10841_v1  ;;  %v2322_v8 = vmax.f32 %v1671_v20, 0.0  ;;  %v15575_v20 = vld [vmem:[#allocation87_spill] sm:$0xff] }
 0x3cd   :  { %2186 = vmatmul.bf16.gmra.mxu3 %v15570_v32  ;;  %2823 = vmatpush.bf16.msrb.mxu1 %v2442_v50  ;;  %v10874_v30 = vpack.c.bf16 %v2229_v56, %v2225_v47  ;;  %v15576_v56 = vld [vmem:[#allocation86_spill] sm:$0xff] }
 0x3ce   :  { %v10851_v63 = vpop.f32.mrf.mxu0  ;;  %v1964_v0 = vpop.f32.mrf.mxu1  ;;  %v2430_v60 = vpack.c.bf16 %v2322_v8, %v2318_v29  ;;  %v7930_v8 = vld [vmem:[%s14979_s5 + $0x20] sm:$0xf] }
 0x3cf   :  { %v1965_v14 = vadd.f32 %v1964_v0, %v1876_v27  ;;  %v10853_v39 = vpop.f32.mrf.mxu2  ;;  %3005 = vmatpush.bf16.msrb.mxu3 %v10736_v40  ;;  %v2061_v40 = vadd.f32 %v10685_v3, %v15572_v48 }
 0x3d0   :  { %v2147_v42 = vpop.f32.mrf.mxu3 }
 0x3d1   :  { %v2148_v41 = vadd.f32 %v2147_v42, %v2059_v34  ;;  %2003 = vmatmul.bf16.gmra.mxu1 %v15566_v7  ;;  %2742 = vmatmul.bf16.vlgmr.msrb.gmra.mxu0 %v10841_v1  ;;  %v8351_v7 = vld [vmem:[%s14979_s5 + $0x14] sm:$0xf0]  ;;  %v2224_v27 = vmax.f32 %v1965_v14, 0.0 }
 0x3d2   :  { %2824 = vmatpush.bf16.msrb.mxu1 %v2438_v62  ;;  %v10879_v51 = vor.u32 %v8351_v7, %v7922_v19 }
 0x3d3   :  { %3006 = vmatpush.bf16.msrb.mxu3 %v10708_v49  ;;  %v2233_v50 = vmax.f32 %v2148_v41, 0.0 }
 0x3d4   :  { %15573 = vst [vmem:[#allocation88_spill] sm:$0xff] %v10879_v51 }
 0x3d6   :  { %2825 = vmatpush.bf16.msrb.mxu1 %v10788_v54  ;;  %v10872_v49 = vpop.f32.mrf.mxu0  ;;  %v1966_v62 = vpop.f32.mrf.mxu1  ;;  %v1881_v54 = vadd.f32 %v10667_v24, %v15569_v38 }
 0x3d7   :  { %v1967_v37 = vadd.f32 %v1966_v62, %v1878_v53  ;;  %v10876_v28 = vpop.f32.mrf.mxu2  ;;  %3007 = vmatpush.bf16.msrb.mxu3 %v10683_v57  ;;  %v15574_v57 = vld [vmem:[#allocation73_spill] sm:$0xff]  ;;  %v8353_v53 = vld [vmem:[%s14979_s5 + $0x24] sm:$0xf0] }
 0x3d8   :  { %v2149_v3 = vpop.f32.mrf.mxu3  ;;  %v2064_v0 = vadd.f32 %v10698_v26, %v15574_v57  ;;  %v1883_v26 = vadd.f32 %v10681_v35, %v15572_v48  ;;  %v10915_v48 = vor.u32 %v8353_v53, %v7930_v8 }
 0x3d9   :  { %v2228_v34 = vmax.f32 %v1967_v37, 0.0  ;;  %v2150_v45 = vadd.f32 %v2149_v3, %v2061_v40  ;;  %v1886_v37 = vadd.f32 %v10696_v5, %v15574_v57  ;;  %v1888_v57 = vadd.f32 %v10706_v12, %v15576_v56 }
 0x3da   :  { %2826 = vmatpush.bf16.msrb.mxu1 %v2430_v60  ;;  %15577 = vst [vmem:[#allocation58_spill] sm:$0xff] %v10915_v48  ;;  %v15578_v60 = vld [vmem:[#allocation67_spill] sm:$0xff] }
 0x3db   :  { %v2237_v21 = vmax.f32 %v2150_v45, 0.0  ;;  %3008 = vmatpush.bf16.msrb.mxu3 %v10654_v11  ;;  %v10884_v22 = vpack.c.bf16 %v2228_v34, %v2224_v27  ;;  %v2069_v27 = vadd.f32 %v10724_v31, %v15578_v60  ;;  %v7938_v31 = vld [vmem:[%s14979_s5 + $0x30] sm:$0xf] }
 0x3dc   :  { %2925 = vmatmul.bf16.gmra.mxu2 %v10879_v51 }
 0x3dd   :  { %2191 = vmatmul.bf16.gmra.mxu3 %v15575_v20  ;;  %v10890_v14 = vpack.c.bf16 %v2237_v21, %v2233_v50  ;;  %v15579_v50 = vld [vmem:[#allocation90_spill] sm:$0xff] }
 0x3de   :  { %2827 = vmatpush.bf16.msrb.mxu1 %v10744_v55  ;;  %v10893_v42 = vpop.f32.mrf.mxu0  ;;  %v1969_v41 = vpop.f32.mrf.mxu1  ;;  %v2066_v55 = vadd.f32 %v10710_v4, %v15576_v56 }
 0x3df   :  { %v1970_v24 = vadd.f32 %v1969_v41, %v1881_v54  ;;  %v10895_v38 = vpop.f32.mrf.mxu2  ;;  %v8355_v41 = vld [vmem:[%s14979_s5 + $0x34] sm:$0xf0] }
 0x3e0   :  { %v2152_v11 = vpop.f32.mrf.mxu3  ;;  %v10948_v12 = vor.u32 %v8355_v41, %v7938_v31 }
 0x3e1   :  { %v2153_v47 = vadd.f32 %v2152_v11, %v2064_v0  ;;  %2008 = vmatmul.bf16.gmra.mxu1 %v15570_v32  ;;  %2747 = vmatmul.bf16.gmra.mxu0 %v10879_v51  ;;  %v2232_v4 = vmax.f32 %v1970_v24, 0.0 }
 0x3e2   :  { %2828 = vmatpush.bf16.msrb.mxu1 %v10716_v9  ;;  %15581 = vst [vmem:[#allocation41_spill] sm:$0xff] %v10948_v12 }
 0x3e3   :  { %v2241_v7 = vmax.f32 %v2153_v47, 0.0  ;;  %v15580_v47 = vld [vmem:[#allocation68_spill] sm:$0xff] }
 0x3e4   :  { %v1893_v41 = vadd.f32 %v10734_v6, %v15580_v47 }
 0x3e6   :  { %2829 = vmatpush.bf16.msrb.mxu1 %v10692_v61  ;;  %v10911_v32 = vpop.f32.mrf.mxu0  ;;  %v1971_v40 = vpop.f32.mrf.mxu1 }
 0x3e7   :  { %v1972_v9 = vadd.f32 %v1971_v40, %v1883_v26  ;;  %v10913_v19 = vpop.f32.mrf.mxu2  ;;  %v2071_v26 = vadd.f32 %v10738_v25, %v15580_v47  ;;  %v8461_v25 = vld [vmem:[%s14976_s2 + $0xf8] sm:$0xff] }
 0x3e8   :  { %v2154_v35 = vpop.f32.mrf.mxu3 }
 0x3e9   :  { %v2236_v29 = vmax.f32 %v1972_v9, 0.0  ;;  %v2155_v62 = vadd.f32 %v2154_v35, %v2066_v55  ;;  %v8522_v35 = vmov 2  }
 0x3ea   :  { %2830 = vmatpush.bf16.msrb.mxu1 %v10662_v18  ;;  %8419 = vset.pattern.permute.xlu1 %v8522_v35 }
 0x3eb   :  { %v2245_v3 = vmax.f32 %v2155_v62, 0.0  ;;  %v10920_v61 = vpack.c.bf16 %v2236_v29, %v2232_v4  ;;  %8418 = vset.pattern.permute.xlu0 %v8522_v35  ;;  %2571 = vperm.xlu1 %8419, %v8461_v25   ;;  %v8462_v29 = vld [vmem:[%s14976_s2 + $0x70] sm:$0xff]  ;;  %v1891_v62 = vadd.f32 %v10722_v17, %v15578_v60  ;;  %v8465_v60 = vld [vmem:[%s14976_s2 + $0xe8] sm:$0xff] }
 0x3ec   :  { %2930 = vmatmul.bf16.gmra.mxu2 %v10915_v48  ;;  %2503 = vperm.xlu0 %8418, %v8462_v29  }
 0x3ed   :  { %2196 = vmatmul.bf16.gmra.mxu3 %v15579_v50  ;;  %v10926_v34 = vpack.c.bf16 %v2245_v3, %v2241_v7  ;;  %8417 = vset.pattern.permute.xlu2 %v8522_v35  ;;  %v15582_v3 = vld [vmem:[#allocation93_spill] sm:$0xff] }
 0x3ee   :  { %v10928_v45 = vpop.f32.mrf.mxu0  ;;  %v1974_v54 = vpop.f32.mrf.mxu1 }
 0x3ef   :  { %v1975_v21 = vadd.f32 %v1974_v54, %v1886_v37  ;;  %v10930_v18 = vpop.f32.mrf.mxu2  ;;  %v2074_v37 = vadd.f32 %v10752_v33, %v10327_v15  ;;  %v8463_v54 = vld [vmem:[%s14976_s2 + $0x78] sm:$0xff]  ;;  %v8464_v33 = vld [vmem:[%s14976_s2 + $0xf0] sm:$0xff] }
 0x3f0   :  { %v2157_v0 = vpop.f32.mrf.mxu3  ;;  %2507 = vperm.xlu2 %8417, %v8463_v54   ;;  %v15584_v54 = vld [vmem:[#allocation44_spill] sm:$0xff] }
 0x3f1   :  { %v2158_v5 = vadd.f32 %v2157_v0, %v2069_v27  ;;  %2013 = vmatmul.bf16.gmra.mxu1 %v15575_v20  ;;  %2752 = vmatmul.bf16.gmra.mxu0 %v10915_v48  ;;  %v2240_v8 = vmax.f32 %v1975_v21, 0.0 }
 0x3f3   :  { %v2249_v56 = vmax.f32 %v2158_v5, 0.0  ;;  %2567 = vperm.xlu1 %8419, %v8464_v33  }
 0x3f4   :  { %2563 = vperm.xlu0 %8418, %v8465_v60  }
 0x3f6   :  { %v10942_v24 = vpop.f32.mrf.mxu0  ;;  %v1976_v11 = vpop.f32.mrf.mxu1 }
 0x3f7   :  { %v1977_v20 = vadd.f32 %v1976_v11, %v1888_v57  ;;  %v10946_v55 = vpop.f32.mrf.mxu2  ;;  %v7946_v11 = vld [vmem:[%s14979_s5 + $0x40] sm:$0xf] }
 0x3f8   :  { %v2159_v53 = vpop.f32.mrf.mxu3 }
 0x3f9   :  { %v2244_v40 = vmax.f32 %v1977_v20, 0.0  ;;  %v2160_v9 = vadd.f32 %v2159_v53, %v2071_v26  ;;  %v8466_v26 = vld [vmem:[%s14976_s2 + $0x68] sm:$0xff]  ;;  %v2076_v53 = vadd.f32 %v10760_v16, %v10269_v2  ;;  %v8468_v16 = vld [vmem:[%s14976_s2 + $0x50] sm:$0xff] }
 0x3fa   :  { %2499 = vperm.xlu2 %8417, %v8466_v26   ;;  %v8471_v26 = vld [vmem:[%s14976_s2 + $0xd0] sm:$0xff] }
 0x3fb   :  { %v2253_v4 = vmax.f32 %v2160_v9, 0.0  ;;  %v10950_v7 = vpack.c.bf16 %v2244_v40, %v2240_v8 }
 0x3fc   :  { %2935 = vmatmul.bf16.gmra.mxu2 %v10948_v12  ;;  %2487 = vperm.xlu0 %8418, %v8468_v16  }
 0x3fd   :  { %2201 = vmatmul.bf16.gmra.mxu3 %v15582_v3  ;;  %v10964_v27 = vpack.c.bf16 %v2253_v4, %v2249_v56 }
 0x3fe   :  { %v10969_v21 = vpop.f32.mrf.mxu0  ;;  %v1979_v0 = vpop.f32.mrf.mxu1 }
 0x3ff   :  { %v1980_v5 = vadd.f32 %v1979_v0, %v1891_v62  ;;  %v10971_v57 = vpop.f32.mrf.mxu2  ;;  %v1896_v0 = vadd.f32 %v15584_v54, %v10327_v15  ;;  %v8470_v15 = vld [vmem:[%s14976_s2 + $0xd8] sm:$0xff] }
 0x400   :  { %v2162_v31 = vpop.f32.mrf.mxu3 }
 0x401   :  { %v2163_v17 = vadd.f32 %v2162_v31, %v2074_v37  ;;  %2018 = vmatmul.bf16.gmra.mxu1 %v15579_v50  ;;  %2757 = vmatmul.bf16.gmra.mxu0 %v10948_v12  ;;  %v8357_v50 = vld [vmem:[%s14979_s5 + $0x44] sm:$0xf0]  ;;  %v2248_v9 = vmax.f32 %v1980_v5, 0.0  ;;  %v8467_v37 = vld [vmem:[%s14976_s2 + $0x58] sm:$0xff]  ;;  %v15585_v5 = vld [vmem:[#allocation97_spill] sm:$0xff] }
 0x402   :  { %v10998_v40 = vor.u32 %v8357_v50, %v7946_v11  ;;  %2491 = vperm.xlu1 %8419, %v8467_v37  }
 0x403   :  { %v2257_v25 = vmax.f32 %v2163_v17, 0.0  ;;  %v8469_v17 = vld [vmem:[%s14976_s2 + $0x60] sm:$0xff] }
 0x404   :  { %15583 = vst [vmem:[#allocation54_spill] sm:$0xff] %v10998_v40  ;;  %2495 = vperm.xlu2 %8417, %v8469_v17   ;;  %2551 = vperm.xlu0 %8418, %v8471_v26  }
 0x406   :  { %v10992_v20 = vpop.f32.mrf.mxu0  ;;  %v1981_v8 = vpop.f32.mrf.mxu1 }
 0x407   :  { %v1982_v6 = vadd.f32 %v1981_v8, %v1893_v41  ;;  %v10996_v47 = vpop.f32.mrf.mxu2  ;;  %v15586_v8 = vld [vmem:[#allocation57_spill] sm:$0xff] }
 0x408   :  { %v2164_v56 = vpop.f32.mrf.mxu3 }
 0x409   :  { %v2252_v35 = vmax.f32 %v1982_v6, 0.0  ;;  %v2165_v4 = vadd.f32 %v2164_v56, %v2076_v53  ;;  %v1898_v53 = vadd.f32 %v15586_v8, %v10269_v2  ;;  %v15587_v6 = vld [vmem:[#allocation53_spill] sm:$0xff]  ;;  %v15588_v56 = vld [vmem:[#allocation83_spill] sm:$0xff] }
 0x40a   :  { %2555 = vperm.xlu1 %8419, %v8470_v15   ;;  %v15589_v2 = vld [vmem:[#allocation71_spill] sm:$0xff] }
 0x40b   :  { %v2261_v29 = vmax.f32 %v2165_v4, 0.0  ;;  %v11000_v62 = vpack.c.bf16 %v2252_v35, %v2248_v9  ;;  %v2079_v9 = vadd.f32 %v15588_v56, %v15587_v6  ;;  %v8359_v35 = vld [vmem:[%s14979_s5 + $0x54] sm:$0xf0]  ;;  %v8472_v4 = vld [vmem:[%s14976_s2 + $0xe0] sm:$0xff]  ;;  %v2081_v37 = vadd.f32 %v10786_v36, %v15589_v2 }
 0x40c   :  { %2940 = vmatmul.bf16.gmra.mxu2 %v10998_v40  ;;  %2559 = vperm.xlu2 %8417, %v8472_v4   ;;  %v8473_v4 = vld [vmem:[%s14976_s2 + $0x40] sm:$0xff]  ;;  %v8474_v36 = vld [vmem:[%s14976_s2 + $0x38] sm:$0xff] }
 0x40d   :  { %2206 = vmatmul.bf16.gmra.mxu3 %v15585_v5  ;;  %v11012_v31 = vpack.c.bf16 %v2261_v29, %v2257_v25  ;;  %2475 = vperm.xlu0 %8418, %v8474_v36   ;;  %v8478_v36 = vld [vmem:[%s14976_s2 + $0xc8] sm:$0xff] }
 0x40e   :  { %v11017_v33 = vpop.f32.mrf.mxu0  ;;  %v1984_v60 = vpop.f32.mrf.mxu1 }
 0x40f   :  { %v1985_v41 = vadd.f32 %v1984_v60, %v1896_v0  ;;  %v11019_v11 = vpop.f32.mrf.mxu2 }
 0x410   :  { %v2167_v50 = vpop.f32.mrf.mxu3 }
 0x411   :  { %2023 = vmatmul.bf16.gmra.mxu1 %v15582_v3  ;;  %2762 = vmatmul.bf16.gmra.mxu0 %v10998_v40  ;;  %v7954_v3 = vld [vmem:[%s14979_s5 + $0x50] sm:$0xf]  ;;  %v2168_v16 = vadd.f32 %v2167_v50, %v2079_v9  ;;  %v2256_v15 = vmax.f32 %v1985_v41, 0.0  ;;  %v15591_v50 = vld [vmem:[#allocation101_spill] sm:$0xff] }
 0x412   :  { %v11048_v60 = vor.u32 %v8359_v35, %v7954_v3  ;;  %2479 = vperm.xlu1 %8419, %v8473_v4   ;;  %v8361_v4 = vld [vmem:[%s14979_s5 + $0x64] sm:$0xf0] }
 0x413   :  { %v2265_v56 = vmax.f32 %v2168_v16, 0.0 }
 0x414   :  { %15590 = vst [vmem:[#allocation91_spill] sm:$0xff] %v11048_v60 }
 0x416   :  { %v11042_v25 = vpop.f32.mrf.mxu0  ;;  %v1986_v29 = vpop.f32.mrf.mxu1 }
 0x417   :  { %v1987_v54 = vadd.f32 %v1986_v29, %v1898_v53  ;;  %v11046_v0 = vpop.f32.mrf.mxu2  ;;  %v8475_v53 = vld [vmem:[%s14976_s2 + $0x48] sm:$0xff] }
 0x418   :  { %v2169_v17 = vpop.f32.mrf.mxu3  ;;  %2483 = vperm.xlu2 %8417, %v8475_v53  }
 0x419   :  { %v2260_v26 = vmax.f32 %v1987_v54, 0.0  ;;  %v2170_v8 = vadd.f32 %v2169_v17, %v2081_v37  ;;  %v15593_v37 = vld [vmem:[#allocation84_spill] sm:$0xff]  ;;  %v15594_v17 = vld [vmem:[#allocation42_spill] sm:$0xff] }
 0x41a   :  { %v1901_v16 = vadd.f32 %v15593_v37, %v15587_v6  ;;  %v8477_v54 = vld [vmem:[%s14976_s2 + $0xb8] sm:$0xff]  ;;  %v7962_v6 = vld [vmem:[%s14979_s5 + $0x60] sm:$0xf] }
 0x41b   :  { %v2269_v40 = vmax.f32 %v2170_v8, 0.0  ;;  %v11050_v12 = vpack.c.bf16 %v2260_v26, %v2256_v15  ;;  %2539 = vperm.xlu0 %8418, %v8477_v54   ;;  %v1903_v15 = vadd.f32 %v15594_v17, %v15589_v2  ;;  %v15595_v26 = vld [vmem:[#allocation39_spill] sm:$0xff]  ;;  %v15598_v37 = vld [vmem:[#allocation40_spill] sm:$0xff] }
 0x41c   :  { %2945 = vmatmul.bf16.gmra.mxu2 %v11048_v60 }
 0x41d   :  { %2211 = vmatmul.bf16.gmra.mxu3 %v15591_v50  ;;  %v11060_v41 = vpack.c.bf16 %v2269_v40, %v2265_v56  ;;  %v8476_v40 = vld [vmem:[%s14976_s2 + $0xc0] sm:$0xff] }
 0x41e   :  { %v11065_v9 = vpop.f32.mrf.mxu0  ;;  %v1989_v3 = vpop.f32.mrf.mxu1  ;;  %2543 = vperm.xlu1 %8419, %v8476_v40   ;;  %v2086_v40 = vadd.f32 %v10808_v52, %v15598_v37  ;;  %v8480_v52 = vld [vmem:[%s14976_s2 + $0x20] sm:$0xff] }
 0x41f   :  { %15592 = vst [vmem:[#allocation94_spill] sm:$0xff] %v11065_v9  ;;  %v11067_v35 = vpop.f32.mrf.mxu2  ;;  %v1990_v56 = vadd.f32 %v1989_v3, %v1901_v16 }
 0x420   :  { %v2172_v29 = vpop.f32.mrf.mxu3  ;;  %2547 = vperm.xlu2 %8417, %v8478_v36   ;;  %v8479_v36 = vld [vmem:[%s14976_s2 + $0x28] sm:$0xff] }
 0x421   :  { %2028 = vmatmul.bf16.gmra.mxu1 %v15585_v5  ;;  %2767 = vmatmul.bf16.gmra.mxu0 %v11048_v60  ;;  %v15596_v5 = vld [vmem:[#allocation89_spill] sm:$0xff]  ;;  %v2264_v60 = vmax.f32 %v1990_v56, 0.0 }
 0x422   :  { %v2084_v8 = vadd.f32 %v15596_v5, %v15595_v26  ;;  %v11098_v5 = vor.u32 %v8361_v4, %v7962_v6  ;;  %v15603_v6 = vld [vmem:[#allocation43_spill] sm:$0xff] }
 0x423   :  { %2463 = vperm.xlu0 %8418, %v8480_v52   ;;  %v1906_v4 = vadd.f32 %v15603_v6, %v15595_v26  ;;  %v7970_v26 = vld [vmem:[%s14979_s5 + $0x70] sm:$0xf] }
 0x424   :  { %v2173_v3 = vadd.f32 %v2172_v29, %v2084_v8  ;;  %15599 = vst [vmem:[#allocation49_spill] sm:$0xff] %v11098_v5  ;;  %v15600_v29 = vld [vmem:[#allocation105_spill] sm:$0xff]  ;;  %v15606_v52 = vld [vmem:[#allocation47_spill] sm:$0xff] }
 0x426   :  { %v11092_v53 = vpop.f32.mrf.mxu0  ;;  %v1991_v2 = vpop.f32.mrf.mxu1  ;;  %v2273_v1 = vmax.f32 %v2173_v3, 0.0  ;;  %2467 = vperm.xlu1 %8419, %v8479_v36  }
 0x427   :  { %15597 = vst [vmem:[#allocation96_spill] sm:$0xff] %v11092_v53  ;;  %v1992_v16 = vadd.f32 %v1991_v2, %v1903_v15  ;;  %v11096_v54 = vpop.f32.mrf.mxu2  ;;  %v1908_v2 = vadd.f32 %v10806_v43, %v15598_v37  ;;  %v7916_v37 = vld [vmem:[%s14979_s5 + $0x8] sm:$0xf0] }
 0x428   :  { %v2174_v17 = vpop.f32.mrf.mxu3 }
 0x429   :  { %v2268_v48 = vmax.f32 %v1992_v16, 0.0  ;;  %v2175_v51 = vadd.f32 %v2174_v17, %v2086_v40  ;;  %v15604_v40 = vld [vmem:[#allocation35_spill] sm:$0xff]  ;;  %v8363_v16 = vld [vmem:[%s14979_s5 + $0x74] sm:$0xf0] }
 0x42a   :  { %v8484_v17 = vld [vmem:[%s14976_s2 + $0xb0] sm:$0xff] }
 0x42b   :  { %v2277_v46 = vmax.f32 %v2175_v51, 0.0  ;;  %v11100_v10 = vpack.c.bf16 %v2268_v48, %v2264_v60  ;;  %v8481_v51 = vld [vmem:[%s14976_s2 + $0x30] sm:$0xff] }
 0x42c   :  { %2950 = vmatmul.bf16.gmra.mxu2 %v11098_v5  ;;  %2471 = vperm.xlu2 %8417, %v8481_v51   ;;  %v2091_v51 = vadd.f32 %v10838_v44, %v15606_v52  ;;  %v8485_v44 = vld [vmem:[%s14976_s2 + $0x10] sm:$0xff] }
 0x42d   :  { %2216 = vmatmul.bf16.gmra.mxu3 %v15600_v29  ;;  %v2409_v15 = vpack.c.bf16 %v2277_v46, %v2273_v1  ;;  %v8482_v46 = vld [vmem:[%s14976_s2 + $0xa8] sm:$0xff]  ;;  %v8483_v1 = vld [vmem:[%s14976_s2 + $0xa0] sm:$0xff] }
 0x42e   :  { %v11113_v48 = vpop.f32.mrf.mxu0  ;;  %v1994_v60 = vpop.f32.mrf.mxu1  ;;  %2531 = vperm.xlu1 %8419, %v8482_v46   ;;  %2527 = vperm.xlu0 %8418, %v8483_v1   ;;  %v11152_v1 = vor.u32 %v8363_v16, %v7970_v26  ;;  %v15607_v26 = vld [vmem:[#allocation60_spill] sm:$0xff] }
 0x42f   :  { %15601 = vst [vmem:[#allocation98_spill] sm:$0xff] %v11113_v48  ;;  %v11115_v8 = vpop.f32.mrf.mxu2  ;;  %v1995_v3 = vadd.f32 %v1994_v60, %v1906_v4  ;;  %v2094_v16 = vadd.f32 %v10853_v39, %v15607_v26  ;;  %v8489_v39 = vld [vmem:[%s14976_s2 + $0x88] sm:$0xff] }
 0x430   :  { %15602 = vst [vmem:[#allocation38_spill] sm:$0xff] %v11115_v8  ;;  %v2177_v56 = vpop.f32.mrf.mxu3 }
 0x431   :  { %2033 = vmatmul.bf16.gmra.mxu1 %v15591_v50  ;;  %2772 = vmatmul.bf16.gmra.mxu0 %v11098_v5  ;;  %v2089_v50 = vadd.f32 %v10818_v13, %v15604_v40  ;;  %v8348_v13 = vld [vmem:[%s14979_s5 + $0x4] sm:$0xf] }
 0x432   :  { %v11154_v48 = vor.u32 %v8348_v13, %v7916_v37  ;;  %v1913_v37 = vadd.f32 %v10836_v59, %v15606_v52  ;;  %v8350_v59 = vld [vmem:[%s14979_s5 + $0x14] sm:$0xf]  ;;  %v7924_v52 = vld [vmem:[%s14979_s5 + $0x18] sm:$0xf0] }
 0x433   :  { %v2178_v60 = vadd.f32 %v2177_v56, %v2089_v50  ;;  %v8486_v56 = vld [vmem:[%s14976_s2 + $0x8] sm:$0xff] }
 0x434   :  { %2535 = vperm.xlu2 %8417, %v8484_v17   ;;  %v2272_v17 = vmax.f32 %v1995_v3, 0.0 }
 0x435   :  { %v2281_v8 = vmax.f32 %v2178_v60, 0.0 }
 0x436   :  { %v11140_v36 = vpop.f32.mrf.mxu0  ;;  %v1996_v43 = vpop.f32.mrf.mxu1  ;;  %2455 = vperm.xlu1 %8419, %v8485_v44   ;;  %2451 = vperm.xlu0 %8418, %v8486_v56  }
 0x437   :  { %15605 = vst [vmem:[#allocation48_spill] sm:$0xff] %v11140_v36  ;;  %v1997_v6 = vadd.f32 %v1996_v43, %v1908_v2  ;;  %v11150_v4 = vpop.f32.mrf.mxu2 }
 0x438   :  { %v2179_v46 = vpop.f32.mrf.mxu3 }
 0x439   :  { %v2276_v5 = vmax.f32 %v1997_v6, 0.0  ;;  %v2180_v36 = vadd.f32 %v2179_v46, %v2091_v51  ;;  %v7978_v51 = vld [vmem:[%s14979_s5 + $0x80] sm:$0xf]  ;;  %v15608_v6 = vld [vmem:[#allocation63_spill] sm:$0xff] }
 0x43a   :  { %v2096_v46 = vadd.f32 %v10876_v28, %v15608_v6  ;;  %v8491_v28 = vld [vmem:[%s14976_s2 + $0x80] sm:$0xff] }
 0x43b   :  { %v2285_v53 = vmax.f32 %v2180_v36, 0.0  ;;  %v11156_v9 = vpack.c.bf16 %v2276_v5, %v2272_v17  ;;  %v8487_v5 = vld [vmem:[%s14976_s2 + $0x18] sm:$0xff] }
 0x43c   :  { %2955 = vmatmul.bf16.gmra.mxu2 %v11152_v1  ;;  %2459 = vperm.xlu2 %8417, %v8487_v5  }
 0x43d   :  { %v2413_v2 = vpack.c.bf16 %v2285_v53, %v2281_v8  ;;  %3009 = vmatmul.bf16.vlgmr.msrb.gmra.mxu3 %v11154_v48  ;;  %v1911_v53 = vadd.f32 %v10816_v23, %v15604_v40  ;;  %v8488_v8 = vld [vmem:[%s14976_s2 + $0x90] sm:$0xff]  ;;  %v8365_v23 = vld [vmem:[%s14979_s5 + $0x84] sm:$0xf0] }
 0x43e   :  { %v11169_v50 = vpop.f32.mrf.mxu0  ;;  %v1999_v3 = vpop.f32.mrf.mxu1  ;;  %2519 = vperm.xlu1 %8419, %v8488_v8   ;;  %2515 = vperm.xlu0 %8418, %v8489_v39  }
 0x43f   :  { %v11173_v36 = vpop.f32.mrf.mxu2  ;;  %3268 = vmatpush.bf16.msra.mxu2 %v2413_v2  ;;  %v11209_v2 = vor.u32 %v8365_v23, %v7978_v51  ;;  %v15610_v51 = vld [vmem:[#allocation80_spill] sm:$0xff] }
 0x440   :  { %v2182_v43 = vpop.f32.mrf.mxu3  ;;  %v2099_v23 = vadd.f32 %v10895_v38, %v15610_v51  ;;  %v7986_v38 = vld [vmem:[%s14979_s5 + $0x90] sm:$0xf] }
 0x441   :  { %v2183_v13 = vadd.f32 %v2182_v43, %v2094_v16  ;;  %2038 = vmatmul.bf16.gmra.mxu1 %v15600_v29  ;;  %2777 = vmatmul.bf16.gmra.mxu0 %v11152_v1  ;;  %v2000_v29 = vadd.f32 %v1999_v3, %v1911_v53  ;;  %v11211_v43 = vor.u32 %v8350_v59, %v7924_v52 }
 0x442   :  { %v1918_v59 = vadd.f32 %v10872_v49, %v15608_v6 }
 0x443   :  { %3269 = vmatpush.bf16.msra.mxu2 %v2409_v15  ;;  %v8490_v15 = vld [vmem:[%s14976_s2 + $0x98] sm:$0xff]  ;;  %v2280_v5 = vmax.f32 %v2000_v29, 0.0  ;;  %v2289_v53 = vmax.f32 %v2183_v13, 0.0 }
 0x444   :  { %2523 = vperm.xlu2 %8417, %v8490_v15  }
 0x446   :  { %v11196_v40 = vpop.f32.mrf.mxu0  ;;  %v2001_v60 = vpop.f32.mrf.mxu1  ;;  %2511 = vperm.xlu1 %8419, %v8491_v28  }
 0x447   :  { %v2002_v17 = vadd.f32 %v2001_v60, %v1913_v37  ;;  %v11206_v44 = vpop.f32.mrf.mxu2  ;;  %3270 = vmatpush.bf16.msra.mxu2 %v11060_v41  ;;  %v1916_v41 = vadd.f32 %v10851_v63, %v15607_v26 }
 0x448   :  { %v2184_v56 = vpop.f32.mrf.mxu3 }
 0x449   :  { %v2284_v3 = vmax.f32 %v2002_v17, 0.0  ;;  %v2185_v16 = vadd.f32 %v2184_v56, %v2096_v46 }
 0x44b   :  { %v2412_v8 = vpack.c.bf16 %v2284_v3, %v2280_v5  ;;  %v2293_v39 = vmax.f32 %v2185_v16, 0.0  ;;  %3271 = vmatpush.bf16.msra.mxu2 %v11012_v31  ;;  %v8492_v31 = vld [vmem:[%s14976_s2] sm:$0xff] }
 0x44c   :  { %2960 = vmatmul.bf16.gmra.mxu2 %v11209_v2  ;;  %2447 = vperm.xlu2 %8417, %v8492_v31   ;;  %v15618_v31 = vld [vmem:[#allocation76_spill] sm:$0xff] }
 0x44d   :  { %3014 = vmatmul.bf16.gmra.mxu3 %v11211_v43  ;;  %3090 = vmatpush.bf16.msra.mxu0 %v2412_v8  ;;  %v11221_v37 = vpack.c.bf16 %v2293_v39, %v2289_v53 }
 0x44e   :  { %v2004_v13 = vpop.f32.mrf.mxu1  ;;  %v11223_v29 = vpop.f32.mrf.mxu0 }
 0x44f   :  { %15609 = vst [vmem:[#allocation95_spill] sm:$0xff] %v11223_v29  ;;  %v2005_v15 = vadd.f32 %v2004_v13, %v1916_v41  ;;  %3272 = vmatpush.bf16.msra.mxu2 %v10964_v27  ;;  %v11231_v63 = vpop.f32.mrf.mxu2  ;;  %v8367_v27 = vld [vmem:[%s14979_s5 + $0x94] sm:$0xf0] }
 0x450   :  { %15611 = vst [vmem:[#allocation56_spill] sm:$0xff] %v11231_v63  ;;  %v2187_v26 = vpop.f32.mrf.mxu3  ;;  %v11259_v5 = vor.u32 %v8367_v27, %v7986_v38 }
 0x451   :  { %v2188_v60 = vadd.f32 %v2187_v26, %v2099_v23  ;;  %2831 = vmatmul.bf16.vlgmr.msrb.gmra.mxu1 %v11154_v48  ;;  %3091 = vmatpush.bf16.msra.mxu0 %v11156_v9  ;;  %v8352_v9 = vld [vmem:[%s14979_s5 + $0x24] sm:$0xf]  ;;  %v2288_v3 = vmax.f32 %v2005_v15, 0.0  ;;  %v2104_v23 = vadd.f32 %v10930_v18, %v15618_v31  ;;  %v7994_v18 = vld [vmem:[%s14979_s5 + $0xa0] sm:$0xf] }
 0x452   :  { %2782 = vmatmul.bf16.gmra.mxu0 %v11209_v2  ;;  %15615 = vst [vmem:[#allocation102_spill] sm:$0xff] %v11259_v5 }
 0x453   :  { %3273 = vmatpush.bf16.msra.mxu2 %v10926_v34  ;;  %v7932_v34 = vld [vmem:[%s14979_s5 + $0x28] sm:$0xf0]  ;;  %v2297_v39 = vmax.f32 %v2188_v60, 0.0 }
 0x454   :  { %v11262_v8 = vor.u32 %v8352_v9, %v7932_v34 }
 0x455   :  { %3092 = vmatpush.bf16.msra.mxu0 %v11100_v10  ;;  %v15613_v10 = vld [vmem:[#allocation108_spill] sm:$0xff] }
 0x456   :  { %v2006_v52 = vpop.f32.mrf.mxu1  ;;  %v11252_v49 = vpop.f32.mrf.mxu0  ;;  %v2101_v6 = vadd.f32 %v10913_v19, %v15613_v10  ;;  %15616 = vst [vmem:[#allocation104_spill] sm:$0xff] %v11262_v8 }
 0x457   :  { %15612 = vst [vmem:[#allocation61_spill] sm:$0xff] %v11252_v49  ;;  %v2007_v46 = vadd.f32 %v2006_v52, %v1918_v59  ;;  %3274 = vmatpush.bf16.msra.mxu2 %v10890_v14  ;;  %v11257_v17 = vpop.f32.mrf.mxu2  ;;  %v1921_v14 = vadd.f32 %v10893_v42, %v15610_v51  ;;  %v1923_v42 = vadd.f32 %v10911_v32, %v15613_v10  ;;  %v7940_v59 = vld [vmem:[%s14979_s5 + $0x38] sm:$0xf0] }
 0x458   :  { %15614 = vst [vmem:[#allocation62_spill] sm:$0xff] %v11257_v17  ;;  %v2189_v56 = vpop.f32.mrf.mxu3 }
 0x459   :  { %v2292_v16 = vmax.f32 %v2007_v46, 0.0  ;;  %v2190_v53 = vadd.f32 %v2189_v56, %v2101_v6  ;;  %3093 = vmatpush.bf16.msra.mxu0 %v11050_v12 }
 0x45b   :  { %v2301_v28 = vmax.f32 %v2190_v53, 0.0  ;;  %3275 = vmatpush.bf16.msra.mxu2 %v10874_v30  ;;  %v11265_v19 = vpack.c.bf16 %v2292_v16, %v2288_v3 }
 0x45c   :  { %2965 = vmatmul.bf16.gmra.mxu2 %v11259_v5 }
 0x45d   :  { %3019 = vmatmul.bf16.gmra.mxu3 %v11262_v8  ;;  %3094 = vmatpush.bf16.msra.mxu0 %v11000_v62  ;;  %v11272_v41 = vpack.c.bf16 %v2301_v28, %v2297_v39  ;;  %v8369_v62 = vld [vmem:[%s14979_s5 + $0xa4] sm:$0xf0] }
 0x45e   :  { %v2009_v12 = vpop.f32.mrf.mxu1  ;;  %v11274_v13 = vpop.f32.mrf.mxu0  ;;  %v11304_v34 = vor.u32 %v8369_v62, %v7994_v18  ;;  %v8356_v18 = vld [vmem:[%s14979_s5 + $0x44] sm:$0xf]  ;;  %v7948_v62 = vld [vmem:[%s14979_s5 + $0x48] sm:$0xf0] }
 0x45f   :  { %15617 = vst [vmem:[#allocation52_spill] sm:$0xff] %v11274_v13  ;;  %v2010_v30 = vadd.f32 %v2009_v12, %v1921_v14  ;;  %v11278_v15 = vpop.f32.mrf.mxu2  ;;  %v15624_v12 = vld [vmem:[#allocation82_spill] sm:$0xff] }
 0x460   :  { %v2192_v26 = vpop.f32.mrf.mxu3  ;;  %15621 = vst [vmem:[#allocation59_spill] sm:$0xff] %v11304_v34 }
 0x461   :  { %v2193_v60 = vadd.f32 %v2192_v26, %v2104_v23  ;;  %2836 = vmatmul.bf16.gmra.mxu1 %v11211_v43  ;;  %3095 = vmatpush.bf16.msra.mxu0 %v10950_v7  ;;  %v8354_v7 = vld [vmem:[%s14979_s5 + $0x34] sm:$0xf]  ;;  %v2296_v10 = vmax.f32 %v2010_v30, 0.0 }
 0x462   :  { %2787 = vmatmul.bf16.gmra.mxu0 %v11259_v5  ;;  %v11307_v56 = vor.u32 %v8354_v7, %v7940_v59 }
 0x463   :  { %v2305_v3 = vmax.f32 %v2193_v60, 0.0 }
 0x464   :  { %15622 = vst [vmem:[#allocation107_spill] sm:$0xff] %v11307_v56 }
 0x465   :  { %3096 = vmatpush.bf16.msra.mxu0 %v10920_v61  ;;  %v15620_v61 = vld [vmem:[#allocation77_spill] sm:$0xff] }
 0x466   :  { %v2011_v51 = vpop.f32.mrf.mxu1  ;;  %v11298_v32 = vpop.f32.mrf.mxu0  ;;  %v2106_v38 = vadd.f32 %v10946_v55, %v15620_v61  ;;  %v1926_v55 = vadd.f32 %v10928_v45, %v15618_v31  ;;  %v1928_v45 = vadd.f32 %v10942_v24, %v15620_v61  ;;  %v8002_v31 = vld [vmem:[%s14979_s5 + $0xb0] sm:$0xf]  ;;  %v15626_v24 = vld [vmem:[#allocation72_spill] sm:$0xff] }
 0x467   :  { %15619 = vst [vmem:[#allocation64_spill] sm:$0xff] %v11298_v32  ;;  %v2012_v27 = vadd.f32 %v2011_v51, %v1923_v42  ;;  %v11302_v52 = vpop.f32.mrf.mxu2  ;;  %v2111_v7 = vadd.f32 %v10996_v47, %v15626_v24  ;;  %v1931_v47 = vadd.f32 %v10969_v21, %v15624_v12  ;;  %v1933_v21 = vadd.f32 %v10992_v20, %v15626_v24 }
 0x468   :  { %v2194_v9 = vpop.f32.mrf.mxu3  ;;  %v2116_v20 = vadd.f32 %v11046_v0, %v15564_v58 }
 0x469   :  { %v2300_v6 = vmax.f32 %v2012_v27, 0.0  ;;  %v2195_v46 = vadd.f32 %v2194_v9, %v2106_v38  ;;  %3097 = vmatpush.bf16.msra.mxu0 %v10884_v22  ;;  %v2109_v22 = vadd.f32 %v10971_v57, %v15624_v12  ;;  %v8371_v57 = vld [vmem:[%s14979_s5 + $0xb4] sm:$0xf0]  ;;  %v8010_v12 = vld [vmem:[%s14979_s5 + $0xc0] sm:$0xf] }
 0x46a   :  { %v11345_v27 = vor.u32 %v8371_v57, %v8002_v31 }
 0x46b   :  { %v2309_v16 = vmax.f32 %v2195_v46, 0.0  ;;  %v11309_v53 = vpack.c.bf16 %v2300_v6, %v2296_v10  ;;  %v11347_v46 = vor.u32 %v8356_v18, %v7948_v62  ;;  %v8358_v62 = vld [vmem:[%s14979_s5 + $0x54] sm:$0xf] }
 0x46c   :  { %2970 = vmatmul.bf16.gmra.mxu2 %v11304_v34  ;;  %15627 = vst [vmem:[#allocation70_spill] sm:$0xff] %v11345_v27 }
 0x46d   :  { %3024 = vmatmul.bf16.gmra.mxu3 %v11307_v56  ;;  %v11315_v39 = vpack.c.bf16 %v2309_v16, %v2305_v3  ;;  %15628 = vst [vmem:[#allocation106_spill] sm:$0xff] %v11347_v46 }
 0x46e   :  { %v2014_v28 = vpop.f32.mrf.mxu1  ;;  %v11317_v14 = vpop.f32.mrf.mxu0 }
 0x46f   :  { %15623 = vst [vmem:[#allocation103_spill] sm:$0xff] %v11317_v14  ;;  %v2015_v23 = vadd.f32 %v2014_v28, %v1926_v55  ;;  %v11321_v30 = vpop.f32.mrf.mxu2 }
 0x470   :  { %v2197_v26 = vpop.f32.mrf.mxu3 }
 0x471   :  { %v2198_v60 = vadd.f32 %v2197_v26, %v2109_v22  ;;  %2841 = vmatmul.bf16.gmra.mxu1 %v11262_v8  ;;  %v2304_v9 = vmax.f32 %v2015_v23, 0.0  ;;  %v15630_v23 = vld [vmem:[#allocation65_spill] sm:$0xff] }
 0x472   :  { %2792 = vmatmul.bf16.gmra.mxu0 %v11304_v34  ;;  %v1936_v0 = vadd.f32 %v11017_v33, %v15630_v23 }
 0x473   :  { %v2313_v3 = vmax.f32 %v2198_v60, 0.0 }
 0x476   :  { %v2016_v42 = vpop.f32.mrf.mxu1  ;;  %v11339_v51 = vpop.f32.mrf.mxu0 }
 0x477   :  { %15625 = vst [vmem:[#allocation69_spill] sm:$0xff] %v11339_v51  ;;  %v2017_v59 = vadd.f32 %v2016_v42, %v1928_v45  ;;  %v11343_v61 = vpop.f32.mrf.mxu2  ;;  %v2114_v45 = vadd.f32 %v11019_v11, %v15630_v23  ;;  %v8373_v11 = vld [vmem:[%s14979_s5 + $0xc4] sm:$0xf0]  ;;  %v8018_v23 = vld [vmem:[%s14979_s5 + $0xd0] sm:$0xf] }
 0x478   :  { %v2199_v38 = vpop.f32.mrf.mxu3 }
 0x479   :  { %v2308_v10 = vmax.f32 %v2017_v59, 0.0  ;;  %v2200_v6 = vadd.f32 %v2199_v38, %v2111_v7  ;;  %v7956_v7 = vld [vmem:[%s14979_s5 + $0x58] sm:$0xf0] }
 0x47b   :  { %v2317_v16 = vmax.f32 %v2200_v6, 0.0  ;;  %v11349_v55 = vpack.c.bf16 %v2308_v10, %v2304_v9  ;;  %v11385_v10 = vor.u32 %v8373_v11, %v8010_v12 }
 0x47c   :  { %2975 = vmatmul.bf16.gmra.mxu2 %v11345_v27 }
 0x47d   :  { %3029 = vmatmul.bf16.gmra.mxu3 %v11347_v46  ;;  %v11355_v28 = vpack.c.bf16 %v2317_v16, %v2313_v3  ;;  %15632 = vst [vmem:[#allocation78_spill] sm:$0xff] %v11385_v10 }
 0x47e   :  { %v2019_v22 = vpop.f32.mrf.mxu1  ;;  %v11357_v26 = vpop.f32.mrf.mxu0 }
 0x47f   :  { %15629 = vst [vmem:[#allocation74_spill] sm:$0xff] %v11357_v26  ;;  %v2020_v31 = vadd.f32 %v2019_v22, %v1931_v47  ;;  %v11361_v60 = vpop.f32.mrf.mxu2  ;;  %v11387_v47 = vor.u32 %v8358_v62, %v7956_v7  ;;  %v15635_v7 = vld [vmem:[#allocation50_spill] sm:$0xff] }
 0x480   :  { %v2202_v57 = vpop.f32.mrf.mxu3  ;;  %v2119_v33 = vadd.f32 %v11067_v35, %v15635_v7  ;;  %v15636_v35 = vld [vmem:[#allocation51_spill] sm:$0xff] }
 0x481   :  { %v2203_v42 = vadd.f32 %v2202_v57, %v2114_v45  ;;  %2846 = vmatmul.bf16.gmra.mxu1 %v11307_v56  ;;  %v2312_v6 = vmax.f32 %v2020_v31, 0.0  ;;  %15633 = vst [vmem:[#allocation100_spill] sm:$0xff] %v11387_v47 }
 0x482   :  { %2797 = vmatmul.bf16.gmra.mxu0 %v11345_v27 }
 0x483   :  { %v2321_v22 = vmax.f32 %v2203_v42, 0.0  ;;  %v1938_v42 = vadd.f32 %v11042_v25, %v15564_v58  ;;  %v7964_v58 = vld [vmem:[%s14979_s5 + $0x68] sm:$0xf0] }
 0x486   :  { %v2021_v18 = vpop.f32.mrf.mxu1  ;;  %v11379_v59 = vpop.f32.mrf.mxu0 }
 0x487   :  { %15631 = vst [vmem:[#allocation45_spill] sm:$0xff] %v11379_v59  ;;  %v2022_v24 = vadd.f32 %v2021_v18, %v1933_v21  ;;  %v11383_v38 = vpop.f32.mrf.mxu2 }
 0x488   :  { %v2204_v9 = vpop.f32.mrf.mxu3 }
 0x489   :  { %v2316_v3 = vmax.f32 %v2022_v24, 0.0  ;;  %v2205_v16 = vadd.f32 %v2204_v9, %v2116_v20  ;;  %v8375_v20 = vld [vmem:[%s14979_s5 + $0xd4] sm:$0xf0]  ;;  %v8360_v9 = vld [vmem:[%s14979_s5 + $0x64] sm:$0xf] }
 0x48a   :  { %v11427_v27 = vor.u32 %v8360_v9, %v7964_v58  ;;  %v15642_v9 = vld [vmem:[#allocation38_spill] sm:$0xff]  ;;  %v8026_v58 = vld [vmem:[%s14979_s5 + $0xe0] sm:$0xf] }
 0x48b   :  { %v2325_v45 = vmax.f32 %v2205_v16, 0.0  ;;  %v11389_v57 = vpack.c.bf16 %v2316_v3, %v2312_v6  ;;  %v2121_v6 = vadd.f32 %v11096_v54, %v15636_v35 }
 0x48c   :  { %2980 = vmatmul.bf16.gmra.mxu2 %v11385_v10  ;;  %15638 = vst [vmem:[#allocation46_spill] sm:$0xff] %v11427_v27 }
 0x48d   :  { %3034 = vmatmul.bf16.gmra.mxu3 %v11387_v47  ;;  %v11395_v21 = vpack.c.bf16 %v2325_v45, %v2321_v22 }
 0x48e   :  { %v2024_v12 = vpop.f32.mrf.mxu1  ;;  %v11397_v11 = vpop.f32.mrf.mxu0 }
 0x48f   :  { %15634 = vst [vmem:[#allocation75_spill] sm:$0xff] %v11397_v11  ;;  %v2025_v31 = vadd.f32 %v2024_v12, %v1936_v0  ;;  %v11399_v18 = vpop.f32.mrf.mxu2  ;;  %v11425_v0 = vor.u32 %v8375_v20, %v8018_v23 }
 0x490   :  { %v2207_v62 = vpop.f32.mrf.mxu3 }
 0x491   :  { %2851 = vmatmul.bf16.gmra.mxu1 %v11347_v46  ;;  %v2208_v3 = vadd.f32 %v2207_v62, %v2119_v33  ;;  %15637 = vst [vmem:[#allocation85_spill] sm:$0xff] %v11425_v0  ;;  %v2320_v12 = vmax.f32 %v2025_v31, 0.0  ;;  %v15640_v31 = vld [vmem:[#allocation96_spill] sm:$0xff] }
 0x492   :  { %2802 = vmatmul.bf16.gmra.mxu0 %v11385_v10  ;;  %v1943_v20 = vadd.f32 %v15640_v31, %v15636_v35  ;;  %v7972_v35 = vld [vmem:[%s14979_s5 + $0x78] sm:$0xf0] }
 0x493   :  { %v2329_v56 = vmax.f32 %v2208_v3, 0.0 }
 0x496   :  { %v2026_v24 = vpop.f32.mrf.mxu1  ;;  %v11419_v25 = vpop.f32.mrf.mxu0 }
 0x497   :  { %v2027_v16 = vadd.f32 %v2026_v24, %v1938_v42  ;;  %v11423_v22 = vpop.f32.mrf.mxu2  ;;  %v15641_v24 = vld [vmem:[#allocation66_spill] sm:$0xff] }
 0x498   :  { %v2209_v45 = vpop.f32.mrf.mxu3 }
 0x499   :  { %v2324_v10 = vmax.f32 %v2027_v16, 0.0  ;;  %v2210_v46 = vadd.f32 %v2209_v45, %v2121_v6  ;;  %v8377_v6 = vld [vmem:[%s14979_s5 + $0xe4] sm:$0xf0]  ;;  %v15643_v16 = vld [vmem:[#allocation55_spill] sm:$0xff] }
 0x49a   :  { %v2126_v45 = vadd.f32 %v11150_v4, %v15643_v16  ;;  %v11463_v31 = vor.u32 %v8377_v6, %v8026_v58 }
 0x49b   :  { %v2333_v34 = vmax.f32 %v2210_v46, 0.0  ;;  %v11429_v29 = vpack.c.bf16 %v2324_v10, %v2320_v12  ;;  %v15639_v46 = vld [vmem:[#allocation94_spill] sm:$0xff] }
 0x49c   :  { %2985 = vmatmul.bf16.gmra.mxu2 %v11425_v0  ;;  %v1941_v10 = vadd.f32 %v15639_v46, %v15635_v7  ;;  %v8362_v7 = vld [vmem:[%s14979_s5 + $0x74] sm:$0xf]  ;;  %15644 = vst [vmem:[#allocation81_spill] sm:$0xff] %v11463_v31 }
 0x49d   :  { %3039 = vmatmul.bf16.gmra.mxu3 %v11427_v27  ;;  %v11433_v54 = vpack.c.bf16 %v2333_v34, %v2329_v56  ;;  %v2124_v34 = vadd.f32 %v15642_v9, %v15641_v24  ;;  %v11465_v49 = vor.u32 %v8362_v7, %v7972_v35  ;;  %v8379_v35 = vld [vmem:[%s14979_s5 + $0xf4] sm:$0xf0] }
 0x49e   :  { %v2029_v62 = vpop.f32.mrf.mxu1  ;;  %v11437_v23 = vpop.f32.mrf.mxu0 }
 0x49f   :  { %v11435_v42 = vpop.f32.mrf.mxu2  ;;  %v2030_v56 = vadd.f32 %v2029_v62, %v1941_v10  ;;  %15645 = vst [vmem:[#allocation99_spill] sm:$0xff] %v11465_v49 }
 0x4a0   :  { %v2212_v33 = vpop.f32.mrf.mxu3 }
 0x4a1   :  { %2856 = vmatmul.bf16.gmra.mxu1 %v11387_v47  ;;  %v2213_v12 = vadd.f32 %v2212_v33, %v2124_v34  ;;  %v2328_v9 = vmax.f32 %v2030_v56, 0.0  ;;  %v15646_v56 = vld [vmem:[#allocation98_spill] sm:$0xff] }
 0x4a2   :  { %2807 = vmatmul.bf16.gmra.mxu0 %v11425_v0  ;;  %v1946_v58 = vadd.f32 %v15646_v56, %v15641_v24  ;;  %v8364_v24 = vld [vmem:[%s14979_s5 + $0x84] sm:$0xf] }
 0x4a3   :  { %v2337_v5 = vmax.f32 %v2213_v12, 0.0  ;;  %v15649_v12 = vld [vmem:[#allocation36_spill] sm:$0xff] }
 0x4a6   :  { %v2031_v3 = vpop.f32.mrf.mxu1  ;;  %v11467_v8 = vpop.f32.mrf.mxu0 }
 0x4a7   :  { %v2032_v62 = vadd.f32 %v2031_v3, %v1943_v20  ;;  %v11461_v46 = vpop.f32.mrf.mxu2  ;;  %v15648_v3 = vld [vmem:[#allocation37_spill] sm:$0xff] }
 0x4a8   :  { %v2214_v10 = vpop.f32.mrf.mxu3  ;;  %v2129_v7 = vadd.f32 %v11173_v36, %v15648_v3  ;;  %v2131_v36 = vadd.f32 %v11206_v44, %v15649_v12 }
 0x4a9   :  { %v2332_v0 = vmax.f32 %v2032_v62, 0.0  ;;  %v2215_v47 = vadd.f32 %v2214_v10, %v2126_v45 }
 0x4ab   :  { %v2341_v13 = vmax.f32 %v2215_v47, 0.0  ;;  %v11469_v32 = vpack.c.bf16 %v2332_v0, %v2328_v9  ;;  %v15647_v47 = vld [vmem:[#allocation48_spill] sm:$0xff] }
 0x4ac   :  { %2990 = vmatmul.bf16.gmra.mxu2 %v11463_v31  ;;  %v1948_v0 = vadd.f32 %v15647_v47, %v15643_v16  ;;  %v7980_v16 = vld [vmem:[%s14979_s5 + $0x88] sm:$0xf0] }
 0x4ad   :  { %3044 = vmatmul.bf16.gmra.mxu3 %v11465_v49  ;;  %v2441_v4 = vpack.c.bf16 %v2341_v13, %v2337_v5  ;;  %v8034_v13 = vld [vmem:[%s14979_s5 + $0xf0] sm:$0xf] }
 0x4ae   :  { %v2034_v33 = vpop.f32.mrf.mxu1  ;;  %v11479_v6 = vpop.f32.mrf.mxu0  ;;  %v11501_v56 = vor.u32 %v8379_v35, %v8034_v13  ;;  %v7988_v13 = vld [vmem:[%s14979_s5 + $0x98] sm:$0xf0] }
 0x4af   :  { %v11473_v20 = vpop.f32.mrf.mxu2  ;;  %v2035_v5 = vadd.f32 %v2034_v33, %v1946_v58 }
 0x4b0   :  { %v2217_v34 = vpop.f32.mrf.mxu3  ;;  %15650 = vst [vmem:[#allocation79_spill] sm:$0xff] %v11501_v56 }
 0x4b1   :  { %2861 = vmatmul.bf16.gmra.mxu1 %v11427_v27  ;;  %v2218_v62 = vadd.f32 %v2217_v34, %v2129_v7  ;;  %v2336_v58 = vmax.f32 %v2035_v5, 0.0  ;;  %v11503_v27 = vor.u32 %v8364_v24, %v7980_v16 }
 0x4b2   :  { %2812 = vmatmul.bf16.gmra.mxu0 %v11463_v31 }
 0x4b3   :  { %15651 = vst [vmem:[#allocation73_spill] sm:$0xff] %v11503_v27  ;;  %v2345_v14 = vmax.f32 %v2218_v62, 0.0 }
 0x4b6   :  { %v2036_v45 = vpop.f32.mrf.mxu1  ;;  %v11507_v34 = vpop.f32.mrf.mxu0 }
 0x4b7   :  { %v2037_v10 = vadd.f32 %v2036_v45, %v1948_v0  ;;  %v11499_v33 = vpop.f32.mrf.mxu2 }
 0x4b8   :  { %v2219_v9 = vpop.f32.mrf.mxu3 }
 0x4b9   :  { %v2340_v47 = vmax.f32 %v2037_v10, 0.0  ;;  %v2220_v31 = vadd.f32 %v2219_v9, %v2131_v36  ;;  %v8368_v10 = vld [vmem:[%s14979_s5 + $0xa4] sm:$0xf] }
 0x4bb   :  { %v2349_v51 = vmax.f32 %v2220_v31, 0.0  ;;  %v2440_v63 = vpack.c.bf16 %v2340_v47, %v2336_v58  ;;  %v1951_v31 = vadd.f32 %v11169_v50, %v15648_v3 }
 0x4bc   :  { %2995 = vmatmul.bf16.gmra.mxu2 %v11501_v56 }
 0x4bd   :  { %v2445_v26 = vpack.c.bf16 %v2349_v51, %v2345_v14  ;;  %3049 = vmatmul.bf16.gmra.mxu3 %v11503_v27  ;;  %v1953_v14 = vadd.f32 %v11196_v40, %v15649_v12  ;;  %v15655_v12 = vld [vmem:[#allocation92_spill] sm:$0xff] }
 0x4be   :  { %v2039_v44 = vpop.f32.mrf.mxu1  ;;  %v11528_v50 = vpop.f32.mrf.mxu0 }
 0x4bf   :  { %3357 = vmatpush.bf16.msra.mxu3 %v2445_v26  ;;  %v11512_v7 = vpop.f32.mrf.mxu2  ;;  %v2040_v51 = vadd.f32 %v2039_v44, %v1951_v31  ;;  %v8366_v26 = vld [vmem:[%s14979_s5 + $0x94] sm:$0xf] }
 0x4c0   :  { %v11509_v0 = vpop.f32.mrf.mxu3  ;;  %v11530_v40 = vor.u32 %v8366_v26, %v7988_v13  ;;  %v11601_v26 = vpop.permute.xlu2 %2507 }
 0x4c1   :  { %15652 = vst [vmem:[#allocation87_spill] sm:$0xff] %v11509_v0  ;;  %2866 = vmatmul.bf16.gmra.mxu1 %v11465_v49  ;;  %v15714_v0 = vld [vmem:[#allocation49_spill] sm:$0xff] }
 0x4c2   :  { %2817 = vmatmul.bf16.gmra.mxu0 %v11501_v56  ;;  %15654 = vst [vmem:[#allocation67_spill] sm:$0xff] %v11530_v40 }
 0x4c3   :  { %3358 = vmatpush.bf16.msra.mxu3 %v2441_v4  ;;  %v2344_v4 = vmax.f32 %v2040_v51, 0.0  ;;  %15672 = vst [vmem:[#allocation40_spill] sm:$0xff] %v11601_v26 }
 0x4c6   :  { %v2041_v5 = vpop.f32.mrf.mxu1  ;;  %v11543_v62 = vpop.f32.mrf.mxu0 }
 0x4c7   :  { %v2042_v35 = vadd.f32 %v2041_v5, %v1953_v14  ;;  %3359 = vmatpush.bf16.msra.mxu3 %v11433_v54  ;;  %v11533_v16 = vpop.f32.mrf.mxu2 }
 0x4c8   :  { %v11526_v45 = vpop.f32.mrf.mxu3 }
 0x4c9   :  { %15653 = vst [vmem:[#allocation86_spill] sm:$0xff] %v11526_v45  ;;  %v2348_v3 = vmax.f32 %v2042_v35, 0.0 }
 0x4cb   :  { %v2444_v24 = vpack.c.bf16 %v2348_v3, %v2344_v4  ;;  %3360 = vmatpush.bf16.msra.mxu3 %v11395_v21  ;;  %v8372_v3 = vld [vmem:[%s14979_s5 + $0xc4] sm:$0xf] }
 0x4cc   :  { %3276 = vmatmul.bf16.vlgmr.msra.gmra.mxu2 %v15655_v12 }
 0x4cd   :  { %3054 = vmatmul.bf16.gmra.mxu3 %v11530_v40  ;;  %3179 = vmatpush.bf16.msra.mxu1 %v2444_v24  ;;  %v8012_v24 = vld [vmem:[%s14979_s5 + $0xc8] sm:$0xf0] }
 0x4ce   :  { %v11537_v36 = vpop.f32.mrf.mxu1 }
 0x4cf   :  { %15656 = vst [vmem:[#allocation90_spill] sm:$0xff] %v11537_v36  ;;  %3361 = vmatpush.bf16.msra.mxu3 %v11355_v28  ;;  %v7996_v28 = vld [vmem:[%s14979_s5 + $0xa8] sm:$0xf0]  ;;  %v11556_v9 = vpop.f32.mrf.mxu2  ;;  %v15704_v36 = vld [vmem:[#allocation91_spill] sm:$0xff] }
 0x4d0   :  { %v11540_v54 = vpop.f32.mrf.mxu3  ;;  %15659 = vst [vmem:[#allocation44_spill] sm:$0xff] %v11556_v9  ;;  %v11561_v58 = vor.u32 %v8368_v10, %v7996_v28  ;;  %v11621_v10 = vor.u32 %v8372_v3, %v8012_v24  ;;  %v11623_v28 = vpop.permute.xlu2 %2499  ;;  %v8020_v9 = vld [vmem:[%s14979_s5 + $0xd8] sm:$0xf0] }
 0x4d1   :  { %15657 = vst [vmem:[#allocation68_spill] sm:$0xff] %v11540_v54  ;;  %2871 = vmatmul.bf16.gmra.mxu1 %v11503_v27 }
 0x4d2   :  { %3180 = vmatpush.bf16.msra.mxu1 %v2440_v63  ;;  %3098 = vmatmul.bf16.vlgmr.msra.gmra.mxu0 %v15655_v12  ;;  %15661 = vst [vmem:[#allocation57_spill] sm:$0xff] %v11561_v58 }
 0x4d3   :  { %3362 = vmatpush.bf16.msra.mxu3 %v11315_v39  ;;  %v15663_v39 = vld [vmem:[#allocation88_spill] sm:$0xff]  ;;  %15676 = vst [vmem:[#allocation47_spill] sm:$0xff] %v11621_v10 }
 0x4d4   :  { %15677 = vst [vmem:[#allocation60_spill] sm:$0xff] %v11623_v28 }
 0x4d6   :  { %3181 = vmatpush.bf16.msra.mxu1 %v11469_v32  ;;  %v11548_v21 = vpop.f32.mrf.mxu1  ;;  %v11565_v32 = vpop.f32.mrf.mxu0 }
 0x4d7   :  { %15658 = vst [vmem:[#allocation93_spill] sm:$0xff] %v11548_v21  ;;  %3363 = vmatpush.bf16.msra.mxu3 %v11272_v41  ;;  %v11574_v41 = vpop.f32.mrf.mxu2 }
 0x4d8   :  { %v11559_v63 = vpop.f32.mrf.mxu3  ;;  %15662 = vst [vmem:[#allocation53_spill] sm:$0xff] %v11565_v32  ;;  %v11641_v3 = vpop.permute.xlu2 %2495 }
 0x4d9   :  { %15660 = vst [vmem:[#allocation97_spill] sm:$0xff] %v11559_v63 }
 0x4da   :  { %3182 = vmatpush.bf16.msra.mxu1 %v11429_v29  ;;  %15665 = vst [vmem:[#allocation71_spill] sm:$0xff] %v11574_v41  ;;  %v8370_v29 = vld [vmem:[%s14979_s5 + $0xb4] sm:$0xf] }
 0x4db   :  { %3364 = vmatpush.bf16.msra.mxu3 %v11221_v37  ;;  %15684 = vst [vmem:[#allocation82_spill] sm:$0xff] %v11641_v3 }
 0x4dc   :  { %3281 = vmatmul.bf16.gmra.mxu2 %v15663_v39 }
 0x4dd   :  { %3059 = vmatmul.bf16.gmra.mxu3 %v11561_v58 }
 0x4de   :  { %3183 = vmatpush.bf16.msra.mxu1 %v11389_v57  ;;  %v11570_v47 = vpop.f32.mrf.mxu1  ;;  %v8004_v57 = vld [vmem:[%s14979_s5 + $0xb8] sm:$0xf0]  ;;  %v11588_v31 = vpop.f32.mrf.mxu0 }
 0x4df   :  { %15664 = vst [vmem:[#allocation83_spill] sm:$0xff] %v11570_v47  ;;  %v11592_v51 = vor.u32 %v8370_v29, %v8004_v57  ;;  %v15679_v29 = vld [vmem:[#allocation41_spill] sm:$0xff]  ;;  %v11629_v57 = vpop.permute.xlu1 %2571 }
 0x4e0   :  { %v11572_v44 = vpop.f32.mrf.mxu3  ;;  %15667 = vst [vmem:[#allocation84_spill] sm:$0xff] %v11588_v31  ;;  %v11635_v31 = vpop.permute.xlu0 %2503 }
 0x4e1   :  { %2876 = vmatmul.bf16.gmra.mxu1 %v11530_v40  ;;  %15668 = vst [vmem:[#allocation42_spill] sm:$0xff] %v11592_v51 }
 0x4e2   :  { %3184 = vmatpush.bf16.msra.mxu1 %v11349_v55  ;;  %3103 = vmatmul.bf16.gmra.mxu0 %v15663_v39  ;;  %v11595_v55 = vpop.f32.mrf.mxu2  ;;  %15680 = vst [vmem:[#allocation80_spill] sm:$0xff] %v11629_v57 }
 0x4e3   :  { %15669 = vst [vmem:[#allocation39_spill] sm:$0xff] %v11595_v55 }
 0x4e4   :  { %15683 = vst [vmem:[#allocation77_spill] sm:$0xff] %v11635_v31 }
 0x4e6   :  { %3185 = vmatpush.bf16.msra.mxu1 %v11309_v53  ;;  %v11580_v37 = vpop.f32.mrf.mxu1  ;;  %v15670_v53 = vld [vmem:[#allocation58_spill] sm:$0xff]  ;;  %v11605_v35 = vpop.f32.mrf.mxu0 }
 0x4e7   :  { %15666 = vst [vmem:[#allocation101_spill] sm:$0xff] %v11580_v37  ;;  %v11653_v41 = vpop.permute.xlu1 %2567 }
 0x4e8   :  { %v11590_v14 = vpop.f32.mrf.mxu3  ;;  %15673 = vst [vmem:[#allocation105_spill] sm:$0xff] %v11605_v35  ;;  %v11661_v40 = vpop.permute.xlu0 %2563 }
 0x4e9   :  { %15687 = vst [vmem:[#allocation50_spill] sm:$0xff] %v11653_v41 }
 0x4ea   :  { %3186 = vmatpush.bf16.msra.mxu1 %v11265_v19  ;;  %v11609_v4 = vpop.f32.mrf.mxu2  ;;  %15690 = vst [vmem:[#allocation96_spill] sm:$0xff] %v11661_v40 }
 0x4eb   :  { %15674 = vst [vmem:[#allocation43_spill] sm:$0xff] %v11609_v4  ;;  %v11665_v4 = vpop.permute.xlu2 %2559 }
 0x4ec   :  { %3286 = vmatmul.bf16.gmra.mxu2 %v15670_v53  ;;  %15692 = vst [vmem:[#allocation66_spill] sm:$0xff] %v11665_v4  ;;  %v8376_v4 = vld [vmem:[%s14979_s5 + $0xe4] sm:$0xf] }
 0x4ed   :  { %3064 = vmatmul.bf16.gmra.mxu3 %v11592_v51 }
 0x4ee   :  { %v11599_v5 = vpop.f32.mrf.mxu1  ;;  %v11625_v39 = vpop.f32.mrf.mxu0 }
 0x4ef   :  { %15671 = vst [vmem:[#allocation89_spill] sm:$0xff] %v11599_v5  ;;  %v11674_v57 = vpop.permute.xlu1 %2491 }
 0x4f0   :  { %v11603_v13 = vpop.f32.mrf.mxu3  ;;  %15678 = vst [vmem:[#allocation63_spill] sm:$0xff] %v11625_v39  ;;  %v8374_v39 = vld [vmem:[%s14979_s5 + $0xd4] sm:$0xf] }
 0x4f1   :  { %2881 = vmatmul.bf16.gmra.mxu1 %v11561_v58  ;;  %15695 = vst [vmem:[#allocation98_spill] sm:$0xff] %v11674_v57 }
 0x4f2   :  { %3108 = vmatmul.bf16.gmra.mxu0 %v15670_v53  ;;  %v11633_v32 = vpop.f32.mrf.mxu2 }
 0x4f3   :  { %15682 = vst [vmem:[#allocation76_spill] sm:$0xff] %v11633_v32  ;;  %v11689_v40 = vpop.permute.xlu2 %2483 }
 0x4f4   :  { %15699 = vst [vmem:[#allocation92_spill] sm:$0xff] %v11689_v40 }
 0x4f6   :  { %v11611_v19 = vpop.f32.mrf.mxu1  ;;  %v11643_v24 = vpop.f32.mrf.mxu0 }
 0x4f7   :  { %15675 = vst [vmem:[#allocation35_spill] sm:$0xff] %v11611_v19 }
 0x4f8   :  { %v11619_v12 = vpop.f32.mrf.mxu3  ;;  %15685 = vst [vmem:[#allocation72_spill] sm:$0xff] %v11643_v24  ;;  %v15691_v24 = vld [vmem:[#allocation54_spill] sm:$0xff] }
 0x4fb   :  { %v11706_v5 = vpop.permute.xlu2 %2547 }
 0x4fc   :  { %3291 = vmatmul.bf16.gmra.mxu2 %v15679_v29  ;;  %15706 = vst [vmem:[#allocation109_spill] sm:$0xff] %v11706_v5 }
 0x4fd   :  { %3069 = vmatmul.bf16.gmra.mxu3 %v11621_v10 }
 0x4fe   :  { %v11631_v53 = vpop.f32.mrf.mxu1  ;;  %v11669_v27 = vpop.f32.mrf.mxu0 }
 0x4ff   :  { %15681 = vst [vmem:[#allocation108_spill] sm:$0xff] %v11631_v53 }
 0x500   :  { %v11637_v58 = vpop.f32.mrf.mxu3  ;;  %15694 = vst [vmem:[#allocation55_spill] sm:$0xff] %v11669_v27  ;;  %v8028_v27 = vld [vmem:[%s14979_s5 + $0xe8] sm:$0xf0] }
 0x501   :  { %2886 = vmatmul.bf16.gmra.mxu1 %v11592_v51  ;;  %v11657_v51 = vpop.f32.mrf.mxu2 }
 0x502   :  { %3113 = vmatmul.bf16.gmra.mxu0 %v15679_v29  ;;  %15688 = vst [vmem:[#allocation51_spill] sm:$0xff] %v11657_v51  ;;  %v11659_v29 = vor.u32 %v8374_v39, %v8020_v9  ;;  %v11679_v39 = vpop.permute.xlu0 %2487 }
 0x503   :  { %15697 = vst [vmem:[#allocation37_spill] sm:$0xff] %v11679_v39 }
 0x504   :  { %15689 = vst [vmem:[#allocation94_spill] sm:$0xff] %v11659_v29 }
 0x506   :  { %v11645_v35 = vpop.f32.mrf.mxu1  ;;  %v11691_v41 = vpop.f32.mrf.mxu0 }
 0x507   :  { %15686 = vst [vmem:[#allocation65_spill] sm:$0xff] %v11645_v35 }
 0x508   :  { %v11655_v55 = vpop.f32.mrf.mxu3  ;;  %15700 = vst [vmem:[#allocation88_spill] sm:$0xff] %v11691_v41 }
 0x509   :  { %v11676_v9 = vpop.f32.mrf.mxu2 }
 0x50a   :  { %15696 = vst [vmem:[#allocation48_spill] sm:$0xff] %v11676_v9  ;;  %v11693_v9 = vor.u32 %v8376_v4, %v8028_v27  ;;  %v11701_v21 = vpop.permute.xlu0 %2551 }
 0x50b   :  { %15705 = vst [vmem:[#allocation91_spill] sm:$0xff] %v11701_v21  ;;  %v8036_v21 = vld [vmem:[%s14979_s5 + $0xf8] sm:$0xf0] }
 0x50c   :  { %3296 = vmatmul.bf16.gmra.mxu2 %v15691_v24  ;;  %15701 = vst [vmem:[#allocation58_spill] sm:$0xff] %v11693_v9 }
 0x50d   :  { %3074 = vmatmul.bf16.gmra.mxu3 %v11659_v29 }
 0x50e   :  { %v11667_v32 = vpop.f32.mrf.mxu1  ;;  %v11708_v41 = vpop.f32.mrf.mxu0 }
 0x50f   :  { %15693 = vst [vmem:[#allocation38_spill] sm:$0xff] %v11667_v32 }
 0x510   :  { %v11671_v56 = vpop.f32.mrf.mxu3  ;;  %15707 = vst [vmem:[#allocation110_spill] sm:$0xff] %v11708_v41 }
 0x511   :  { %2891 = vmatmul.bf16.gmra.mxu1 %v11621_v10  ;;  %v11697_v49 = vpop.f32.mrf.mxu2 }
 0x512   :  { %3118 = vmatmul.bf16.gmra.mxu0 %v15691_v24  ;;  %v11695_v24 = vpop.permute.xlu1 %2555  ;;  %15703 = vst [vmem:[#allocation54_spill] sm:$0xff] %v11697_v49  ;;  %v8378_v49 = vld [vmem:[%s14979_s5 + $0xf4] sm:$0xf]  ;;  %s8526_s5 = smov 32  }
 0x513   :  { %15702 = vst [vmem:[#allocation41_spill] sm:$0xff] %v11695_v24  ;;  %v11725_v41 = vor.u32 %v8378_v49, %v8036_v21  ;;  %v2957_v49 = vadd.f32 %v11512_v7, %v11635_v31  ;;  %v2959_v21 = vadd.f32 %v11533_v16, %v11601_v26  ;;  %v2949_v16 = vadd.f32 %v11461_v46, %v11674_v57 }
 0x515   :  { %15711 = vst [vmem:[#allocation114_spill] sm:$0xff] %v11725_v41 }
 0x516   :  { %v11681_v51 = vpop.f32.mrf.mxu1  ;;  %v11729_v19 = vpop.f32.mrf.mxu0 }
 0x517   :  { %15698 = vst [vmem:[#allocation36_spill] sm:$0xff] %v11681_v51 }
 0x518   :  { %v3037_v10 = vpop.f32.mrf.mxu3  ;;  %15713 = vst [vmem:[#allocation116_spill] sm:$0xff] %v11729_v19 }
 0x519   :  { %v11721_v24 = vpop.f32.mrf.mxu2 }
 0x51a   :  { %v11711_v27 = vpop.permute.xlu1 %2479  ;;  %15709 = vst [vmem:[#allocation112_spill] sm:$0xff] %v11721_v24 }
 0x51b   :  { %15708 = vst [vmem:[#allocation111_spill] sm:$0xff] %v11711_v27 }
 0x51c   :  { %3301 = vmatmul.bf16.gmra.mxu2 %v15704_v36 }
 0x51d   :  { %3079 = vmatmul.bf16.gmra.mxu3 %v11693_v9 }
 0x51e   :  { %v11703_v47 = vpop.f32.mrf.mxu1  ;;  %v11751_v54 = vpop.f32.mrf.mxu0 }
 0x520   :  { %v3040_v37 = vpop.f32.mrf.mxu3 }
 0x521   :  { %2896 = vmatmul.bf16.gmra.mxu1 %v11659_v29  ;;  %v11723_v29 = vpop.permute.xlu0 %2475  ;;  %v11737_v59 = vpop.f32.mrf.mxu2 }
 0x522   :  { %3123 = vmatmul.bf16.gmra.mxu0 %v15704_v36  ;;  %15710 = vst [vmem:[#allocation113_spill] sm:$0xff] %v11723_v29  ;;  %v11727_v36 = vpop.permute.xlu2 %2471  ;;  %v11735_v35 = vpop.permute.xlu1 %2543 }
 0x523   :  { %15712 = vst [vmem:[#allocation115_spill] sm:$0xff] %v11727_v36 }
 0x524   :  { %15715 = vst [vmem:[#allocation49_spill] sm:$0xff] %v11735_v35  ;;  %v2954_v35 = vadd.f32 %v11499_v33, %v11623_v28 }
 0x525   :  { %15716 = vst [vmem:[#allocation117_spill] sm:$0xff] %v11737_v59 }
 0x526   :  { %v11713_v4 = vpop.f32.mrf.mxu1 }
 0x528   :  { %v3042_v5 = vpop.f32.mrf.mxu3 }
 0x529   :  { %v11740_v24 = vpop.permute.xlu0 %2539  ;;  %v3043_v7 = vadd.f32 %v3042_v5, %v2954_v35  ;;  %v11759_v17 = vpop.f32.mrf.mxu2  ;;  %v2947_v5 = vadd.f32 %v11435_v42, %v11679_v39  ;;  %v2942_v42 = vadd.f32 %v11399_v18, %v11711_v27 }
 0x52a   :  { %15717 = vst [vmem:[#allocation118_spill] sm:$0xff] %v11740_v24  ;;  %v11747_v19 = vpop.permute.xlu2 %2535 }
 0x52b   :  { %15718 = vst [vmem:[#allocation119_spill] sm:$0xff] %v11747_v19  ;;  %v3031_v18 = vadd.f32 %v11637_v58, %v2942_v42 }
 0x52c   :  { %3306 = vmatmul.bf16.gmra.mxu2 %v15714_v0 }
 0x52d   :  { %3084 = vmatmul.bf16.gmra.mxu3 %v11725_v41 }
 0x52e   :  { %v11733_v53 = vpop.f32.mrf.mxu1 }
 0x530   :  { %v3045_v45 = vpop.f32.mrf.mxu3 }
 0x531   :  { %2901 = vmatmul.bf16.gmra.mxu1 %v11693_v9  ;;  %v3046_v59 = vadd.f32 %v3045_v45, %v2957_v49  ;;  %v2952_v9 = vadd.f32 %v11473_v20, %v11641_v3  ;;  %v11761_v19 = vpop.permute.xlu0 %2463  ;;  %v3499_v20 = vmax.f32 %v3043_v7, 0.0  ;;  %v3038_v45 = vadd.f32 %v3037_v10, %v2949_v16  ;;  %v11785_v49 = vpop.f32.mrf.mxu2 }
 0x532   :  { %3128 = vmatmul.bf16.gmra.mxu0 %v15714_v0  ;;  %v11755_v0 = vpop.permute.xlu1 %2467  ;;  %15720 = vst [vmem:[#allocation121_spill] sm:$0xff] %v11761_v19  ;;  %v3036_v10 = vadd.f32 %v11671_v56, %v2947_v5  ;;  %v2781_v56 = vadd.f32 %v11543_v62, %v11601_v26  ;;  %v2776_v16 = vadd.f32 %v11507_v34, %v11623_v28 }
 0x533   :  { %15719 = vst [vmem:[#allocation120_spill] sm:$0xff] %v11755_v0  ;;  %v3503_v63 = vmax.f32 %v3046_v59, 0.0  ;;  %v3041_v11 = vadd.f32 %v3040_v37, %v2952_v9  ;;  %v11773_v37 = vpop.f32.mrf.mxu0  ;;  %v3491_v9 = vmax.f32 %v3038_v45, 0.0  ;;  %v2934_v58 = vadd.f32 %v11343_v61, %v11755_v0 }
 0x534   :  { %v2771_v61 = vadd.f32 %v11467_v8, %v11674_v57 }
 0x535   :  { %v3495_v46 = vmax.f32 %v3041_v11, 0.0  ;;  %v2779_v11 = vadd.f32 %v11528_v50, %v11635_v31  ;;  %v15776_v31 = vld [vmem:[#allocation81_spill] sm:$0xff] }
 0x536   :  { %v2864_v32 = vpop.f32.mrf.mxu1 }
 0x538   :  { %v3047_v24 = vpop.f32.mrf.mxu3 }
 0x539   :  { %v3048_v51 = vadd.f32 %v3047_v24, %v2959_v21  ;;  %v11767_v24 = vpop.permute.xlu2 %2459  ;;  %v2939_v21 = vadd.f32 %v11383_v38, %v11723_v29  ;;  %v11791_v7 = vpop.permute.xlu0 %2527  ;;  %v2774_v38 = vadd.f32 %v11479_v6, %v11641_v3  ;;  %v2932_v6 = vadd.f32 %v11321_v30, %v11761_v19 }
 0x53a   :  { %15723 = vst [vmem:[#allocation124_spill] sm:$0xff] %v11791_v7 }
 0x53b   :  { %v3507_v33 = vmax.f32 %v3048_v51, 0.0  ;;  %v2944_v51 = vadd.f32 %v11423_v22, %v11689_v40  ;;  %v3028_v5 = vadd.f32 %v11619_v12, %v2939_v21  ;;  %v2863_v12 = vadd.f32 %v11733_v53, %v2774_v38 }
 0x53c   :  { %3311 = vmatmul.bf16.gmra.mxu2 %v11152_v1  ;;  %v2860_v53 = vadd.f32 %v11713_v4, %v2771_v61  ;;  %v2766_v4 = vadd.f32 %v11419_v25, %v11689_v40  ;;  %v15772_v40 = vld [vmem:[#allocation46_spill] sm:$0xff] }
 0x53d   :  { %3365 = vmatmul.bf16.vlgmr.msra.gmra.mxu3 %v11154_v48  ;;  %3625 = vmatpush.msrb.mxu2 %v3507_v33  ;;  %v3033_v22 = vadd.f32 %v11655_v55, %v2944_v51  ;;  %v2937_v55 = vadd.f32 %v11361_v60, %v11727_v36  ;;  %v2865_v51 = vadd.f32 %v2864_v32, %v2776_v16  ;;  %v3479_v60 = vmax.f32 %v3031_v18, 0.0  ;;  %v15726_v18 = vld [vmem:[#allocation75_spill] sm:$0xff] }
 0x53e   :  { %v2867_v35 = vpop.f32.mrf.mxu1  ;;  %v2769_v32 = vadd.f32 %v11437_v23, %v11679_v39  ;;  %v3475_v42 = vmax.f32 %v3028_v5, 0.0  ;;  %v11827_v23 = vpop.f32.mrf.mxu2 }
 0x53f   :  { %3626 = vmatpush.msrb.mxu2 %v3503_v63  ;;  %v11782_v63 = vpop.permute.xlu1 %2531  ;;  %v3483_v62 = vmax.f32 %v3033_v22, 0.0  ;;  %v3498_v30 = vmax.f32 %v2865_v51, 0.0 }
 0x540   :  { %v11771_v59 = vpop.f32.mrf.mxu3  ;;  %15722 = vst [vmem:[#allocation123_spill] sm:$0xff] %v11782_v63 }
 0x541   :  { %15721 = vst [vmem:[#allocation122_spill] sm:$0xff] %v11771_v59  ;;  %2906 = vmatmul.bf16.gmra.mxu1 %v11725_v41  ;;  %3627 = vmatpush.msrb.mxu2 %v3499_v20  ;;  %v2868_v20 = vadd.f32 %v2867_v35, %v2779_v11  ;;  %v11805_v34 = vpop.permute.xlu2 %2523  ;;  %v3026_v35 = vadd.f32 %v11603_v13, %v2937_v55  ;;  %v11837_v16 = vpop.permute.xlu0 %2451  ;;  %v15777_v41 = vld [vmem:[#allocation99_spill] sm:$0xff] }
 0x542   :  { %3133 = vmatmul.bf16.gmra.mxu0 %v11152_v1  ;;  %v3487_v1 = vmax.f32 %v3036_v10, 0.0  ;;  %15724 = vst [vmem:[#allocation125_spill] sm:$0xff] %v11805_v34  ;;  %v3023_v11 = vadd.f32 %v11590_v14, %v2934_v58  ;;  %v2929_v13 = vadd.f32 %v11302_v52, %v11767_v24  ;;  %v3494_v52 = vmax.f32 %v2863_v12, 0.0  ;;  %v15730_v58 = vld [vmem:[#allocation68_spill] sm:$0xff]  ;;  %v15733_v12 = vld [vmem:[#allocation74_spill] sm:$0xff]  ;;  %v15789_v59 = vld [vmem:[#allocation91_spill] sm:$0xff] }
 0x543   :  { %3628 = vmatpush.msrb.mxu2 %v3495_v46  ;;  %v3502_v10 = vmax.f32 %v2868_v20, 0.0  ;;  %v3471_v21 = vmax.f32 %v3026_v35, 0.0 }
 0x545   :  { %3629 = vmatpush.msrb.mxu2 %v3491_v9  ;;  %v11807_v9 = vpop.f32.mrf.mxu0 }
 0x546   :  { %v2869_v50 = vpop.f32.mrf.mxu1 }
 0x547   :  { %v2870_v33 = vadd.f32 %v2869_v50, %v2781_v56  ;;  %3630 = vmatpush.msrb.mxu2 %v3487_v1  ;;  %v11823_v22 = vpop.permute.xlu1 %2455  ;;  %v3021_v56 = vadd.f32 %v11572_v44, %v2932_v6  ;;  %v2858_v1 = vadd.f32 %v11703_v47, %v2769_v32  ;;  %v2764_v50 = vadd.f32 %v15726_v18, %v11711_v27  ;;  %v15727_v44 = vld [vmem:[#allocation97_spill] sm:$0xff] }
 0x548   :  { %v11800_v45 = vpop.f32.mrf.mxu3  ;;  %v2927_v14 = vadd.f32 %v11278_v15, %v11823_v22  ;;  %v3018_v20 = vadd.f32 %v15727_v44, %v2929_v13  ;;  %v15728_v15 = vld [vmem:[#allocation62_spill] sm:$0xff]  ;;  %v3490_v47 = vmax.f32 %v2860_v53, 0.0  ;;  %v15732_v6 = vld [vmem:[#allocation45_spill] sm:$0xff]  ;;  %v15736_v13 = vld [vmem:[#allocation56_spill] sm:$0xff] }
 0x549   :  { %v3506_v46 = vmax.f32 %v2870_v33, 0.0  ;;  %3631 = vmatpush.msrb.mxu2 %v3483_v62  ;;  %v3467_v33 = vmax.f32 %v3023_v11, 0.0  ;;  %v2924_v38 = vadd.f32 %v15728_v15, %v11837_v16  ;;  %v15729_v62 = vld [vmem:[#allocation36_spill] sm:$0xff]  ;;  %v3463_v5 = vmax.f32 %v3021_v56, 0.0  ;;  %v11853_v61 = vpop.permute.xlu2 %2447  ;;  %v15741_v44 = vld [vmem:[#allocation103_spill] sm:$0xff] }
 0x54a   :  { %v2855_v25 = vadd.f32 %v15729_v62, %v2766_v4  ;;  %v3486_v51 = vmax.f32 %v2858_v1, 0.0  ;;  %15734 = vst [vmem:[#allocation75_spill] sm:$0xff] %v11853_v61  ;;  %v15739_v4 = vld [vmem:[#allocation108_spill] sm:$0xff]  ;;  %v15742_v62 = vld [vmem:[#allocation87_spill] sm:$0xff] }
 0x54b   :  { %3585 = vmatpush.msrb.mxu0 %v3506_v46  ;;  %3632 = vmatpush.msrb.mxu2 %v3479_v60  ;;  %v3016_v46 = vadd.f32 %v15730_v58, %v2927_v14  ;;  %v15731_v60 = vld [vmem:[#allocation38_spill] sm:$0xff]  ;;  %v15743_v58 = vld [vmem:[#allocation35_spill] sm:$0xff] }
 0x54c   :  { %3316 = vmatmul.bf16.gmra.mxu2 %v11209_v2  ;;  %v2853_v35 = vadd.f32 %v15731_v60, %v2764_v50  ;;  %v3482_v53 = vmax.f32 %v2855_v25, 0.0  ;;  %v15740_v50 = vld [vmem:[#allocation69_spill] sm:$0xff] }
 0x54d   :  { %3370 = vmatmul.bf16.gmra.mxu3 %v11211_v43  ;;  %3586 = vmatpush.msrb.mxu0 %v3502_v10  ;;  %v2761_v10 = vadd.f32 %v15732_v6, %v11723_v29  ;;  %v11855_v32 = vpop.f32.mrf.mxu0  ;;  %v15744_v60 = vld [vmem:[#allocation89_spill] sm:$0xff]  ;;  %v15745_v6 = vld [vmem:[#allocation64_spill] sm:$0xff] }
 0x54e   :  { %v11825_v8 = vpop.f32.mrf.mxu1  ;;  %3633 = vmatpush.msrb.mxu2 %v3475_v42  ;;  %v15735_v42 = vld [vmem:[#allocation86_spill] sm:$0xff]  ;;  %v3478_v1 = vmax.f32 %v2853_v35, 0.0 }
 0x54f   :  { %15725 = vst [vmem:[#allocation126_spill] sm:$0xff] %v11825_v8  ;;  %3587 = vmatpush.msrb.mxu0 %v3498_v30  ;;  %v3013_v11 = vadd.f32 %v15735_v42, %v2924_v38  ;;  %v2922_v30 = vadd.f32 %v15736_v13, %v11853_v61  ;;  %v11870_v38 = vpop.f32.mrf.mxu2 }
 0x550   :  { %v11839_v55 = vpop.f32.mrf.mxu3  ;;  %3634 = vmatpush.msrb.mxu2 %v3471_v21  ;;  %v15737_v21 = vld [vmem:[#allocation65_spill] sm:$0xff] }
 0x551   :  { %3187 = vmatmul.bf16.vlgmr.msra.gmra.mxu1 %v11154_v48  ;;  %3588 = vmatpush.msrb.mxu0 %v3494_v52  ;;  %v2759_v48 = vadd.f32 %v15733_v12, %v11727_v36  ;;  %v2850_v56 = vadd.f32 %v15737_v21, %v2761_v10  ;;  %v3455_v52 = vmax.f32 %v3016_v46, 0.0  ;;  %v3011_v25 = vadd.f32 %v15742_v62, %v2922_v30  ;;  %v15746_v12 = vld [vmem:[#allocation52_spill] sm:$0xff]  ;;  %v15749_v30 = vld [vmem:[#allocation101_spill] sm:$0xff] }
 0x552   :  { %3138 = vmatmul.bf16.gmra.mxu0 %v11209_v2  ;;  %3635 = vmatpush.msrb.mxu2 %v3467_v33  ;;  %v3459_v2 = vmax.f32 %v3018_v20, 0.0  ;;  %v2756_v33 = vadd.f32 %v15740_v50, %v11755_v0  ;;  %v2754_v20 = vadd.f32 %v15741_v44, %v11761_v19  ;;  %v2751_v10 = vadd.f32 %v15745_v6, %v11767_v24  ;;  %v15754_v62 = vld [vmem:[#allocation93_spill] sm:$0xff]  ;;  %v15781_v0 = vld [vmem:[#allocation80_spill] sm:$0xff] }
 0x553   :  { %3589 = vmatpush.msrb.mxu0 %v3490_v47  ;;  %v2848_v18 = vadd.f32 %v15739_v4, %v2759_v48  ;;  %v3451_v47 = vmax.f32 %v3013_v11, 0.0  ;;  %v2749_v48 = vadd.f32 %v15746_v12, %v11823_v22  ;;  %v3447_v42 = vmax.f32 %v3011_v25, 0.0  ;;  %v15748_v11 = vld [vmem:[#allocation104_spill] sm:$0xff] }
 0x554   :  { %3636 = vmatpush.msrb.mxu2 %v3463_v5  ;;  %v3474_v5 = vmax.f32 %v2850_v56, 0.0  ;;  %v2845_v46 = vadd.f32 %v15743_v58, %v2756_v33  ;;  %v2843_v35 = vadd.f32 %v15744_v60, %v2754_v20  ;;  %v15753_v33 = vld [vmem:[#allocation95_spill] sm:$0xff] }
 0x555   :  { %3590 = vmatpush.msrb.mxu0 %v3486_v51  ;;  %v3470_v51 = vmax.f32 %v2848_v18, 0.0  ;;  %v11884_v56 = vpop.f32.mrf.mxu0  ;;  %v15752_v18 = vld [vmem:[#allocation61_spill] sm:$0xff]  ;;  %v2744_v44 = vadd.f32 %v15753_v33, %v11853_v61 }
 0x556   :  { %v11861_v14 = vpop.f32.mrf.mxu1  ;;  %3637 = vmatpush.msrb.mxu2 %v3459_v2  ;;  %v15747_v2 = vld [vmem:[#allocation102_spill] sm:$0xff]  ;;  %v3466_v13 = vmax.f32 %v2845_v46, 0.0  ;;  %v2746_v50 = vadd.f32 %v15752_v18, %v11837_v16  ;;  %v15771_v61 = vld [vmem:[#allocation85_spill] sm:$0xff] }
 0x557   :  { %15738 = vst [vmem:[#allocation97_spill] sm:$0xff] %v11861_v14  ;;  %3591 = vmatpush.msrb.mxu0 %v3482_v53  ;;  %v2840_v53 = vadd.f32 %v15749_v30, %v2751_v10  ;;  %v15755_v46 = vld [vmem:[#allocation90_spill] sm:$0xff] }
 0x558   :  { %v11868_v15 = vpop.f32.mrf.mxu3  ;;  %3638 = vmatpush.msrb.mxu2 %v3455_v52  ;;  %v3462_v52 = vmax.f32 %v2843_v35, 0.0  ;;  %v2835_v25 = vadd.f32 %v15754_v62, %v2746_v50  ;;  %v15763_v18 = vld [vmem:[#allocation70_spill] sm:$0xff] }
 0x559   :  { %3592 = vmatpush.msrb.mxu0 %v3478_v1  ;;  %v15751_v1 = vld [vmem:[#allocation83_spill] sm:$0xff]  ;;  %v15764_v50 = vld [vmem:[#allocation106_spill] sm:$0xff] }
 0x55a   :  { %3639 = vmatpush.msrb.mxu2 %v3451_v47  ;;  %v2838_v4 = vadd.f32 %v15751_v1, %v2749_v48  ;;  %v3458_v47 = vmax.f32 %v2840_v53, 0.0  ;;  %v3450_v60 = vmax.f32 %v2835_v25, 0.0  ;;  %v15757_v48 = vld [vmem:[#allocation59_spill] sm:$0xff] }
 0x55b   :  { %3593 = vmatpush.msrb.mxu0 %v3474_v5  ;;  %v11895_v5 = vpop.f32.mrf.mxu2 }
 0x55c   :  { %3321 = vmatmul.bf16.gmra.mxu2 %v15747_v2  ;;  %v3454_v58 = vmax.f32 %v2838_v4, 0.0 }
 0x55d   :  { %3375 = vmatmul.bf16.gmra.mxu3 %v15748_v11  ;;  %3594 = vmatpush.msrb.mxu0 %v3470_v51  ;;  %v2833_v51 = vadd.f32 %v15755_v46, %v2744_v44  ;;  %v15767_v46 = vld [vmem:[#allocation78_spill] sm:$0xff] }
 0x55e   :  { %v11882_v21 = vpop.f32.mrf.mxu1  ;;  %3640 = vmatpush.msrb.mxu2 %v3447_v42  ;;  %v15758_v42 = vld [vmem:[#allocation107_spill] sm:$0xff] }
 0x55f   :  { %15750 = vst [vmem:[#allocation62_spill] sm:$0xff] %v11882_v21  ;;  %3595 = vmatpush.msrb.mxu0 %v3466_v13  ;;  %v3446_v6 = vmax.f32 %v2833_v51, 0.0  ;;  %v15768_v51 = vld [vmem:[#allocation100_spill] sm:$0xff]  ;;  %v15783_v21 = vld [vmem:[#allocation66_spill] sm:$0xff] }
 0x560   :  { %v11891_v20 = vpop.f32.mrf.mxu3 }
 0x561   :  { %3192 = vmatmul.bf16.gmra.mxu1 %v11211_v43  ;;  %3596 = vmatpush.msrb.mxu0 %v3462_v52  ;;  %v11903_v43 = vpop.f32.mrf.mxu0 }
 0x562   :  { %3143 = vmatmul.bf16.gmra.mxu0 %v15747_v2 }
 0x563   :  { %3597 = vmatpush.msrb.mxu0 %v3458_v47  ;;  %v2998_v12 = vpop.f32.mrf.mxu2 }
 0x565   :  { %3598 = vmatpush.msrb.mxu0 %v3454_v58 }
 0x566   :  { %v11899_v35 = vpop.f32.mrf.mxu1 }
 0x567   :  { %15756 = vst [vmem:[#allocation36_spill] sm:$0xff] %v11899_v35  ;;  %3599 = vmatpush.msrb.mxu0 %v3450_v60  ;;  %v2992_v35 = vadd.f32 %v11827_v23, %v15783_v21 }
 0x568   :  { %v11901_v10 = vpop.f32.mrf.mxu3 }
 0x569   :  { %3600 = vmatpush.msrb.mxu0 %v3446_v6  ;;  %v11912_v30 = vpop.f32.mrf.mxu0 }
 0x56b   :  { %v11917_v52 = vpop.f32.mrf.mxu2 }
 0x56c   :  { %3326 = vmatmul.bf16.gmra.mxu2 %v15757_v48  ;;  %15761 = vst [vmem:[#allocation45_spill] sm:$0xff] %v11917_v52 }
 0x56d   :  { %3380 = vmatmul.bf16.gmra.mxu3 %v15758_v42 }
 0x56e   :  { %v11907_v2 = vpop.f32.mrf.mxu1 }
 0x56f   :  { %15759 = vst [vmem:[#allocation68_spill] sm:$0xff] %v11907_v2 }
 0x570   :  { %v11909_v13 = vpop.f32.mrf.mxu3 }
 0x571   :  { %3197 = vmatmul.bf16.gmra.mxu1 %v15748_v11  ;;  %v11921_v4 = vpop.f32.mrf.mxu0 }
 0x572   :  { %3148 = vmatmul.bf16.gmra.mxu0 %v15757_v48  ;;  %15762 = vst [vmem:[#allocation74_spill] sm:$0xff] %v11921_v4 }
 0x573   :  { %v11929_v11 = vpop.f32.mrf.mxu2 }
 0x576   :  { %v11915_v53 = vpop.f32.mrf.mxu1 }
 0x577   :  { %15760 = vst [vmem:[#allocation38_spill] sm:$0xff] %v11915_v53 }
 0x578   :  { %v11919_v1 = vpop.f32.mrf.mxu3 }
 0x579   :  { %v11935_v62 = vpop.f32.mrf.mxu0 }
 0x57b   :  { %v11939_v58 = vpop.f32.mrf.mxu2 }
 0x57c   :  { %3331 = vmatmul.bf16.gmra.mxu2 %v15763_v18 }
 0x57d   :  { %3385 = vmatmul.bf16.gmra.mxu3 %v15764_v50 }
 0x57e   :  { %v11925_v33 = vpop.f32.mrf.mxu1 }
 0x57f   :  { %15765 = vst [vmem:[#allocation86_spill] sm:$0xff] %v11925_v33  ;;  %v15787_v33 = vld [vmem:[#allocation79_spill] sm:$0xff] }
 0x580   :  { %v11927_v44 = vpop.f32.mrf.mxu3 }
 0x581   :  { %3202 = vmatmul.bf16.gmra.mxu1 %v15758_v42  ;;  %v11945_v48 = vpop.f32.mrf.mxu0 }
 0x582   :  { %3153 = vmatmul.bf16.gmra.mxu0 %v15763_v18  ;;  %15769 = vst [vmem:[#allocation65_spill] sm:$0xff] %v11945_v48 }
 0x583   :  { %v11949_v42 = vpop.f32.mrf.mxu2 }
 0x586   :  { %v11933_v47 = vpop.f32.mrf.mxu1 }
 0x587   :  { %15766 = vst [vmem:[#allocation56_spill] sm:$0xff] %v11933_v47 }
 0x588   :  { %v11937_v25 = vpop.f32.mrf.mxu3 }
 0x589   :  { %v11953_v52 = vpop.f32.mrf.mxu0 }
 0x58a   :  { %15770 = vst [vmem:[#allocation108_spill] sm:$0xff] %v11953_v52  ;;  %v15782_v52 = vld [vmem:[#allocation96_spill] sm:$0xff] }
 0x58b   :  { %v11959_v57 = vpop.f32.mrf.mxu2  ;;  %v2994_v8 = vadd.f32 %v11870_v38, %v15782_v52  ;;  %v15788_v38 = vld [vmem:[#allocation73_spill] sm:$0xff] }
 0x58c   :  { %3336 = vmatmul.bf16.gmra.mxu2 %v15767_v46  ;;  %15773 = vst [vmem:[#allocation69_spill] sm:$0xff] %v11959_v57 }
 0x58d   :  { %3390 = vmatmul.bf16.gmra.mxu3 %v15768_v51 }
 0x58e   :  { %v11943_v60 = vpop.f32.mrf.mxu1 }
 0x590   :  { %v3075_v6 = vpop.f32.mrf.mxu3 }
 0x591   :  { %3207 = vmatmul.bf16.gmra.mxu1 %v15764_v50  ;;  %v11963_v50 = vpop.f32.mrf.mxu0 }
 0x592   :  { %3158 = vmatmul.bf16.gmra.mxu0 %v15767_v46  ;;  %15774 = vst [vmem:[#allocation103_spill] sm:$0xff] %v11963_v50 }
 0x593   :  { %v11967_v28 = vpop.f32.mrf.mxu2 }
 0x594   :  { %15775 = vst [vmem:[#allocation87_spill] sm:$0xff] %v11967_v28  ;;  %v2999_v28 = vadd.f32 %v2998_v12, %v15781_v0 }
 0x596   :  { %v11951_v18 = vpop.f32.mrf.mxu1 }
 0x598   :  { %v3077_v4 = vpop.f32.mrf.mxu3 }
 0x599   :  { %v11973_v29 = vpop.f32.mrf.mxu0 }
 0x59a   :  { %15778 = vst [vmem:[#allocation35_spill] sm:$0xff] %v11973_v29 }
 0x59c   :  { %3341 = vmatmul.bf16.gmra.mxu2 %v15771_v61 }
 0x59d   :  { %3395 = vmatmul.bf16.gmra.mxu3 %v15772_v40 }
 0x59e   :  { %v11957_v39 = vpop.f32.mrf.mxu1 }
 0x5a0   :  { %v3080_v3 = vpop.f32.mrf.mxu3 }
 0x5a1   :  { %3212 = vmatmul.bf16.gmra.mxu1 %v15768_v51  ;;  %v11976_v51 = vpop.f32.mrf.mxu2  ;;  %v11986_v19 = vpop.f32.mrf.mxu0 }
 0x5a2   :  { %3163 = vmatmul.bf16.gmra.mxu0 %v15771_v61  ;;  %15779 = vst [vmem:[#allocation89_spill] sm:$0xff] %v11976_v51  ;;  %v15780_v61 = vld [vmem:[#allocation50_spill] sm:$0xff]  ;;  %v15785_v51 = vld [vmem:[#allocation41_spill] sm:$0xff] }
 0x5a3   :  { %v2997_v50 = vadd.f32 %v11895_v5, %v15780_v61  ;;  %15784 = vst [vmem:[#allocation64_spill] sm:$0xff] %v11986_v19  ;;  %v3081_v5 = vadd.f32 %v3080_v3, %v2992_v35  ;;  %v15792_v3 = vld [vmem:[#allocation49_spill] sm:$0xff] }
 0x5a6   :  { %v11965_v46 = vpop.f32.mrf.mxu1 }
 0x5a8   :  { %v3082_v26 = vpop.f32.mrf.mxu3 }
 0x5a9   :  { %v3083_v2 = vadd.f32 %v3082_v26, %v2994_v8  ;;  %v11990_v12 = vpop.f32.mrf.mxu2  ;;  %v3559_v26 = vmax.f32 %v3081_v5, 0.0  ;;  %v12003_v47 = vpop.f32.mrf.mxu0 }
 0x5aa   :  { %15786 = vst [vmem:[#allocation52_spill] sm:$0xff] %v11990_v12 }
 0x5ac   :  { %3346 = vmatmul.bf16.gmra.mxu2 %v15776_v31 }
 0x5ad   :  { %3400 = vmatmul.bf16.gmra.mxu3 %v15777_v41 }
 0x5ae   :  { %v11971_v27 = vpop.f32.mrf.mxu1 }
 0x5b0   :  { %v3085_v36 = vpop.f32.mrf.mxu3 }
 0x5b1   :  { %3217 = vmatmul.bf16.gmra.mxu1 %v15772_v40  ;;  %v3086_v29 = vadd.f32 %v3085_v36, %v2997_v50  ;;  %v2987_v36 = vadd.f32 %v11759_v17, %v15789_v59  ;;  %v3563_v50 = vmax.f32 %v3083_v2, 0.0  ;;  %v2819_v17 = vadd.f32 %v11903_v43, %v15780_v61  ;;  %v15794_v2 = vld [vmem:[#allocation118_spill] sm:$0xff]  ;;  %v15797_v43 = vld [vmem:[#allocation119_spill] sm:$0xff] }
 0x5b2   :  { %3168 = vmatmul.bf16.gmra.mxu0 %v15776_v31  ;;  %v2989_v31 = vadd.f32 %v11785_v49, %v15785_v51 }
 0x5b3   :  { %v3567_v53 = vmax.f32 %v3086_v29, 0.0  ;;  %v15793_v29 = vld [vmem:[#allocation112_spill] sm:$0xff] }
 0x5b4   :  { %v3078_v23 = vadd.f32 %v3077_v4, %v2989_v31  ;;  %v2982_v35 = vadd.f32 %v15793_v29, %v15792_v3  ;;  %v15795_v4 = vld [vmem:[#allocation54_spill] sm:$0xff]  ;;  %v15799_v29 = vld [vmem:[#allocation51_spill] sm:$0xff] }
 0x5b6   :  { %v2904_v14 = vpop.f32.mrf.mxu1  ;;  %v3555_v12 = vmax.f32 %v3078_v23, 0.0  ;;  %v3071_v31 = vadd.f32 %v11927_v44, %v2982_v35  ;;  %v15798_v23 = vld [vmem:[#allocation48_spill] sm:$0xff]  ;;  %v2974_v35 = vadd.f32 %v15799_v29, %v11782_v63 }
 0x5b8   :  { %v3087_v57 = vpop.f32.mrf.mxu3 }
 0x5b9   :  { %v3088_v40 = vadd.f32 %v3087_v57, %v2999_v28  ;;  %v15790_v28 = vld [vmem:[#allocation109_spill] sm:$0xff] }
 0x5ba   :  { %v15791_v57 = vld [vmem:[#allocation117_spill] sm:$0xff] }
 0x5bb   :  { %v3571_v48 = vmax.f32 %v3088_v40, 0.0  ;;  %v2984_v49 = vadd.f32 %v15791_v57, %v15790_v28  ;;  %v3076_v40 = vadd.f32 %v3075_v6, %v2987_v36  ;;  %v3280_v6 = vadd.f32 %v11929_v11, %v11837_v16  ;;  %v12016_v36 = vpop.permute.xlu1 %2519 }
 0x5bc   :  { %3351 = vmatmul.bf16.gmra.mxu2 %v15787_v33  ;;  %15796 = vst [vmem:[#allocation102_spill] sm:$0xff] %v12016_v36 }
 0x5bd   :  { %3405 = vmatmul.bf16.gmra.mxu3 %v15788_v38  ;;  %v3551_v5 = vmax.f32 %v3076_v40, 0.0 }
 0x5be   :  { %v2907_v19 = vpop.f32.mrf.mxu1  ;;  %3645 = vmatpush.msrb.mxu3 %v3571_v48  ;;  %v2979_v48 = vadd.f32 %v15795_v4, %v15794_v2 }
 0x5bf   :  { %v2908_v57 = vadd.f32 %v2907_v19, %v2819_v17 }
 0x5c0   :  { %v11998_v8 = vpop.f32.mrf.mxu3  ;;  %3646 = vmatpush.msrb.mxu3 %v3567_v53  ;;  %v3073_v53 = vadd.f32 %v11937_v25, %v2984_v49  ;;  %v2816_v25 = vadd.f32 %v11884_v56, %v15782_v52  ;;  %v3068_v11 = vadd.f32 %v11919_v1, %v2979_v48  ;;  %v15800_v56 = vld [vmem:[#allocation76_spill] sm:$0xff]  ;;  %v15801_v48 = vld [vmem:[#allocation43_spill] sm:$0xff] }
 0x5c1   :  { %3222 = vmatmul.bf16.gmra.mxu1 %v15777_v41  ;;  %v2821_v41 = vadd.f32 %v11912_v30, %v15781_v0  ;;  %v2814_v30 = vadd.f32 %v11855_v32, %v15783_v21  ;;  %v2972_v17 = vadd.f32 %v15800_v56, %v11791_v7  ;;  %v2811_v32 = vadd.f32 %v11807_v9, %v15785_v51  ;;  %v12043_v9 = vpop.permute.xlu0 %2515 }
 0x5c2   :  { %3173 = vmatmul.bf16.gmra.mxu0 %v15787_v33  ;;  %3647 = vmatpush.msrb.mxu3 %v3563_v50  ;;  %v2977_v50 = vadd.f32 %v15798_v23, %v15797_v43  ;;  %v3543_v23 = vmax.f32 %v3071_v31, 0.0  ;;  %v3566_v1 = vmax.f32 %v2908_v57, 0.0  ;;  %v3283_v31 = vadd.f32 %v11939_v58, %v11823_v22  ;;  %15803 = vst [vmem:[#allocation104_spill] sm:$0xff] %v12043_v9  ;;  %v15805_v58 = vld [vmem:[#allocation116_spill] sm:$0xff] }
 0x5c4   :  { %3648 = vmatpush.msrb.mxu3 %v3559_v26  ;;  %v3547_v26 = vmax.f32 %v3073_v53, 0.0  ;;  %v3066_v19 = vadd.f32 %v11909_v13, %v2977_v50  ;;  %v2969_v53 = vadd.f32 %v15801_v48, %v11805_v34  ;;  %v3063_v13 = vadd.f32 %v11901_v10, %v2974_v35  ;;  %v15804_v10 = vld [vmem:[#allocation39_spill] sm:$0xff] }
 0x5c5   :  { %v2900_v50 = vadd.f32 %v11965_v46, %v2811_v32  ;;  %v15809_v32 = vld [vmem:[#allocation88_spill] sm:$0xff] }
 0x5c6   :  { %v2909_v33 = vpop.f32.mrf.mxu1  ;;  %3649 = vmatpush.msrb.mxu3 %v3555_v12  ;;  %v2905_v12 = vadd.f32 %v2904_v14, %v2816_v25  ;;  %v2809_v14 = vadd.f32 %v11773_v37, %v15789_v59  ;;  %v12046_v25 = vpop.f32.mrf.mxu2  ;;  %v3061_v37 = vadd.f32 %v11891_v20, %v2972_v17 }
 0x5c7   :  { %v2910_v49 = vadd.f32 %v2909_v33, %v2821_v41  ;;  %v3539_v41 = vmax.f32 %v3068_v11, 0.0  ;;  %v15802_v33 = vld [vmem:[#allocation67_spill] sm:$0xff]  ;;  %v3058_v11 = vadd.f32 %v11868_v15, %v2969_v53  ;;  %v12061_v20 = vpop.permute.xlu1 %2511  ;;  %v15808_v15 = vld [vmem:[#allocation44_spill] sm:$0xff]  ;;  %v3554_v17 = vmax.f32 %v2900_v50, 0.0  ;;  %v15810_v53 = vld [vmem:[#allocation110_spill] sm:$0xff] }
 0x5c8   :  { %v3368_v44 = vpop.f32.mrf.mxu3  ;;  %3650 = vmatpush.msrb.mxu3 %v3551_v5  ;;  %v3562_v5 = vmax.f32 %v2905_v12, 0.0  ;;  %v2898_v29 = vadd.f32 %v11957_v39, %v2809_v14  ;;  %15807 = vst [vmem:[#allocation101_spill] sm:$0xff] %v12061_v20 }
 0x5c9   :  { %v3570_v40 = vmax.f32 %v2910_v49, 0.0  ;;  %v12027_v4 = vadd.f32 %v3368_v44, %v3280_v6  ;;  %v2903_v6 = vadd.f32 %v11971_v27, %v2814_v30  ;;  %v3535_v27 = vmax.f32 %v3066_v19, 0.0 }
 0x5ca   :  { %3651 = vmatpush.msrb.mxu3 %v3547_v26  ;;  %v2967_v49 = vadd.f32 %v15804_v10, %v12016_v36  ;;  %v2804_v30 = vadd.f32 %v15805_v58, %v15792_v3  ;;  %v15806_v26 = vld [vmem:[#allocation71_spill] sm:$0xff]  ;;  %v2806_v44 = vadd.f32 %v11751_v54, %v15790_v28  ;;  %v2962_v19 = vadd.f32 %v15808_v15, %v12061_v20  ;;  %v15815_v58 = vld [vmem:[#allocation86_spill] sm:$0xff]  ;;  %v15818_v15 = vld [vmem:[#allocation65_spill] sm:$0xff] }
 0x5cb   :  { %3605 = vmatpush.msrb.mxu1 %v3570_v40  ;;  %v2964_v46 = vadd.f32 %v15806_v26, %v12043_v9  ;;  %v3558_v35 = vmax.f32 %v2903_v6, 0.0  ;;  %v3531_v40 = vmax.f32 %v3063_v13, 0.0  ;;  %v3527_v54 = vmax.f32 %v3061_v37, 0.0  ;;  %v15811_v13 = vld [vmem:[#allocation56_spill] sm:$0xff]  ;;  %v15814_v10 = vld [vmem:[#allocation55_spill] sm:$0xff]  ;;  %v15856_v28 = vld [vmem:[#allocation98_spill] sm:$0xff] }
 0x5cc   :  { %3652 = vmatpush.msrb.mxu3 %v3543_v23  ;;  %v2895_v56 = vadd.f32 %v11951_v18, %v2806_v44  ;;  %v3056_v39 = vadd.f32 %v11839_v55, %v2967_v49  ;;  %v3550_v14 = vmax.f32 %v2898_v29, 0.0  ;;  %v3523_v18 = vmax.f32 %v3058_v11, 0.0  ;;  %v15816_v11 = vld [vmem:[#allocation72_spill] sm:$0xff] }
 0x5cd   :  { %3410 = vmatmul.bf16.gmra.mxu3 %v15802_v33  ;;  %3606 = vmatpush.msrb.mxu1 %v3566_v1  ;;  %v2799_v1 = vadd.f32 %v15809_v32, %v15797_v43  ;;  %v3053_v48 = vadd.f32 %v11800_v45, %v2964_v46  ;;  %v3102_v6 = vadd.f32 %v11935_v62, %v11837_v16  ;;  %v15820_v32 = vld [vmem:[#allocation63_spill] sm:$0xff]  ;;  %v15855_v43 = vld [vmem:[#allocation82_spill] sm:$0xff] }
 0x5ce   :  { %v12048_v57 = vpop.f32.mrf.mxu1  ;;  %3653 = vmatpush.msrb.mxu3 %v3539_v41  ;;  %v2801_v41 = vadd.f32 %v15810_v53, %v15794_v2  ;;  %v3285_v55 = vadd.f32 %v11949_v42, %v11767_v24  ;;  %v3519_v45 = vmax.f32 %v3056_v39, 0.0  ;;  %v2796_v49 = vadd.f32 %v15814_v10, %v11782_v63  ;;  %v12087_v62 = vpop.f32.mrf.mxu2 }
 0x5cf   :  { %3607 = vmatpush.msrb.mxu1 %v3562_v5  ;;  %v3546_v5 = vmax.f32 %v2895_v56, 0.0  ;;  %v2794_v26 = vadd.f32 %v15816_v11, %v11791_v7  ;;  %v3515_v46 = vmax.f32 %v3053_v48, 0.0  ;;  %v12096_v56 = vpop.f32.mrf.mxu0  ;;  %v15821_v48 = vld [vmem:[#allocation105_spill] sm:$0xff] }
 0x5d0   :  { %v3371_v12 = vpop.f32.mrf.mxu3  ;;  %3654 = vmatpush.msrb.mxu3 %v3535_v27  ;;  %v15812_v27 = vld [vmem:[#allocation122_spill] sm:$0xff]  ;;  %v2789_v53 = vadd.f32 %v15821_v48, %v12016_v36  ;;  %v15829_v11 = vld [vmem:[#allocation97_spill] sm:$0xff] }
 0x5d1   :  { %v12063_v23 = vadd.f32 %v3371_v12, %v3283_v31  ;;  %3227 = vmatmul.bf16.gmra.mxu1 %v15788_v38  ;;  %v2893_v38 = vadd.f32 %v11943_v60, %v2804_v30  ;;  %v2890_v31 = vadd.f32 %v15811_v13, %v2801_v41  ;;  %v3051_v37 = vadd.f32 %v15812_v27, %v2962_v19  ;;  %v15822_v41 = vld [vmem:[#allocation121_spill] sm:$0xff] }
 0x5d2   :  { %3608 = vmatpush.msrb.mxu1 %v3558_v35  ;;  %3655 = vmatpush.msrb.mxu3 %v3531_v40  ;;  %v2888_v30 = vadd.f32 %v15815_v58, %v2799_v1  ;;  %v15817_v35 = vld [vmem:[#allocation38_spill] sm:$0xff]  ;;  %v3105_v19 = vadd.f32 %v15818_v15, %v11823_v22  ;;  %v2791_v1 = vadd.f32 %v15820_v32, %v11805_v34  ;;  %v15832_v15 = vld [vmem:[#allocation120_spill] sm:$0xff] }
 0x5d3   :  { %v3542_v16 = vmax.f32 %v2893_v38, 0.0  ;;  %v3538_v29 = vmax.f32 %v2890_v31, 0.0  ;;  %v2885_v12 = vadd.f32 %v15817_v35, %v2796_v49  ;;  %v3511_v40 = vmax.f32 %v3051_v37, 0.0  ;;  %v15823_v38 = vld [vmem:[#allocation69_spill] sm:$0xff]  ;;  %v15827_v37 = vld [vmem:[#allocation84_spill] sm:$0xff] }
 0x5d4   :  { %3609 = vmatpush.msrb.mxu1 %v3554_v17  ;;  %3656 = vmatpush.msrb.mxu3 %v3527_v54  ;;  %v3534_v17 = vmax.f32 %v2888_v30, 0.0  ;;  %v15819_v54 = vld [vmem:[#allocation68_spill] sm:$0xff]  ;;  %v2786_v10 = vadd.f32 %v15827_v37, %v12043_v9  ;;  %v15828_v49 = vld [vmem:[#allocation53_spill] sm:$0xff] }
 0x5d5   :  { %v2883_v39 = vadd.f32 %v15819_v54, %v2794_v26  ;;  %v3530_v22 = vmax.f32 %v2885_v12, 0.0  ;;  %v2784_v58 = vadd.f32 %v15828_v49, %v12061_v20  ;;  %v15831_v12 = vld [vmem:[#allocation108_spill] sm:$0xff]  ;;  %v15839_v49 = vld [vmem:[#allocation113_spill] sm:$0xff] }
 0x5d6   :  { %v3190_v50 = vpop.f32.mrf.mxu1  ;;  %3610 = vmatpush.msrb.mxu1 %v3550_v14  ;;  %3657 = vmatpush.msrb.mxu3 %v3523_v18  ;;  %v3288_v14 = vadd.f32 %v15823_v38, %v15822_v41  ;;  %v15824_v18 = vld [vmem:[#allocation57_spill] sm:$0xff]  ;;  %v2875_v26 = vadd.f32 %v15829_v11, %v2786_v10  ;;  %v15834_v38 = vld [vmem:[#allocation103_spill] sm:$0xff] }
 0x5d7   :  { %v12082_v60 = vadd.f32 %v3190_v50, %v3102_v6  ;;  %v3526_v50 = vmax.f32 %v2883_v39, 0.0  ;;  %v12125_v54 = vpop.f32.mrf.mxu0  ;;  %v15838_v10 = vld [vmem:[#allocation35_spill] sm:$0xff] }
 0x5d8   :  { %v3373_v42 = vpop.f32.mrf.mxu3  ;;  %3611 = vmatpush.msrb.mxu1 %v3546_v5  ;;  %3658 = vmatpush.msrb.mxu3 %v3519_v45  ;;  %v15826_v45 = vld [vmem:[#allocation62_spill] sm:$0xff] }
 0x5d9   :  { %15813 = vst [vmem:[#allocation83_spill] sm:$0xff] %v12082_v60  ;;  %v12091_v44 = vadd.f32 %v3373_v42, %v3285_v55  ;;  %v15825_v55 = vld [vmem:[#allocation36_spill] sm:$0xff]  ;;  %v2878_v27 = vadd.f32 %v15826_v45, %v2789_v53 }
 0x5da   :  { %3612 = vmatpush.msrb.mxu1 %v3542_v16  ;;  %3659 = vmatpush.msrb.mxu3 %v3515_v46  ;;  %v2880_v13 = vadd.f32 %v15825_v55, %v2791_v1  ;;  %v12117_v16 = vpop.f32.mrf.mxu2 }
 0x5db   :  { %v3518_v46 = vmax.f32 %v2878_v27, 0.0 }
 0x5dc   :  { %3613 = vmatpush.msrb.mxu1 %v3538_v29  ;;  %3660 = vmatpush.msrb.mxu3 %v3511_v40  ;;  %v3522_v42 = vmax.f32 %v2880_v13, 0.0  ;;  %v15830_v29 = vld [vmem:[#allocation126_spill] sm:$0xff]  ;;  %v3107_v40 = vadd.f32 %v15831_v12, %v11767_v24 }
 0x5dd   :  { %3415 = vmatmul.bf16.gmra.mxu3 %v15824_v18  ;;  %v2873_v35 = vadd.f32 %v15830_v29, %v2784_v58  ;;  %v15837_v13 = vld [vmem:[#allocation42_spill] sm:$0xff]  ;;  %v15840_v58 = vld [vmem:[#allocation52_spill] sm:$0xff] }
 0x5de   :  { %v3193_v6 = vpop.f32.mrf.mxu1  ;;  %3614 = vmatpush.msrb.mxu1 %v3534_v17 }
 0x5df   :  { %v12107_v31 = vadd.f32 %v3193_v6, %v3105_v19  ;;  %v15833_v19 = vld [vmem:[#allocation87_spill] sm:$0xff]  ;;  %v3510_v48 = vmax.f32 %v2873_v35, 0.0 }
 0x5e0   :  { %v3376_v5 = vpop.f32.mrf.mxu3  ;;  %3615 = vmatpush.msrb.mxu1 %v3530_v22  ;;  %v3290_v17 = vadd.f32 %v15833_v19, %v15832_v15  ;;  %v15835_v6 = vld [vmem:[#allocation115_spill] sm:$0xff]  ;;  %v15836_v22 = vld [vmem:[#allocation89_spill] sm:$0xff] }
 0x5e1   :  { %v12114_v30 = vadd.f32 %v3376_v5, %v3288_v14  ;;  %3232 = vmatmul.bf16.gmra.mxu1 %v15802_v33  ;;  %v3514_v33 = vmax.f32 %v2875_v26, 0.0  ;;  %v3110_v14 = vadd.f32 %v15834_v38, %v15822_v41  ;;  %v3293_v55 = vadd.f32 %v15836_v22, %v15835_v6 }
 0x5e2   :  { %3616 = vmatpush.msrb.mxu1 %v3526_v50  ;;  %v12133_v24 = vpop.f32.mrf.mxu2  ;;  %v12138_v50 = vpop.f32.mrf.mxu0  ;;  %v3112_v41 = vadd.f32 %v15838_v10, %v15832_v15  ;;  %v3117_v22 = vadd.f32 %v12003_v47, %v15839_v49 }
 0x5e4   :  { %3617 = vmatpush.msrb.mxu1 %v3522_v42  ;;  %v3295_v42 = vadd.f32 %v15840_v58, %v15839_v49 }
 0x5e6   :  { %v3195_v39 = vpop.f32.mrf.mxu1  ;;  %3618 = vmatpush.msrb.mxu1 %v3518_v46 }
 0x5e7   :  { %v12127_v32 = vadd.f32 %v3195_v39, %v3107_v40  ;;  %v15841_v40 = vld [vmem:[#allocation64_spill] sm:$0xff]  ;;  %v15843_v39 = vld [vmem:[#allocation47_spill] sm:$0xff] }
 0x5e8   :  { %v3378_v1 = vpop.f32.mrf.mxu3  ;;  %3619 = vmatpush.msrb.mxu1 %v3514_v33  ;;  %v3115_v19 = vadd.f32 %v15841_v40, %v15835_v6  ;;  %v15845_v40 = vld [vmem:[#allocation58_spill] sm:$0xff] }
 0x5e9   :  { %v12129_v53 = vadd.f32 %v3378_v1, %v3290_v17  ;;  %v15842_v17 = vld [vmem:[#allocation111_spill] sm:$0xff] }
 0x5ea   :  { %3620 = vmatpush.msrb.mxu1 %v3510_v48  ;;  %v3307_v11 = vpop.f32.mrf.mxu2  ;;  %v12151_v35 = vpop.f32.mrf.mxu0 }
 0x5eb   :  { %v3308_v2 = vadd.f32 %v3307_v11, %v15855_v43  ;;  %v15859_v11 = vld [vmem:[#allocation92_spill] sm:$0xff] }
 0x5ed   :  { %3420 = vmatmul.bf16.gmra.mxu3 %v15837_v13 }
 0x5ee   :  { %v3198_v5 = vpop.f32.mrf.mxu1 }
 0x5ef   :  { %v12140_v45 = vadd.f32 %v3198_v5, %v3110_v14 }
 0x5f0   :  { %v3381_v27 = vpop.f32.mrf.mxu3 }
 0x5f1   :  { %v12142_v37 = vadd.f32 %v3381_v27, %v3293_v55  ;;  %3237 = vmatmul.bf16.gmra.mxu1 %v15824_v18  ;;  %v3298_v18 = vadd.f32 %v12046_v25, %v15842_v17  ;;  %v3120_v27 = vadd.f32 %v12096_v56, %v15842_v17 }
 0x5f2   :  { %v3309_v1 = vpop.f32.mrf.mxu2  ;;  %v12165_v14 = vpop.f32.mrf.mxu0 }
 0x5f6   :  { %v3200_v26 = vpop.f32.mrf.mxu1 }
 0x5f7   :  { %v12149_v46 = vadd.f32 %v3200_v26, %v3112_v41  ;;  %v15844_v41 = vld [vmem:[#allocation94_spill] sm:$0xff] }
 0x5f8   :  { %v3383_v29 = vpop.f32.mrf.mxu3 }
 0x5f9   :  { %v12153_v12 = vadd.f32 %v3383_v29, %v3295_v42 }
 0x5fa   :  { %v3312_v5 = vpop.f32.mrf.mxu2  ;;  %v12175_v10 = vpop.f32.mrf.mxu0 }
 0x5fd   :  { %3425 = vmatmul.bf16.gmra.mxu3 %v15843_v39 }
 0x5fe   :  { %v3203_v15 = vpop.f32.mrf.mxu1 }
 0x5ff   :  { %v12160_v33 = vadd.f32 %v3203_v15, %v3115_v19 }
 0x600   :  { %v3386_v48 = vpop.f32.mrf.mxu3 }
 0x601   :  { %v12162_v38 = vadd.f32 %v3386_v48, %v3298_v18  ;;  %3242 = vmatmul.bf16.gmra.mxu1 %v15837_v13 }
 0x602   :  { %v3314_v47 = vpop.f32.mrf.mxu2  ;;  %v3134_v26 = vpop.f32.mrf.mxu0 }
 0x606   :  { %v3205_v6 = vpop.f32.mrf.mxu1 }
 0x607   :  { %v12169_v55 = vadd.f32 %v3205_v6, %v3117_v22  ;;  %v3574_v22 = vld [vmem:[%s14980_s6] sm:$0xff]  ;;  %s8528_s6 = smov 33  }
 0x608   :  { %v12171_v25 = vpop.f32.mrf.mxu3  ;;  %3580 = vst [vmem:[#allocation1] ss:$2 sm:$0xff] %v3574_v22  ;;  %v15852_v22 = vld [vmem:[#allocation60_spill] sm:$0xff] }
 0x609   :  { %v3310_v34 = vadd.f32 %v3309_v1, %v15852_v22 }
 0x60a   :  { %v12184_v19 = vpop.f32.mrf.mxu2  ;;  %v3136_v18 = vpop.f32.mrf.mxu0 }
 0x60b   :  { %15846 = vst [vmem:[#allocation61_spill] sm:$0xff] %v12184_v19 }
 0x60d   :  { %3430 = vmatmul.bf16.gmra.mxu3 %v15844_v41 }
 0x60e   :  { %v3208_v58 = vpop.f32.mrf.mxu1 }
 0x60f   :  { %v12178_v13 = vadd.f32 %v3208_v58, %v3120_v27  ;;  %v15849_v27 = vld [vmem:[#allocation114_spill] sm:$0xff] }
 0x610   :  { %v3391_v42 = vpop.f32.mrf.mxu3  ;;  %v12218_v1 = vld.sshfl [vmem:[#allocation1 + $0x8] sm:$0xff pattern:$0x75316420] }
 0x611   :  { %3247 = vmatmul.bf16.gmra.mxu1 %v15843_v39  ;;  %15857 = vst [vmem:[#allocation107_spill] sm:$0xff] %v12218_v1 }
 0x612   :  { %v12191_v48 = vpop.f32.mrf.mxu2  ;;  %v12196_v6 = vpop.f32.mrf.mxu0 }
 0x613   :  { %15847 = vst [vmem:[#allocation95_spill] sm:$0xff] %v12191_v48  ;;  %v15851_v48 = vld [vmem:[#allocation77_spill] sm:$0xff] }
 0x614   :  { %15848 = vst [vmem:[#allocation93_spill] sm:$0xff] %v12196_v6  ;;  %v3313_v9 = vadd.f32 %v3312_v5, %v15851_v48  ;;  %v15853_v6 = vld [vmem:[#allocation40_spill] sm:$0xff] }
 0x615   :  { %v3315_v7 = vadd.f32 %v3314_v47, %v15853_v6  ;;  %v15858_v47 = vld [vmem:[#allocation37_spill] sm:$0xff] }
 0x616   :  { %v12181_v49 = vpop.f32.mrf.mxu1 }
 0x618   :  { %v3393_v29 = vpop.f32.mrf.mxu3 }
 0x61a   :  { %v12204_v20 = vpop.f32.mrf.mxu2  ;;  %v12211_v36 = vpop.f32.mrf.mxu0 }
 0x61b   :  { %15850 = vst [vmem:[#allocation90_spill] sm:$0xff] %v12204_v20  ;;  %v3305_v20 = vadd.f32 %v12133_v24, %v15856_v28 }
 0x61c   :  { %15854 = vst [vmem:[#allocation59_spill] sm:$0xff] %v12211_v36  ;;  %v3303_v36 = vadd.f32 %v12117_v16, %v15858_v47  ;;  %v3132_v16 = vadd.f32 %v12175_v10, %v15852_v22  ;;  %v3127_v10 = vadd.f32 %v12151_v35, %v15856_v28  ;;  %v3469_v28 = vmax.f32 %v12129_v53, 0.0 }
 0x61d   :  { %3435 = vmatmul.bf16.gmra.mxu3 %v15845_v40  ;;  %v3394_v61 = vadd.f32 %v3393_v29, %v3305_v20  ;;  %v3137_v20 = vadd.f32 %v3136_v18, %v15853_v6  ;;  %v3473_v6 = vmax.f32 %v12142_v37, 0.0 }
 0x61e   :  { %v12186_v56 = vpop.f32.mrf.mxu1 }
 0x61f   :  { %v3493_v24 = vmax.f32 %v3394_v61, 0.0  ;;  %v3130_v61 = vadd.f32 %v12165_v14, %v15855_v43  ;;  %v12253_v43 = vld [vmem:[%s14981_s7 + $0x8] sm:$0xff]  ;;  %v3125_v14 = vadd.f32 %v12138_v50, %v15858_v47 }
 0x620   :  { %v3396_v17 = vpop.f32.mrf.mxu3  ;;  %15864 = vst [vmem:[#allocation85_spill] sm:$0xff] %v12253_v43  ;;  %3751 = vrot.lane.b32.xlu1 %v12253_v43, %s8523_s12  ;;  %v15882_v43 = vld [vmem:[#allocation96_spill] sm:$0xff] }
 0x621   :  { %3252 = vmatmul.bf16.gmra.mxu1 %v15844_v41  ;;  %v12202_v41 = vld.sshfl [vmem:[#allocation1] sm:$0xff pattern:$0x75316420]  ;;  %v3397_v21 = vadd.f32 %v3396_v17, %v3308_v2  ;;  %v3392_v2 = vadd.f32 %v3391_v42, %v3303_v36  ;;  %v3214_v35 = vadd.f32 %v12186_v56, %v3125_v14 }
 0x622   :  { %3601 = vmatmul.f32.vlgmr.msrb.gmra.mxu0 %v12202_v41  ;;  %3641 = vmatmul.f32.vlgmr.msrb.gmra.mxu2 %v12202_v41  ;;  %v12216_v0 = vpop.f32.mrf.mxu2 }
 0x623   :  { %v3489_v36 = vmax.f32 %v3392_v2, 0.0  ;;  %v3488_v53 = vmax.f32 %v3214_v35, 0.0 }
 0x626   :  { %v12189_v15 = vpop.f32.mrf.mxu1 }
 0x628   :  { %v3398_v39 = vpop.f32.mrf.mxu3 }
 0x629   :  { %v3399_v59 = vadd.f32 %v3398_v39, %v3310_v34  ;;  %v3300_v34 = vadd.f32 %v12087_v62, %v15859_v11 }
 0x62b   :  { %v3501_v60 = vmax.f32 %v3399_v59, 0.0  ;;  %v12233_v59 = vld [vmem:[%s14981_s7] sm:$0xff]  ;;  %s8531_s7 = smov 31  }
 0x62c   :  { %15862 = vst [vmem:[#allocation78_spill] sm:$0xff] %v12233_v59  ;;  %3749 = vrot.lane.b32.xlu0 %v12233_v59, %s8523_s12 }
 0x62d   :  { %3440 = vmatmul.bf16.gmra.mxu3 %v15849_v27 }
 0x62e   :  { %v12199_v58 = vpop.f32.mrf.mxu1 }
 0x62f   :  { %v3219_v39 = vadd.f32 %v12199_v58, %v3130_v61  ;;  %v3472_v61 = vmax.f32 %v12160_v33, 0.0  ;;  %v3460_v33 = vmax.f32 %v12127_v32, 0.0 }
 0x630   :  { %v3401_v19 = vpop.f32.mrf.mxu3 }
 0x631   :  { %3257 = vmatmul.bf16.gmra.mxu1 %v15845_v40  ;;  %v3402_v40 = vadd.f32 %v3401_v19, %v3313_v9 }
 0x633   :  { %v3505_v5 = vmax.f32 %v3402_v40, 0.0  ;;  %v3122_v40 = vadd.f32 %v12125_v54, %v15859_v11  ;;  %v3461_v54 = vmax.f32 %v12091_v44, 0.0  ;;  %v8524_v11 = vmov 3   ;;  %v12289_v44 = vld [vmem:[%s14976_s2] sm:$0xff] }
 0x634   :  { %8420 = vset.pattern.permute.xlu2 %v8524_v11 }
 0x635   :  { %3576 = vperm.xlu2 %8420, %v12289_v44  }
 0x636   :  { %v3220_v63 = vpop.f32.mrf.mxu1 }
 0x637   :  { %v3221_v18 = vadd.f32 %v3220_v63, %v3132_v16  ;;  %v15872_v16 = vld [vmem:[#allocation74_spill] sm:$0xff] }
 0x638   :  { %v3403_v3 = vpop.f32.mrf.mxu3 }
 0x639   :  { %v3404_v51 = vadd.f32 %v3403_v3, %v3315_v7  ;;  %v12225_v7 = vpop.f32.mrf.mxu0  ;;  %v3497_v3 = vmax.f32 %v3397_v21, 0.0  ;;  %v3389_v21 = vadd.f32 %v12171_v25, %v3300_v34  ;;  %v3481_v25 = vmax.f32 %v12162_v38, 0.0 }
 0x63a   :  { %15860 = vst [vmem:[#allocation70_spill] sm:$0xff] %v12225_v7  ;;  %v3477_v38 = vmax.f32 %v12153_v12, 0.0  ;;  %v3500_v22 = vmax.f32 %v3221_v18, 0.0  ;;  %v3496_v12 = vmax.f32 %v3219_v39, 0.0  ;;  %v3211_v34 = vadd.f32 %v12181_v49, %v3122_v40  ;;  %v15873_v18 = vld [vmem:[#allocation83_spill] sm:$0xff] }
 0x63b   :  { %v3509_v52 = vmax.f32 %v3404_v51, 0.0  ;;  %v3485_v42 = vmax.f32 %v3389_v21, 0.0  ;;  %v3480_v21 = vmax.f32 %v12178_v13, 0.0 }
 0x63d   :  { %3705 = vmatpush.msra.mxu2 %v3509_v52  ;;  %3661 = vmatmul.f32.vlgmr.msrb.gmra.mxu3 %v12218_v1  ;;  %v3135_v52 = vadd.f32 %v3134_v26, %v15851_v48 }
 0x63e   :  { %v3223_v9 = vpop.f32.mrf.mxu1 }
 0x63f   :  { %3706 = vmatpush.msra.mxu2 %v3505_v5  ;;  %v3224_v29 = vadd.f32 %v3223_v9, %v3135_v52  ;;  %v15867_v5 = vld [vmem:[#allocation45_spill] sm:$0xff]  ;;  %v3465_v9 = vmax.f32 %v12114_v30, 0.0  ;;  %v3457_v30 = vmax.f32 %v12063_v23, 0.0  ;;  %v3453_v52 = vmax.f32 %v12027_v4, 0.0 }
 0x640   :  { %v12227_v51 = vpop.f32.mrf.mxu3  ;;  %v3468_v4 = vmax.f32 %v12149_v46, 0.0  ;;  %v3456_v46 = vmax.f32 %v12107_v31, 0.0 }
 0x641   :  { %15861 = vst [vmem:[#allocation106_spill] sm:$0xff] %v12227_v51  ;;  %3262 = vmatmul.bf16.gmra.mxu1 %v15849_v27  ;;  %3707 = vmatpush.msra.mxu2 %v3501_v60  ;;  %v12241_v60 = vpop.f32.mrf.mxu2  ;;  %v12248_v17 = vpop.f32.mrf.mxu0  ;;  %v3504_v63 = vmax.f32 %v3224_v29, 0.0  ;;  %v3216_v27 = vadd.f32 %v12189_v15, %v3127_v10  ;;  %v15866_v15 = vld [vmem:[#allocation75_spill] sm:$0xff] }
 0x642   :  { %15863 = vst [vmem:[#allocation100_spill] sm:$0xff] %v12248_v17  ;;  %v3278_v47 = vadd.f32 %v15867_v5, %v15866_v15 }
 0x643   :  { %3708 = vmatpush.msra.mxu2 %v3497_v3  ;;  %v3492_v3 = vmax.f32 %v3216_v27, 0.0 }
 0x644   :  { %v3367_v2 = vadd.f32 %v11998_v8, %v3278_v47 }
 0x645   :  { %3709 = vmatpush.msra.mxu2 %v3493_v24  ;;  %v3484_v24 = vmax.f32 %v3211_v34, 0.0 }
 0x646   :  { %v3225_v62 = vpop.f32.mrf.mxu1  ;;  %v3449_v23 = vmax.f32 %v3367_v2, 0.0 }
 0x647   :  { %v3226_v19 = vadd.f32 %v3225_v62, %v3137_v20  ;;  %3710 = vmatpush.msra.mxu2 %v3489_v36  ;;  %v3476_v20 = vmax.f32 %v12169_v55, 0.0  ;;  %v3100_v55 = vadd.f32 %v15872_v16, %v15866_v15 }
 0x648   :  { %v12245_v26 = vpop.f32.mrf.mxu3 }
 0x649   :  { %v3508_v48 = vmax.f32 %v3226_v19, 0.0  ;;  %3711 = vmatpush.msra.mxu2 %v3485_v42  ;;  %v12270_v58 = vpop.f32.mrf.mxu2  ;;  %v12280_v56 = vpop.f32.mrf.mxu0  ;;  %v3464_v42 = vmax.f32 %v12140_v45, 0.0  ;;  %v3189_v19 = vadd.f32 %v12048_v57, %v3100_v55 }
 0x64a   :  { %15868 = vst [vmem:[#allocation81_spill] sm:$0xff] %v12280_v56 }
 0x64b   :  { %3665 = vmatpush.msra.mxu0 %v3508_v48  ;;  %3712 = vmatpush.msra.mxu2 %v3481_v25  ;;  %v3452_v48 = vmax.f32 %v15873_v18, 0.0  ;;  %v3448_v10 = vmax.f32 %v3189_v19, 0.0  ;;  %v15880_v19 = vld [vmem:[#allocation50_spill] sm:$0xff]  ;;  %v15881_v18 = vld [vmem:[#allocation80_spill] sm:$0xff] }
 0x64d   :  { %3666 = vmatpush.msra.mxu0 %v3504_v63  ;;  %3713 = vmatpush.msra.mxu2 %v3477_v38 }
 0x64e   :  { %v12264_v50 = vpop.f32.mrf.mxu1 }
 0x64f   :  { %15865 = vst [vmem:[#allocation46_spill] sm:$0xff] %v12264_v50  ;;  %3667 = vmatpush.msra.mxu0 %v3500_v22  ;;  %3714 = vmatpush.msra.mxu2 %v3473_v6 }
 0x650   :  { %v12272_v37 = vpop.f32.mrf.mxu3 }
 0x651   :  { %3668 = vmatpush.msra.mxu0 %v3496_v12  ;;  %3715 = vmatpush.msra.mxu2 %v3469_v28  ;;  %v12297_v36 = vpop.f32.mrf.mxu2  ;;  %v12302_v13 = vpop.f32.mrf.mxu0 }
 0x652   :  { %3621 = vmatmul.f32.vlgmr.msrb.gmra.mxu1 %v12218_v1  ;;  %15870 = vst [vmem:[#allocation79_spill] sm:$0xff] %v12302_v13  ;;  %v15885_v13 = vld [vmem:[#allocation91_spill] sm:$0xff] }
 0x653   :  { %3669 = vmatpush.msra.mxu0 %v3492_v3  ;;  %3716 = vmatpush.msra.mxu2 %v3465_v9 }
 0x655   :  { %3670 = vmatpush.msra.mxu0 %v3488_v53  ;;  %3717 = vmatpush.msra.mxu2 %v3461_v54 }
 0x656   :  { %v12284_v49 = vpop.f32.mrf.mxu1 }
 0x657   :  { %15869 = vst [vmem:[#allocation99_spill] sm:$0xff] %v12284_v49  ;;  %3671 = vmatpush.msra.mxu0 %v3484_v24  ;;  %3718 = vmatpush.msra.mxu2 %v3457_v30 }
 0x658   :  { %v12294_v8 = vpop.f32.mrf.mxu3 }
 0x659   :  { %3672 = vmatpush.msra.mxu0 %v3480_v21  ;;  %3719 = vmatpush.msra.mxu2 %v3453_v52  ;;  %v12314_v25 = vpop.f32.mrf.mxu2  ;;  %v12319_v45 = vpop.f32.mrf.mxu0 }
 0x65a   :  { %15875 = vst [vmem:[#allocation112_spill] sm:$0xff] %v12319_v45 }
 0x65b   :  { %3673 = vmatpush.msra.mxu0 %v3476_v20  ;;  %3720 = vmatpush.msra.mxu2 %v3449_v23 }
 0x65c   :  { %3721 = vmatmul.f32.vlgmr.msra.gmra.mxu2 %v12202_v41 }
 0x65d   :  { %3674 = vmatpush.msra.mxu0 %v3472_v61 }
 0x65e   :  { %v12304_v62 = vpop.f32.mrf.mxu1 }
 0x65f   :  { %15871 = vst [vmem:[#allocation73_spill] sm:$0xff] %v12304_v62  ;;  %3675 = vmatpush.msra.mxu0 %v3468_v4  ;;  %v15883_v62 = vld [vmem:[#allocation66_spill] sm:$0xff] }
 0x660   :  { %v12309_v29 = vpop.f32.mrf.mxu3 }
 0x661   :  { %3676 = vmatpush.msra.mxu0 %v3464_v42  ;;  %v3337_v57 = vpop.f32.mrf.mxu2  ;;  %v12328_v39 = vpop.f32.mrf.mxu0 }
 0x663   :  { %3677 = vmatpush.msra.mxu0 %v3460_v33 }
 0x665   :  { %3678 = vmatpush.msra.mxu0 %v3456_v46 }
 0x666   :  { %v12317_v14 = vpop.f32.mrf.mxu1 }
 0x667   :  { %15874 = vst [vmem:[#allocation117_spill] sm:$0xff] %v12317_v14  ;;  %3679 = vmatpush.msra.mxu0 %v3452_v48 }
 0x668   :  { %v12321_v38 = vpop.f32.mrf.mxu3 }
 0x669   :  { %3680 = vmatpush.msra.mxu0 %v3448_v10  ;;  %v3339_v6 = vpop.f32.mrf.mxu2  ;;  %v12334_v22 = vpop.f32.mrf.mxu0 }
 0x66a   :  { %3681 = vmatmul.f32.vlgmr.msra.gmra.mxu0 %v12202_v41 }
 0x66e   :  { %v12324_v32 = vpop.f32.mrf.mxu1 }
 0x66f   :  { %15876 = vst [vmem:[#allocation54_spill] sm:$0xff] %v12324_v32  ;;  %v15884_v32 = vld [vmem:[#allocation41_spill] sm:$0xff] }
 0x670   :  { %v12326_v31 = vpop.f32.mrf.mxu3 }
 0x671   :  { %v3342_v35 = vpop.f32.mrf.mxu2  ;;  %v12338_v12 = vpop.f32.mrf.mxu0 }
 0x676   :  { %v12330_v63 = vpop.f32.mrf.mxu1 }
 0x677   :  { %15877 = vst [vmem:[#allocation48_spill] sm:$0xff] %v12330_v63 }
 0x678   :  { %v12332_v27 = vpop.f32.mrf.mxu3 }
 0x679   :  { %v3344_v5 = vpop.f32.mrf.mxu2  ;;  %v12344_v9 = vpop.f32.mrf.mxu0 }
 0x67a   :  { %v3345_v17 = vadd.f32 %v3344_v5, %v15884_v32 }
 0x67e   :  { %v12336_v40 = vpop.f32.mrf.mxu1 }
 0x67f   :  { %15878 = vst [vmem:[#allocation51_spill] sm:$0xff] %v12336_v40 }
 0x680   :  { %v3426_v28 = vpop.f32.mrf.mxu3 }
 0x681   :  { %v3347_v3 = vpop.f32.mrf.mxu2  ;;  %v12348_v11 = vpop.f32.mrf.mxu0 }
 0x682   :  { %v3348_v14 = vadd.f32 %v3347_v3, %v15883_v62  ;;  %v15887_v3 = vld [vmem:[#allocation49_spill] sm:$0xff] }
 0x686   :  { %v12340_v41 = vpop.f32.mrf.mxu1 }
 0x687   :  { %15879 = vst [vmem:[#allocation76_spill] sm:$0xff] %v12340_v41  ;;  %v3343_v41 = vadd.f32 %v3342_v35, %v15885_v13 }
 0x688   :  { %v3428_v15 = vpop.f32.mrf.mxu3 }
 0x689   :  { %v3349_v30 = vpop.f32.mrf.mxu2  ;;  %v3169_v52 = vpop.f32.mrf.mxu0 }
 0x68a   :  { %v3350_v59 = vadd.f32 %v3349_v30, %v15882_v43 }
 0x68e   :  { %v12342_v47 = vpop.f32.mrf.mxu1 }
 0x690   :  { %v3431_v34 = vpop.f32.mrf.mxu3 }
 0x691   :  { %v3352_v20 = vpop.f32.mrf.mxu2  ;;  %v3171_v61 = vpop.f32.mrf.mxu0 }
 0x692   :  { %v3353_v46 = vadd.f32 %v3352_v20, %v15880_v19 }
 0x696   :  { %v12346_v54 = vpop.f32.mrf.mxu1 }
 0x698   :  { %v3433_v53 = vpop.f32.mrf.mxu3 }
 0x699   :  { %v3354_v55 = vpop.f32.mrf.mxu2  ;;  %v3174_v33 = vpop.f32.mrf.mxu0  ;;  %v3434_v20 = vadd.f32 %v3433_v53, %v3345_v17 }
 0x69a   :  { %v3355_v48 = vadd.f32 %v3354_v55, %v15881_v18  ;;  %v15886_v55 = vld [vmem:[#allocation109_spill] sm:$0xff] }
 0x69b   :  { %v3340_v45 = vadd.f32 %v3339_v6, %v15886_v55 }
 0x69e   :  { %v12350_v2 = vpop.f32.mrf.mxu1 }
 0x6a0   :  { %v3436_v24 = vpop.f32.mrf.mxu3 }
 0x6a1   :  { %v3437_v63 = vadd.f32 %v3436_v24, %v3348_v14  ;;  %v3176_v30 = vpop.f32.mrf.mxu0  ;;  %v15888_v14 = vld [vmem:[#allocation118_spill] sm:$0xff] }
 0x6a6   :  { %v12352_v21 = vpop.f32.mrf.mxu1 }
 0x6a8   :  { %v3438_v23 = vpop.f32.mrf.mxu3 }
 0x6a9   :  { %v3439_v7 = vadd.f32 %v3438_v23, %v3350_v59  ;;  %v3338_v59 = vadd.f32 %v3337_v57, %v15887_v3  ;;  %v3557_v23 = vmax.f32 %v3434_v20, 0.0  ;;  %v3165_v20 = vadd.f32 %v12344_v9, %v15885_v13 }
 0x6ab   :  { %v3565_v51 = vmax.f32 %v3439_v7, 0.0  ;;  %v3427_v35 = vadd.f32 %v3426_v28, %v3338_v59  ;;  %v3177_v7 = vadd.f32 %v3176_v30, %v15881_v18  ;;  %v3170_v28 = vadd.f32 %v3169_v52, %v15883_v62 }
 0x6ad   :  { %v3545_v53 = vmax.f32 %v3427_v35, 0.0 }
 0x6ae   :  { %v3258_v4 = vpop.f32.mrf.mxu1 }
 0x6b0   :  { %v3441_v16 = vpop.f32.mrf.mxu3 }
 0x6b1   :  { %v3442_v50 = vadd.f32 %v3441_v16, %v3353_v46  ;;  %v3432_v16 = vadd.f32 %v3431_v34, %v3343_v41  ;;  %v3561_v46 = vmax.f32 %v3437_v63, 0.0 }
 0x6b3   :  { %v3569_v56 = vmax.f32 %v3442_v50, 0.0  ;;  %v3175_v50 = vadd.f32 %v3174_v33, %v15880_v19  ;;  %v3553_v17 = vmax.f32 %v3432_v16, 0.0  ;;  %v8525_v16 = vmov 4  }
 0x6b4   :  { %8422 = vset.pattern.permute.xlu0 %v8525_v16  ;;  %8421 = vset.pattern.permute.xlu2 %v8525_v16 }
 0x6b5   :  { %3972 = vperm.xlu0 %8422, %v12289_v44  }
 0x6b6   :  { %v3260_v42 = vpop.f32.mrf.mxu1 }
 0x6b8   :  { %v3443_v10 = vpop.f32.mrf.mxu3 }
 0x6b9   :  { %v3444_v49 = vadd.f32 %v3443_v10, %v3355_v48 }
 0x6bb   :  { %v3573_v1 = vmax.f32 %v3444_v49, 0.0  ;;  %v3429_v49 = vadd.f32 %v3428_v15, %v3340_v45 }
 0x6bd   :  { %3725 = vmatpush.msra.mxu3 %v3573_v1  ;;  %v3335_v1 = vadd.f32 %v12314_v25, %v15888_v14  ;;  %v3549_v57 = vmax.f32 %v3429_v49, 0.0  ;;  %v15890_v25 = vld [vmem:[#allocation123_spill] sm:$0xff] }
 0x6be   :  { %v3263_v40 = vpop.f32.mrf.mxu1  ;;  %v3330_v5 = vadd.f32 %v12270_v58, %v15890_v25  ;;  %v3167_v58 = vadd.f32 %v12348_v11, %v15884_v32 }
 0x6bf   :  { %3726 = vmatpush.msra.mxu3 %v3569_v56  ;;  %v15889_v56 = vld [vmem:[#allocation119_spill] sm:$0xff]  ;;  %v3424_v45 = vadd.f32 %v12332_v27, %v3335_v1  ;;  %v3264_v41 = vadd.f32 %v3263_v40, %v3175_v50  ;;  %v15892_v27 = vld [vmem:[#allocation90_spill] sm:$0xff]  ;;  %v15893_v40 = vld [vmem:[#allocation124_spill] sm:$0xff] }
 0x6c0   :  { %v3333_v6 = vadd.f32 %v12297_v36, %v15889_v56  ;;  %v3602_v36 = vpop.f32.mrf.mxu0  ;;  %v3328_v18 = vadd.f32 %v12241_v60, %v15893_v40  ;;  %v3419_v62 = vadd.f32 %v12321_v38, %v3330_v5  ;;  %v3256_v38 = vadd.f32 %v12352_v21, %v3167_v58  ;;  %v15897_v1 = vld [vmem:[#allocation101_spill] sm:$0xff]  ;;  %v12432_v58 = vpop.permute.xlu1 %3751 }
 0x6c1   :  { %3727 = vmatpush.msra.mxu3 %v3565_v51  ;;  %v3172_v51 = vadd.f32 %v3171_v61, %v15882_v43  ;;  %v12374_v43 = vpop.permute.xlu2 %3576  ;;  %v15891_v61 = vld [vmem:[#allocation102_spill] sm:$0xff]  ;;  %v3541_v52 = vmax.f32 %v3424_v45, 0.0  ;;  %v3568_v48 = vmax.f32 %v3264_v41, 0.0  ;;  %v3254_v21 = vadd.f32 %v12350_v2, %v3165_v20  ;;  %v15898_v50 = vld [vmem:[#allocation61_spill] sm:$0xff]  ;;  %v12408_v2 = vpop.permute.xlu0 %3749 }
 0x6c2   :  { %v3422_v34 = vadd.f32 %v12326_v31, %v3333_v6  ;;  %v3323_v19 = vadd.f32 %v15892_v27, %v15891_v61  ;;  %v3259_v31 = vadd.f32 %v3258_v4, %v3170_v28  ;;  %v3603_v30 = vadd.f32 %v3602_v36, %v12374_v43  ;;  %v15895_v4 = vld [vmem:[#allocation104_spill] sm:$0xff]  ;;  %v15901_v45 = vld [vmem:[#allocation106_spill] sm:$0xff]  ;;  %v15904_v28 = vld [vmem:[#allocation51_spill] sm:$0xff] }
 0x6c3   :  { %3728 = vmatpush.msra.mxu3 %v3561_v46  ;;  %v3261_v24 = vadd.f32 %v3260_v42, %v3172_v51  ;;  %v15894_v42 = vld [vmem:[#allocation125_spill] sm:$0xff]  ;;  %v3417_v60 = vadd.f32 %v12309_v29, %v3328_v18  ;;  %v15896_v46 = vld [vmem:[#allocation95_spill] sm:$0xff]  ;;  %v8494_v29 = vld [vmem:[%s14976_s2 + $0x8] sm:$0xff]  ;;  %v3533_v9 = vmax.f32 %v3419_v62, 0.0  ;;  %v3157_v6 = vadd.f32 %v12328_v39, %v15888_v14 }
 0x6c4   :  { %v3325_v10 = vadd.f32 %v12216_v0, %v15894_v42  ;;  %v3537_v32 = vmax.f32 %v3422_v34, 0.0  ;;  %v3320_v59 = vadd.f32 %v15896_v46, %v15895_v4  ;;  %v3162_v0 = vadd.f32 %v12338_v12, %v15886_v55  ;;  %3976 = vperm.xlu2 %8421, %v8494_v29   ;;  %v15902_v14 = vld [vmem:[#allocation76_spill] sm:$0xff]  ;;  %v15914_v46 = vld [vmem:[#allocation73_spill] sm:$0xff]  ;;  %v15915_v29 = vld [vmem:[#allocation99_spill] sm:$0xff] }
 0x6c5   :  { %3729 = vmatpush.msra.mxu3 %v3557_v23  ;;  %v3564_v11 = vmax.f32 %v3261_v24, 0.0  ;;  %v3560_v49 = vmax.f32 %v3259_v31, 0.0  ;;  %v3318_v12 = vadd.f32 %v15898_v50, %v15897_v1  ;;  %v3412_v44 = vadd.f32 %v12272_v37, %v3323_v19  ;;  %v15905_v24 = vld [vmem:[#allocation81_spill] sm:$0xff]  ;;  %v15906_v27 = vld [vmem:[#allocation48_spill] sm:$0xff] }
 0x6c6   :  { %v3265_v63 = vpop.f32.mrf.mxu1  ;;  %v3414_v13 = vadd.f32 %v12294_v8, %v3325_v10  ;;  %v3160_v8 = vadd.f32 %v12334_v22, %v15887_v3  ;;  %v3529_v35 = vmax.f32 %v3417_v60, 0.0  ;;  %v3409_v22 = vadd.f32 %v12245_v26, %v3320_v59  ;;  %v8495_v26 = vld [vmem:[%s14974_s0] sm:$0xff]  ;;  %v15907_v62 = vld [vmem:[#allocation100_spill] sm:$0xff]  ;;  %v15909_v10 = vld [vmem:[#allocation107_spill] sm:$0xff] }
 0x6c7   :  { %v3266_v15 = vadd.f32 %v3265_v63, %v3177_v7  ;;  %3730 = vmatpush.msra.mxu3 %v3553_v17  ;;  %v3251_v7 = vadd.f32 %v12346_v54, %v3162_v0  ;;  %v3556_v17 = vmax.f32 %v3256_v38, 0.0  ;;  %v3552_v51 = vmax.f32 %v3254_v21, 0.0  ;;  %v15900_v54 = vld [vmem:[#allocation112_spill] sm:$0xff]  ;;  %v15913_v38 = vld [vmem:[#allocation59_spill] sm:$0xff] }
 0x6c8   :  { %v3525_v37 = vmax.f32 %v3414_v13, 0.0  ;;  %v3249_v3 = vadd.f32 %v12342_v47, %v3160_v8  ;;  %v3155_v63 = vadd.f32 %v15900_v54, %v15889_v56  ;;  %v3521_v39 = vmax.f32 %v3412_v44, 0.0  ;;  %v15903_v47 = vld [vmem:[#allocation79_spill] sm:$0xff]  ;;  %v3642_v13 = vpop.f32.mrf.mxu2 }
 0x6c9   :  { %v3572_v33 = vmax.f32 %v3266_v15, 0.0  ;;  %3731 = vmatpush.msra.mxu3 %v3549_v57  ;;  %v3407_v57 = vadd.f32 %v15901_v45, %v3318_v12  ;;  %v3246_v41 = vadd.f32 %v15902_v14, %v3157_v6  ;;  %v3548_v15 = vmax.f32 %v3251_v7, 0.0  ;;  %v15917_v12 = vld [vmem:[#allocation78_spill] sm:$0xff] }
 0x6ca   :  { %v3152_v56 = vadd.f32 %v15903_v47, %v15890_v25  ;;  %v3517_v5 = vmax.f32 %v3409_v22, 0.0  ;;  %v3244_v34 = vadd.f32 %v15904_v28, %v3155_v63  ;;  %v3147_v25 = vadd.f32 %v15907_v62, %v15894_v42  ;;  %v8496_v7 = vld [vmem:[%s14974_s0 + $0x8] sm:$0xff]  ;;  %v8498_v47 = vld [vmem:[%s14974_s0 + $0x10] sm:$0xff] }
 0x6cb   :  { %3685 = vmatpush.msra.mxu1 %v3572_v33  ;;  %3732 = vmatpush.msra.mxu3 %v3545_v53  ;;  %v3544_v53 = vmax.f32 %v3249_v3, 0.0  ;;  %v3150_v33 = vadd.f32 %v15905_v24, %v15893_v40  ;;  %v3513_v36 = vmax.f32 %v3407_v57, 0.0  ;;  %v3540_v18 = vmax.f32 %v3246_v41, 0.0  ;;  %v15910_v40 = vld [vmem:[#allocation70_spill] sm:$0xff] }
 0x6cc   :  { %v3241_v19 = vadd.f32 %v15906_v27, %v3152_v56  ;;  %v3145_v20 = vadd.f32 %v15910_v40, %v15891_v61  ;;  %v15916_v61 = vld [vmem:[#allocation46_spill] sm:$0xff]  ;;  %v3643_v50 = vadd.f32 %v3642_v13, %v12374_v43 }
 0x6cd   :  { %3686 = vmatpush.msra.mxu1 %v3568_v48  ;;  %3733 = vmatpush.msra.mxu3 %v3541_v52  ;;  %v15908_v52 = vld [vmem:[#allocation54_spill] sm:$0xff]  ;;  %v3536_v48 = vmax.f32 %v3244_v34, 0.0 }
 0x6ce   :  { %v3239_v31 = vadd.f32 %v15908_v52, %v3150_v33  ;;  %v3532_v60 = vmax.f32 %v3241_v19, 0.0  ;;  %v3234_v59 = vadd.f32 %v15914_v46, %v3145_v20 }
 0x6cf   :  { %3687 = vmatpush.msra.mxu1 %v3564_v11  ;;  %3734 = vmatpush.msra.mxu3 %v3537_v32  ;;  %v3622_v23 = vpop.f32.mrf.mxu1  ;;  %v15912_v32 = vld [vmem:[#allocation93_spill] sm:$0xff]  ;;  %v3142_v11 = vadd.f32 %v15913_v38, %v15895_v4 }
 0x6d0   :  { %v12405_v55 = vadd.f32 %v3622_v23, %v3603_v30  ;;  %v15911_v30 = vld [vmem:[#allocation117_spill] sm:$0xff]  ;;  %v3140_v42 = vadd.f32 %v15912_v32, %v15897_v1  ;;  %v3528_v0 = vmax.f32 %v3239_v31, 0.0  ;;  %v3520_v23 = vmax.f32 %v3234_v59, 0.0  ;;  %v3662_v1 = vpop.f32.mrf.mxu3 }
 0x6d1   :  { %3688 = vmatpush.msra.mxu1 %v3560_v49  ;;  %3735 = vmatpush.msra.mxu3 %v3533_v9  ;;  %v3236_v16 = vadd.f32 %v15911_v30, %v3147_v25  ;;  %v3231_v9 = vadd.f32 %v15915_v29, %v3142_v11  ;;  %v12453_v44 = vadd.f32 %v3662_v1, %v3643_v50 }
 0x6d2   :  { %15899 = vst [vmem:[#allocation43_spill] sm:$0xff] %v12405_v55  ;;  %8040 = vmatpush.msk.msrb.mxu0 %vm3758_vm9, %v12405_v55  ;;  %v3229_v49 = vadd.f32 %v15916_v61, %v3140_v42  ;;  %v15926_v61 = vld [vmem:[#allocation2_spill] sm:$0xff] }
 0x6d3   :  { %3689 = vmatpush.msra.mxu1 %v3556_v17  ;;  %3736 = vmatpush.msra.mxu3 %v3529_v35  ;;  %v3524_v21 = vmax.f32 %v3236_v16, 0.0  ;;  %v3516_v4 = vmax.f32 %v3231_v9, 0.0  ;;  %15918 = vst [vmem:[#allocation67_spill] sm:$0xff] %v12453_v44  ;;  %v15919_v35 = vld [vmem:[#allocation85_spill] sm:$0xff]  ;;  %vm4045_vm11 = vcmp.lt.s32.totalorder %v15926_v61, 33  ;;  %vm4005_vm12 = vcmp.lt.s32.totalorder %v15926_v61, 34 }
 0x6d4   :  { %8041 = vmatmul.msk.f32.vlgmr.msrb.gmra.mxu0 %vm3753_vm10, %v12408_v2  ;;  %v3512_v8 = vmax.f32 %v3229_v49, 0.0  ;;  %v12621_v49 = vld [vmem:[%s14975_s1 + $0x8] sm:$0xff]  ;;  %vm4282_vm13 = vcmp.lt.s32.totalorder %v15926_v61, 32  ;;  %vm4428_vm15 = vcmp.lt.s32.totalorder %v15926_v61, 31  ;;  %vm4574_vm8 = vcmp.lt.s32.totalorder %v15926_v61, 30 }
 0x6d5   :  { %3690 = vmatpush.msra.mxu1 %v3552_v51  ;;  %3737 = vmatpush.msra.mxu3 %v3525_v37 }
 0x6d6   :  { %8052 = vmatpush.msk.msra.mxu0 %vm3758_vm9, %v8495_v26 }
 0x6d7   :  { %3691 = vmatpush.msra.mxu1 %v3548_v15  ;;  %3738 = vmatpush.msra.mxu3 %v3521_v39  ;;  %v8497_v39 = vld [vmem:[%s14974_s0 + $0x18] sm:$0xff]  ;;  %s8538_s0 = smov 97  }
 0x6d9   :  { %3692 = vmatpush.msra.mxu1 %v3544_v53  ;;  %3739 = vmatpush.msra.mxu3 %v3517_v5 }
 0x6db   :  { %3693 = vmatpush.msra.mxu1 %v3540_v18  ;;  %3740 = vmatpush.msra.mxu3 %v3513_v36 }
 0x6dc   :  { %3741 = vmatmul.f32.vlgmr.msra.gmra.mxu3 %v15909_v10  ;;  %8042 = vmatmul.msk.f32.gmra.mxu0 %vm3753_vm10, %v12432_v58 }
 0x6dd   :  { %3694 = vmatpush.msra.mxu1 %v3536_v48 }
 0x6df   :  { %3695 = vmatpush.msra.mxu1 %v3532_v60  ;;  %v3722_v37 = vpop.f32.mrf.mxu2 }
 0x6e0   :  { %v3723_v3 = vadd.f32 %v3722_v37, %v12374_v43 }
 0x6e1   :  { %3696 = vmatpush.msra.mxu1 %v3528_v0 }
 0x6e3   :  { %3697 = vmatpush.msra.mxu1 %v3524_v21 }
 0x6e4   :  { %8053 = vmatmul.msk.f32.vlgmr.msra.gmra.mxu0 %vm3753_vm10, %v15917_v12 }
 0x6e5   :  { %3698 = vmatpush.msra.mxu1 %v3520_v23  ;;  %v4055_v23 = vperm.slane %v12621_v49, 1 }
 0x6e7   :  { %3699 = vmatpush.msra.mxu1 %v3516_v4  ;;  %v3682_v17 = vpop.f32.mrf.mxu0 }
 0x6e8   :  { %v3683_v41 = vadd.f32 %v3682_v17, %v12374_v43 }
 0x6e9   :  { %3700 = vmatpush.msra.mxu1 %v3512_v8 }
 0x6ea   :  { %3701 = vmatmul.f32.vlgmr.msra.gmra.mxu1 %v15909_v10 }
 0x6eb   :  { %8043 = vmatpush.msk.msrb.mxu1 %vm3758_vm9, %v12453_v44 }
 0x6ec   :  { %8054 = vmatmul.msk.f32.gmra.mxu0 %vm3753_vm10, %v15919_v35 }
 0x6ed   :  { %8055 = vmatpush.msk.msra.mxu1 %vm3758_vm9, %v8496_v7  ;;  %v4015_v7 = vperm.slane %v12621_v49, 0 }
 0x6f2   :  { %8044 = vmatmul.msk.f32.vlgmr.msrb.gmra.mxu1 %vm3753_vm10, %v12408_v2 }
 0x6fa   :  { %8045 = vmatmul.msk.f32.gmra.mxu1 %vm3753_vm10, %v12432_v58 }
 0x702   :  { %8056 = vmatmul.msk.f32.vlgmr.msra.gmra.mxu1 %vm3753_vm10, %v15917_v12 }
 0x70a   :  { %8057 = vmatmul.msk.f32.gmra.mxu1 %vm3753_vm10, %v15919_v35 }
 0x71e   :  { %v12511_v5 = vpop.permute.xlu2 %3976 }
 0x727   :  { %v12475_v45 = vpop.permute.xlu0 %3972 }
 0x751   :  { %v3788_v6 = vpop.f32.mrf.mxu0 }
 0x759   :  { %v3791_v22 = vpop.f32.mrf.mxu0 }
 0x75f   :  { %v3742_v51 = vpop.f32.mrf.mxu3 }
 0x760   :  { %v12473_v54 = vadd.f32 %v3742_v51, %v3723_v3  ;;  %v12654_v3 = vld [vmem:[%s14982_s8 + $0x10] sm:$0xff] }
 0x761   :  { %v3896_v63 = vpop.f32.mrf.mxu0 }
 0x762   :  { %15920 = vst [vmem:[#allocation39_spill] sm:$0xff] %v12473_v54  ;;  %8049 = vmatpush.msk.msrb.mxu3 %vm3758_vm9, %v12473_v54  ;;  %v3897_v57 = vadd.f32 %v3896_v63, %v3788_v6 }
 0x763   :  { %8050 = vmatmul.msk.f32.vlgmr.msrb.gmra.mxu3 %vm3753_vm10, %v12408_v2 }
 0x764   :  { %8061 = vmatpush.msk.msra.mxu3 %vm3758_vm9, %v8497_v39  ;;  %v12486_v14 = vadd.f32 %v12475_v45, %v3897_v57  ;;  %v4292_v39 = vperm.slane %v12621_v49, 2 }
 0x766   :  { %4266 = vrot.lane.b32.xlu1 %v12486_v14, %s8526_s5  ;;  %3989 = vrot.lane.b32.xlu2 %v12486_v14, %s8527_s30 }
 0x767   :  { %v3702_v15 = vpop.f32.mrf.mxu1  ;;  %4029 = vrot.lane.b32.xlu0 %v12486_v14, %s8528_s6 }
 0x768   :  { %v12495_v26 = vadd.f32 %v3702_v15, %v3683_v41 }
 0x769   :  { %v3899_v43 = vpop.f32.mrf.mxu0 }
 0x76a   :  { %15921 = vst [vmem:[#allocation116_spill] sm:$0xff] %v12495_v26  ;;  %8046 = vmatpush.msk.msrb.mxu2 %vm3758_vm9, %v12495_v26  ;;  %v3900_v56 = vadd.f32 %v3899_v43, %v3791_v22 }
 0x76b   :  { %8047 = vmatmul.msk.f32.vlgmr.msrb.gmra.mxu2 %vm3753_vm10, %v12408_v2  ;;  %8051 = vmatmul.msk.f32.gmra.mxu3 %vm3753_vm10, %v12432_v58 }
 0x76c   :  { %8058 = vmatpush.msk.msra.mxu2 %vm3758_vm9, %v8498_v47  ;;  %v12516_v28 = vadd.f32 %v12511_v5, %v3900_v56 }
 0x76e   :  { %4704 = vrot.lane.b32.xlu1 %v12486_v14, %s8529_s13  ;;  %4558 = vrot.lane.b32.xlu2 %v12486_v14, %s8530_s4 }
 0x76f   :  { %v3811_v2 = vpop.f32.mrf.mxu1  ;;  %4412 = vrot.lane.b32.xlu0 %v12486_v14, %s8531_s7 }
 0x773   :  { %8048 = vmatmul.msk.f32.gmra.mxu2 %vm3753_vm10, %v12432_v58  ;;  %8062 = vmatmul.msk.f32.vlgmr.msra.gmra.mxu3 %vm3753_vm10, %v15917_v12 }
 0x776   :  { %3991 = vrot.lane.b32.xlu1 %v12516_v28, %s8527_s30  ;;  %4031 = vrot.lane.b32.xlu2 %v12516_v28, %s8528_s6 }
 0x777   :  { %v3814_v34 = vpop.f32.mrf.mxu1  ;;  %4268 = vrot.lane.b32.xlu0 %v12516_v28, %s8526_s5 }
 0x77b   :  { %8059 = vmatmul.msk.f32.vlgmr.msra.gmra.mxu2 %vm3753_vm10, %v15917_v12  ;;  %8063 = vmatmul.msk.f32.gmra.mxu3 %vm3753_vm10, %v15919_v35 }
 0x77e   :  { %4560 = vrot.lane.b32.xlu1 %v12516_v28, %s8530_s4  ;;  %4414 = vrot.lane.b32.xlu2 %v12516_v28, %s8531_s7 }
 0x77f   :  { %v3919_v53 = vpop.f32.mrf.mxu1  ;;  %4706 = vrot.lane.b32.xlu0 %v12516_v28, %s8529_s13 }
 0x780   :  { %v3920_v24 = vadd.f32 %v3919_v53, %v3811_v2  ;;  %v12683_v2 = vld [vmem:[%s14982_s8 + $0x18] sm:$0xff] }
 0x782   :  { %v12539_v33 = vadd.f32 %v12475_v45, %v3920_v24 }
 0x783   :  { %8060 = vmatmul.msk.f32.gmra.mxu2 %vm3753_vm10, %v15919_v35  ;;  %vm4720_vm10 = vcmp.lt.s32.totalorder %v15926_v61, 18 }
 0x786   :  { %4033 = vrot.lane.b32.xlu1 %v12539_v33, %s8528_s6  ;;  %4270 = vrot.lane.b32.xlu2 %v12539_v33, %s8526_s5 }
 0x787   :  { %3993 = vrot.lane.b32.xlu0 %v12539_v33, %s8527_s30  ;;  %v3922_v36 = vpop.f32.mrf.mxu1 }
 0x788   :  { %v3923_v27 = vadd.f32 %v3922_v36, %v3814_v34  ;;  %v4438_v36 = vperm.slane %v12621_v49, 3 }
 0x78a   :  { %v12556_v19 = vadd.f32 %v12511_v5, %v3923_v27 }
 0x78e   :  { %4416 = vrot.lane.b32.xlu1 %v12539_v33, %s8531_s7  ;;  %4708 = vrot.lane.b32.xlu2 %v12539_v33, %s8529_s13 }
 0x78f   :  { %4562 = vrot.lane.b32.xlu0 %v12539_v33, %s8530_s4 }
 0x796   :  { %4035 = vrot.lane.b32.xlu1 %v12556_v19, %s8528_s6  ;;  %4272 = vrot.lane.b32.xlu2 %v12556_v19, %s8526_s5 }
 0x797   :  { %3995 = vrot.lane.b32.xlu0 %v12556_v19, %s8527_s30 }
 0x79e   :  { %4418 = vrot.lane.b32.xlu1 %v12556_v19, %s8531_s7  ;;  %4710 = vrot.lane.b32.xlu2 %v12556_v19, %s8529_s13 }
 0x79f   :  { %4564 = vrot.lane.b32.xlu0 %v12556_v19, %s8530_s4 }
 0x7a6   :  { %4856 = vrot.lane.b32.xlu1 %v12556_v19, %s8519_s26 }
 0x7c0   :  { %v12572_v18 = vpop.permute.xlu2 %3989 }
 0x7c8   :  { %v12578_v25 = vpop.permute.xlu2 %4558 }
 0x7c9   :  { %15922 = vst [vmem:[#allocation71_spill] sm:$0xff] %v12578_v25 }
 0x7d0   :  { %v12584_v48 = vpop.permute.xlu2 %4031 }
 0x7d8   :  { %v12574_v58 = vpop.permute.xlu1 %4266  ;;  %v12590_v30 = vpop.permute.xlu2 %4414 }
 0x7d9   :  { %v12576_v62 = vpop.permute.xlu0 %4029 }
 0x7e0   :  { %v12580_v52 = vpop.permute.xlu1 %4704  ;;  %v12596_v42 = vpop.permute.xlu2 %4270 }
 0x7e1   :  { %15923 = vst [vmem:[#allocation44_spill] sm:$0xff] %v12580_v52  ;;  %v12582_v31 = vpop.permute.xlu0 %4412  ;;  %v4287_v56 = vsel %vm4282_vm13, %v12574_v58, %v12596_v42 }
 0x7e2   :  { %v4296_v34 = vmul.f32 %v4292_v39, %v4287_v56 }
 0x7e6   :  { %v3857_v21 = vpop.f32.mrf.mxu3 }
 0x7e8   :  { %v12586_v10 = vpop.permute.xlu1 %3991  ;;  %v12609_v9 = vpop.permute.xlu2 %4708 }
 0x7e9   :  { %v12588_v40 = vpop.permute.xlu0 %4268 }
 0x7ee   :  { %v3834_v20 = vpop.f32.mrf.mxu2  ;;  %v3860_v41 = vpop.f32.mrf.mxu3 }
 0x7f0   :  { %v12592_v16 = vpop.permute.xlu1 %4560  ;;  %v12649_v22 = vpop.permute.xlu2 %4272 }
 0x7f1   :  { %15924 = vst [vmem:[#allocation88_spill] sm:$0xff] %v12592_v16  ;;  %v12594_v60 = vpop.permute.xlu0 %4706  ;;  %v4288_v63 = vsel %vm4282_vm13, %v12588_v40, %v12649_v22 }
 0x7f2   :  { %15925 = vst [vmem:[#allocation110_spill] sm:$0xff] %v12594_v60  ;;  %v4300_v15 = vmul.f32 %v4292_v39, %v4288_v63 }
 0x7f6   :  { %v3837_v32 = vpop.f32.mrf.mxu2  ;;  %v3965_v24 = vpop.f32.mrf.mxu3 }
 0x7f8   :  { %v12598_v38 = vpop.permute.xlu1 %4033 }
 0x7f9   :  { %v12600_v11 = vpop.permute.xlu0 %3993  ;;  %v4050_v50 = vsel %vm4045_vm11, %v12576_v62, %v12598_v38 }
 0x7fa   :  { %v4059_v6 = vmul.f32 %v4055_v23, %v4050_v50  ;;  %v4010_v57 = vsel %vm4005_vm12, %v12572_v18, %v12600_v11 }
 0x7fb   :  { %v4019_v43 = vmul.f32 %v4015_v7, %v4010_v57  ;;  %v12765_v57 = vld [vmem:[%s14982_s8 + $0x28] sm:$0xff] }
 0x7fe   :  { %v3942_v46 = vpop.f32.mrf.mxu2 }
 0x7ff   :  { %v3943_v59 = vadd.f32 %v3942_v46, %v3834_v20  ;;  %v3966_v46 = vadd.f32 %v3965_v24, %v3857_v21  ;;  %v12724_v21 = vld [vmem:[%s14982_s8 + $0x8] sm:$0xff] }
 0x800   :  { %v12602_v0 = vpop.permute.xlu1 %4416 }
 0x801   :  { %v12605_v13 = vadd.f32 %v12475_v45, %v3943_v59  ;;  %v12607_v29 = vpop.permute.xlu0 %4562  ;;  %v4433_v27 = vsel %vm4428_vm15, %v12582_v31, %v12602_v0  ;;  %v12713_v50 = vadd.f32 %v12475_v45, %v3966_v46 }
 0x803   :  { %4274 = vrot.lane.b32.xlu0 %v12605_v13, %s8526_s5  ;;  %3997 = vrot.lane.b32.xlu1 %v12605_v13, %s8527_s30 }
 0x804   :  { %4037 = vrot.lane.b32.xlu2 %v12605_v13, %s8528_s6 }
 0x806   :  { %v3945_v8 = vpop.f32.mrf.mxu2 }
 0x807   :  { %v3946_v51 = vadd.f32 %v3945_v8, %v3837_v32  ;;  %v12708_v32 = vld [vmem:[%s14982_s8] sm:$0xff] }
 0x808   :  { %v12628_v12 = vpop.permute.xlu1 %4035 }
 0x809   :  { %v4051_v1 = vsel %vm4045_vm11, %v12584_v48, %v12628_v12  ;;  %v12635_v4 = vpop.permute.xlu0 %3995  ;;  %v12668_v47 = vadd.f32 %v12511_v5, %v3946_v51 }
 0x80a   :  { %v4063_v35 = vmul.f32 %v4055_v23, %v4051_v1  ;;  %v4011_v17 = vsel %vm4005_vm12, %v12586_v10, %v12635_v4  ;;  %v4442_v23 = vmul.f32 %v4438_v36, %v4433_v27  ;;  %v3968_v1 = vpop.f32.mrf.mxu3 }
 0x80b   :  { %4712 = vrot.lane.b32.xlu0 %v12605_v13, %s8529_s13  ;;  %4566 = vrot.lane.b32.xlu1 %v12605_v13, %s8530_s4  ;;  %v4023_v37 = vmul.f32 %v4015_v7, %v4011_v17  ;;  %v12745_v7 = vld [vmem:[%s14982_s8 + $0x20] sm:$0xff]  ;;  %v4579_v17 = vsel %vm4574_vm8, %v12578_v25, %v12607_v29 }
 0x80c   :  { %4420 = vrot.lane.b32.xlu2 %v12605_v13, %s8531_s7  ;;  %4110 = vmatpush.msrb.mxu1 %v4063_v35  ;;  %v4584_v35 = vperm.slane %v12621_v49, 4 }
 0x80e   :  { %4111 = vmatpush.msrb.mxu1 %v4059_v6  ;;  %v3969_v6 = vadd.f32 %v3968_v1, %v3860_v41  ;;  %v4588_v51 = vmul.f32 %v4584_v35, %v4579_v17  ;;  %v4730_v41 = vperm.slane %v12621_v49, 5  ;;  %v12876_v17 = vld [vmem:[%s14982_s8 + $0x40] sm:$0xff] }
 0x80f   :  { %8068 = vmatmul.msk.f32.vlgmr.msrb.gmra.mxu1 %vm4066_vm14, %v12654_v3  ;;  %15928 = vst [vmem:[#allocation122_spill] sm:$0xff] %v12876_v17 }
 0x810   :  { %4208 = vmatpush.msra.mxu1 %v4023_v37  ;;  %v12688_v53 = vpop.permute.xlu1 %4418  ;;  %v12754_v63 = vadd.f32 %v12511_v5, %v3969_v6  ;;  %v12769_v5 = vpop.permute.xlu2 %4710 }
 0x811   :  { %v4434_v20 = vsel %vm4428_vm15, %v12590_v30, %v12688_v53  ;;  %v12728_v45 = vpop.permute.xlu0 %4564  ;;  %v4726_v39 = vsel %vm4720_vm10, %v12594_v60, %v12769_v5 }
 0x812   :  { %4209 = vmatpush.msra.mxu1 %v4019_v43  ;;  %v4446_v59 = vmul.f32 %v4438_v36, %v4434_v20  ;;  %v4580_v8 = vsel %vm4574_vm8, %v12592_v16, %v12728_v45  ;;  %v4725_v43 = vsel %vm4720_vm10, %v12580_v52, %v12609_v9  ;;  %v4738_v56 = vmul.f32 %v4730_v41, %v4726_v39 }
 0x813   :  { %4276 = vrot.lane.b32.xlu0 %v12668_v47, %s8526_s5  ;;  %4039 = vrot.lane.b32.xlu1 %v12668_v47, %s8528_s6  ;;  %v4592_v37 = vmul.f32 %v4584_v35, %v4580_v8 }
 0x814   :  { %4422 = vrot.lane.b32.xlu2 %v12668_v47, %s8531_s7  ;;  %4346 = vmatpush.msrb.mxu1 %v4300_v15  ;;  %v12786_v15 = vld [vmem:[%s14982_s8 + $0x30] sm:$0xff] }
 0x816   :  { %4347 = vmatpush.msrb.mxu1 %v4296_v34  ;;  %v4734_v34 = vmul.f32 %v4730_v41, %v4725_v43 }
 0x817   :  { %8069 = vmatmul.msk.f32.gmra.mxu1 %vm4066_vm14, %v12683_v2 }
 0x818   :  { %v12834_v36 = vpop.permute.xlu1 %4856 }
 0x81b   :  { %4714 = vrot.lane.b32.xlu0 %v12668_v47, %s8529_s13  ;;  %3999 = vrot.lane.b32.xlu1 %v12668_v47, %s8527_s30 }
 0x81c   :  { %4860 = vrot.lane.b32.xlu2 %v12668_v47, %s8519_s26 }
 0x81f   :  { %8076 = vmatmul.msk.f32.vlgmr.msra.gmra.mxu1 %vm4066_vm14, %v12708_v32 }
 0x820   :  { %4492 = vmatpush.msra.mxu1 %v4446_v59 }
 0x822   :  { %4493 = vmatpush.msra.mxu1 %v4442_v23  ;;  %v12857_v23 = vld [vmem:[%s14982_s8 + $0x38] sm:$0xff] }
 0x823   :  { %4041 = vrot.lane.b32.xlu0 %v12713_v50, %s8528_s6  ;;  %4568 = vrot.lane.b32.xlu1 %v12668_v47, %s8530_s4 }
 0x824   :  { %4001 = vrot.lane.b32.xlu2 %v12713_v50, %s8527_s30 }
 0x827   :  { %8077 = vmatmul.msk.f32.gmra.mxu1 %vm4066_vm14, %v12724_v21 }
 0x82b   :  { %4424 = vrot.lane.b32.xlu0 %v12713_v50, %s8531_s7  ;;  %4278 = vrot.lane.b32.xlu1 %v12713_v50, %s8526_s5 }
 0x82c   :  { %4570 = vrot.lane.b32.xlu2 %v12713_v50, %s8530_s4 }
 0x82f   :  { %8086 = vmatmul.msk.f32.vlgmr.msrb.gmra.mxu1 %vm4066_vm14, %v12745_v7 }
 0x830   :  { %4638 = vmatpush.msrb.mxu1 %v4592_v37  ;;  %v12887_v37 = vld [vmem:[%s14975_s1 + $0x10] sm:$0xff] }
 0x831   :  { %v4293_v25 = vperm.slane %v12887_v37, 2 }
 0x832   :  { %4639 = vmatpush.msrb.mxu1 %v4588_v51  ;;  %v4056_v51 = vperm.slane %v12887_v37, 1 }
 0x833   :  { %4862 = vrot.lane.b32.xlu0 %v12713_v50, %s8519_s26  ;;  %4716 = vrot.lane.b32.xlu1 %v12713_v50, %s8529_s13 }
 0x834   :  { %4043 = vrot.lane.b32.xlu2 %v12754_v63, %s8528_s6 }
 0x837   :  { %8087 = vmatmul.msk.f32.gmra.mxu1 %vm4066_vm14, %v12765_v57 }
 0x83b   :  { %4850 = vrot.lane.b32.xlu0 %v12486_v14, %s8519_s26  ;;  %4854 = vrot.lane.b32.xlu1 %v12539_v33, %s8519_s26 }
 0x83c   :  { %4858 = vrot.lane.b32.xlu2 %v12605_v13, %s8519_s26 }
 0x83f   :  { %8096 = vmatmul.msk.f32.vlgmr.msra.gmra.mxu1 %vm4066_vm14, %v12786_v15 }
 0x840   :  { %4784 = vmatpush.msra.mxu1 %v4738_v56 }
 0x842   :  { %4785 = vmatpush.msra.mxu1 %v4734_v34 }
 0x843   :  { %4997 = vrot.lane.b32.xlu0 %v12556_v19, %s8518_s25  ;;  %5001 = vrot.lane.b32.xlu1 %v12668_v47, %s8518_s25 }
 0x844   :  { %4003 = vrot.lane.b32.xlu2 %v12754_v63, %s8527_s30  ;;  %s8534_s30 = smov 126  }
 0x847   :  { %8097 = vmatmul.msk.f32.gmra.mxu1 %vm4066_vm14, %v12857_v23 }
 0x84b   :  { %4995 = vrot.lane.b32.xlu0 %v12539_v33, %s8518_s25  ;;  %4280 = vrot.lane.b32.xlu1 %v12754_v63, %s8526_s5  ;;  %s8532_s5 = smov 14  }
 0x84c   :  { %4852 = vrot.lane.b32.xlu2 %v12516_v28, %s8519_s26 }
 0x84f   :  { %8106 = vmatmul.msk.f32.vlgmr.msrb.gmra.mxu1 %vm4066_vm14, %v12876_v17 }
 0x853   :  { %4426 = vrot.lane.b32.xlu0 %v12754_v63, %s8531_s7  ;;  %4999 = vrot.lane.b32.xlu1 %v12605_v13, %s8518_s25 }
 0x854   :  { %5003 = vrot.lane.b32.xlu2 %v12713_v50, %s8518_s25 }
 0x85b   :  { %5142 = vrot.lane.b32.xlu0 %v12668_v47, %s8517_s24  ;;  %4993 = vrot.lane.b32.xlu1 %v12516_v28, %s8518_s25 }
 0x85c   :  { %4991 = vrot.lane.b32.xlu2 %v12486_v14, %s8518_s25 }
 0x85e   :  { %v12818_v49 = vpop.permute.xlu2 %4037 }
 0x85f   :  { %v4048_v56 = vsel %vm4045_vm11, %v12598_v38, %v12818_v49  ;;  %v12913_v38 = vld [vmem:[%s14975_s1] sm:$0xff] }
 0x860   :  { %v4060_v26 = vmul.f32 %v4056_v51, %v4048_v56 }
 0x863   :  { %5140 = vrot.lane.b32.xlu0 %v12605_v13, %s8517_s24  ;;  %5144 = vrot.lane.b32.xlu1 %v12713_v50, %s8517_s24 }
 0x864   :  { %5138 = vrot.lane.b32.xlu2 %v12556_v19, %s8517_s24 }
 0x866   :  { %v12826_v24 = vpop.permute.xlu2 %4420 }
 0x86b   :  { %5134 = vrot.lane.b32.xlu0 %v12516_v28, %s8517_s24  ;;  %5132 = vrot.lane.b32.xlu1 %v12486_v14, %s8517_s24 }
 0x86c   :  { %5136 = vrot.lane.b32.xlu2 %v12539_v33, %s8517_s24 }
 0x86e   :  { %v12836_v27 = vpop.permute.xlu2 %4422 }
 0x873   :  { %5285 = vrot.lane.b32.xlu0 %v12713_v50, %s8532_s5  ;;  %5279 = vrot.lane.b32.xlu1 %v12556_v19, %s8532_s5 }
 0x874   :  { %4572 = vrot.lane.b32.xlu2 %v12754_v63, %s8530_s4  ;;  %s8535_s4 = smov 114  }
 0x875   :  { %v12844_v20 = vpop.permute.xlu0 %4274  ;;  %v12846_v46 = vpop.permute.xlu1 %3997 }
 0x876   :  { %v12848_v59 = vpop.permute.xlu2 %4860  ;;  %v4008_v60 = vsel %vm4005_vm12, %v12600_v11, %v12846_v46 }
 0x877   :  { %15927 = vst [vmem:[#allocation56_spill] sm:$0xff] %v12848_v59 }
 0x87b   :  { %5273 = vrot.lane.b32.xlu0 %v12486_v14, %s8532_s5  ;;  %4718 = vrot.lane.b32.xlu1 %v12754_v63, %s8529_s13 }
 0x87c   :  { %5283 = vrot.lane.b32.xlu2 %v12668_v47, %s8532_s5 }
 0x87d   :  { %v12863_v1 = vpop.permute.xlu0 %4712  ;;  %v12865_v8 = vpop.permute.xlu1 %4566 }
 0x87e   :  { %v12867_v35 = vpop.permute.xlu2 %4001 }
 0x883   :  { %4864 = vrot.lane.b32.xlu0 %v12754_v63, %s8519_s26  ;;  %5277 = vrot.lane.b32.xlu1 %v12539_v33, %s8532_s5  ;;  %s8533_s26 = smov 2  }
 0x884   :  { %5281 = vrot.lane.b32.xlu2 %v12605_v13, %s8532_s5 }
 0x885   :  { %v12882_v6 = vpop.permute.xlu0 %4276  ;;  %v4040_v39 = vpop.permute.xlu1 %4039 }
 0x886   :  { %v4049_v41 = vsel %vm4045_vm11, %v12628_v12, %v4040_v39  ;;  %v12893_v43 = vpop.permute.xlu2 %4570  ;;  %v12906_v12 = vld [vmem:[%s14982_s8 + $0x48] sm:$0xff] }
 0x887   :  { %15929 = vst [vmem:[#allocation55_spill] sm:$0xff] %v12893_v43  ;;  %v4064_v34 = vmul.f32 %v4056_v51, %v4049_v41  ;;  %v4054_v51 = vperm.slane %v12913_v38, 1  ;;  %v12919_v41 = vld [vmem:[%s14975_s1 + $0x18] sm:$0xff]  ;;  %8107 = vmatmul.msk.f32.gmra.mxu1 %vm4066_vm14, %v12906_v12 }
 0x888   :  { %15930 = vst [vmem:[#allocation86_spill] sm:$0xff] %v12906_v12  ;;  %v4057_v56 = vperm.slane %v12919_v41, 1 }
 0x889   :  { %4133 = vmatpush.msrb.mxu2 %v4064_v34 }
 0x88b   :  { %5425 = vrot.lane.b32.xlu0 %v12556_v19, %s8533_s26  ;;  %5429 = vrot.lane.b32.xlu1 %v12668_v47, %s8533_s26 }
 0x88c   :  { %5275 = vrot.lane.b32.xlu2 %v12516_v28, %s8532_s5  ;;  %4134 = vmatpush.msrb.mxu2 %v4060_v26  ;;  %v4016_v26 = vperm.slane %v12887_v37, 0 }
 0x88d   :  { %8070 = vmatmul.msk.f32.vlgmr.msrb.gmra.mxu2 %vm4066_vm14, %v12654_v3  ;;  %v12924_v34 = vpop.permute.xlu0 %4714  ;;  %v4000_v54 = vpop.permute.xlu1 %3999 }
 0x88e   :  { %v4009_v55 = vsel %vm4005_vm12, %v12635_v4, %v4000_v54  ;;  %v4044_v44 = vpop.permute.xlu2 %4043  ;;  %v4286_v4 = vsel %vm4282_vm13, %v12649_v22, %v12882_v6  ;;  %v4020_v59 = vmul.f32 %v4016_v26, %v4008_v60 }
 0x88f   :  { %v4024_v52 = vmul.f32 %v4016_v26, %v4009_v55  ;;  %v4047_v16 = vsel %vm4045_vm11, %v4040_v39, %v4044_v44  ;;  %v4053_v17 = vsel %vm4045_vm11, %v4044_v44, %v12584_v48  ;;  %v4285_v55 = vsel %vm4282_vm13, %v12596_v42, %v12844_v20  ;;  %v12957_v44 = vld [vmem:[%s14982_s8 + $0x50] sm:$0xff] }
 0x890   :  { %v4062_v43 = vmul.f32 %v4054_v51, %v4053_v17  ;;  %v4065_v12 = vmul.f32 %v4057_v56, %v4047_v16  ;;  %8116 = vmatmul.msk.f32.vlgmr.msra.gmra.mxu1 %vm4066_vm14, %v12957_v44  ;;  %v4297_v22 = vmul.f32 %v4293_v25, %v4285_v55  ;;  %v4432_v39 = vsel %vm4428_vm15, %v12688_v53, %v12836_v27 }
 0x891   :  { %4231 = vmatpush.msra.mxu2 %v4024_v52  ;;  %v4301_v52 = vmul.f32 %v4293_v25, %v4286_v4  ;;  %v12995_v25 = vld [vmem:[%s14982_s8 + $0x58] sm:$0xff] }
 0x892   :  { %4087 = vmatpush.msrb.mxu0 %v4062_v43  ;;  %4156 = vmatpush.msrb.mxu3 %v4065_v12  ;;  %v4014_v43 = vperm.slane %v12913_v38, 0 }
 0x893   :  { %5423 = vrot.lane.b32.xlu0 %v12539_v33, %s8533_s26  ;;  %5427 = vrot.lane.b32.xlu1 %v12605_v13, %s8533_s26 }
 0x894   :  { %5431 = vrot.lane.b32.xlu2 %v12713_v50, %s8533_s26  ;;  %4232 = vmatpush.msra.mxu2 %v4020_v59 }
 0x895   :  { %8071 = vmatmul.msk.f32.gmra.mxu2 %vm4066_vm14, %v12683_v2  ;;  %v4042_v48 = vpop.permute.xlu0 %4041  ;;  %v12963_v16 = vpop.permute.xlu1 %4568 }
 0x896   :  { %v4046_v60 = vsel %vm4045_vm11, %v12818_v49, %v4042_v48  ;;  %v4052_v42 = vsel %vm4045_vm11, %v4042_v48, %v12576_v62  ;;  %v12973_v11 = vpop.permute.xlu2 %4858  ;;  %4369 = vmatpush.msrb.mxu2 %v4301_v52  ;;  %v4439_v49 = vperm.slane %v12887_v37, 3  ;;  %v4431_v62 = vsel %vm4428_vm15, %v12602_v0, %v12826_v24 }
 0x897   :  { %v4058_v59 = vmul.f32 %v4054_v51, %v4052_v42  ;;  %v4061_v17 = vmul.f32 %v4057_v56, %v4046_v60  ;;  %v4017_v56 = vperm.slane %v12919_v41, 0  ;;  %v4012_v52 = vsel %vm4005_vm12, %v12867_v35, %v12572_v18  ;;  %v15931_v42 = vld [vmem:[#allocation11_spill] sm:$0xff] }
 0x898   :  { %4370 = vmatpush.msrb.mxu2 %v4297_v22  ;;  %v4447_v53 = vmul.f32 %v4439_v49, %v4432_v39  ;;  %8117 = vmatmul.msk.f32.gmra.mxu1 %vm4066_vm14, %v12995_v25  ;;  %v4443_v51 = vmul.f32 %v4439_v49, %v4431_v62  ;;  %v4006_v60 = vsel %vm4005_vm12, %v12846_v46, %v12867_v35  ;;  %vm5289_vm11 = vcmp.lt.s32.totalorder %v15926_v61, 14 }
 0x899   :  { %4088 = vmatpush.msrb.mxu0 %v4058_v59  ;;  %4157 = vmatpush.msrb.mxu3 %v4061_v17  ;;  %v4578_v59 = vsel %vm4574_vm8, %v12728_v45, %v12963_v16  ;;  %v4585_v17 = vperm.slane %v12887_v37, 4  ;;  %v4577_v39 = vsel %vm4574_vm8, %v12607_v29, %v12865_v8 }
 0x89a   :  { %8066 = vmatmul.msk.f32.vlgmr.msrb.gmra.mxu0 %vm4066_vm14, %v12654_v3  ;;  %8072 = vmatmul.msk.f32.vlgmr.msrb.gmra.mxu3 %vm4066_vm14, %v12654_v3 }
 0x89b   :  { %5575 = vrot.lane.b32.xlu0 %v12668_v47, %s8516_s23  ;;  %5421 = vrot.lane.b32.xlu1 %v12516_v28, %s8533_s26  ;;  %v4593_v45 = vmul.f32 %v4585_v17, %v4578_v59 }
 0x89c   :  { %5419 = vrot.lane.b32.xlu2 %v12486_v14, %s8533_s26 }
 0x89d   :  { %8078 = vmatmul.msk.f32.vlgmr.msra.gmra.mxu2 %vm4066_vm14, %v12708_v32  ;;  %v13001_v3 = vpop.permute.xlu0 %4424  ;;  %v13003_v0 = vpop.permute.xlu1 %4278 }
 0x89e   :  { %v4004_v12 = vpop.permute.xlu2 %4003  ;;  %4515 = vmatpush.msra.mxu2 %v4447_v53 }
 0x89f   :  { %v4007_v26 = vsel %vm4005_vm12, %v4000_v54, %v4004_v12  ;;  %v4013_v4 = vsel %vm4005_vm12, %v4004_v12, %v12586_v10  ;;  %v4018_v54 = vmul.f32 %v4014_v43, %v4012_v52  ;;  %v13117_v52 = vld [vmem:[%s14982_s8 + $0x68] sm:$0xff]  ;;  %vm7417_vm12 = vcmp.lt.s32.totalorder %v15926_v61, 94 }
 0x8a0   :  { %v4022_v55 = vmul.f32 %v4014_v43, %v4013_v4  ;;  %4516 = vmatpush.msra.mxu2 %v4443_v51  ;;  %v4025_v48 = vmul.f32 %v4017_v56, %v4007_v26  ;;  %v4589_v43 = vmul.f32 %v4585_v17, %v4577_v39  ;;  %v13082_v51 = vld [vmem:[%s14982_s8 + $0x60] sm:$0xff]  ;;  %v4289_v17 = vsel %vm4282_vm13, %v13003_v0, %v12574_v58 }
 0x8a1   :  { %v4437_v58 = vperm.slane %v12913_v38, 3 }
 0x8a2   :  { %8067 = vmatmul.msk.f32.gmra.mxu0 %vm4066_vm14, %v12683_v2  ;;  %8073 = vmatmul.msk.f32.gmra.mxu3 %vm4066_vm14, %v12683_v2  ;;  %v4021_v2 = vmul.f32 %v4017_v56, %v4006_v60  ;;  %v4723_v60 = vsel %vm4720_vm10, %v12609_v9, %v12863_v1  ;;  %v4291_v9 = vperm.slane %v12913_v38, 2 }
 0x8a3   :  { %5573 = vrot.lane.b32.xlu0 %v12605_v13, %s8516_s23  ;;  %5577 = vrot.lane.b32.xlu1 %v12713_v50, %s8516_s23 }
 0x8a4   :  { %5005 = vrot.lane.b32.xlu2 %v12754_v63, %s8518_s25  ;;  %4185 = vmatpush.msra.mxu0 %v4022_v55  ;;  %v4724_v55 = vsel %vm4720_vm10, %v12769_v5, %v12924_v34 }
 0x8a5   :  { %8079 = vmatmul.msk.f32.gmra.mxu2 %vm4066_vm14, %v12724_v21  ;;  %v13034_v18 = vpop.permute.xlu0 %4862  ;;  %v13036_v10 = vpop.permute.xlu1 %4716  ;;  %4254 = vmatpush.msra.mxu3 %v4025_v48  ;;  %v4731_v48 = vperm.slane %v12887_v37, 5  ;;  %v4294_v37 = vperm.slane %v12919_v41, 2 }
 0x8a6   :  { %v13038_v46 = vpop.permute.xlu2 %4852  ;;  %4186 = vmatpush.msra.mxu0 %v4018_v54 }
 0x8a7   :  { %v4871_v35 = vsel %vm97_vm7, %v13038_v46, %v12834_v36  ;;  %4255 = vmatpush.msra.mxu3 %v4021_v2  ;;  %v4739_v54 = vmul.f32 %v4731_v48, %v4724_v55  ;;  %v4735_v59 = vmul.f32 %v4731_v48, %v4723_v60  ;;  %v4435_v48 = vsel %vm4428_vm15, %v13001_v3, %v12582_v31 }
 0x8a8   :  { %v4879_v22 = vmul.f32 %v4871_v35, %v15931_v42 }
 0x8aa   :  { %8074 = vmatmul.msk.f32.vlgmr.msra.gmra.mxu0 %vm4066_vm14, %v12708_v32  ;;  %8080 = vmatmul.msk.f32.vlgmr.msra.gmra.mxu3 %vm4066_vm14, %v12708_v32 }
 0x8ab   :  { %5567 = vrot.lane.b32.xlu0 %v12516_v28, %s8516_s23  ;;  %5146 = vrot.lane.b32.xlu1 %v12754_v63, %s8517_s24 }
 0x8ac   :  { %5571 = vrot.lane.b32.xlu2 %v12556_v19, %s8516_s23  ;;  %4925 = vmatpush.msrb.mxu1 %v4879_v22 }
 0x8ad   :  { %8088 = vmatmul.msk.f32.vlgmr.msrb.gmra.mxu2 %vm4066_vm14, %v12745_v7  ;;  %v4851_v32 = vpop.permute.xlu0 %4850  ;;  %v13066_v49 = vpop.permute.xlu1 %4854 }
 0x8ae   :  { %v13071_v29 = vsel %vm97_vm7, %v13034_v18, %v4851_v32  ;;  %v4870_v62 = vsel %vm97_vm7, %v4851_v32, %v13066_v49  ;;  %v13076_v53 = vpop.permute.xlu2 %5003  ;;  %4661 = vmatpush.msrb.mxu2 %v4593_v45 }
 0x8af   :  { %v4875_v12 = vmul.f32 %v4870_v62, %v15931_v42 }
 0x8b0   :  { %4662 = vmatpush.msrb.mxu2 %v4589_v43 }
 0x8b1   :  { %4926 = vmatpush.msrb.mxu1 %v4875_v12 }
 0x8b2   :  { %8075 = vmatmul.msk.f32.gmra.mxu0 %vm4066_vm14, %v12724_v21  ;;  %8081 = vmatmul.msk.f32.gmra.mxu3 %vm4066_vm14, %v12724_v21 }
 0x8b3   :  { %5287 = vrot.lane.b32.xlu0 %v12754_v63, %s8532_s5  ;;  %5565 = vrot.lane.b32.xlu1 %v12486_v14, %s8516_s23 }
 0x8b4   :  { %5569 = vrot.lane.b32.xlu2 %v12539_v33, %s8516_s23  ;;  %8126 = vmatmul.msk.f32.vlgmr.msrb.gmra.mxu1 %vm4066_vm14, %v13082_v51 }
 0x8b5   :  { %8089 = vmatmul.msk.f32.gmra.mxu2 %vm4066_vm14, %v12765_v57  ;;  %v13098_v56 = vpop.permute.xlu0 %4997  ;;  %v13100_v26 = vpop.permute.xlu1 %5001 }
 0x8b6   :  { %v13102_v21 = vpop.permute.xlu2 %4991 }
 0x8b7   :  { %v13108_v4 = vsel %vm118_vm6, %v13076_v53, %v13102_v21 }
 0x8bb   :  { %5827 = vrot.lane.b32.xlu0 %v12713_v50, %s8515_s22  ;;  %5815 = vrot.lane.b32.xlu1 %v12486_v14, %s8515_s22 }
 0x8bc   :  { %5817 = vrot.lane.b32.xlu2 %v12516_v28, %s8515_s22  ;;  %8127 = vmatmul.msk.f32.gmra.mxu1 %vm4066_vm14, %v13117_v52 }
 0x8bd   :  { %8098 = vmatmul.msk.f32.vlgmr.msra.gmra.mxu2 %vm4066_vm14, %v12786_v15  ;;  %v13134_v5 = vpop.permute.xlu0 %4995  ;;  %v4281_v2 = vpop.permute.xlu1 %4280 }
 0x8be   :  { %v4284_v35 = vsel %vm4282_vm13, %v12882_v6, %v4281_v2  ;;  %v4290_v42 = vsel %vm4282_vm13, %v4281_v2, %v12588_v40  ;;  %v13144_v22 = vpop.permute.xlu2 %5138  ;;  %4807 = vmatpush.msra.mxu2 %v4739_v54  ;;  %v4283_v6 = vsel %vm4282_vm13, %v12844_v20, %v13003_v0  ;;  %v4295_v40 = vmul.f32 %v4291_v9, %v4289_v17 }
 0x8bf   :  { %v4299_v39 = vmul.f32 %v4291_v9, %v4290_v42  ;;  %v4302_v45 = vmul.f32 %v4294_v37, %v4284_v35  ;;  %v4298_v32 = vmul.f32 %v4294_v37, %v4283_v6  ;;  %v4440_v20 = vperm.slane %v12919_v41, 3  ;;  %v15934_v35 = vld [vmem:[#allocation71_spill] sm:$0xff] }
 0x8c0   :  { %4808 = vmatpush.msra.mxu2 %v4735_v59  ;;  %v4429_v54 = vsel %vm4428_vm15, %v12826_v24, %v13001_v3  ;;  %v4441_v9 = vmul.f32 %v4437_v58, %v4435_v48  ;;  %v4868_v24 = vsel %vm97_vm7, %v13066_v49, %v12973_v11  ;;  %v15933_v3 = vld [vmem:[#allocation33_spill] sm:$0xff]  ;;  %v15935_v42 = vld [vmem:[#allocation55_spill] sm:$0xff]  ;;  %v15936_v49 = vld [vmem:[#allocation122_spill] sm:$0xff] }
 0x8c1   :  { %4323 = vmatpush.msrb.mxu0 %v4299_v39  ;;  %4392 = vmatpush.msrb.mxu3 %v4302_v45  ;;  %v4444_v31 = vmul.f32 %v4440_v20, %v4429_v54  ;;  %v4581_v59 = vsel %vm4574_vm8, %v15935_v42, %v15934_v35  ;;  %v4583_v39 = vperm.slane %v12913_v38, 4  ;;  %v4586_v45 = vperm.slane %v12919_v41, 4  ;;  %v13282_v35 = vld [vmem:[%s14982_s8 + $0x78] sm:$0xff] }
 0x8c3   :  { %5819 = vrot.lane.b32.xlu0 %v12539_v33, %s8515_s22  ;;  %5823 = vrot.lane.b32.xlu1 %v12605_v13, %s8515_s22 }
 0x8c4   :  { %5825 = vrot.lane.b32.xlu2 %v12668_v47, %s8515_s22  ;;  %4324 = vmatpush.msrb.mxu0 %v4295_v40  ;;  %v4876_v40 = vmul.f32 %v4868_v24, %v15933_v3 }
 0x8c5   :  { %4393 = vmatpush.msrb.mxu3 %v4298_v32  ;;  %8084 = vmatmul.msk.f32.vlgmr.msrb.gmra.mxu0 %vm4066_vm14, %v12745_v7  ;;  %v4427_v0 = vpop.permute.xlu0 %4426  ;;  %v13164_v62 = vpop.permute.xlu1 %4999  ;;  %v15937_v32 = vld [vmem:[#allocation9_spill] sm:$0xff] }
 0x8c6   :  { %8090 = vmatmul.msk.f32.vlgmr.msrb.gmra.mxu3 %vm4066_vm14, %v12745_v7  ;;  %8099 = vmatmul.msk.f32.gmra.mxu2 %vm4066_vm14, %v12857_v23  ;;  %v4430_v43 = vsel %vm4428_vm15, %v12836_v27, %v4427_v0  ;;  %v4436_v12 = vsel %vm4428_vm15, %v4427_v0, %v12590_v30  ;;  %v13176_v55 = vpop.permute.xlu2 %5136  ;;  %v15932_v27 = vld [vmem:[#allocation56_spill] sm:$0xff] }
 0x8c7   :  { %v4445_v60 = vmul.f32 %v4437_v58, %v4436_v12  ;;  %v4448_v7 = vmul.f32 %v4440_v20, %v4430_v43  ;;  %v4869_v30 = vsel %vm97_vm7, %v12834_v36, %v15932_v27  ;;  %v15938_v20 = vld [vmem:[#allocation88_spill] sm:$0xff]  ;;  %v5011_v43 = vsel %vm118_vm6, %v13102_v21, %v13134_v5  ;;  %v13247_v21 = vld [vmem:[%s14982_s8 + $0x70] sm:$0xff] }
 0x8c8   :  { %v4880_v36 = vmul.f32 %v4869_v30, %v15933_v3  ;;  %v13263_v3 = vpop.f32.mrf.mxu1 }
 0x8c9   :  { %4469 = vmatpush.msra.mxu0 %v4445_v60  ;;  %4538 = vmatpush.msra.mxu3 %v4448_v7  ;;  %v4575_v60 = vsel %vm4574_vm8, %v12865_v8, %v15935_v42  ;;  %v5016_v7 = vmul.f32 %v5011_v43, %v15937_v32  ;;  %v13329_v43 = vld [vmem:[%s14982_s8 + $0x80] sm:$0xff] }
 0x8ca   :  { %v4590_v30 = vmul.f32 %v4586_v45, %v4575_v60 }
 0x8cb   :  { %5956 = vrot.lane.b32.xlu0 %v12486_v14, %s8534_s30  ;;  %5958 = vrot.lane.b32.xlu1 %v12516_v28, %s8534_s30 }
 0x8cc   :  { %5821 = vrot.lane.b32.xlu2 %v12556_v19, %s8515_s22  ;;  %4470 = vmatpush.msra.mxu0 %v4441_v9  ;;  %v15939_v9 = vld [vmem:[#allocation86_spill] sm:$0xff] }
 0x8cd   :  { %8085 = vmatmul.msk.f32.gmra.mxu0 %vm4066_vm14, %v12765_v57  ;;  %v13203_v37 = vpop.permute.xlu0 %5142  ;;  %v13205_v2 = vpop.permute.xlu1 %4993  ;;  %4539 = vmatpush.msra.mxu3 %v4444_v31 }
 0x8ce   :  { %8091 = vmatmul.msk.f32.gmra.mxu3 %vm4066_vm14, %v12765_v57  ;;  %8108 = vmatmul.msk.f32.vlgmr.msrb.gmra.mxu2 %vm4066_vm14, %v15936_v49  ;;  %v5012_v17 = vsel %vm118_vm6, %v13205_v2, %v13098_v56  ;;  %v4573_v6 = vpop.permute.xlu2 %4572 }
 0x8cf   :  { %v5020_v58 = vmul.f32 %v5012_v17, %v15937_v32  ;;  %v4576_v57 = vsel %vm4574_vm8, %v12963_v16, %v4573_v6  ;;  %v4582_v0 = vsel %vm4574_vm8, %v4573_v6, %v15938_v20  ;;  %4948 = vmatpush.msrb.mxu2 %v4880_v36  ;;  %v4587_v16 = vmul.f32 %v4583_v39, %v4581_v59  ;;  %v13323_v20 = vld [vmem:[%s14975_s1 + $0x28] sm:$0xff] }
 0x8d0   :  { %v4591_v12 = vmul.f32 %v4583_v39, %v4582_v0  ;;  %v4594_v48 = vmul.f32 %v4586_v45, %v4576_v57  ;;  %v5009_v36 = vsel %vm118_vm6, %v13134_v5, %v13164_v62  ;;  %v13311_v57 = vpop.f32.mrf.mxu1  ;;  %v5299_v0 = vperm.slane %v13323_v20, 1 }
 0x8d1   :  { %5066 = vmatpush.msra.mxu1 %v5020_v58  ;;  %4949 = vmatpush.msrb.mxu2 %v4876_v40  ;;  %v15941_v40 = vld [vmem:[#allocation8_spill] sm:$0xff] }
 0x8d2   :  { %4615 = vmatpush.msrb.mxu0 %v4591_v12  ;;  %4684 = vmatpush.msrb.mxu3 %v4594_v48 }
 0x8d3   :  { %5964 = vrot.lane.b32.xlu0 %v12605_v13, %s8534_s30  ;;  %5966 = vrot.lane.b32.xlu1 %v12668_v47, %s8534_s30 }
 0x8d4   :  { %5433 = vrot.lane.b32.xlu2 %v12754_v63, %s8533_s26  ;;  %4616 = vmatpush.msrb.mxu0 %v4587_v16  ;;  %s8541_s26 = smov 94  }
 0x8d5   :  { %8094 = vmatmul.msk.f32.vlgmr.msra.gmra.mxu0 %vm4066_vm14, %v12786_v15  ;;  %v5141_v8 = vpop.permute.xlu0 %5140  ;;  %v5145_v54 = vpop.permute.xlu1 %5144  ;;  %5067 = vmatpush.msra.mxu1 %v5016_v7 }
 0x8d6   :  { %8100 = vmatmul.msk.f32.vlgmr.msra.gmra.mxu3 %vm4066_vm14, %v12786_v15  ;;  %8109 = vmatmul.msk.f32.gmra.mxu2 %vm4066_vm14, %v15939_v9  ;;  %v13257_v31 = vsel %vm139_vm4, %v5141_v8, %v5145_v54  ;;  %v13259_v24 = vpop.permute.xlu2 %5283  ;;  %v5010_v15 = vsel %vm118_vm6, %v13098_v56, %v13100_v26  ;;  %v15940_v56 = vld [vmem:[#allocation31_spill] sm:$0xff] }
 0x8d7   :  { %4685 = vmatpush.msrb.mxu3 %v4590_v30  ;;  %8136 = vmatmul.msk.f32.vlgmr.msra.gmra.mxu1 %vm4066_vm14, %v13247_v21  ;;  %v5021_v42 = vmul.f32 %v5010_v15, %v15940_v56  ;;  %v5017_v6 = vmul.f32 %v5009_v36, %v15940_v56  ;;  %v5150_v30 = vsel %vm139_vm4, %v13176_v55, %v5141_v8  ;;  %v13370_v15 = vld [vmem:[%s14982_s8 + $0x88] sm:$0xff]  ;;  %v15942_v36 = vld [vmem:[#allocation44_spill] sm:$0xff]  ;;  %v4729_v8 = vperm.slane %v12913_v38, 5 }
 0x8d8   :  { %v4727_v56 = vsel %vm4720_vm10, %v13036_v10, %v15942_v36 }
 0x8db   :  { %6104 = vrot.lane.b32.xlu0 %v12516_v28, %s8535_s4  ;;  %5579 = vrot.lane.b32.xlu1 %v12754_v63, %s8516_s23  ;;  %s8536_s23 = smov 110  }
 0x8dc   :  { %5968 = vrot.lane.b32.xlu2 %v12713_v50, %s8534_s30 }
 0x8dd   :  { %8095 = vmatmul.msk.f32.gmra.mxu0 %vm4066_vm14, %v12857_v23  ;;  %v13287_v59 = vpop.permute.xlu0 %5134  ;;  %v5133_v17 = vpop.permute.xlu1 %5132 }
 0x8de   :  { %8101 = vmatmul.msk.f32.gmra.mxu3 %vm4066_vm14, %v12857_v23  ;;  %8118 = vmatmul.msk.f32.vlgmr.msra.gmra.mxu2 %vm4066_vm14, %v12957_v44  ;;  %v5153_v5 = vsel %vm139_vm4, %v13287_v59, %v13144_v22  ;;  %v13299_v39 = vsel %vm139_vm4, %v5145_v54, %v5133_v17  ;;  %v13301_v45 = vpop.permute.xlu2 %5281  ;;  %v5152_v23 = vsel %vm139_vm4, %v5133_v17, %v13176_v55 }
 0x8df   :  { %v5161_v32 = vmul.f32 %v5153_v5, %v15941_v40  ;;  %5089 = vmatpush.msra.mxu2 %v5021_v42  ;;  %8137 = vmatmul.msk.f32.gmra.mxu1 %vm4066_vm14, %v13282_v35  ;;  %v5157_v58 = vmul.f32 %v5152_v23, %v15941_v40  ;;  %v5151_v54 = vsel %vm139_vm4, %v13144_v22, %v13203_v37  ;;  %v13372_v22 = vpop.f32.mrf.mxu1  ;;  %v15943_v42 = vld [vmem:[#allocation29_spill] sm:$0xff]  ;;  %v4732_v5 = vperm.slane %v12919_v41, 5  ;;  %v15944_v23 = vld [vmem:[#allocation110_spill] sm:$0xff] }
 0x8e0   :  { %v5162_v17 = vmul.f32 %v5151_v54, %v15943_v42 }
 0x8e1   :  { %5207 = vmatpush.msrb.mxu1 %v5161_v32  ;;  %5090 = vmatpush.msra.mxu2 %v5017_v6 }
 0x8e3   :  { %6112 = vrot.lane.b32.xlu0 %v12668_v47, %s8535_s4  ;;  %5962 = vrot.lane.b32.xlu1 %v12556_v19, %s8534_s30 }
 0x8e4   :  { %5960 = vrot.lane.b32.xlu2 %v12539_v33, %s8534_s30  ;;  %5208 = vmatpush.msrb.mxu1 %v5157_v58  ;;  %v5158_v58 = vmul.f32 %v5150_v30, %v15943_v42  ;;  %v15945_v42 = vld [vmem:[#allocation18_spill] sm:$0xff] }
 0x8e5   :  { %8104 = vmatmul.msk.f32.vlgmr.msrb.gmra.mxu0 %vm4066_vm14, %v15936_v49  ;;  %v5286_v12 = vpop.permute.xlu0 %5285  ;;  %v13333_v48 = vpop.permute.xlu1 %5279 }
 0x8e6   :  { %8110 = vmatmul.msk.f32.vlgmr.msrb.gmra.mxu3 %vm4066_vm14, %v15936_v49  ;;  %8119 = vmatmul.msk.f32.gmra.mxu2 %vm4066_vm14, %v12995_v25  ;;  %v13342_v60 = vsel %vm5289_vm11, %v13301_v45, %v5286_v12  ;;  %v13344_v16 = vpop.permute.xlu2 %5275 }
 0x8e7   :  { %v5295_v7 = vsel %vm5289_vm11, %v13344_v16, %v13333_v48  ;;  %8146 = vmatmul.msk.f32.vlgmr.msrb.gmra.mxu1 %vm4066_vm14, %v13329_v43 }
 0x8e8   :  { %v5307_v49 = vmul.f32 %v5299_v0, %v5295_v7 }
 0x8ea   :  { %5353 = vmatpush.msra.mxu1 %v5307_v49 }
 0x8eb   :  { %6108 = vrot.lane.b32.xlu0 %v12556_v19, %s8535_s4  ;;  %6114 = vrot.lane.b32.xlu1 %v12713_v50, %s8535_s4 }
 0x8ec   :  { %6102 = vrot.lane.b32.xlu2 %v12486_v14, %s8535_s4 }
 0x8ed   :  { %8105 = vmatmul.msk.f32.gmra.mxu0 %vm4066_vm14, %v15939_v9  ;;  %v5274_v55 = vpop.permute.xlu0 %5273  ;;  %v4719_v6 = vpop.permute.xlu1 %4718 }
 0x8ee   :  { %8111 = vmatmul.msk.f32.gmra.mxu3 %vm4066_vm14, %v15939_v9  ;;  %8128 = vmatmul.msk.f32.vlgmr.msrb.gmra.mxu2 %vm4066_vm14, %v13082_v51  ;;  %v13389_v40 = vsel %vm5289_vm11, %v5286_v12, %v5274_v55  ;;  %v4722_v32 = vsel %vm4720_vm10, %v12924_v34, %v4719_v6  ;;  %v4728_v38 = vsel %vm4720_vm10, %v4719_v6, %v15944_v23  ;;  %v13397_v41 = vpop.permute.xlu2 %5431 }
 0x8ef   :  { %5230 = vmatpush.msrb.mxu2 %v5162_v17  ;;  %v4737_v9 = vmul.f32 %v4729_v8, %v4728_v38  ;;  %v4740_v7 = vmul.f32 %v4732_v5, %v4722_v32  ;;  %8147 = vmatmul.msk.f32.gmra.mxu1 %vm4066_vm14, %v13370_v15  ;;  %v4721_v12 = vsel %vm4720_vm10, %v12863_v1, %v13036_v10 }
 0x8f0   :  { %v4733_v34 = vmul.f32 %v4729_v8, %v4727_v56  ;;  %v4736_v49 = vmul.f32 %v4732_v5, %v4721_v12  ;;  %v13426_v56 = vpop.f32.mrf.mxu1  ;;  %v15946_v8 = vld [vmem:[#allocation34_spill] sm:$0xff]  ;;  %v15947_v12 = vld [vmem:[#allocation17_spill] sm:$0xff] }
 0x8f1   :  { %5231 = vmatpush.msrb.mxu2 %v5158_v58  ;;  %4761 = vmatpush.msra.mxu0 %v4737_v9 }
 0x8f2   :  { %4830 = vmatpush.msra.mxu3 %v4740_v7 }
 0x8f3   :  { %5829 = vrot.lane.b32.xlu0 %v12754_v63, %s8515_s22  ;;  %6106 = vrot.lane.b32.xlu1 %v12539_v33, %s8535_s4 }
 0x8f4   :  { %6110 = vrot.lane.b32.xlu2 %v12605_v13, %s8535_s4  ;;  %4762 = vmatpush.msra.mxu0 %v4733_v34 }
 0x8f5   :  { %4831 = vmatpush.msra.mxu3 %v4736_v49  ;;  %8114 = vmatmul.msk.f32.vlgmr.msra.gmra.mxu0 %vm4066_vm14, %v12957_v44  ;;  %v4865_v1 = vpop.permute.xlu0 %4864  ;;  %v5278_v10 = vpop.permute.xlu1 %5277  ;;  %v15948_v49 = vld [vmem:[#allocation32_spill] sm:$0xff] }
 0x8f6   :  { %8120 = vmatmul.msk.f32.vlgmr.msra.gmra.mxu3 %vm4066_vm14, %v12957_v44  ;;  %8129 = vmatmul.msk.f32.gmra.mxu2 %vm4066_vm14, %v13117_v52  ;;  %v4867_v54 = vsel %vm97_vm7, %v15932_v27, %v4865_v1  ;;  %v4873_v30 = vsel %vm97_vm7, %v4865_v1, %v13038_v46  ;;  %v13424_v36 = vpop.permute.xlu2 %5419  ;;  %v5294_v44 = vsel %vm5289_vm11, %v5274_v55, %v5278_v10  ;;  %v13441_v46 = vld [vmem:[%s14975_s1 + $0x30] sm:$0xff] }
 0x8f7   :  { %v4878_v17 = vmul.f32 %v4873_v30, %v15945_v42  ;;  %v4881_v5 = vmul.f32 %v4867_v54, %v15946_v8  ;;  %v4866_v27 = vsel %vm97_vm7, %v12973_v11, %v13034_v18  ;;  %v5303_v6 = vmul.f32 %v5299_v0, %v5294_v44 }
 0x8f8   :  { %v5300_v32 = vperm.slane %v13441_v46, 1  ;;  %v4874_v55 = vmul.f32 %v13071_v29, %v15945_v42  ;;  %v5293_v11 = vsel %vm5289_vm11, %v13333_v48, %v13259_v24  ;;  %v4877_v18 = vmul.f32 %v4866_v27, %v15946_v8  ;;  %v13463_v29 = vld [vmem:[%s14982_s8 + $0x90] sm:$0xff] }
 0x8f9   :  { %4902 = vmatpush.msrb.mxu0 %v4878_v17  ;;  %4971 = vmatpush.msrb.mxu3 %v4881_v5  ;;  %v5292_v0 = vsel %vm5289_vm11, %v5278_v10, %v13301_v45  ;;  %v13487_v10 = vpop.f32.mrf.mxu1  ;;  %v5446_v30 = vperm.slane %v13441_v46, 2  ;;  %v5445_v5 = vperm.slane %v13323_v20, 2  ;;  %vm7271_vm7 = vcmp.lt.s32.totalorder %v15926_v61, 95 }
 0x8fa   :  { %5354 = vmatpush.msra.mxu1 %v5303_v6  ;;  %v5308_v48 = vmul.f32 %v5300_v32, %v5293_v11  ;;  %v5304_v58 = vmul.f32 %v5300_v32, %v5292_v0 }
 0x8fb   :  { %6260 = vrot.lane.b32.xlu0 %v12713_v50, %s8512_s15  ;;  %6248 = vrot.lane.b32.xlu1 %v12486_v14, %s8512_s15 }
 0x8fc   :  { %6250 = vrot.lane.b32.xlu2 %v12516_v28, %s8512_s15  ;;  %4903 = vmatpush.msrb.mxu0 %v4874_v55 }
 0x8fd   :  { %4972 = vmatpush.msrb.mxu3 %v4877_v18  ;;  %8115 = vmatmul.msk.f32.gmra.mxu0 %vm4066_vm14, %v12995_v25  ;;  %v5426_v23 = vpop.permute.xlu0 %5425  ;;  %v13467_v38 = vpop.permute.xlu1 %5429 }
 0x8fe   :  { %8121 = vmatmul.msk.f32.gmra.mxu3 %vm4066_vm14, %v12995_v25  ;;  %8138 = vmatmul.msk.f32.vlgmr.msra.gmra.mxu2 %vm4066_vm14, %v13247_v21  ;;  %v5006_v45 = vpop.permute.xlu2 %5005  ;;  %v5007_v25 = vsel %vm118_vm6, %v13164_v62, %v13076_v53  ;;  %v13501_v53 = vld [vmem:[%s14982_s8 + $0x98] sm:$0xff] }
 0x8ff   :  { %5376 = vmatpush.msra.mxu2 %v5308_v48  ;;  %v5008_v9 = vsel %vm118_vm6, %v13100_v26, %v5006_v45  ;;  %v5014_v7 = vsel %vm118_vm6, %v5006_v45, %v13205_v2  ;;  %8156 = vmatmul.msk.f32.vlgmr.msra.gmra.mxu1 %vm4066_vm14, %v13463_v29  ;;  %v5015_v26 = vmul.f32 %v13108_v4, %v15947_v12  ;;  %vm5435_vm6 = vcmp.lt.s32.totalorder %v15926_v61, 2  ;;  %v13553_v48 = vld [vmem:[%s14982_s8 + $0xa0] sm:$0xff] }
 0x900   :  { %v5019_v34 = vmul.f32 %v5014_v7, %v15947_v12  ;;  %v5022_v1 = vmul.f32 %v5008_v9, %v15948_v49  ;;  %v5018_v2 = vmul.f32 %v5007_v25, %v15948_v49  ;;  %v5439_v42 = vsel %vm5435_vm6, %v5426_v23, %v13467_v38  ;;  %v15952_v49 = vld [vmem:[#allocation27_spill] sm:$0xff] }
 0x901   :  { %5377 = vmatpush.msra.mxu2 %v5304_v58  ;;  %v13518_v17 = vpop.f32.mrf.mxu1  ;;  %v5454_v8 = vmul.f32 %v5446_v30, %v5439_v42 }
 0x902   :  { %5043 = vmatpush.msra.mxu0 %v5019_v34  ;;  %5112 = vmatpush.msra.mxu3 %v5022_v1  ;;  %v13587_v34 = vld [vmem:[%s14982_s8 + $0xa8] sm:$0xff] }
 0x903   :  { %6252 = vrot.lane.b32.xlu0 %v12539_v33, %s8512_s15  ;;  %6256 = vrot.lane.b32.xlu1 %v12605_v13, %s8512_s15 }
 0x904   :  { %6258 = vrot.lane.b32.xlu2 %v12668_v47, %s8512_s15  ;;  %5044 = vmatpush.msra.mxu0 %v5015_v26 }
 0x905   :  { %5113 = vmatpush.msra.mxu3 %v5018_v2  ;;  %8124 = vmatmul.msk.f32.vlgmr.msrb.gmra.mxu0 %vm4066_vm14, %v13082_v51  ;;  %v5424_v4 = vpop.permute.xlu0 %5423  ;;  %v13505_v62 = vpop.permute.xlu1 %5427 }
 0x906   :  { %8130 = vmatmul.msk.f32.vlgmr.msrb.gmra.mxu3 %vm4066_vm14, %v13082_v51  ;;  %8139 = vmatmul.msk.f32.gmra.mxu2 %vm4066_vm14, %v13282_v35  ;;  %v5572_v54 = vpop.permute.xlu2 %5571  ;;  %v5438_v51 = vsel %vm5435_vm6, %v5424_v4, %v13505_v62  ;;  %v5440_v55 = vsel %vm5435_vm6, %v13424_v36, %v5424_v4 }
 0x907   :  { %8157 = vmatmul.msk.f32.gmra.mxu1 %vm4066_vm14, %v13501_v53  ;;  %v5450_v11 = vmul.f32 %v5446_v30, %v5438_v51 }
 0x90b   :  { %6389 = vrot.lane.b32.xlu0 %v12486_v14, %s8513_s16  ;;  %6391 = vrot.lane.b32.xlu1 %v12516_v28, %s8513_s16 }
 0x90c   :  { %6254 = vrot.lane.b32.xlu2 %v12556_v19, %s8512_s15 }
 0x90d   :  { %8125 = vmatmul.msk.f32.gmra.mxu0 %vm4066_vm14, %v13117_v52  ;;  %v13532_v44 = vpop.permute.xlu0 %5575  ;;  %v13534_v27 = vpop.permute.xlu1 %5421 }
 0x90e   :  { %8131 = vmatmul.msk.f32.gmra.mxu3 %vm4066_vm14, %v13117_v52  ;;  %8148 = vmatmul.msk.f32.vlgmr.msrb.gmra.mxu2 %vm4066_vm14, %v13329_v43  ;;  %v5441_v6 = vsel %vm5435_vm6, %v13534_v27, %v5426_v23  ;;  %v13543_v32 = vpop.permute.xlu2 %5569  ;;  %v5449_v52 = vmul.f32 %v5445_v5, %v5440_v55  ;;  %v13561_v23 = vpop.f32.mrf.mxu1  ;;  %v5584_v25 = vsel %vm160_vm5, %v5572_v54, %v13532_v44  ;;  %v15954_v55 = vld [vmem:[#allocation16_spill] sm:$0xff] }
 0x90f   :  { %5522 = vmatpush.msrb.mxu2 %v5454_v8  ;;  %v5453_v18 = vmul.f32 %v5445_v5, %v5441_v6  ;;  %v5595_v1 = vmul.f32 %v5584_v25, %v15952_v49  ;;  %v15953_v5 = vld [vmem:[#allocation7_spill] sm:$0xff] }
 0x910   :  { %v13548_v0 = vpop.f32.mrf.mxu2 }
 0x911   :  { %15949 = vst [vmem:[#allocation72_spill] sm:$0xff] %v13548_v0  ;;  %5523 = vmatpush.msrb.mxu2 %v5450_v11  ;;  %5499 = vmatpush.msrb.mxu1 %v5453_v18 }
 0x913   :  { %6397 = vrot.lane.b32.xlu0 %v12605_v13, %s8513_s16  ;;  %6399 = vrot.lane.b32.xlu1 %v12668_v47, %s8513_s16 }
 0x914   :  { %5970 = vrot.lane.b32.xlu2 %v12754_v63, %s8534_s30  ;;  %5500 = vmatpush.msrb.mxu1 %v5449_v52  ;;  %s8539_s30 = smov 96  }
 0x915   :  { %8134 = vmatmul.msk.f32.vlgmr.msra.gmra.mxu0 %vm4066_vm14, %v13247_v21  ;;  %v13565_v45 = vpop.permute.xlu0 %5573  ;;  %v13567_v58 = vpop.permute.xlu1 %5577  ;;  %8166 = vmatmul.msk.f32.vlgmr.msrb.gmra.mxu1 %vm4066_vm14, %v13553_v48 }
 0x916   :  { %8140 = vmatmul.msk.f32.vlgmr.msra.gmra.mxu3 %vm4066_vm14, %v13247_v21  ;;  %8149 = vmatmul.msk.f32.gmra.mxu2 %vm4066_vm14, %v13370_v15  ;;  %v13575_v9 = vpop.permute.xlu2 %5817  ;;  %v5583_v21 = vsel %vm160_vm5, %v13543_v32, %v13565_v45  ;;  %v13621_v8 = vpop.f32.mrf.mxu1 }
 0x917   :  { %v13582_v12 = vpop.f32.mrf.mxu0 }
 0x918   :  { %v13577_v7 = vpop.f32.mrf.mxu2  ;;  %15951 = vst [vmem:[#allocation65_spill] sm:$0xff] %v13582_v12 }
 0x919   :  { %15950 = vst [vmem:[#allocation38_spill] sm:$0xff] %v13577_v7 }
 0x91b   :  { %6532 = vrot.lane.b32.xlu0 %v12516_v28, %s8514_s17  ;;  %6116 = vrot.lane.b32.xlu1 %v12754_v63, %s8535_s4 }
 0x91c   :  { %6401 = vrot.lane.b32.xlu2 %v12713_v50, %s8513_s16 }
 0x91d   :  { %8135 = vmatmul.msk.f32.gmra.mxu0 %vm4066_vm14, %v13282_v35  ;;  %v13602_v26 = vpop.permute.xlu0 %5567  ;;  %v5147_v2 = vpop.permute.xlu1 %5146  ;;  %8167 = vmatmul.msk.f32.gmra.mxu1 %vm4066_vm14, %v13587_v34 }
 0x91e   :  { %8141 = vmatmul.msk.f32.gmra.mxu3 %vm4066_vm14, %v13282_v35  ;;  %8158 = vmatmul.msk.f32.vlgmr.msra.gmra.mxu2 %vm4066_vm14, %v13463_v29  ;;  %v5586_v4 = vsel %vm160_vm5, %v13602_v26, %v5572_v54  ;;  %v5149_v30 = vsel %vm139_vm4, %v13203_v37, %v5147_v2  ;;  %v5155_v42 = vsel %vm139_vm4, %v5147_v2, %v13287_v59  ;;  %v13619_v51 = vpop.permute.xlu2 %5825  ;;  %v15955_v54 = vld [vmem:[#allocation30_spill] sm:$0xff]  ;;  %v13631_v59 = vpop.f32.mrf.mxu3  ;;  %vm5972_vm4 = vcmp.lt.s32.totalorder %v15926_v61, 126 }
 0x91f   :  { %v5591_v35 = vmul.f32 %v5583_v21, %v15952_v49  ;;  %5663 = vmatpush.msra.mxu2 %v5595_v1  ;;  %v5594_v6 = vmul.f32 %v5586_v4, %v15953_v5  ;;  %v5160_v11 = vmul.f32 %v5155_v42, %v15954_v55  ;;  %v5163_v18 = vmul.f32 %v5149_v30, %v15955_v54  ;;  %v13641_v21 = vpop.f32.mrf.mxu0 }
 0x920   :  { %v13627_v52 = vpop.f32.mrf.mxu2  ;;  %v5156_v37 = vmul.f32 %v13299_v39, %v15954_v55  ;;  %v5159_v25 = vmul.f32 %v13257_v31, %v15955_v54  ;;  %15957 = vst [vmem:[#allocation63_spill] sm:$0xff] %v13641_v21  ;;  %v13646_v39 = vld [vmem:[%s14975_s1 + $0x38] sm:$0xff]  ;;  %v13652_v31 = vld [vmem:[%s14975_s1 + $0x20] sm:$0xff] }
 0x921   :  { %15956 = vst [vmem:[#allocation68_spill] sm:$0xff] %v13627_v52  ;;  %5664 = vmatpush.msra.mxu2 %v5591_v35  ;;  %5184 = vmatpush.msrb.mxu0 %v5160_v11  ;;  %v5301_v49 = vperm.slane %v13646_v39, 1  ;;  %v5298_v1 = vperm.slane %v13652_v31, 1  ;;  %v15969_v52 = vld [vmem:[#allocation15_spill] sm:$0xff] }
 0x922   :  { %5253 = vmatpush.msrb.mxu3 %v5163_v18  ;;  %5640 = vmatpush.msra.mxu1 %v5594_v6  ;;  %v13678_v18 = vpop.f32.mrf.mxu1 }
 0x923   :  { %6262 = vrot.lane.b32.xlu0 %v12754_v63, %s8512_s15  ;;  %6395 = vrot.lane.b32.xlu1 %v12556_v19, %s8513_s16 }
 0x924   :  { %6393 = vrot.lane.b32.xlu2 %v12539_v33, %s8513_s16  ;;  %5185 = vmatpush.msrb.mxu0 %v5156_v37  ;;  %v13702_v37 = vld [vmem:[%s14982_s8 + $0xb0] sm:$0xff] }
 0x925   :  { %5254 = vmatpush.msrb.mxu3 %v5159_v25  ;;  %8144 = vmatmul.msk.f32.vlgmr.msrb.gmra.mxu0 %vm4066_vm14, %v13329_v43  ;;  %v5288_v2 = vpop.permute.xlu0 %5287  ;;  %v13657_v4 = vpop.permute.xlu1 %5565  ;;  %v5444_v25 = vperm.slane %v13652_v31, 2 }
 0x926   :  { %8150 = vmatmul.msk.f32.vlgmr.msrb.gmra.mxu3 %vm4066_vm14, %v13329_v43  ;;  %8159 = vmatmul.msk.f32.gmra.mxu2 %vm4066_vm14, %v13501_v53  ;;  %v5291_v30 = vsel %vm5289_vm11, %v13259_v24, %v5288_v2  ;;  %v5297_v42 = vsel %vm5289_vm11, %v5288_v2, %v13344_v16  ;;  %v5585_v35 = vsel %vm160_vm5, %v13657_v4, %v13543_v32  ;;  %v13673_v6 = vpop.permute.xlu2 %5821 }
 0x927   :  { %v5306_v55 = vmul.f32 %v5298_v1, %v5297_v42  ;;  %v5309_v43 = vmul.f32 %v5301_v49, %v5291_v30  ;;  %v5590_v11 = vmul.f32 %v5585_v35, %v15953_v5  ;;  %v5305_v24 = vmul.f32 %v5301_v49, %v13342_v60  ;;  %v13693_v5 = vpop.f32.mrf.mxu3  ;;  %v13714_v30 = vpop.f32.mrf.mxu0  ;;  %v15960_v42 = vld [vmem:[#allocation6_spill] sm:$0xff] }
 0x928   :  { %v13676_v54 = vpop.f32.mrf.mxu2  ;;  %v5302_v16 = vmul.f32 %v5298_v1, %v13389_v40  ;;  %v5834_v32 = vsel %vm181_vm3, %v13673_v6, %v13619_v51  ;;  %v5442_v49 = vsel %vm5435_vm6, %v13397_v41, %v13424_v36  ;;  %v5447_v1 = vperm.slane %v13646_v39, 2  ;;  %15959 = vst [vmem:[#allocation121_spill] sm:$0xff] %v13714_v30 }
 0x929   :  { %15958 = vst [vmem:[#allocation105_spill] sm:$0xff] %v13676_v54  ;;  %5330 = vmatpush.msra.mxu0 %v5306_v55  ;;  %5399 = vmatpush.msra.mxu3 %v5309_v43  ;;  %v5844_v35 = vmul.f32 %v5834_v32, %v15960_v42  ;;  %v13751_v32 = vld [vmem:[%s14982_s8 + $0xb8] sm:$0xff] }
 0x92a   :  { %5641 = vmatpush.msra.mxu1 %v5590_v11 }
 0x92b   :  { %6540 = vrot.lane.b32.xlu0 %v12668_v47, %s8514_s17  ;;  %6542 = vrot.lane.b32.xlu1 %v12713_v50, %s8514_s17 }
 0x92c   :  { %5749 = vmatpush.msrb.mxu1 %v12556_v19  ;;  %6530 = vrot.lane.b32.xlu2 %v12486_v14, %s8514_s17 }
 0x92d   :  { %5331 = vmatpush.msra.mxu0 %v5302_v16  ;;  %5400 = vmatpush.msra.mxu3 %v5305_v24  ;;  %v13695_v60 = vpop.permute.xlu0 %5827  ;;  %v13697_v40 = vpop.permute.xlu1 %5815 }
 0x92e   :  { %8145 = vmatmul.msk.f32.gmra.mxu0 %vm4066_vm14, %v13370_v15  ;;  %8151 = vmatmul.msk.f32.gmra.mxu3 %vm4066_vm14, %v13370_v15  ;;  %v5434_v2 = vpop.permute.xlu2 %5433  ;;  %v5436_v15 = vsel %vm5435_vm6, %v13505_v62, %v13397_v41 }
 0x92f   :  { %8168 = vmatmul.msk.f32.vlgmr.msrb.gmra.mxu2 %vm4066_vm14, %v13553_v48  ;;  %5750 = vmatpush.msrb.mxu1 %v12539_v33  ;;  %v5437_v36 = vsel %vm5435_vm6, %v13467_v38, %v5434_v2  ;;  %v5443_v55 = vsel %vm5435_vm6, %v5434_v2, %v13534_v27  ;;  %v13736_v38 = vpop.f32.mrf.mxu1  ;;  %v5448_v27 = vmul.f32 %v5444_v25, %v5442_v49  ;;  %v4257_v2 = vpop.f32.mrf.mxu3 }
 0x930   :  { %5772 = vmatpush.msrb.mxu2 %v12668_v47  ;;  %8176 = vmatmul.msk.f32.vlgmr.msra.gmra.mxu1 %vm4066_vm14, %v13702_v37  ;;  %v5452_v43 = vmul.f32 %v5444_v25, %v5443_v55  ;;  %v5455_v11 = vmul.f32 %v5447_v1, %v5437_v36  ;;  %v13733_v24 = vpop.f32.mrf.mxu2  ;;  %v5451_v16 = vmul.f32 %v5447_v1, %v5436_v15  ;;  %v13787_v15 = vld [vmem:[%s14982_s8 + $0xc0] sm:$0xff] }
 0x931   :  { %15961 = vst [vmem:[#allocation69_spill] sm:$0xff] %v13733_v24  ;;  %5890 = vmatpush.msra.mxu1 %v5844_v35  ;;  %v13766_v35 = vpop.f32.mrf.mxu0  ;;  %v4258_v21 = vadd.f32 %v4257_v2, %v13631_v59  ;;  %v13846_v2 = vld [vmem:[%s14982_s8 + $0xd0] sm:$0xff] }
 0x932   :  { %5773 = vmatpush.msrb.mxu2 %v12605_v13  ;;  %5476 = vmatpush.msrb.mxu0 %v5452_v43  ;;  %15962 = vst [vmem:[#allocation57_spill] sm:$0xff] %v13766_v35 }
 0x933   :  { %5545 = vmatpush.msrb.mxu3 %v5455_v11  ;;  %6536 = vrot.lane.b32.xlu0 %v12556_v19, %s8514_s17 }
 0x934   :  { %6534 = vrot.lane.b32.xlu1 %v12539_v33, %s8514_s17  ;;  %6538 = vrot.lane.b32.xlu2 %v12605_v13, %s8514_s17 }
 0x935   :  { %5477 = vmatpush.msrb.mxu0 %v5448_v27  ;;  %5546 = vmatpush.msrb.mxu3 %v5451_v16  ;;  %v13744_v41 = vpop.permute.xlu0 %5819  ;;  %v13746_v62 = vpop.permute.xlu1 %5823 }
 0x936   :  { %8154 = vmatmul.msk.f32.vlgmr.msra.gmra.mxu0 %vm4066_vm14, %v13463_v29  ;;  %8160 = vmatmul.msk.f32.vlgmr.msra.gmra.mxu3 %vm4066_vm14, %v13463_v29  ;;  %v5833_v25 = vsel %vm181_vm3, %v13744_v41, %v13746_v62  ;;  %v13761_v49 = vpop.permute.xlu2 %5968 }
 0x937   :  { %v5840_v1 = vmul.f32 %v5833_v25, %v15960_v42  ;;  %8169 = vmatmul.msk.f32.gmra.mxu2 %vm4066_vm14, %v13587_v34  ;;  %v13778_v29 = vpop.f32.mrf.mxu1  ;;  %v4260_v27 = vpop.f32.mrf.mxu3 }
 0x938   :  { %8177 = vmatmul.msk.f32.gmra.mxu1 %vm4066_vm14, %v13751_v32  ;;  %v13770_v36 = vpop.f32.mrf.mxu2  ;;  %15964 = vst [vmem:[#allocation62_spill] sm:$0xff] %v13778_v29 }
 0x939   :  { %15963 = vst [vmem:[#allocation36_spill] sm:$0xff] %v13770_v36  ;;  %5891 = vmatpush.msra.mxu1 %v5840_v1  ;;  %v13816_v1 = vld [vmem:[%s14982_s8 + $0xc8] sm:$0xff]  ;;  %v15970_v36 = vld [vmem:[#allocation28_spill] sm:$0xff] }
 0x93b   :  { %6683 = vrot.lane.b32.xlu0 %v12713_v50, %s8536_s23 }
 0x93c   :  { %6671 = vrot.lane.b32.xlu1 %v12486_v14, %s8536_s23  ;;  %6673 = vrot.lane.b32.xlu2 %v12516_v28, %s8536_s23 }
 0x93d   :  { %v13780_v42 = vpop.permute.xlu0 %5956  ;;  %v13782_v55 = vpop.permute.xlu1 %5958 }
 0x93e   :  { %8155 = vmatmul.msk.f32.gmra.mxu0 %vm4066_vm14, %v13501_v53  ;;  %8161 = vmatmul.msk.f32.gmra.mxu3 %vm4066_vm14, %v13501_v53  ;;  %v13793_v43 = vpop.permute.xlu2 %5960 }
 0x93f   :  { %8178 = vmatmul.msk.f32.vlgmr.msra.gmra.mxu2 %vm4066_vm14, %v13702_v37  ;;  %v13824_v35 = vpop.f32.mrf.mxu1 }
 0x940   :  { %8186 = vmatmul.msk.f32.vlgmr.msrb.gmra.mxu1 %vm4066_vm14, %v13787_v15  ;;  %v13799_v11 = vpop.f32.mrf.mxu2 }
 0x941   :  { %15965 = vst [vmem:[#allocation84_spill] sm:$0xff] %v13799_v11 }
 0x942   :  { %v13801_v16 = vpop.f32.mrf.mxu0 }
 0x943   :  { %15966 = vst [vmem:[#allocation53_spill] sm:$0xff] %v13801_v16  ;;  %6675 = vrot.lane.b32.xlu0 %v12539_v33, %s8536_s23 }
 0x944   :  { %6679 = vrot.lane.b32.xlu1 %v12605_v13, %s8536_s23  ;;  %6403 = vrot.lane.b32.xlu2 %v12754_v63, %s8513_s16  ;;  %s8537_s16 = smov 98  }
 0x945   :  { %v13809_v53 = vpop.permute.xlu0 %5964  ;;  %v13811_v25 = vpop.permute.xlu1 %5966 }
 0x946   :  { %8164 = vmatmul.msk.f32.vlgmr.msrb.gmra.mxu0 %vm4066_vm14, %v13553_v48  ;;  %8170 = vmatmul.msk.f32.vlgmr.msrb.gmra.mxu3 %vm4066_vm14, %v13553_v48  ;;  %v13822_v16 = vpop.permute.xlu2 %6102 }
 0x947   :  { %8179 = vmatmul.msk.f32.gmra.mxu2 %vm4066_vm14, %v13751_v32 }
 0x948   :  { %8187 = vmatmul.msk.f32.gmra.mxu1 %vm4066_vm14, %v13816_v1 }
 0x949   :  { %v4395_v30 = vpop.f32.mrf.mxu3  ;;  %v13831_v12 = vpop.f32.mrf.mxu2 }
 0x94a   :  { %15967 = vst [vmem:[#allocation97_spill] sm:$0xff] %v13831_v12  ;;  %v4404_v11 = vadd.f32 %v4395_v30, %v4258_v21  ;;  %v13833_v24 = vpop.f32.mrf.mxu0  ;;  %v5587_v21 = vsel %vm160_vm5, %v13567_v58, %v13657_v4 }
 0x94b   :  { %15968 = vst [vmem:[#allocation126_spill] sm:$0xff] %v13833_v24  ;;  %6817 = vrot.lane.b32.xlu0 %v12486_v14, %s8537_s16 }
 0x94c   :  { %6544 = vrot.lane.b32.xlu1 %v12754_v63, %s8514_s17  ;;  %6681 = vrot.lane.b32.xlu2 %v12668_v47, %s8536_s23 }
 0x94d   :  { %v13841_v48 = vpop.permute.xlu0 %6104  ;;  %v5580_v59 = vpop.permute.xlu1 %5579 }
 0x94e   :  { %8165 = vmatmul.msk.f32.gmra.mxu0 %vm4066_vm14, %v13587_v34  ;;  %8171 = vmatmul.msk.f32.gmra.mxu3 %vm4066_vm14, %v13587_v34  ;;  %v5582_v30 = vsel %vm160_vm5, %v13532_v44, %v5580_v59  ;;  %v5588_v24 = vsel %vm160_vm5, %v5580_v59, %v13602_v26  ;;  %v13862_v12 = vpop.permute.xlu2 %6110  ;;  %v5581_v34 = vsel %vm160_vm5, %v13565_v45, %v13567_v58  ;;  %v13875_v26 = vpop.f32.mrf.mxu1  ;;  %v5982_v58 = vperm.slane %v13323_v20, 6 }
 0x94f   :  { %v5593_v0 = vmul.f32 %v5588_v24, %v15969_v52  ;;  %v5596_v4 = vmul.f32 %v5582_v30, %v15970_v36  ;;  %8188 = vmatmul.msk.f32.vlgmr.msrb.gmra.mxu2 %vm4066_vm14, %v13787_v15  ;;  %v4261_v44 = vadd.f32 %v4260_v27, %v13693_v5  ;;  %15971 = vst [vmem:[#allocation108_spill] sm:$0xff] %v13875_v26  ;;  %v13905_v5 = vld [vmem:[%s14982_s8 + $0xd8] sm:$0xff]  ;;  %vm6118_vm5 = vcmp.lt.s32.totalorder %v15926_v61, 114 }
 0x950   :  { %8196 = vmatmul.msk.f32.vlgmr.msra.gmra.mxu1 %vm4066_vm14, %v13846_v2  ;;  %v5589_v59 = vmul.f32 %v5587_v21, %v15969_v52  ;;  %v5592_v29 = vmul.f32 %v5581_v34, %v15970_v36  ;;  %v5836_v45 = vsel %vm181_vm3, %v13575_v9, %v13673_v6  ;;  %v15974_v36 = vld [vmem:[#allocation14_spill] sm:$0xff] }
 0x951   :  { %v4398_v24 = vpop.f32.mrf.mxu3  ;;  %5617 = vmatpush.msra.mxu0 %v5593_v0  ;;  %5686 = vmatpush.msra.mxu3 %v5596_v4  ;;  %v13878_v30 = vpop.f32.mrf.mxu2  ;;  %v5835_v0 = vsel %vm181_vm3, %v13697_v40, %v13744_v41  ;;  %v5843_v27 = vmul.f32 %v5836_v45, %v15974_v36  ;;  %v5975_v41 = vsel %vm5972_vm4, %v13793_v43, %v13809_v53 }
 0x952   :  { %15972 = vst [vmem:[#allocation120_spill] sm:$0xff] %v13878_v30  ;;  %v4408_v54 = vadd.f32 %v4398_v24, %v4261_v44  ;;  %v13880_v7 = vpop.f32.mrf.mxu0  ;;  %v5839_v34 = vmul.f32 %v5835_v0, %v15974_v36  ;;  %v5986_v44 = vmul.f32 %v5982_v58, %v5975_v41  ;;  %v6128_v0 = vperm.slane %v13323_v20, 7  ;;  %v13950_v36 = vld [vmem:[%s14982_s8 + $0xe0] sm:$0xff] }
 0x953   :  { %15973 = vst [vmem:[#allocation87_spill] sm:$0xff] %v13880_v7  ;;  %6685 = vrot.lane.b32.xlu0 %v12754_v63, %s8536_s23  ;;  %5618 = vmatpush.msra.mxu0 %v5589_v59 }
 0x954   :  { %6819 = vrot.lane.b32.xlu1 %v12516_v28, %s8537_s16  ;;  %6677 = vrot.lane.b32.xlu2 %v12556_v19, %s8536_s23 }
 0x955   :  { %5687 = vmatpush.msra.mxu3 %v5592_v29  ;;  %5726 = vmatpush.msrb.mxu0 %v12516_v28  ;;  %v13900_v52 = vpop.permute.xlu0 %6112  ;;  %v5963_v6 = vpop.permute.xlu1 %5962 }
 0x956   :  { %8174 = vmatmul.msk.f32.vlgmr.msra.gmra.mxu0 %vm4066_vm14, %v13702_v37  ;;  %8180 = vmatmul.msk.f32.vlgmr.msra.gmra.mxu3 %vm4066_vm14, %v13702_v37  ;;  %v5976_v29 = vsel %vm5972_vm4, %v5963_v6, %v13811_v25  ;;  %v13919_v21 = vpop.permute.xlu2 %6250 }
 0x957   :  { %5795 = vmatpush.msrb.mxu3 %v12754_v63  ;;  %v5990_v4 = vmul.f32 %v5982_v58, %v5976_v29  ;;  %5727 = vmatpush.msrb.mxu0 %v12486_v14  ;;  %v13933_v29 = vpop.f32.mrf.mxu1 }
 0x958   :  { %8197 = vmatmul.msk.f32.gmra.mxu1 %vm4066_vm14, %v13905_v5  ;;  %8189 = vmatmul.msk.f32.gmra.mxu2 %vm4066_vm14, %v13816_v1  ;;  %15977 = vst [vmem:[#allocation89_spill] sm:$0xff] %v13933_v29 }
 0x959   :  { %5867 = vmatpush.msra.mxu0 %v5843_v27  ;;  %5796 = vmatpush.msrb.mxu3 %v12713_v50  ;;  %v4541_v37 = vpop.f32.mrf.mxu3  ;;  %v13927_v59 = vpop.f32.mrf.mxu2 }
 0x95a   :  { %6036 = vmatpush.msrb.mxu1 %v5990_v4  ;;  %15975 = vst [vmem:[#allocation103_spill] sm:$0xff] %v13927_v59  ;;  %v4550_v24 = vadd.f32 %v4541_v37, %v4404_v11  ;;  %v13929_v45 = vpop.f32.mrf.mxu0  ;;  %v15981_v59 = vld [vmem:[#allocation25_spill] sm:$0xff] }
 0x95b   :  { %15976 = vst [vmem:[#allocation115_spill] sm:$0xff] %v13929_v45  ;;  %5868 = vmatpush.msra.mxu0 %v5839_v34  ;;  %6825 = vrot.lane.b32.xlu0 %v12605_v13, %s8537_s16  ;;  %v5981_v45 = vperm.slane %v13652_v31, 6 }
 0x95c   :  { %6037 = vmatpush.msrb.mxu1 %v5986_v44  ;;  %6827 = vrot.lane.b32.xlu1 %v12668_v47, %s8537_s16  ;;  %v5978_v44 = vsel %vm5972_vm4, %v13782_v55, %v5963_v6 }
 0x95d   :  { %6829 = vrot.lane.b32.xlu2 %v12713_v50, %s8537_s16  ;;  %v13943_v11 = vpop.permute.xlu0 %6108  ;;  %v13945_v58 = vpop.permute.xlu1 %6114 }
 0x95e   :  { %8175 = vmatmul.msk.f32.gmra.mxu0 %vm4066_vm14, %v13751_v32  ;;  %8181 = vmatmul.msk.f32.gmra.mxu3 %vm4066_vm14, %v13751_v32  ;;  %v6122_v20 = vsel %vm6118_vm5, %v13943_v11, %v13900_v52  ;;  %v13960_v27 = vpop.permute.xlu2 %6258 }
 0x95f   :  { %v6136_v41 = vmul.f32 %v6128_v0, %v6122_v20  ;;  %v13973_v7 = vpop.f32.mrf.mxu1  ;;  %v5977_v20 = vsel %vm5972_vm4, %v13780_v42, %v13793_v43 }
 0x960   :  { %8206 = vmatmul.msk.f32.vlgmr.msrb.gmra.mxu1 %vm4066_vm14, %v13950_v36  ;;  %15980 = vst [vmem:[#allocation113_spill] sm:$0xff] %v13973_v7  ;;  %v5985_v30 = vmul.f32 %v5981_v45, %v5977_v20  ;;  %v15983_v20 = vld [vmem:[#allocation5_spill] sm:$0xff] }
 0x961   :  { %v4544_v4 = vpop.f32.mrf.mxu3  ;;  %6182 = vmatpush.msra.mxu1 %v6136_v41  ;;  %v13964_v34 = vpop.f32.mrf.mxu2 }
 0x962   :  { %15978 = vst [vmem:[#allocation42_spill] sm:$0xff] %v13964_v34  ;;  %v13969_v32 = vadd.f32 %v4544_v4, %v4408_v54  ;;  %v13971_v37 = vpop.f32.mrf.mxu0  ;;  %v5989_v54 = vmul.f32 %v5981_v45, %v5978_v44  ;;  %v13991_v4 = vld [vmem:[%s14982_s8 + $0xe8] sm:$0xff] }
 0x963   :  { %15979 = vst [vmem:[#allocation35_spill] sm:$0xff] %v13971_v37  ;;  %6965 = vrot.lane.b32.xlu0 %v12516_v28, %s8538_s0 }
 0x964   :  { %6823 = vrot.lane.b32.xlu1 %v12556_v19, %s8537_s16 }
 0x965   :  { %6821 = vrot.lane.b32.xlu2 %v12539_v33, %s8537_s16  ;;  %v5830_v6 = vpop.permute.xlu0 %5829  ;;  %v13986_v41 = vpop.permute.xlu1 %6106 }
 0x966   :  { %8184 = vmatmul.msk.f32.vlgmr.msrb.gmra.mxu0 %vm4066_vm14, %v13787_v15  ;;  %8190 = vmatmul.msk.f32.vlgmr.msrb.gmra.mxu3 %vm4066_vm14, %v13787_v15  ;;  %v5832_v43 = vsel %vm181_vm3, %v13619_v51, %v5830_v6  ;;  %v5838_v44 = vsel %vm181_vm3, %v5830_v6, %v13575_v9  ;;  %v6121_v37 = vsel %vm6118_vm5, %v13986_v41, %v13862_v12  ;;  %v14007_v34 = vpop.permute.xlu2 %6254  ;;  %v15982_v15 = vld [vmem:[#allocation26_spill] sm:$0xff] }
 0x967   :  { %6013 = vmatpush.msrb.mxu0 %v5989_v54  ;;  %v5845_v7 = vmul.f32 %v5832_v43, %v15981_v59  ;;  %v5846_v26 = vmul.f32 %v5838_v44, %v15982_v15  ;;  %v6132_v29 = vmul.f32 %v6128_v0, %v6121_v37  ;;  %v5837_v51 = vsel %vm181_vm3, %v13695_v60, %v13697_v40 }
 0x968   :  { %v5831_v9 = vsel %vm181_vm3, %v13746_v62, %v13695_v60  ;;  %v6267_v45 = vsel %vm202_vm2, %v14007_v34, %v13960_v27  ;;  %8207 = vmatmul.msk.f32.gmra.mxu1 %vm4066_vm14, %v13991_v4  ;;  %v5842_v60 = vmul.f32 %v5837_v51, %v15982_v15  ;;  %v5979_v51 = vsel %vm5972_vm4, %v13761_v49, %v13780_v42 }
 0x969   :  { %v6277_v0 = vmul.f32 %v6267_v45, %v15983_v20  ;;  %6014 = vmatpush.msrb.mxu0 %v5985_v30  ;;  %v4687_v37 = vpop.f32.mrf.mxu3  ;;  %5913 = vmatpush.msra.mxu2 %v5845_v7  ;;  %v14026_v54 = vpop.f32.mrf.mxu2  ;;  %v5841_v62 = vmul.f32 %v5831_v9, %v15981_v59  ;;  %v14049_v59 = vld [vmem:[%s14982_s8 + $0xf0] sm:$0xff]  ;;  %v6124_v42 = vsel %vm6118_vm5, %v13841_v48, %v13943_v11  ;;  %vm7125_vm3 = vcmp.lt.s32.totalorder %v15926_v61, 96 }
 0x96a   :  { %v14028_v40 = vadd.f32 %v4687_v37, %v4550_v24  ;;  %v14030_v6 = vpop.f32.mrf.mxu0  ;;  %5936 = vmatpush.msra.mxu3 %v5846_v26  ;;  %6183 = vmatpush.msra.mxu1 %v6132_v29  ;;  %v14040_v7 = vpop.f32.mrf.mxu1  ;;  %v5984_v24 = vperm.slane %v13646_v39, 6  ;;  %v5983_v29 = vperm.slane %v13441_v46, 6 }
 0x96b   :  { %15984 = vst [vmem:[#allocation52_spill] sm:$0xff] %v14030_v6  ;;  %6973 = vrot.lane.b32.xlu0 %v12668_v47, %s8538_s0  ;;  %5914 = vmatpush.msra.mxu2 %v5841_v62 }
 0x96c   :  { %6323 = vmatpush.msrb.mxu1 %v6277_v0  ;;  %6975 = vrot.lane.b32.xlu1 %v12713_v50, %s8538_s0 }
 0x96d   :  { %6963 = vrot.lane.b32.xlu2 %v12486_v14, %s8538_s0  ;;  %5937 = vmatpush.msra.mxu3 %v5842_v60  ;;  %v14042_v26 = vpop.permute.xlu0 %6260  ;;  %v14044_v30 = vpop.permute.xlu1 %6248 }
 0x96e   :  { %8185 = vmatmul.msk.f32.gmra.mxu0 %vm4066_vm14, %v13816_v1  ;;  %8191 = vmatmul.msk.f32.gmra.mxu3 %vm4066_vm14, %v13816_v1  ;;  %v5971_v43 = vpop.permute.xlu2 %5970  ;;  %v5973_v1 = vsel %vm5972_vm4, %v13809_v53, %v13761_v49  ;;  %v5988_v49 = vmul.f32 %v5984_v24, %v5979_v51 }
 0x96f   :  { %v5974_v44 = vsel %vm5972_vm4, %v13811_v25, %v5971_v43  ;;  %v5980_v15 = vsel %vm5972_vm4, %v5971_v43, %v13782_v55  ;;  %8198 = vmatmul.msk.f32.vlgmr.msra.gmra.mxu2 %vm4066_vm14, %v13846_v2  ;;  %v6127_v55 = vperm.slane %v13652_v31, 7  ;;  %v5987_v53 = vmul.f32 %v5983_v29, %v5973_v1 }
 0x970   :  { %v5991_v9 = vmul.f32 %v5983_v29, %v5974_v44  ;;  %v5992_v45 = vmul.f32 %v5984_v24, %v5980_v15  ;;  %8216 = vmatmul.msk.f32.vlgmr.msra.gmra.mxu1 %vm4066_vm14, %v14049_v59  ;;  %v6123_v31 = vsel %vm6118_vm5, %v13822_v16, %v13986_v41  ;;  %v14100_v24 = vld [vmem:[%s14982_s8 + $0xf8] sm:$0xff] }
 0x971   :  { %v4690_v25 = vpop.f32.mrf.mxu3  ;;  %v14076_v0 = vpop.f32.mrf.mxu2  ;;  %v6135_v11 = vmul.f32 %v6127_v55, %v6124_v42  ;;  %v6131_v44 = vmul.f32 %v6127_v55, %v6123_v31 }
 0x972   :  { %15985 = vst [vmem:[#allocation64_spill] sm:$0xff] %v14076_v0  ;;  %v4700_v37 = vadd.f32 %v4690_v25, %v13969_v32  ;;  %v14083_v60 = vpop.f32.mrf.mxu0  ;;  %6059 = vmatpush.msrb.mxu2 %v5991_v9  ;;  %6082 = vmatpush.msrb.mxu3 %v5992_v45  ;;  %v14111_v43 = vpop.f32.mrf.mxu1 }
 0x973   :  { %15986 = vst [vmem:[#allocation111_spill] sm:$0xff] %v14083_v60  ;;  %6969 = vrot.lane.b32.xlu0 %v12556_v19, %s8538_s0 }
 0x974   :  { %6967 = vrot.lane.b32.xlu1 %v12539_v33, %s8538_s0  ;;  %6060 = vmatpush.msrb.mxu2 %v5987_v53  ;;  %v6269_v53 = vsel %vm202_vm2, %v13919_v21, %v14007_v34 }
 0x975   :  { %6831 = vrot.lane.b32.xlu2 %v12754_v63, %s8537_s16  ;;  %6083 = vmatpush.msrb.mxu3 %v5988_v49  ;;  %v6253_v32 = vpop.permute.xlu0 %6252  ;;  %v14095_v62 = vpop.permute.xlu1 %6256 }
 0x976   :  { %8194 = vmatmul.msk.f32.vlgmr.msra.gmra.mxu0 %vm4066_vm14, %v13846_v2  ;;  %8200 = vmatmul.msk.f32.vlgmr.msra.gmra.mxu3 %vm4066_vm14, %v13846_v2  ;;  %v6266_v41 = vsel %vm202_vm2, %v6253_v32, %v14095_v62  ;;  %v14109_v29 = vpop.permute.xlu2 %6401 }
 0x977   :  { %6159 = vmatpush.msra.mxu0 %v6135_v11  ;;  %v6273_v15 = vmul.f32 %v6266_v41, %v15983_v20  ;;  %8199 = vmatmul.msk.f32.gmra.mxu2 %vm4066_vm14, %v13905_v5  ;;  %v6268_v11 = vsel %vm202_vm2, %v14044_v30, %v6253_v32  ;;  %v15990_v41 = vld [vmem:[#allocation13_spill] sm:$0xff] }
 0x978   :  { %8217 = vmatmul.msk.f32.gmra.mxu1 %vm4066_vm14, %v14100_v24 }
 0x979   :  { %6160 = vmatpush.msra.mxu0 %v6131_v44  ;;  %v4833_v2 = vpop.f32.mrf.mxu3  ;;  %6324 = vmatpush.msrb.mxu1 %v6273_v15  ;;  %v14118_v51 = vpop.f32.mrf.mxu2  ;;  %v6276_v44 = vmul.f32 %v6269_v53, %v15990_v41 }
 0x97a   :  { %v4842_v1 = vadd.f32 %v4833_v2, %v14028_v40  ;;  %v14121_v9 = vpop.f32.mrf.mxu0  ;;  %v14136_v40 = vld [vmem:[%s14982_s8 + $0x100] sm:$0xff]  ;;  %v14148_v25 = vpop.f32.mrf.mxu1  ;;  %v6272_v2 = vmul.f32 %v6268_v11, %v15990_v41  ;;  %v6130_v11 = vperm.slane %v13646_v39, 7 }
 0x97b   :  { %15987 = vst [vmem:[#allocation47_spill] sm:$0xff] %v14121_v9  ;;  %7121 = vrot.lane.b32.xlu0 %v12713_v50, %s8539_s30 }
 0x97c   :  { %6977 = vrot.lane.b32.xlu1 %v12754_v63, %s8538_s0 }
 0x97d   :  { %6971 = vrot.lane.b32.xlu2 %v12605_v13, %s8538_s0  ;;  %v14129_v20 = vpop.permute.xlu0 %6389  ;;  %v14131_v45 = vpop.permute.xlu1 %6391 }
 0x97e   :  { %8195 = vmatmul.msk.f32.gmra.mxu0 %vm4066_vm14, %v13905_v5  ;;  %8201 = vmatmul.msk.f32.gmra.mxu3 %vm4066_vm14, %v13905_v5  ;;  %v14142_v55 = vpop.permute.xlu2 %6393 }
 0x97f   :  { %8208 = vmatmul.msk.f32.vlgmr.msrb.gmra.mxu2 %vm4066_vm14, %v13950_v36 }
 0x980   :  { %8226 = vmatmul.msk.f32.vlgmr.msrb.gmra.mxu1 %vm4066_vm14, %v14136_v40 }
 0x981   :  { %v4836_v42 = vpop.f32.mrf.mxu3  ;;  %v14150_v49 = vpop.f32.mrf.mxu2 }
 0x982   :  { %15988 = vst [vmem:[#allocation94_spill] sm:$0xff] %v14150_v49  ;;  %v4846_v31 = vadd.f32 %v4836_v42, %v4700_v37  ;;  %v14156_v5 = vpop.f32.mrf.mxu0  ;;  %v14175_v37 = vld [vmem:[%s14982_s8 + $0x108] sm:$0xff]  ;;  %v14188_v42 = vpop.f32.mrf.mxu1 }
 0x983   :  { %15989 = vst [vmem:[#allocation58_spill] sm:$0xff] %v14156_v5  ;;  %7123 = vrot.lane.b32.xlu0 %v12754_v63, %s8539_s30 }
 0x984   :  { %7109 = vrot.lane.b32.xlu1 %v12486_v14, %s8539_s30 }
 0x985   :  { %7111 = vrot.lane.b32.xlu2 %v12516_v28, %s8539_s30  ;;  %v14168_v15 = vpop.permute.xlu0 %6397  ;;  %v14170_v34 = vpop.permute.xlu1 %6399 }
 0x986   :  { %8204 = vmatmul.msk.f32.vlgmr.msrb.gmra.mxu0 %vm4066_vm14, %v13950_v36  ;;  %8210 = vmatmul.msk.f32.vlgmr.msrb.gmra.mxu3 %vm4066_vm14, %v13950_v36  ;;  %v14181_v32 = vpop.permute.xlu2 %6530  ;;  %v6129_v36 = vperm.slane %v13441_v46, 7 }
 0x987   :  { %6300 = vmatpush.msrb.mxu0 %v6276_v44  ;;  %8209 = vmatmul.msk.f32.gmra.mxu2 %vm4066_vm14, %v13991_v4 }
 0x988   :  { %8227 = vmatmul.msk.f32.gmra.mxu1 %vm4066_vm14, %v14175_v37 }
 0x989   :  { %6301 = vmatpush.msrb.mxu0 %v6272_v2  ;;  %v4974_v53 = vpop.f32.mrf.mxu3  ;;  %v14190_v5 = vpop.f32.mrf.mxu2 }
 0x98a   :  { %v4983_v60 = vadd.f32 %v4974_v53, %v4842_v1  ;;  %v14192_v9 = vpop.f32.mrf.mxu0  ;;  %v6119_v1 = vsel %vm6118_vm5, %v13862_v12, %v13945_v58  ;;  %v6125_v12 = vsel %vm6118_vm5, %v13945_v58, %v13822_v16  ;;  %v6264_v16 = vsel %vm202_vm2, %v14095_v62, %v14042_v26 }
 0x98b   :  { %15991 = vst [vmem:[#allocation114_spill] sm:$0xff] %v14192_v9  ;;  %7113 = vrot.lane.b32.xlu0 %v12539_v33, %s8539_s30  ;;  %v6133_v6 = vmul.f32 %v6129_v36, %v6119_v1  ;;  %v15994_v1 = vld [vmem:[#allocation24_spill] sm:$0xff] }
 0x98c   :  { %7117 = vrot.lane.b32.xlu1 %v12605_v13, %s8539_s30 }
 0x98d   :  { %7119 = vrot.lane.b32.xlu2 %v12668_v47, %s8539_s30  ;;  %v14202_v41 = vpop.permute.xlu0 %6532  ;;  %v6117_v44 = vpop.permute.xlu1 %6116 }
 0x98e   :  { %8205 = vmatmul.msk.f32.gmra.mxu0 %vm4066_vm14, %v13991_v4  ;;  %8211 = vmatmul.msk.f32.gmra.mxu3 %vm4066_vm14, %v13991_v4  ;;  %v6120_v46 = vsel %vm6118_vm5, %v13900_v52, %v6117_v44  ;;  %v6126_v39 = vsel %vm6118_vm5, %v6117_v44, %v13841_v48  ;;  %v14218_v2 = vpop.permute.xlu2 %6538  ;;  %v6134_v48 = vmul.f32 %v6130_v11, %v6125_v12  ;;  %v14232_v44 = vpop.f32.mrf.mxu1  ;;  %v15996_v12 = vld [vmem:[#allocation12_spill] sm:$0xff] }
 0x98f   :  { %v6137_v53 = vmul.f32 %v6129_v36, %v6120_v46  ;;  %v6138_v9 = vmul.f32 %v6130_v11, %v6126_v39  ;;  %v15993_v36 = vld [vmem:[#allocation23_spill] sm:$0xff]  ;;  %v15995_v39 = vld [vmem:[#allocation4_spill] sm:$0xff] }
 0x991   :  { %v4977_v49 = vpop.f32.mrf.mxu3  ;;  %6205 = vmatpush.msra.mxu2 %v6137_v53  ;;  %6228 = vmatpush.msra.mxu3 %v6138_v9  ;;  %v14224_v4 = vpop.f32.mrf.mxu2  ;;  %v6409_v53 = vsel %vm223_vm1, %v14129_v20, %v14142_v55 }
 0x992   :  { %v14226_v52 = vadd.f32 %v4977_v49, %v4846_v31  ;;  %v14228_v0 = vpop.f32.mrf.mxu0 }
 0x993   :  { %15992 = vst [vmem:[#allocation77_spill] sm:$0xff] %v14228_v0  ;;  %7255 = vrot.lane.b32.xlu0 %v12486_v14, %s8540_s19  ;;  %6206 = vmatpush.msra.mxu2 %v6133_v6 }
 0x994   :  { %7257 = vrot.lane.b32.xlu1 %v12516_v28, %s8540_s19  ;;  %6229 = vmatpush.msra.mxu3 %v6134_v48 }
 0x995   :  { %7115 = vrot.lane.b32.xlu2 %v12556_v19, %s8539_s30  ;;  %8218 = vmatmul.msk.f32.vlgmr.msra.gmra.mxu2 %vm4066_vm14, %v14049_v59  ;;  %v6263_v58 = vpop.permute.xlu0 %6262  ;;  %v6396_v9 = vpop.permute.xlu1 %6395 }
 0x996   :  { %8214 = vmatmul.msk.f32.vlgmr.msra.gmra.mxu0 %vm4066_vm14, %v14049_v59  ;;  %8220 = vmatmul.msk.f32.vlgmr.msra.gmra.mxu3 %vm4066_vm14, %v14049_v59  ;;  %v6265_v6 = vsel %vm202_vm2, %v13960_v27, %v6263_v58  ;;  %v6271_v62 = vsel %vm202_vm2, %v6263_v58, %v13919_v21  ;;  %v6408_v49 = vsel %vm223_vm1, %v6396_v9, %v14170_v34  ;;  %v14257_v31 = vpop.permute.xlu2 %6673 }
 0x997   :  { %v6278_v11 = vmul.f32 %v6265_v6, %v15993_v36  ;;  %v6279_v46 = vmul.f32 %v6271_v62, %v15994_v1  ;;  %v6410_v59 = vsel %vm223_vm1, %v14131_v45, %v6396_v9  ;;  %v6418_v27 = vmul.f32 %v6408_v49, %v15995_v39 }
 0x998   :  { %v6270_v21 = vsel %vm202_vm2, %v14042_v26, %v14044_v30  ;;  %v6417_v48 = vmul.f32 %v6410_v59, %v15996_v12  ;;  %v6274_v58 = vmul.f32 %v6264_v16, %v15993_v36  ;;  %v6407_v9 = vsel %vm223_vm1, %v14142_v55, %v14168_v15  ;;  %v14287_v16 = vpop.f32.mrf.mxu1 }
 0x999   :  { %v5115_v6 = vpop.f32.mrf.mxu3  ;;  %6346 = vmatpush.msrb.mxu2 %v6278_v11  ;;  %6369 = vmatpush.msrb.mxu3 %v6279_v46  ;;  %v14279_v62 = vpop.f32.mrf.mxu2  ;;  %v6275_v49 = vmul.f32 %v6270_v21, %v15994_v1  ;;  %v6413_v59 = vmul.f32 %v6409_v53, %v15996_v12  ;;  %v6414_v55 = vmul.f32 %v6407_v9, %v15995_v39  ;;  %v15997_v21 = vld [vmem:[#allocation21_spill] sm:$0xff]  ;;  %vm6979_vm2 = vcmp.lt.s32.totalorder %v15926_v61, 97 }
 0x99a   :  { %v5124_v26 = vadd.f32 %v5115_v6, %v4983_v60  ;;  %v14281_v30 = vpop.f32.mrf.mxu0  ;;  %6441 = vmatpush.msra.mxu0 %v6417_v48  ;;  %6464 = vmatpush.msra.mxu1 %v6418_v27  ;;  %v14297_v60 = vld [vmem:[%s14982_s8 + $0x110] sm:$0xff]  ;;  %v6411_v39 = vsel %vm223_vm1, %v14109_v29, %v14129_v20  ;;  %v6405_v27 = vsel %vm223_vm1, %v14168_v15, %v14109_v29 }
 0x99b   :  { %7263 = vrot.lane.b32.xlu0 %v12605_v13, %s8540_s19  ;;  %6347 = vmatpush.msrb.mxu2 %v6274_v58  ;;  %v6415_v15 = vmul.f32 %v6405_v27, %v15997_v21 }
 0x99c   :  { %7265 = vrot.lane.b32.xlu1 %v12668_v47, %s8540_s19  ;;  %6370 = vmatpush.msrb.mxu3 %v6275_v49 }
 0x99d   :  { %7267 = vrot.lane.b32.xlu2 %v12713_v50, %s8540_s19  ;;  %6442 = vmatpush.msra.mxu0 %v6413_v59  ;;  %v14299_v36 = vpop.permute.xlu0 %6540  ;;  %v14303_v11 = vpop.permute.xlu1 %6542 }
 0x99e   :  { %6465 = vmatpush.msra.mxu1 %v6414_v55  ;;  %8215 = vmatmul.msk.f32.gmra.mxu0 %vm4066_vm14, %v14100_v24  ;;  %v6404_v1 = vpop.permute.xlu2 %6403 }
 0x99f   :  { %8219 = vmatmul.msk.f32.gmra.mxu2 %vm4066_vm14, %v14100_v24  ;;  %8221 = vmatmul.msk.f32.gmra.mxu3 %vm4066_vm14, %v14100_v24  ;;  %v6406_v46 = vsel %vm223_vm1, %v14170_v34, %v6404_v1  ;;  %v6412_v24 = vsel %vm223_vm1, %v6404_v1, %v14131_v45  ;;  %v15998_v34 = vld [vmem:[#allocation22_spill] sm:$0xff]  ;;  %v14343_v45 = vld [vmem:[%s14982_s8 + $0x118] sm:$0xff]  ;;  %vm6687_vm1 = vcmp.lt.s32.totalorder %v15926_v61, 110 }
 0x9a0   :  { %8236 = vmatmul.msk.f32.vlgmr.msra.gmra.mxu1 %vm4066_vm14, %v14297_v60  ;;  %v6419_v53 = vmul.f32 %v6406_v46, %v15997_v21  ;;  %v6420_v12 = vmul.f32 %v6412_v24, %v15998_v34  ;;  %v6416_v29 = vmul.f32 %v6411_v39, %v15998_v34  ;;  %v14345_v6 = vpop.f32.mrf.mxu1  ;;  %v16000_v1 = vld [vmem:[#allocation10_spill] sm:$0xff]  ;;  %v16001_v39 = vld [vmem:[#allocation3_spill] sm:$0xff] }
 0x9a1   :  { %v5118_v48 = vpop.f32.mrf.mxu3  ;;  %v14327_v58 = vpop.f32.mrf.mxu2 }
 0x9a2   :  { %v5128_v20 = vadd.f32 %v5118_v48, %v14226_v52  ;;  %v14330_v9 = vpop.f32.mrf.mxu0  ;;  %6487 = vmatpush.msra.mxu2 %v6419_v53  ;;  %6510 = vmatpush.msra.mxu3 %v6420_v12 }
 0x9a3   :  { %15999 = vst [vmem:[#allocation60_spill] sm:$0xff] %v14330_v9  ;;  %7403 = vrot.lane.b32.xlu0 %v12516_v28, %s8541_s26 }
 0x9a4   :  { %7261 = vrot.lane.b32.xlu1 %v12556_v19, %s8540_s19  ;;  %6488 = vmatpush.msra.mxu2 %v6415_v15 }
 0x9a5   :  { %7269 = vrot.lane.b32.xlu2 %v12754_v63, %s8540_s19  ;;  %6511 = vmatpush.msra.mxu3 %v6416_v29  ;;  %v6537_v52 = vpop.permute.xlu0 %6536 }
 0x9a6   :  { %8224 = vmatmul.msk.f32.vlgmr.msrb.gmra.mxu0 %vm4066_vm14, %v14136_v40  ;;  %v6549_v28 = vsel %vm244_vm0, %v6537_v52, %v14299_v36  ;;  %v6551_v49 = vsel %vm244_vm0, %v14202_v41, %v6537_v52  ;;  %v6535_v59 = vpop.permute.xlu1 %6534  ;;  %v14355_v55 = vpop.permute.xlu2 %6681 }
 0x9a7   :  { %8228 = vmatmul.msk.f32.vlgmr.msrb.gmra.mxu2 %vm4066_vm14, %v14136_v40  ;;  %8230 = vmatmul.msk.f32.vlgmr.msrb.gmra.mxu3 %vm4066_vm14, %v14136_v40  ;;  %v6558_v46 = vmul.f32 %v6551_v49, %v16000_v1  ;;  %v6559_v27 = vmul.f32 %v6549_v28, %v16001_v39  ;;  %v6548_v24 = vsel %vm244_vm0, %v6535_v59, %v14218_v2 }
 0x9a8   :  { %8237 = vmatmul.msk.f32.gmra.mxu1 %vm4066_vm14, %v14343_v45  ;;  %v6550_v21 = vsel %vm244_vm0, %v14181_v32, %v6535_v59  ;;  %v6555_v48 = vmul.f32 %v6548_v24, %v16001_v39  ;;  %v14415_v39 = vld [vmem:[%s14975_s1 + $0x40] sm:$0xff] }
 0x9a9   :  { %v6554_v53 = vmul.f32 %v6550_v21, %v16000_v1  ;;  %v5256_v34 = vpop.f32.mrf.mxu3  ;;  %6582 = vmatpush.msrb.mxu0 %v6558_v46  ;;  %6605 = vmatpush.msrb.mxu1 %v6559_v27  ;;  %v14372_v12 = vpop.f32.mrf.mxu2  ;;  %v6696_v27 = vperm.slane %v14415_v39, 3 }
 0x9aa   :  { %v5265_v40 = vadd.f32 %v5256_v34, %v5124_v26  ;;  %v14387_v26 = vld [vmem:[%s14975_s1 + $0x48] sm:$0xff] }
 0x9ab   :  { %v14375_v29 = vpop.f32.mrf.mxu0  ;;  %7411 = vrot.lane.b32.xlu0 %v12668_v47, %s8541_s26  ;;  %6583 = vmatpush.msrb.mxu0 %v6554_v53  ;;  %v6697_v15 = vperm.slane %v14387_v26, 3  ;;  %v14393_v47 = vld [vmem:[%s14982_s8 + $0x120] sm:$0xff] }
 0x9ac   :  { %7415 = vrot.lane.b32.xlu1 %v12754_v63, %s8541_s26  ;;  %6606 = vmatpush.msrb.mxu1 %v6555_v48 }
 0x9ad   :  { %7259 = vrot.lane.b32.xlu2 %v12539_v33, %s8540_s19  ;;  %v14395_v52 = vpop.permute.xlu0 %6683  ;;  %v14397_v63 = vpop.f32.mrf.mxu1 }
 0x9ae   :  { %8225 = vmatmul.msk.f32.gmra.mxu0 %vm4066_vm14, %v14175_v37  ;;  %v14401_v28 = vpop.permute.xlu1 %6671  ;;  %v6678_v49 = vpop.permute.xlu2 %6677 }
 0x9af   :  { %8229 = vmatmul.msk.f32.gmra.mxu2 %vm4066_vm14, %v14175_v37  ;;  %8231 = vmatmul.msk.f32.gmra.mxu3 %vm4066_vm14, %v14175_v37  ;;  %v6691_v59 = vsel %vm6687_vm1, %v6678_v49, %v14355_v55  ;;  %v6693_v37 = vsel %vm6687_vm1, %v14257_v31, %v6678_v49 }
 0x9b0   :  { %8246 = vmatmul.msk.f32.vlgmr.msrb.gmra.mxu1 %vm4066_vm14, %v14393_v47  ;;  %v6705_v1 = vmul.f32 %v6697_v15, %v6691_v59  ;;  %v6704_v49 = vmul.f32 %v6696_v27, %v6693_v37 }
 0x9b1   :  { %v5259_v46 = vpop.f32.mrf.mxu3 }
 0x9b2   :  { %v5269_v24 = vadd.f32 %v5259_v46, %v5128_v20  ;;  %6751 = vmatpush.msra.mxu1 %v6705_v1  ;;  %v14429_v53 = vpop.f32.mrf.mxu2  ;;  %v14434_v20 = vld [vmem:[%s14982_s8 + $0x128] sm:$0xff] }
 0x9b3   :  { %v14421_v21 = vpop.f32.mrf.mxu0  ;;  %7407 = vrot.lane.b32.xlu0 %v12556_v19, %s8541_s26 }
 0x9b4   :  { %16002 = vst [vmem:[#allocation40_spill] sm:$0xff] %v14421_v21  ;;  %7413 = vrot.lane.b32.xlu1 %v12713_v50, %s8541_s26 }
 0x9b5   :  { %7401 = vrot.lane.b32.xlu2 %v12486_v14, %s8541_s26  ;;  %v6676_v34 = vpop.permute.xlu0 %6675  ;;  %v14436_v48 = vpop.f32.mrf.mxu1 }
 0x9b6   :  { %8234 = vmatmul.msk.f32.vlgmr.msra.gmra.mxu0 %vm4066_vm14, %v14297_v60  ;;  %v6692_v19 = vsel %vm6687_vm1, %v14401_v28, %v6676_v34  ;;  %v6680_v50 = vpop.permute.xlu1 %6679 }
 0x9b7   :  { %v14443_v14 = vpop.permute.xlu2 %6829  ;;  %8238 = vmatmul.msk.f32.vlgmr.msra.gmra.mxu2 %vm4066_vm14, %v14297_v60  ;;  %8240 = vmatmul.msk.f32.vlgmr.msra.gmra.mxu3 %vm4066_vm14, %v14297_v60  ;;  %v6700_v59 = vmul.f32 %v6696_v27, %v6692_v19  ;;  %v6690_v1 = vsel %vm6687_vm1, %v6676_v34, %v6680_v50  ;;  %v14462_v60 = vld [vmem:[%s14982_s8 + $0x130] sm:$0xff]  ;;  %v4215_v19 = vadd.f32 %v13426_v56, %v13311_v57  ;;  %v14506_v56 = vld [vmem:[%s14975_s1 + $0x58] sm:$0xff] }
 0x9b8   :  { %8247 = vmatmul.msk.f32.gmra.mxu1 %vm4066_vm14, %v14434_v20  ;;  %6728 = vmatpush.msra.mxu0 %v6704_v49  ;;  %v6701_v46 = vmul.f32 %v6697_v15, %v6690_v1 }
 0x9b9   :  { %v5402_v37 = vpop.f32.mrf.mxu3  ;;  %v4406_v57 = vadd.f32 %v13518_v17, %v4215_v19  ;;  %v14518_v17 = vld [vmem:[%s14982_s8 + $0x138] sm:$0xff]  ;;  %v6688_v19 = vsel %vm6687_vm1, %v6680_v50, %v14395_v52 }
 0x9ba   :  { %v5411_v21 = vadd.f32 %v5402_v37, %v5265_v40  ;;  %6729 = vmatpush.msra.mxu0 %v6700_v59  ;;  %6752 = vmatpush.msra.mxu1 %v6701_v46  ;;  %v6546_v40 = vsel %vm244_vm0, %v14218_v2, %v14303_v11  ;;  %v16004_v59 = vld [vmem:[#allocation20_spill] sm:$0xff]  ;;  %v14496_v46 = vpop.f32.mrf.mxu2 }
 0x9bb   :  { %v14453_v9 = vpop.f32.mrf.mxu0 }
 0x9bc   :  { %7405 = vrot.lane.b32.xlu1 %v12539_v33, %s8541_s26 }
 0x9bd   :  { %7409 = vrot.lane.b32.xlu2 %v12605_v13, %s8541_s26  ;;  %v14464_v27 = vpop.permute.xlu0 %6817  ;;  %v14466_v15 = vpop.f32.mrf.mxu1  ;;  %v6552_v13 = vsel %vm244_vm0, %v14303_v11, %v14181_v32  ;;  %v16003_v32 = vld [vmem:[#allocation19_spill] sm:$0xff] }
 0x9be   :  { %8235 = vmatmul.msk.f32.gmra.mxu0 %vm4066_vm14, %v14343_v45  ;;  %v6545_v33 = vpop.permute.xlu1 %6544  ;;  %v6556_v37 = vmul.f32 %v6546_v40, %v16003_v32  ;;  %v14512_v40 = vld [vmem:[%s14975_s1 + $0x50] sm:$0xff] }
 0x9bf   :  { %v14474_v34 = vpop.permute.xlu2 %6821  ;;  %8239 = vmatmul.msk.f32.gmra.mxu2 %vm4066_vm14, %v14343_v45  ;;  %8241 = vmatmul.msk.f32.gmra.mxu3 %vm4066_vm14, %v14343_v45  ;;  %v6547_v2 = vsel %vm244_vm0, %v14299_v36, %v6545_v33  ;;  %v6553_v49 = vsel %vm244_vm0, %v6545_v33, %v14202_v41  ;;  %v6557_v36 = vmul.f32 %v6552_v13, %v16004_v59  ;;  %v6699_v33 = vperm.slane %v14506_v56, 3 }
 0x9c0   :  { %8256 = vmatmul.msk.f32.vlgmr.msra.gmra.mxu1 %vm4066_vm14, %v14462_v60  ;;  %v6560_v11 = vmul.f32 %v6547_v2, %v16003_v32  ;;  %v6561_v1 = vmul.f32 %v6553_v49, %v16004_v59  ;;  %v6694_v49 = vsel %vm6687_vm1, %v14395_v52, %v14401_v28  ;;  %v4212_v28 = vadd.f32 %v13372_v22, %v13263_v3 }
 0x9c1   :  { %v5405_v45 = vpop.f32.mrf.mxu3  ;;  %vm6833_vm0 = vcmp.lt.s32.totalorder %v15926_v61, 98 }
 0x9c2   :  { %v5415_v0 = vadd.f32 %v5405_v45, %v5269_v24  ;;  %6628 = vmatpush.msrb.mxu2 %v6560_v11  ;;  %6651 = vmatpush.msrb.mxu3 %v6561_v1  ;;  %v6698_v24 = vperm.slane %v14512_v40, 3  ;;  %v14550_v3 = vpop.f32.mrf.mxu2  ;;  %v4402_v22 = vadd.f32 %v13487_v10, %v4212_v28 }
 0x9c3   :  { %v14500_v41 = vpop.f32.mrf.mxu0 }
 0x9c4   :  { %6629 = vmatpush.msrb.mxu2 %v6556_v37  ;;  %6652 = vmatpush.msrb.mxu3 %v6557_v36  ;;  %v6702_v45 = vmul.f32 %v6698_v24, %v6688_v19  ;;  %v4548_v10 = vadd.f32 %v13561_v23, %v4402_v22  ;;  %v6840_v23 = vsel %vm6833_vm0, %v14443_v14, %v14464_v27 }
 0x9c5   :  { %v6686_v13 = vpop.permute.xlu0 %6685  ;;  %v14520_v2 = vpop.f32.mrf.mxu1 }
 0x9c6   :  { %8244 = vmatmul.msk.f32.vlgmr.msrb.gmra.mxu0 %vm4066_vm14, %v14393_v47  ;;  %v6689_v32 = vsel %vm6687_vm1, %v14355_v55, %v6686_v13  ;;  %v6695_v11 = vsel %vm6687_vm1, %v6686_v13, %v14257_v31  ;;  %v14537_v59 = vpop.permute.xlu1 %6819  ;;  %v4552_v55 = vadd.f32 %v13621_v8, %v4406_v57  ;;  %v6703_v31 = vmul.f32 %v6699_v33, %v6694_v49 }
 0x9c7   :  { %v14539_v1 = vpop.permute.xlu2 %6963  ;;  %8248 = vmatmul.msk.f32.vlgmr.msrb.gmra.mxu2 %vm4066_vm14, %v14393_v47  ;;  %8250 = vmatmul.msk.f32.vlgmr.msrb.gmra.mxu3 %vm4066_vm14, %v14393_v47  ;;  %v6706_v52 = vmul.f32 %v6698_v24, %v6689_v32  ;;  %v6707_v50 = vmul.f32 %v6699_v33, %v6695_v11  ;;  %v6844_v8 = vperm.slane %v14512_v40, 4  ;;  %v6845_v49 = vperm.slane %v14506_v56, 4 }
 0x9c8   :  { %8257 = vmatmul.msk.f32.gmra.mxu1 %vm4066_vm14, %v14518_v17  ;;  %v4698_v47 = vadd.f32 %v13736_v38, %v4552_v55 }
 0x9c9   :  { %v5548_v37 = vpop.f32.mrf.mxu3  ;;  %6774 = vmatpush.msra.mxu2 %v6706_v52  ;;  %6797 = vmatpush.msra.mxu3 %v6707_v50 }
 0x9ca   :  { %v5557_v36 = vadd.f32 %v5548_v37, %v5411_v21  ;;  %v4844_v32 = vadd.f32 %v13824_v35, %v4698_v47  ;;  %v4694_v35 = vadd.f32 %v13678_v18, %v4548_v10  ;;  %v16005_v37 = vld [vmem:[#allocation89_spill] sm:$0xff]  ;;  %v6843_v18 = vperm.slane %v14387_v26, 4 }
 0x9cb   :  { %v14553_v13 = vpop.f32.mrf.mxu0  ;;  %6775 = vmatpush.msra.mxu2 %v6702_v45  ;;  %6798 = vmatpush.msra.mxu3 %v6703_v31  ;;  %v6849_v31 = vmul.f32 %v6845_v49, %v6840_v23 }
 0x9cc   :  { %v4985_v22 = vadd.f32 %v16005_v37, %v4844_v32  ;;  %v16006_v32 = vld [vmem:[#allocation62_spill] sm:$0xff] }
 0x9cd   :  { %v6826_v57 = vpop.permute.xlu0 %6825  ;;  %v14558_v33 = vpop.f32.mrf.mxu1  ;;  %v4840_v23 = vadd.f32 %v16006_v32, %v4694_v35  ;;  %v16009_v35 = vld [vmem:[#allocation108_spill] sm:$0xff] }
 0x9ce   :  { %8245 = vmatmul.msk.f32.gmra.mxu0 %vm4066_vm14, %v14434_v20  ;;  %v6828_v21 = vpop.permute.xlu1 %6827  ;;  %v6834_v38 = vsel %vm6833_vm0, %v6826_v57, %v14443_v14  ;;  %v14585_v14 = vpop.f32.mrf.mxu2 }
 0x9cf   :  { %v6832_v24 = vpop.permute.xlu2 %6831  ;;  %8249 = vmatmul.msk.f32.gmra.mxu2 %vm4066_vm14, %v14434_v20  ;;  %8251 = vmatmul.msk.f32.gmra.mxu3 %vm4066_vm14, %v14434_v20  ;;  %v6848_v50 = vmul.f32 %v6844_v8, %v6834_v38  ;;  %v6836_v38 = vsel %vm6833_vm0, %v14474_v34, %v6826_v57 }
 0x9d0   :  { %v6835_v19 = vsel %vm6833_vm0, %v6828_v21, %v6832_v24  ;;  %v6841_v11 = vsel %vm6833_vm0, %v6832_v24, %v14537_v59 }
 0x9d1   :  { %v6852_v28 = vmul.f32 %v6844_v8, %v6835_v19  ;;  %v6853_v20 = vmul.f32 %v6845_v49, %v6841_v11  ;;  %v5551_v52 = vpop.f32.mrf.mxu3  ;;  %v5126_v19 = vadd.f32 %v14040_v7, %v4985_v22  ;;  %v6838_v8 = vsel %vm6833_vm0, %v14464_v27, %v14474_v34 }
 0x9d2   :  { %v5561_v55 = vadd.f32 %v5551_v52, %v5415_v0  ;;  %v6842_v0 = vperm.slane %v14415_v39, 4  ;;  %v6847_v52 = vmul.f32 %v6843_v18, %v6836_v38  ;;  %v4981_v22 = vadd.f32 %v16009_v35, %v4840_v23  ;;  %v16012_v23 = vld [vmem:[#allocation72_spill] sm:$0xff] }
 0x9d3   :  { %6920 = vmatpush.msrb.mxu2 %v6852_v28  ;;  %v14581_v45 = vpop.f32.mrf.mxu0  ;;  %6943 = vmatpush.msrb.mxu3 %v6853_v20  ;;  %v5267_v20 = vadd.f32 %v14148_v25, %v5126_v19  ;;  %v6988_v35 = vperm.slane %v14415_v39, 5 }
 0x9d4   :  { %v6846_v57 = vmul.f32 %v6842_v0, %v6838_v8 }
 0x9d5   :  { %6921 = vmatpush.msrb.mxu2 %v6848_v50  ;;  %6944 = vmatpush.msrb.mxu3 %v6849_v31  ;;  %v14587_v47 = vpop.permute.xlu0 %6965  ;;  %v5896_v24 = vpop.f32.mrf.mxu1  ;;  %v16008_v31 = vld [vmem:[#allocation105_spill] sm:$0xff]  ;;  %v5413_v25 = vadd.f32 %v14232_v44, %v5267_v20 }
 0x9d6   :  { %8254 = vmatmul.msk.f32.vlgmr.msra.gmra.mxu0 %vm4066_vm14, %v14462_v60  ;;  %v6824_v10 = vpop.permute.xlu1 %6823  ;;  %v16014_v20 = vld [vmem:[#allocation97_spill] sm:$0xff] }
 0x9d7   :  { %v14598_v49 = vpop.permute.xlu2 %6971  ;;  %8258 = vmatmul.msk.f32.vlgmr.msra.gmra.mxu2 %vm4066_vm14, %v14462_v60  ;;  %8260 = vmatmul.msk.f32.vlgmr.msra.gmra.mxu3 %vm4066_vm14, %v14462_v60  ;;  %v6837_v7 = vsel %vm6833_vm0, %v6824_v10, %v6828_v21  ;;  %v6839_v27 = vsel %vm6833_vm0, %v14537_v59, %v6824_v10  ;;  %v8262_v60 = vld [vmem:[%s14982_s8 + $0x140] sm:$0xff]  ;;  %v16007_v21 = vld [vmem:[#allocation38_spill] sm:$0xff] }
 0x9d8   :  { %v6850_v11 = vmul.f32 %v6842_v0, %v6839_v27  ;;  %v6851_v28 = vmul.f32 %v6843_v18, %v6837_v7  ;;  %v4238_v59 = vadd.f32 %v16008_v31, %v16007_v21  ;;  %v16010_v0 = vld [vmem:[#allocation113_spill] sm:$0xff]  ;;  %v5559_v18 = vadd.f32 %v14345_v6, %v5413_v25  ;;  %v16011_v7 = vld [vmem:[#allocation36_spill] sm:$0xff]  ;;  %v14643_v6 = vpop.f32.mrf.mxu2 }
 0x9d9   :  { %v5689_v34 = vpop.f32.mrf.mxu3  ;;  %v5122_v8 = vadd.f32 %v16010_v0, %v4981_v22  ;;  %v6989_v22 = vperm.slane %v14387_v26, 5 }
 0x9da   :  { %v14614_v50 = vadd.f32 %v5689_v34, %v5557_v36  ;;  %6874 = vmatpush.msrb.mxu0 %v6850_v11  ;;  %6897 = vmatpush.msrb.mxu1 %v6851_v28  ;;  %v4407_v44 = vadd.f32 %v16011_v7, %v4238_v59  ;;  %v5700_v32 = vadd.f32 %v14436_v48, %v5559_v18  ;;  %v16013_v11 = vld [vmem:[#allocation68_spill] sm:$0xff] }
 0x9db   :  { %v14621_v37 = vpop.f32.mrf.mxu0  ;;  %v5263_v27 = vadd.f32 %v14111_v43, %v5122_v8  ;;  %v4235_v28 = vadd.f32 %v16013_v11, %v16012_v23  ;;  %v8263_v43 = vld [vmem:[%s14982_s8 + $0x148] sm:$0xff]  ;;  %v16017_v11 = vld [vmem:[#allocation84_spill] sm:$0xff] }
 0x9dc   :  { %6875 = vmatpush.msrb.mxu0 %v6846_v57  ;;  %6898 = vmatpush.msrb.mxu1 %v6847_v52  ;;  %v4553_v34 = vadd.f32 %v16014_v20, %v4407_v44  ;;  %v5809_v21 = vadd.f32 %v14520_v2, %v5700_v32 }
 0x9dd   :  { %8266 = vmatmul.msk.f32.vlgmr.msrb.gmra.mxu1 %vm4066_vm14, %v8262_v60  ;;  %v14626_v36 = vpop.permute.xlu0 %6973  ;;  %v6039_v19 = vpop.f32.mrf.mxu1  ;;  %v5409_v52 = vadd.f32 %v14188_v42, %v5263_v27  ;;  %v16016_v42 = vld [vmem:[#allocation69_spill] sm:$0xff] }
 0x9de   :  { %8255 = vmatmul.msk.f32.gmra.mxu0 %vm4066_vm14, %v14518_v17  ;;  %v14632_v10 = vpop.permute.xlu1 %6975  ;;  %v5950_v0 = vadd.f32 %v5896_v24, %v5809_v21  ;;  %v4403_v8 = vadd.f32 %v16016_v42, %v4235_v28 }
 0x9df   :  { %v14634_v38 = vpop.permute.xlu2 %7111  ;;  %8259 = vmatmul.msk.f32.gmra.mxu2 %vm4066_vm14, %v14518_v17  ;;  %8261 = vmatmul.msk.f32.gmra.mxu3 %vm4066_vm14, %v14518_v17  ;;  %v16015_v17 = vld [vmem:[#allocation103_spill] sm:$0xff]  ;;  %v5555_v25 = vadd.f32 %v14287_v16, %v5409_v52 }
 0x9e0   :  { %v4699_v48 = vadd.f32 %v16015_v17, %v4553_v34  ;;  %v4549_v28 = vadd.f32 %v16017_v11, %v4403_v8 }
 0x9e1   :  { %v5692_v57 = vpop.f32.mrf.mxu3  ;;  %v5696_v7 = vadd.f32 %v14397_v63, %v5555_v25  ;;  %v16018_v25 = vld [vmem:[#allocation120_spill] sm:$0xff] }
 0x9e2   :  { %v14650_v31 = vadd.f32 %v5692_v57, %v5561_v55  ;;  %v4845_v2 = vadd.f32 %v14026_v54, %v4699_v48  ;;  %v14694_v48 = vld [vmem:[%s14982_s8 + $0x150] sm:$0xff] }
 0x9e3   :  { %v14656_v59 = vpop.f32.mrf.mxu0  ;;  %v5805_v20 = vadd.f32 %v14466_v15, %v5696_v7  ;;  %v14696_v15 = vpop.f32.mrf.mxu2 }
 0x9e4   :  { %v4986_v57 = vadd.f32 %v14118_v51, %v4845_v2 }
 0x9e5   :  { %8267 = vmatmul.msk.f32.gmra.mxu1 %vm4066_vm14, %v8263_v43  ;;  %v6970_v55 = vpop.permute.xlu0 %6969  ;;  %v6042_v18 = vpop.f32.mrf.mxu1 }
 0x9e6   :  { %8264 = vmatmul.msk.f32.vlgmr.msrb.gmra.mxu0 %vm4066_vm14, %v8262_v60  ;;  %v6983_v44 = vsel %vm6979_vm2, %v6970_v55, %v14626_v36  ;;  %v6985_v16 = vsel %vm6979_vm2, %v14587_v47, %v6970_v55  ;;  %v6968_v24 = vpop.permute.xlu1 %6967  ;;  %v14675_v27 = vadd.f32 %v6042_v18, %v5950_v0  ;;  %v4695_v0 = vadd.f32 %v16018_v25, %v4549_v28  ;;  %v16020_v28 = vld [vmem:[#allocation65_spill] sm:$0xff] }
 0x9e7   :  { %v14673_v54 = vpop.permute.xlu2 %7119  ;;  %8268 = vmatmul.msk.f32.vlgmr.msrb.gmra.mxu2 %vm4066_vm14, %v8262_v60  ;;  %8270 = vmatmul.msk.f32.vlgmr.msrb.gmra.mxu3 %vm4066_vm14, %v8262_v60  ;;  %v6996_v63 = vmul.f32 %v6988_v35, %v6985_v16  ;;  %v6997_v32 = vmul.f32 %v6989_v22, %v6983_v44  ;;  %v6982_v23 = vsel %vm6979_vm2, %v6968_v24, %v14598_v49  ;;  %v6990_v55 = vperm.slane %v14512_v40, 5 }
 0x9e8   :  { %v6984_v34 = vsel %vm6979_vm2, %v14539_v1, %v6968_v24  ;;  %v6993_v21 = vmul.f32 %v6989_v22, %v6982_v23  ;;  %v5946_v60 = vadd.f32 %v14558_v33, %v5805_v20  ;;  %v5127_v42 = vadd.f32 %v14190_v5, %v4986_v57  ;;  %v16019_v22 = vld [vmem:[#allocation42_spill] sm:$0xff]  ;;  %v16021_v20 = vld [vmem:[#allocation121_spill] sm:$0xff] }
 0x9e9   :  { %v6992_v52 = vmul.f32 %v6988_v35, %v6984_v34  ;;  %v14688_v17 = vpop.f32.mrf.mxu3  ;;  %7020 = vmatpush.msra.mxu0 %v6996_v63  ;;  %7043 = vmatpush.msra.mxu1 %v6997_v32  ;;  %v7135_v33 = vperm.slane %v14387_v26, 6  ;;  %v4841_v8 = vadd.f32 %v16019_v22, %v4695_v0  ;;  %v7134_v5 = vperm.slane %v14415_v39, 6  ;;  %v16022_v34 = vld [vmem:[#allocation63_spill] sm:$0xff]  ;;  %v16023_v57 = vld [vmem:[#allocation57_spill] sm:$0xff]  ;;  %v8273_v22 = vld [vmem:[%s14982_s8 + $0x158] sm:$0xff] }
 0x9ea   :  { %v6092_v35 = vadd.f32 %v6039_v19, %v5946_v60  ;;  %v5268_v2 = vadd.f32 %v14279_v62, %v5127_v42  ;;  %v6991_v19 = vperm.slane %v14506_v56, 5  ;;  %v6980_v44 = vsel %vm6979_vm2, %v14598_v49, %v14632_v10 }
 0x9eb   :  { %v14700_v51 = vpop.f32.mrf.mxu0  ;;  %7021 = vmatpush.msra.mxu0 %v6992_v52  ;;  %7044 = vmatpush.msra.mxu1 %v6993_v21  ;;  %v6986_v62 = vsel %vm6979_vm2, %v14632_v10, %v14539_v1  ;;  %v4192_v52 = vadd.f32 %v16023_v57, %v16022_v34  ;;  %v6994_v42 = vmul.f32 %v6990_v55, %v6980_v44  ;;  %v16029_v34 = vld [vmem:[#allocation52_spill] sm:$0xff] }
 0x9ec   :  { %v5414_v0 = vadd.f32 %v14372_v12, %v5268_v2  ;;  %v7136_v12 = vperm.slane %v14512_v40, 6  ;;  %v7137_v2 = vperm.slane %v14506_v56, 6 }
 0x9ed   :  { %8276 = vmatmul.msk.f32.vlgmr.msra.gmra.mxu1 %vm4066_vm14, %v14694_v48  ;;  %v14709_v18 = vpop.permute.xlu0 %7121  ;;  %v6185_v7 = vpop.f32.mrf.mxu1 }
 0x9ee   :  { %8265 = vmatmul.msk.f32.gmra.mxu0 %vm4066_vm14, %v8263_v43  ;;  %v6978_v16 = vpop.permute.xlu1 %6977  ;;  %v14722_v63 = vadd.f32 %v6185_v7, %v6092_v35  ;;  %v6995_v35 = vmul.f32 %v6991_v19, %v6986_v62  ;;  %v16028_v62 = vld [vmem:[#allocation115_spill] sm:$0xff] }
 0x9ef   :  { %v7116_v24 = vpop.permute.xlu2 %7115  ;;  %8269 = vmatmul.msk.f32.gmra.mxu2 %vm4066_vm14, %v8263_v43  ;;  %8271 = vmatmul.msk.f32.gmra.mxu3 %vm4066_vm14, %v8263_v43  ;;  %v6981_v32 = vsel %vm6979_vm2, %v14626_v36, %v6978_v16  ;;  %v6987_v49 = vsel %vm6979_vm2, %v6978_v16, %v14587_v47  ;;  %v4189_v36 = vadd.f32 %v16021_v20, %v16020_v28  ;;  %v16024_v47 = vld [vmem:[#allocation64_spill] sm:$0xff]  ;;  %v16025_v16 = vld [vmem:[#allocation126_spill] sm:$0xff] }
 0x9f0   :  { %v7129_v1 = vsel %vm7125_vm3, %v7116_v24, %v14673_v54  ;;  %v6998_v10 = vmul.f32 %v6990_v55, %v6981_v32  ;;  %v6999_v23 = vmul.f32 %v6991_v19, %v6987_v49  ;;  %v7131_v11 = vsel %vm7125_vm3, %v14634_v38, %v7116_v24  ;;  %v16027_v19 = vld [vmem:[#allocation53_spill] sm:$0xff] }
 0x9f1   :  { %v7143_v43 = vmul.f32 %v7135_v33, %v7129_v1  ;;  %v4982_v21 = vadd.f32 %v16024_v47, %v4841_v8  ;;  %v7142_v60 = vmul.f32 %v7134_v5, %v7131_v11  ;;  %v14747_v25 = vpop.f32.mrf.mxu3  ;;  %v4405_v24 = vadd.f32 %v16025_v16, %v4192_v52  ;;  %v16026_v8 = vld [vmem:[#allocation94_spill] sm:$0xff]  ;;  %v16030_v52 = vld [vmem:[#allocation87_spill] sm:$0xff] }
 0x9f2   :  { %7066 = vmatpush.msra.mxu2 %v6998_v10  ;;  %7089 = vmatpush.msra.mxu3 %v6999_v23  ;;  %v14753_v7 = vpop.f32.mrf.mxu2  ;;  %v5560_v55 = vadd.f32 %v14496_v46, %v5414_v0  ;;  %v4401_v44 = vadd.f32 %v16027_v19, %v4189_v36  ;;  %v16032_v16 = vld [vmem:[#allocation35_spill] sm:$0xff] }
 0x9f3   :  { %v5123_v32 = vadd.f32 %v16026_v8, %v4982_v21  ;;  %v14757_v49 = vpop.f32.mrf.mxu0  ;;  %7166 = vmatpush.msrb.mxu0 %v7142_v60  ;;  %7189 = vmatpush.msrb.mxu1 %v7143_v43  ;;  %v4551_v1 = vadd.f32 %v16028_v62, %v4405_v24  ;;  %v16034_v19 = vld [vmem:[#allocation111_spill] sm:$0xff] }
 0x9f4   :  { %7067 = vmatpush.msra.mxu2 %v6994_v42  ;;  %7090 = vmatpush.msra.mxu3 %v6995_v35  ;;  %v5701_v43 = vadd.f32 %v14585_v14, %v5560_v55  ;;  %v4547_v47 = vadd.f32 %v16030_v52, %v4401_v44 }
 0x9f5   :  { %v5264_v10 = vadd.f32 %v14224_v4, %v5123_v32  ;;  %8277 = vmatmul.msk.f32.gmra.mxu1 %vm4066_vm14, %v8273_v22  ;;  %v7124_v23 = vpop.permute.xlu0 %7123  ;;  %v6188_v11 = vpop.f32.mrf.mxu1  ;;  %v4697_v57 = vadd.f32 %v16029_v34, %v4551_v1 }
 0x9f6   :  { %8274 = vmatmul.msk.f32.vlgmr.msra.gmra.mxu0 %vm4066_vm14, %v14694_v48  ;;  %v7127_v46 = vsel %vm7125_vm3, %v14673_v54, %v7124_v23  ;;  %v7133_v28 = vsel %vm7125_vm3, %v7124_v23, %v14634_v38  ;;  %v7110_v20 = vpop.permute.xlu1 %7109  ;;  %v14776_v4 = vadd.f32 %v6188_v11, %v14675_v27  ;;  %v5810_v27 = vadd.f32 %v14696_v15, %v5701_v43 }
 0x9f7   :  { %8278 = vmatmul.msk.f32.vlgmr.msra.gmra.mxu2 %vm4066_vm14, %v14694_v48  ;;  %8280 = vmatmul.msk.f32.vlgmr.msra.gmra.mxu3 %vm4066_vm14, %v14694_v48  ;;  %v7144_v14 = vmul.f32 %v7136_v12, %v7127_v46  ;;  %v7145_v36 = vmul.f32 %v7137_v2, %v7133_v28  ;;  %v7132_v54 = vsel %vm7125_vm3, %v14709_v18, %v7110_v20  ;;  %v16031_v48 = vld [vmem:[#allocation47_spill] sm:$0xff] }
 0x9f8   :  { %v5410_v38 = vadd.f32 %v14327_v58, %v5264_v10  ;;  %v7141_v21 = vmul.f32 %v7137_v2, %v7132_v54  ;;  %v4843_v0 = vadd.f32 %v16031_v48, %v4697_v57  ;;  %v4693_v24 = vadd.f32 %v16032_v16, %v4547_v47  ;;  %v16033_v58 = vld [vmem:[#allocation114_spill] sm:$0xff]  ;;  %v14798_v2 = vpop.permute.xlu2 %7267 }
 0x9f9   :  { %v14789_v60 = vpop.f32.mrf.mxu3  ;;  %7212 = vmatpush.msrb.mxu2 %v7144_v14  ;;  %7235 = vmatpush.msrb.mxu3 %v7145_v36 }
 0x9fa   :  { %v5556_v42 = vadd.f32 %v14429_v53, %v5410_v38  ;;  %v5919_v35 = vpop.f32.mrf.mxu2  ;;  %v4984_v55 = vadd.f32 %v16033_v58, %v4843_v0  ;;  %v4839_v44 = vadd.f32 %v16034_v19, %v4693_v24 }
 0x9fb   :  { %v5873_v8 = vpop.f32.mrf.mxu0  ;;  %7236 = vmatpush.msrb.mxu3 %v7141_v21  ;;  %v14794_v32 = vadd.f32 %v5919_v35, %v5810_v27  ;;  %v5807_v21 = vadd.f32 %v14688_v17, %v14614_v50 }
 0x9fc   :  { %v5697_v15 = vadd.f32 %v14550_v3, %v5556_v42  ;;  %v5125_v10 = vadd.f32 %v14281_v30, %v4984_v55 }
 0x9fd   :  { %v7114_v62 = vpop.permute.xlu0 %7113  ;;  %v6326_v1 = vpop.f32.mrf.mxu1  ;;  %v5948_v35 = vadd.f32 %v14789_v60, %v5807_v21 }
 0x9fe   :  { %v5806_v53 = vadd.f32 %v14643_v6, %v5697_v15  ;;  %8275 = vmatmul.msk.f32.gmra.mxu0 %vm4066_vm14, %v8273_v22  ;;  %v7130_v23 = vsel %vm7125_vm3, %v7110_v20, %v7114_v62  ;;  %v7118_v11 = vpop.permute.xlu1 %7117  ;;  %v14807_v43 = vadd.f32 %v6326_v1, %v14722_v63  ;;  %v5266_v46 = vadd.f32 %v14375_v29, %v5125_v10 }
 0x9ff   :  { %8279 = vmatmul.msk.f32.gmra.mxu2 %vm4066_vm14, %v8273_v22  ;;  %8281 = vmatmul.msk.f32.gmra.mxu3 %vm4066_vm14, %v8273_v22  ;;  %v7138_v3 = vmul.f32 %v7134_v5, %v7130_v23  ;;  %v7126_v30 = vsel %vm7125_vm3, %v7118_v11, %v14709_v18  ;;  %v7128_v6 = vsel %vm7125_vm3, %v7114_v62, %v7118_v11  ;;  %v8282_v5 = vld [vmem:[%s14982_s8 + $0x160] sm:$0xff]  ;;  %v16035_v18 = vld [vmem:[#allocation58_spill] sm:$0xff]  ;;  %v7282_v10 = vperm.slane %v14512_v40, 7 }
 0xa00   :  { %v5811_v63 = vadd.f32 %v14747_v25, %v14650_v31  ;;  %v7139_v28 = vmul.f32 %v7135_v33, %v7128_v6  ;;  %v7140_v20 = vmul.f32 %v7136_v12, %v7126_v30  ;;  %v5947_v22 = vadd.f32 %v14753_v7, %v5806_v53  ;;  %v16036_v12 = vld [vmem:[#allocation77_spill] sm:$0xff]  ;;  %v7270_v48 = vpop.permute.xlu2 %7269 }
 0xa01   :  { %v5942_v14 = vpop.f32.mrf.mxu3  ;;  %7167 = vmatpush.msrb.mxu0 %v7138_v3  ;;  %v4980_v36 = vadd.f32 %v16035_v18, %v4839_v44  ;;  %v5412_v54 = vadd.f32 %v14453_v9, %v5266_v46  ;;  %v7283_v7 = vperm.slane %v14506_v56, 7  ;;  %v16037_v9 = vld [vmem:[#allocation60_spill] sm:$0xff] }
 0xa02   :  { %v5952_v29 = vadd.f32 %v5942_v14, %v5811_v63  ;;  %7190 = vmatpush.msrb.mxu1 %v7139_v28  ;;  %7213 = vmatpush.msrb.mxu2 %v7140_v20  ;;  %v6062_v31 = vpop.f32.mrf.mxu2  ;;  %v8292_v28 = vld [vmem:[%s14982_s8 + $0x170] sm:$0xff]  ;;  %v7280_v20 = vperm.slane %v14415_v39, 7 }
 0xa03   :  { %v6016_v25 = vpop.f32.mrf.mxu0  ;;  %8286 = vmatmul.msk.f32.vlgmr.msrb.gmra.mxu1 %vm4066_vm14, %v8282_v5  ;;  %v14830_v33 = vadd.f32 %v6062_v31, %v5947_v22  ;;  %v5121_v34 = vadd.f32 %v16036_v12, %v4980_v36  ;;  %v5558_v57 = vadd.f32 %v14553_v13, %v5412_v54 }
 0xa05   :  { %v7256_v38 = vpop.permute.xlu0 %7255  ;;  %v6329_v52 = vpop.f32.mrf.mxu1  ;;  %v5262_v47 = vadd.f32 %v16037_v9, %v5121_v34  ;;  %v5699_v27 = vadd.f32 %v14621_v37, %v5558_v57  ;;  %v16038_v37 = vld [vmem:[#allocation40_spill] sm:$0xff] }
 0xa06   :  { %8284 = vmatmul.msk.f32.vlgmr.msrb.gmra.mxu0 %vm4066_vm14, %v8282_v5  ;;  %v7258_v0 = vpop.permute.xlu1 %7257  ;;  %v14842_v42 = vadd.f32 %v6329_v52, %v14776_v4  ;;  %v7278_v56 = vsel %vm7271_vm7, %v14798_v2, %v7256_v38  ;;  %v8283_v4 = vld [vmem:[%s14982_s8 + $0x168] sm:$0xff]  ;;  %v8293_v52 = vld [vmem:[%s14982_s8 + $0x178] sm:$0xff] }
 0xa07   :  { %8288 = vmatmul.msk.f32.vlgmr.msrb.gmra.mxu2 %vm4066_vm14, %v8282_v5  ;;  %8290 = vmatmul.msk.f32.vlgmr.msrb.gmra.mxu3 %vm4066_vm14, %v8282_v5  ;;  %v7279_v13 = vsel %vm7271_vm7, %v7270_v48, %v7258_v0  ;;  %v5408_v50 = vadd.f32 %v16038_v37, %v5262_v47  ;;  %v5808_v17 = vadd.f32 %v14700_v51, %v5699_v27  ;;  %v7281_v5 = vperm.slane %v14387_v26, 7  ;;  %v8426_v9 = vld [vmem:[%s14975_s1 + $0x78] ss:$0 sm:$0xff] }
 0xa08   :  { %v7291_v16 = vmul.f32 %v7283_v7, %v7279_v13  ;;  %v7287_v15 = vmul.f32 %v7283_v7, %v7278_v56 }
 0xa09   :  { %v6085_v24 = vpop.f32.mrf.mxu3  ;;  %v5554_v58 = vadd.f32 %v14500_v41, %v5408_v50  ;;  %v5949_v55 = vadd.f32 %v5873_v8, %v5808_v17 }
 0xa0a   :  { %v6094_v19 = vadd.f32 %v6085_v24, %v5948_v35  ;;  %7381 = vmatpush.msra.mxu3 %v7291_v16  ;;  %v6065_v44 = vpop.f32.mrf.mxu2  ;;  %v8428_v24 = vld [vmem:[%s14975_s1 + $0x68] ss:$0 sm:$0xff] }
 0xa0b   :  { %v6019_v62 = vpop.f32.mrf.mxu0  ;;  %8287 = vmatmul.msk.f32.gmra.mxu1 %vm4066_vm14, %v8283_v4  ;;  %v14860_v51 = vadd.f32 %v6065_v44, %v14794_v32  ;;  %v5695_v60 = vadd.f32 %v14581_v45, %v5554_v58 }
 0xa0c   :  { %v6095_v1 = vadd.f32 %v6019_v62, %v5949_v55  ;;  %7382 = vmatpush.msra.mxu3 %v7287_v15 }
 0xa0d   :  { %v7264_v53 = vpop.permute.xlu0 %7263  ;;  %v5804_v41 = vadd.f32 %v14656_v59, %v5695_v60  ;;  %v7260_v59 = vpop.permute.xlu2 %7259 }
 0xa0e   :  { %8285 = vmatmul.msk.f32.gmra.mxu0 %vm4066_vm14, %v8283_v4  ;;  %v7266_v8 = vpop.permute.xlu1 %7265  ;;  %v7272_v32 = vsel %vm7271_vm7, %v7264_v53, %v14798_v2  ;;  %v7274_v14 = vsel %vm7271_vm7, %v7260_v59, %v7264_v53 }
 0xa0f   :  { %8289 = vmatmul.msk.f32.gmra.mxu2 %vm4066_vm14, %v8283_v4  ;;  %8291 = vmatmul.msk.f32.gmra.mxu3 %vm4066_vm14, %v8283_v4  ;;  %v7273_v45 = vsel %vm7271_vm7, %v7266_v8, %v7270_v48  ;;  %v5945_v23 = vadd.f32 %v14757_v49, %v5804_v41  ;;  %v7286_v30 = vmul.f32 %v7282_v10, %v7272_v32  ;;  %v8427_v4 = vld [vmem:[%s14975_s1 + $0x60] ss:$0 sm:$0xff] }
 0xa10   :  { %v7290_v40 = vmul.f32 %v7282_v10, %v7273_v45  ;;  %v7276_v49 = vsel %vm7271_vm7, %v7256_v38, %v7260_v59  ;;  %v7285_v12 = vmul.f32 %v7281_v5, %v7274_v14 }
 0xa11   :  { %v6088_v11 = vpop.f32.mrf.mxu3  ;;  %v6091_v3 = vadd.f32 %v6016_v25, %v5945_v23  ;;  %v7284_v25 = vmul.f32 %v7280_v20, %v7276_v49  ;;  %v8303_v49 = vld [vmem:[%s14982_s8 + $0x188] sm:$0xff] }
 0xa12   :  { %v6098_v6 = vadd.f32 %v6088_v11, %v5952_v29  ;;  %7358 = vmatpush.msra.mxu2 %v7290_v40 }
 0xa13   :  { %v6162_v46 = vpop.f32.mrf.mxu0 }
 0xa14   :  { %v6237_v63 = vadd.f32 %v6162_v46, %v6091_v3  ;;  %7359 = vmatpush.msra.mxu2 %v7286_v30 }
 0xa15   :  { %v7404_v2 = vpop.permute.xlu0 %7403  ;;  %v14890_v7 = vpop.permute.xlu2 %7401 }
 0xa16   :  { %v7262_v22 = vpop.permute.xlu1 %7261 }
 0xa17   :  { %8298 = vmatmul.msk.f32.vlgmr.msra.gmra.mxu2 %vm4066_vm14, %v8292_v28  ;;  %8300 = vmatmul.msk.f32.vlgmr.msra.gmra.mxu3 %vm4066_vm14, %v8292_v28  ;;  %v7275_v18 = vsel %vm7271_vm7, %v7262_v22, %v7266_v8  ;;  %v7277_v36 = vsel %vm7271_vm7, %v7258_v0, %v7262_v22 }
 0xa18   :  { %v7288_v39 = vmul.f32 %v7280_v20, %v7277_v36  ;;  %v7289_v54 = vmul.f32 %v7281_v5, %v7275_v18  ;;  %v6208_v29 = vpop.f32.mrf.mxu2 }
 0xa19   :  { %v6239_v31 = vadd.f32 %v6208_v29, %v14830_v33  ;;  %v6231_v26 = vpop.f32.mrf.mxu3  ;;  %v8425_v33 = vld [vmem:[%s14975_s1 + $0x70] ss:$0 sm:$0xff] }
 0xa1a   :  { %v6240_v34 = vadd.f32 %v6231_v26, %v6094_v19  ;;  %7312 = vmatpush.msra.mxu0 %v7288_v39  ;;  %7335 = vmatpush.msra.mxu1 %v7289_v54 }
 0xa1b   :  { %v6165_v57 = vpop.f32.mrf.mxu0 }
 0xa1c   :  { %v6241_v38 = vadd.f32 %v6165_v57, %v6095_v1  ;;  %7313 = vmatpush.msra.mxu0 %v7284_v25  ;;  %7336 = vmatpush.msra.mxu1 %v7285_v12 }
 0xa1d   :  { %v6467_v47 = vpop.f32.mrf.mxu1  ;;  %8294 = vmatmul.msk.f32.vlgmr.msra.gmra.mxu0 %vm4066_vm14, %v8292_v28  ;;  %8296 = vmatmul.msk.f32.vlgmr.msra.gmra.mxu1 %vm4066_vm14, %v8292_v28  ;;  %v7412_v27 = vpop.permute.xlu0 %7411 }
 0xa1e   :  { %v6520_v21 = vadd.f32 %v6467_v47, %v14807_v43  ;;  %v7416_v48 = vpop.permute.xlu1 %7415  ;;  %v7410_v19 = vpop.permute.xlu2 %7409 }
 0xa1f   :  { %8299 = vmatmul.msk.f32.gmra.mxu2 %vm4066_vm14, %v8293_v52  ;;  %8301 = vmatmul.msk.f32.gmra.mxu3 %vm4066_vm14, %v8293_v52  ;;  %v7419_v0 = vsel %vm7417_vm12, %v7412_v27, %v7416_v48  ;;  %v7425_v56 = vsel %vm7417_vm12, %v7416_v48, %v7404_v2 }
 0xa20   :  { %v7436_v13 = vmul.f32 %v8425_v33, %v7419_v0  ;;  %v7437_v37 = vmul.f32 %v8426_v9, %v7425_v56 }
 0xa22   :  { %v6211_v50 = vpop.f32.mrf.mxu2  ;;  %v6234_v17 = vpop.f32.mrf.mxu3  ;;  %7504 = vmatpush.msrb.mxu2 %v7436_v13  ;;  %7527 = vmatpush.msrb.mxu3 %v7437_v37 }
 0xa23   :  { %v6243_v35 = vadd.f32 %v6211_v50, %v14860_v51  ;;  %v6244_v43 = vadd.f32 %v6234_v17, %v6098_v6  ;;  %v6303_v16 = vpop.f32.mrf.mxu0 }
 0xa24   :  { %v6378_v58 = vadd.f32 %v6303_v16, %v6237_v63 }
 0xa25   :  { %v6470_v55 = vpop.f32.mrf.mxu1  ;;  %8295 = vmatmul.msk.f32.gmra.mxu0 %vm4066_vm14, %v8293_v52  ;;  %8297 = vmatmul.msk.f32.gmra.mxu1 %vm4066_vm14, %v8293_v52  ;;  %v7408_v15 = vpop.permute.xlu0 %7407 }
 0xa26   :  { %v6524_v44 = vadd.f32 %v6470_v55, %v14842_v42  ;;  %v7421_v62 = vsel %vm7417_vm12, %v7408_v15, %v7412_v27  ;;  %v7423_v51 = vsel %vm7417_vm12, %v7404_v2, %v7408_v15  ;;  %v7414_v60 = vpop.permute.xlu1 %7413  ;;  %v8302_v42 = vld [vmem:[%s14982_s8 + $0x180] sm:$0xff] }
 0xa27   :  { %v7434_v1 = vmul.f32 %v8427_v4, %v7423_v51  ;;  %v7435_v10 = vmul.f32 %v8428_v24, %v7421_v62  ;;  %v7418_v53 = vsel %vm7417_vm12, %v7410_v19, %v7414_v60  ;;  %v7424_v41 = vsel %vm7417_vm12, %v7414_v60, %v14890_v7 }
 0xa28   :  { %v7432_v8 = vmul.f32 %v8425_v33, %v7418_v53  ;;  %v7433_v32 = vmul.f32 %v8426_v9, %v7424_v41 }
 0xa29   :  { %7458 = vmatpush.msrb.mxu0 %v7434_v1  ;;  %7481 = vmatpush.msrb.mxu1 %v7435_v10 }
 0xa2a   :  { %v6349_v45 = vpop.f32.mrf.mxu2  ;;  %v6372_v23 = vpop.f32.mrf.mxu3  ;;  %7505 = vmatpush.msrb.mxu2 %v7432_v8  ;;  %7528 = vmatpush.msrb.mxu3 %v7433_v32 }
 0xa2b   :  { %v6380_v40 = vadd.f32 %v6349_v45, %v6239_v31  ;;  %v6381_v11 = vadd.f32 %v6372_v23, %v6240_v34  ;;  %v6306_v3 = vpop.f32.mrf.mxu0  ;;  %8308 = vmatmul.msk.f32.vlgmr.msrb.gmra.mxu2 %vm4066_vm14, %v8302_v42  ;;  %8310 = vmatmul.msk.f32.vlgmr.msrb.gmra.mxu3 %vm4066_vm14, %v8302_v42 }
 0xa2c   :  { %v6382_v59 = vadd.f32 %v6306_v3, %v6241_v38 }
 0xa2d   :  { %v6608_v30 = vpop.f32.mrf.mxu1 }
 0xa2e   :  { %v6661_v6 = vadd.f32 %v6608_v30, %v6520_v21  ;;  %v7406_v46 = vpop.permute.xlu1 %7405 }
 0xa2f   :  { %v7420_v63 = vsel %vm7417_vm12, %v7406_v46, %v7410_v19  ;;  %v7422_v28 = vsel %vm7417_vm12, %v14890_v7, %v7406_v46 }
 0xa30   :  { %v7430_v2 = vmul.f32 %v8427_v4, %v7422_v28  ;;  %v7431_v20 = vmul.f32 %v8428_v24, %v7420_v63 }
 0xa32   :  { %v6352_v5 = vpop.f32.mrf.mxu2  ;;  %v6375_v22 = vpop.f32.mrf.mxu3  ;;  %7459 = vmatpush.msrb.mxu0 %v7430_v2  ;;  %7482 = vmatpush.msrb.mxu1 %v7431_v20 }
 0xa33   :  { %v6384_v14 = vadd.f32 %v6352_v5, %v6243_v35  ;;  %v6385_v18 = vadd.f32 %v6375_v22, %v6244_v43  ;;  %v6444_v36 = vpop.f32.mrf.mxu0  ;;  %8304 = vmatmul.msk.f32.vlgmr.msrb.gmra.mxu0 %vm4066_vm14, %v8302_v42  ;;  %8306 = vmatmul.msk.f32.vlgmr.msrb.gmra.mxu1 %vm4066_vm14, %v8302_v42 }
 0xa34   :  { %v6519_v39 = vadd.f32 %v6444_v36, %v6378_v58  ;;  %8309 = vmatmul.msk.f32.gmra.mxu2 %vm4066_vm14, %v8303_v49  ;;  %8311 = vmatmul.msk.f32.gmra.mxu3 %vm4066_vm14, %v8303_v49 }
 0xa35   :  { %v6611_v61 = vpop.f32.mrf.mxu1 }
 0xa36   :  { %v6665_v54 = vadd.f32 %v6611_v61, %v6524_v44 }
 0xa3a   :  { %v6490_v29 = vpop.f32.mrf.mxu2  ;;  %v6513_v31 = vpop.f32.mrf.mxu3 }
 0xa3b   :  { %v6521_v26 = vadd.f32 %v6490_v29, %v6380_v40  ;;  %v6522_v25 = vadd.f32 %v6513_v31, %v6381_v11  ;;  %v6447_v12 = vpop.f32.mrf.mxu0  ;;  %8305 = vmatmul.msk.f32.gmra.mxu0 %vm4066_vm14, %v8303_v49  ;;  %8307 = vmatmul.msk.f32.gmra.mxu1 %vm4066_vm14, %v8303_v49 }
 0xa3c   :  { %v6523_v34 = vadd.f32 %v6447_v12, %v6382_v59 }
 0xa3d   :  { %v6754_v57 = vpop.f32.mrf.mxu1 }
 0xa3e   :  { %v6807_v7 = vadd.f32 %v6754_v57, %v6661_v6  ;;  %v8542_v57 = vmov 5  }
 0xa3f   :  { %8423 = vset.pattern.permute.xlu2 %v8542_v57  ;;  %8424 = vset.pattern.permute.xlu0 %v8542_v57  ;;  %v16040_v57 = vld [vmem:[#allocation43_spill] sm:$0xff] }
 0xa42   :  { %v6493_v38 = vpop.f32.mrf.mxu2  ;;  %v6516_v52 = vpop.f32.mrf.mxu3 }
 0xa43   :  { %v6525_v33 = vadd.f32 %v6493_v38, %v6384_v14  ;;  %v6526_v9 = vadd.f32 %v6516_v52, %v6385_v18  ;;  %v6585_v47 = vpop.f32.mrf.mxu0 }
 0xa44   :  { %v6660_v27 = vadd.f32 %v6585_v47, %v6519_v39 }
 0xa45   :  { %v6757_v21 = vpop.f32.mrf.mxu1 }
 0xa46   :  { %v14949_v48 = vadd.f32 %v6757_v21, %v6665_v54 }
 0xa4a   :  { %v6631_v0 = vpop.f32.mrf.mxu2  ;;  %v6654_v56 = vpop.f32.mrf.mxu3 }
 0xa4b   :  { %v6662_v13 = vadd.f32 %v6631_v0, %v6521_v26  ;;  %v6663_v37 = vadd.f32 %v6654_v56, %v6522_v25  ;;  %v6588_v50 = vpop.f32.mrf.mxu0 }
 0xa4c   :  { %v6664_v17 = vadd.f32 %v6588_v50, %v6523_v34 }
 0xa52   :  { %v6634_v35 = vpop.f32.mrf.mxu2  ;;  %v6657_v43 = vpop.f32.mrf.mxu3 }
 0xa53   :  { %v6666_v16 = vadd.f32 %v6634_v35, %v6525_v33  ;;  %v6667_v4 = vadd.f32 %v6657_v43, %v6526_v9  ;;  %v6731_v24 = vpop.f32.mrf.mxu0 }
 0xa54   :  { %v6806_v58 = vadd.f32 %v6731_v24, %v6660_v27 }
 0xa5a   :  { %v6777_v55 = vpop.f32.mrf.mxu2  ;;  %v6800_v15 = vpop.f32.mrf.mxu3 }
 0xa5b   :  { %v6808_v19 = vadd.f32 %v6777_v55, %v6662_v13  ;;  %v6809_v44 = vadd.f32 %v6800_v15, %v6663_v37  ;;  %v6734_v62 = vpop.f32.mrf.mxu0  ;;  %v6900_v51 = vpop.f32.mrf.mxu1 }
 0xa5c   :  { %v6810_v60 = vadd.f32 %v6734_v62, %v6664_v17  ;;  %v6953_v1 = vadd.f32 %v6900_v51, %v6807_v7  ;;  %v8511_v7 = vld [vmem:[%s14976_s2] sm:$0xff] }
 0xa5d   :  { %7546 = vperm.xlu2 %8423, %v8511_v7  }
 0xa62   :  { %v6780_v10 = vpop.f32.mrf.mxu2  ;;  %v6803_v53 = vpop.f32.mrf.mxu3 }
 0xa63   :  { %v6812_v41 = vadd.f32 %v6780_v10, %v6666_v16  ;;  %v6813_v8 = vadd.f32 %v6803_v53, %v6667_v4  ;;  %v6877_v32 = vpop.f32.mrf.mxu0  ;;  %v6903_v59 = vpop.f32.mrf.mxu1 }
 0xa64   :  { %v6952_v42 = vadd.f32 %v6877_v32, %v6806_v58  ;;  %v6957_v37 = vadd.f32 %v6903_v59, %v14949_v48 }
 0xa6a   :  { %v6923_v45 = vpop.f32.mrf.mxu2  ;;  %v6946_v23 = vpop.f32.mrf.mxu3 }
 0xa6b   :  { %v6954_v40 = vadd.f32 %v6923_v45, %v6808_v19  ;;  %v6955_v11 = vadd.f32 %v6946_v23, %v6809_v44  ;;  %v6880_v3 = vpop.f32.mrf.mxu0  ;;  %v7046_v63 = vpop.f32.mrf.mxu1 }
 0xa6c   :  { %v6956_v50 = vadd.f32 %v6880_v3, %v6810_v60  ;;  %v7099_v15 = vadd.f32 %v7046_v63, %v6953_v1 }
 0xa72   :  { %v6926_v30 = vpop.f32.mrf.mxu2  ;;  %v6949_v6 = vpop.f32.mrf.mxu3 }
 0xa73   :  { %v7023_v46 = vpop.f32.mrf.mxu0  ;;  %v7049_v22 = vpop.f32.mrf.mxu1  ;;  %v6958_v21 = vadd.f32 %v6926_v30, %v6812_v41  ;;  %v6959_v0 = vadd.f32 %v6949_v6, %v6813_v8 }
 0xa74   :  { %v7103_v43 = vadd.f32 %v7049_v22, %v6957_v37  ;;  %v7098_v19 = vadd.f32 %v7023_v46, %v6952_v42 }
 0xa7a   :  { %v7069_v28 = vpop.f32.mrf.mxu2  ;;  %v7092_v2 = vpop.f32.mrf.mxu3 }
 0xa7b   :  { %v7026_v20 = vpop.f32.mrf.mxu0  ;;  %v7100_v4 = vadd.f32 %v7069_v28, %v6954_v40  ;;  %v7101_v24 = vadd.f32 %v7092_v2, %v6955_v11 }
 0xa7c   :  { %v7102_v16 = vadd.f32 %v7026_v20, %v6956_v50  ;;  %v7544_v20 = vld [vmem:[%s14983_s9] sm:$0xf] }
 0xa80   :  { %v7192_v36 = vpop.f32.mrf.mxu1 }
 0xa81   :  { %v7245_v8 = vadd.f32 %v7192_v36, %v7099_v15 }
 0xa82   :  { %v7072_v49 = vpop.f32.mrf.mxu2  ;;  %v7095_v5 = vpop.f32.mrf.mxu3 }
 0xa83   :  { %v7169_v39 = vpop.f32.mrf.mxu0  ;;  %v7104_v17 = vadd.f32 %v7072_v49, %v6958_v21  ;;  %v7105_v35 = vadd.f32 %v7095_v5, %v6959_v0  ;;  %v16042_v21 = vld [vmem:[#allocation116_spill] sm:$0xff] }
 0xa84   :  { %v7244_v32 = vadd.f32 %v7169_v39, %v7098_v19 }
 0xa88   :  { %v7195_v29 = vpop.f32.mrf.mxu1 }
 0xa89   :  { %v7249_v44 = vadd.f32 %v7195_v29, %v7103_v43 }
 0xa8a   :  { %v7215_v14 = vpop.f32.mrf.mxu2  ;;  %v7238_v18 = vpop.f32.mrf.mxu3 }
 0xa8b   :  { %v7172_v31 = vpop.f32.mrf.mxu0  ;;  %v7246_v51 = vadd.f32 %v7215_v14, %v7100_v4  ;;  %v7247_v10 = vadd.f32 %v7238_v18, %v7101_v24 }
 0xa8c   :  { %v7248_v62 = vadd.f32 %v7172_v31, %v7102_v16 }
 0xa92   :  { %v7218_v61 = vpop.f32.mrf.mxu2  ;;  %v7241_v54 = vpop.f32.mrf.mxu3 }
 0xa93   :  { %v7250_v58 = vadd.f32 %v7218_v61, %v7104_v17  ;;  %v7251_v55 = vadd.f32 %v7241_v54, %v7105_v35 }
 0xa9a   :  { %v7361_v26 = vpop.f32.mrf.mxu2  ;;  %v7384_v25 = vpop.f32.mrf.mxu3 }
 0xa9b   :  { %v7315_v12 = vpop.f32.mrf.mxu0  ;;  %v7338_v34 = vpop.f32.mrf.mxu1  ;;  %v7392_v3 = vadd.f32 %v7361_v26, %v7246_v51  ;;  %v7393_v59 = vadd.f32 %v7384_v25, %v7247_v10  ;;  %v16039_v26 = vld [vmem:[#allocation67_spill] sm:$0xff] }
 0xa9c   :  { %v7390_v1 = vadd.f32 %v7315_v12, %v7244_v32  ;;  %v7391_v63 = vadd.f32 %v7338_v34, %v7245_v8 }
 0xaa2   :  { %v7364_v38 = vpop.f32.mrf.mxu2  ;;  %v7387_v52 = vpop.f32.mrf.mxu3 }
 0xaa3   :  { %v7318_v33 = vpop.f32.mrf.mxu0  ;;  %v7341_v9 = vpop.f32.mrf.mxu1  ;;  %v7396_v53 = vadd.f32 %v7364_v38, %v7250_v58  ;;  %v7397_v41 = vadd.f32 %v7387_v52, %v7251_v55 }
 0xaa4   :  { %v7394_v48 = vadd.f32 %v7318_v33, %v7248_v62  ;;  %v7395_v60 = vadd.f32 %v7341_v9, %v7249_v44 }
 0xaae   :  { %v7507_v47 = vpop.f32.mrf.mxu2  ;;  %v7530_v27 = vpop.f32.mrf.mxu3 }
 0xaaf   :  { %v7538_v28 = vadd.f32 %v7507_v47, %v7392_v3  ;;  %v7539_v2 = vadd.f32 %v7530_v27, %v7393_v59  ;;  %v16041_v47 = vld [vmem:[#allocation39_spill] sm:$0xff] }
 0xab0   :  { %v7461_v56 = vpop.f32.mrf.mxu0  ;;  %v7484_v13 = vpop.f32.mrf.mxu1 }
 0xab1   :  { %v7536_v49 = vadd.f32 %v7461_v56, %v7390_v1  ;;  %v7537_v5 = vadd.f32 %v7484_v13, %v7391_v63 }
 0xab7   :  { %v7510_v45 = vpop.f32.mrf.mxu2  ;;  %v7533_v23 = vpop.f32.mrf.mxu3 }
 0xab8   :  { %v7542_v40 = vadd.f32 %v7510_v45, %v7396_v53  ;;  %v7543_v11 = vadd.f32 %v7533_v23, %v7397_v41  ;;  %v7464_v30 = vpop.f32.mrf.mxu0  ;;  %v7487_v6 = vpop.f32.mrf.mxu1 }
 0xab9   :  { %v7540_v42 = vadd.f32 %v7464_v30, %v7394_v48  ;;  %v7541_v46 = vadd.f32 %v7487_v6, %v7395_v60  ;;  %v7547_v22 = vpop.permute.xlu2 %7546 }
 0xaba   :  { %7606 = vmatpush.msra.mxu2 %v7542_v40  ;;  %7626 = vmatpush.msra.mxu3 %v7543_v11 }
 0xabb   :  { %7566 = vmatpush.msra.mxu0 %v7540_v42  ;;  %7586 = vmatpush.msra.mxu1 %v7541_v46 }
 0xabc   :  { %7607 = vmatpush.msra.mxu2 %v7538_v28  ;;  %7627 = vmatpush.msra.mxu3 %v7539_v2 }
 0xabd   :  { %8314 = vmatmul.msk.f32.vlgmr.msra.gmra.mxu2 %vm4066_vm14, %v7544_v20  ;;  %8315 = vmatmul.msk.f32.vlgmr.msra.gmra.mxu3 %vm4066_vm14, %v7544_v20 }
 0xabe   :  { %7567 = vmatpush.msra.mxu0 %v7536_v49  ;;  %7587 = vmatpush.msra.mxu1 %v7537_v5 }
 0xabf   :  { %8312 = vmatmul.msk.f32.vlgmr.msra.gmra.mxu0 %vm4066_vm14, %v7544_v20  ;;  %8313 = vmatmul.msk.f32.vlgmr.msra.gmra.mxu1 %vm4066_vm14, %v7544_v20 }
 0xb3c   :  { %v7569_v14 = vpop.f32.mrf.mxu0  ;;  %v7589_v18 = vpop.f32.mrf.mxu1 }
 0xb3d   :  { %v7570_v36 = vadd.f32 %v7569_v14, %v7547_v22  ;;  %v7590_v39 = vadd.f32 %v7589_v18, %v7547_v22 }
 0xb3f   :  { %v7632_v61 = vadd.f32 1.0, %v7570_v36  ;;  %v7633_v54 = vadd.f32 1.0, %v7590_v39 }
 0xb40   :  { %v7609_v29 = vpop.f32.mrf.mxu2  ;;  %v7629_v31 = vpop.f32.mrf.mxu3 }
 0xb41   :  { %v7637_v25 = vmul.f32 %v7633_v54, %v16039_v26  ;;  %v7610_v12 = vadd.f32 %v7609_v29, %v7547_v22  ;;  %v7630_v34 = vadd.f32 %v7629_v31, %v7547_v22  ;;  %v7636_v7 = vmul.f32 %v7632_v61, %v16040_v57 }
 0xb43   :  { %v7644_v38 = vrot.slane %v7637_v25, 4  ;;  %v7634_v52 = vadd.f32 1.0, %v7610_v12  ;;  %v7635_v33 = vadd.f32 1.0, %v7630_v34 }
 0xb45   :  { %v7646_v9 = vsel %vm3758_vm9, %v7636_v7, %v7644_v38  ;;  %v7639_v27 = vmul.f32 %v7635_v33, %v16041_v47  ;;  %v7638_v0 = vmul.f32 %v7634_v52, %v16042_v21 }
 0xb46   :  { %7650 = vst [vmem:[%s14984_s10] sm:$0xff] %v7646_v9 }
 0xb47   :  { %v7645_v56 = vrot.slane %v7639_v27, 4 }
 0xb49   :  { %v7647_v13 = vsel %vm3758_vm9, %v7638_v0, %v7645_v56 }
 0xb4a   :  { %7651 = vst [vmem:[%s14984_s10 + $0x8] sm:$0xff] %v7647_v13 }

</bundles_post_ra>
